<compile_context>
chip_gen: v5e
topology: v5e:2x2
jax: 0.10.0
libtpu: 0.0.40
codegen_flags: <defaults>
</compile_context>

<pallas_src>
import functools

import jax
import jax.numpy as jnp
from jax import lax
from jax.experimental import pallas as pl
from jax.experimental.pallas import tpu as pltpu

HALO = 6  # 3 chained 5x5 stride-1 max pools => 6-row halo per side


def _silu(z):
    return z * jax.nn.sigmoid(z)


# ---------------------------------------------------------------------------
# Kernel: one (batch, H-tile) per grid step.
#   x_hbm   : (N*(H+12)*W, C1) bf16 in HBM (row-flattened, 6-row zero-padded)
#   o_ref   : (TH*W, C2) f32 output block (also used as the cv2 accumulator)
#   xs_ref  : VMEM ((TH+12)*W, C1) bf16 input slab
#   frame_ref: VMEM (TH+12, W+4, c_) bf16 pool frame; data in cols [0,W),
#              -inf border in cols [W, W+4) (right side only).
# ---------------------------------------------------------------------------
def sppf_kernel(x_hbm, w1_ref, b1_ref, w2_ref, b2_ref, o_ref,
                xs_ref, frame_ref, dma_sem, *, rows_per_img):
    th_h, w_pad, c_ = frame_ref.shape            # (TH+12, W+4, c_)
    w = w_pad - 4
    th = th_h - 2 * HALO
    pool_dt = frame_ref.dtype                    # bf16

    n = pl.program_id(0)
    t = pl.program_id(1)

    # ---- 1. Fetch the halo'd slab: padded-image rows [t*TH, t*TH+TH+12). ---
    slab_rows = th_h * w
    start = n * rows_per_img + t * (th * w)
    if rows_per_img % 8 == 0 and (th * w) % 8 == 0:
        start = pl.multiple_of(start, 8)
    cp = pltpu.make_async_copy(x_hbm.at[pl.ds(start, slab_rows)], xs_ref, dma_sem)
    cp.start()
    cp.wait()

    # ---- 2. cv1: 1x1 conv (BN scale pre-folded into w1) + bias + SiLU. -----
    z1 = jnp.dot(xs_ref[...], w1_ref[...], preferred_element_type=jnp.float32)
    x1 = _silu(z1 + b1_ref[...]).astype(pool_dt)          # ((TH+12)*W, c_) bf16

    # ---- 3. cv2 branch 0 (the un-pooled x1), accumulated straight into the
    #         f32 output block (center TH rows are always in-image). ----------
    o_ref[...] = jnp.dot(x1[HALO * w:(HALO + th) * w, :], w2_ref[0],
                         preferred_element_type=jnp.float32)

    # ---- 4. Pool frame setup.  The 4 right-edge -inf columns implement the
    #         W-direction padding for the rolled windows.  They are rewritten
    #         every step (cheap, one small aligned store) because scratch is
    #         per-core and a "first step" guard is unsafe under megacore
    #         splitting of the parallel axes. -------------------------------
    frame_ref[:, pl.ds(w, 4), :] = jnp.full((th_h, 4, c_), -jnp.inf, pool_dt)
    frame_ref[:, pl.ds(0, w), :] = x1.reshape(th_h, w, c_)

    # Out-of-image halo rows must be -inf for the pools (PyTorch MaxPool2d
    # pads with -inf).  Only the first / last H-tile have such rows.
    @pl.when(t == 0)
    def _():
        frame_ref[pl.ds(0, HALO), pl.ds(0, w), :] = jnp.full(
            (HALO, w, c_), -jnp.inf, pool_dt)

    @pl.when(t == pl.num_programs(1) - 1)
    def _():
        frame_ref[pl.ds(th + HALO, HALO), pl.ds(0, w), :] = jnp.full(
            (HALO, w, c_), -jnp.inf, pool_dt)

    # ---- 5. Three chained 5x5 stride-1 max pools, shrinking the computed
    #         region by 2 rows per side each time, with the cv2 contribution
    #         of each branch accumulated as soon as it is produced. ----------
    for k in range(1, 4):
        rows_k = th_h - 4 * k                # rows needed by later stages
        base = 2 * (k - 1)

        # H pass: 5 leading-dim-shifted loads from the bf16 frame.
        hp = frame_ref[pl.ds(base, rows_k), :, :]
        for d in range(1, 5):
            hp = jnp.maximum(hp, frame_ref[pl.ds(base + d, rows_k), :, :])

        # W pass: XLU sublane rolls (shifts {+-1, +-2} via modular shifts),
        # the wrapped-in -inf border columns provide the left/right padding.
        # Rolls/max are done in f32 (v5e-safe); all VMEM traffic stays bf16.
        hpf = hp.astype(jnp.float32)
        wp = hpf
        for s in (1, 2, w_pad - 2, w_pad - 1):
            wp = jnp.maximum(wp, pltpu.roll(hpf, shift=s, axis=1))
        cur = wp[:, 0:w, :].astype(pool_dt)              # (rows_k, W, c_) bf16

        if k < 3:                                        # feed the next pool
            frame_ref[pl.ds(2 * k, rows_k), pl.ds(0, w), :] = cur

        centre = cur[HALO - 2 * k: HALO - 2 * k + th]    # (TH, W, c_)
        o_ref[...] += jnp.dot(centre.reshape(th * w, c_), w2_ref[k],
                              preferred_element_type=jnp.float32)

    # ---- 6. cv2 bias (BN folded) + SiLU, in place on the output block. -----
    o_ref[...] = _silu(o_ref[...] + b2_ref[...])


# ---------------------------------------------------------------------------
# Wrapper
# ---------------------------------------------------------------------------
def sppf_pallas(x_nchw, w1f, b1f, w2f, b2f, *, tile_h=None):
    """x_nchw: (N, C1, H, W) f32. Returns (N, C2, H, W) f32."""
    x = jnp.transpose(x_nchw, (0, 2, 3, 1)).astype(jnp.bfloat16)   # NHWC bf16
    N, H, W, C1 = x.shape
    c_ = w1f.shape[1]
    C2 = w2f.shape[2]

    if tile_h is None:   # largest divisor of H not exceeding 64 rows
        tile_h = max(d for d in range(1, H + 1) if H % d == 0 and d <= 64)
    assert H % tile_h == 0, "H must be divisible by tile_h"
    assert tile_h >= HALO or H // tile_h == 1, "tile_h must be >= 6 unless single-tile"
    n_t = H // tile_h
    th_h = tile_h + 2 * HALO

    # 6-row zero halo top/bottom (value irrelevant: those rows are forced to
    # -inf in-kernel before pooling), then flatten rows for contiguous DMA.
    x_pad = jnp.pad(x, ((0, 0), (HALO, HALO), (0, 0), (0, 0)))
    rows_per_img = (H + 2 * HALO) * W
    x_flat = x_pad.reshape(N * rows_per_img, C1)

    # Per-tile VMEM footprint -> explicit scoped-VMEM limit (v5e default 16MiB).
    est = (th_h * W * C1 * 2                      # input slab (bf16)
           + th_h * (W + 4) * c_ * 2              # pool frame (bf16)
           + 2 * tile_h * W * C2 * 4              # double-buffered out block
           + 2 * 2 * (C1 * c_ + 4 * c_ * C2)      # double-buffered bf16 weights
           + 2 * 4 * (c_ + C2)                    # biases
           + 4 * th_h * W * c_ * 4)               # headroom for live values
    vmem_limit = int(min(max(2 * est, 16 * 2 ** 20), 100 * 2 ** 20))

    kernel = functools.partial(sppf_kernel, rows_per_img=rows_per_img)

    out_flat = pl.pallas_call(
        kernel,
        out_shape=jax.ShapeDtypeStruct((N, H * W, C2), jnp.float32),
        grid=(N, n_t),
        in_specs=[
            pl.BlockSpec(memory_space=pl.ANY),                    # x (HBM)
            pl.BlockSpec((C1, c_), lambda n, t: (0, 0)),          # w1 (BN folded)
            pl.BlockSpec((1, c_), lambda n, t: (0, 0)),           # b1
            pl.BlockSpec((4, c_, C2), lambda n, t: (0, 0, 0)),    # w2 (split per branch)
            pl.BlockSpec((1, C2), lambda n, t: (0, 0)),           # b2
        ],
        out_specs=pl.BlockSpec((None, tile_h * W, C2), lambda n, t: (n, t, 0)),
        scratch_shapes=[
            pltpu.VMEM((th_h * W, C1), jnp.bfloat16),             # input slab
            pltpu.VMEM((th_h, W + 4, c_), jnp.bfloat16),          # pool frame
            pltpu.SemaphoreType.DMA,
        ],
        compiler_params=pltpu.CompilerParams(
            dimension_semantics=("parallel", "parallel"),
            vmem_limit_bytes=vmem_limit),
    )(x_flat, w1f, b1f, w2f, b2f)

    out = out_flat.reshape(N, H, W, C2)
    return jnp.transpose(out, (0, 3, 1, 2))                        # NHWC -> NCHW


# ---------------------------------------------------------------------------
# Pure-JAX reference (module semantics: conv -> BN -> SiLU, f32 throughout)
# ---------------------------------------------------------------------------
def sppf_ref(x_nchw, w1, s1, b1, w2, s2, b2):
    x = jnp.transpose(x_nchw, (0, 2, 3, 1))
    z1 = jnp.einsum("nhwc,cd->nhwd", x, w1) * s1 + b1
    x1 = _silu(z1)

    def mp(a):
        return lax.reduce_window(a, -jnp.inf, lax.max,
                                 (1, 5, 5, 1), (1, 1, 1, 1),
                                 [(0, 0), (2, 2), (2, 2), (0, 0)])

    y1 = mp(x1)
    y2 = mp(y1)
    y3 = mp(y2)
    cat = jnp.concatenate([x1, y1, y2, y3], axis=-1)
    z2 = jnp.einsum("nhwc,cd->nhwd", cat, w2) * s2 + b2
    return jnp.transpose(_silu(z2), (0, 3, 1, 2))


# ---------------------------------------------------------------------------
# Parameter construction + one-time fold of BN into the conv weights.
# ---------------------------------------------------------------------------
def make_params(c1, c2, key):
    """Raw (unfused) parameters matching the PyTorch module (eval-mode BN)."""
    c_ = c1 // 2
    eps = 1e-5
    ks = jax.random.split(key, 10)

    w1 = 0.1 * jax.random.normal(ks[0], (c1, c_), jnp.float32)
    g1 = 1.0 + 0.1 * jax.random.normal(ks[1], (c_,), jnp.float32)
    beta1 = 0.1 * jax.random.normal(ks[2], (c_,), jnp.float32)
    mean1 = 0.1 * jax.random.normal(ks[3], (c_,), jnp.float32)
    var1 = jnp.abs(jax.random.normal(ks[4], (c_,), jnp.float32)) + 0.5
    s1 = g1 / jnp.sqrt(var1 + eps)
    b1 = beta1 - mean1 * s1

    w2 = 0.1 * jax.random.normal(ks[5], (4 * c_, c2), jnp.float32)
    g2 = 1.0 + 0.1 * jax.random.normal(ks[6], (c2,), jnp.float32)
    beta2 = 0.1 * jax.random.normal(ks[7], (c2,), jnp.float32)
    mean2 = 0.1 * jax.random.normal(ks[8], (c2,), jnp.float32)
    var2 = jnp.abs(jax.random.normal(ks[9], (c2,), jnp.float32)) + 0.5
    s2 = g2 / jnp.sqrt(var2 + eps)
    b2 = beta2 - mean2 * s2

    return w1, s1, b1, w2, s2, b2


def fold_params(w1, s1, b1, w2, s2, b2):
    """Fold BN scale into weights, cast to bf16, split w2 into 4 branch blocks."""
    c_ = w1.shape[1]
    c2 = w2.shape[1]
    w1f = (w1 * s1[None, :]).astype(jnp.bfloat16)                 # (C1, c_)
    b1f = b1.reshape(1, c_).astype(jnp.float32)
    w2f = (w2 * s2[None, :]).reshape(4, c_, c2).astype(jnp.bfloat16)
    b2f = b2.reshape(1, c2).astype(jnp.float32)
    return w1f, b1f, w2f, b2f


if __name__ == "__main__":
    N, C1, H, W = 2, 8, 16, 16
    C2 = 8

    key = jax.random.PRNGKey(0)
    k_x, k_p = jax.random.split(key)
    x = jax.random.normal(k_x, (N, C1, H, W), jnp.float32)
    raw = make_params(C1, C2, k_p)
    w1f, b1f, w2f, b2f = fold_params(*raw)

    # tile_h=8 -> 2 H-tiles per image, exercising the halo + masking paths.
    out = sppf_pallas(x, w1f, b1f, w2f, b2f, tile_h=8)
    out = jax.block_until_ready(out)

    ref = jax.block_until_ready(sppf_ref(x, *raw))
    assert out.shape == (N, C2, H, W), out.shape
    # bf16 matmul operands / bf16 pool chain -> loosened tolerance vs. f32 ref.
    assert jnp.allclose(out, ref, atol=5e-2, rtol=5e-2), float(
        jnp.max(jnp.abs(out - ref)))

    print("KERNEL_OK")
</pallas_src>

<mosaic_0001>
module attributes {stable_mosaic.version = 11 : i64} {
  func.func @sppf_kernel(%arg0: i32, %arg1: i32, %arg2: memref<896x8xbf16, #tpu.memory_space<any>>, %arg3: memref<8x4xbf16, #tpu.memory_space<vmem>>, %arg4: memref<1x4xf32, #tpu.memory_space<vmem>>, %arg5: memref<4x4x8xbf16, #tpu.memory_space<vmem>>, %arg6: memref<1x8xf32, #tpu.memory_space<vmem>>, %arg7: memref<1x128x8xf32, #tpu.memory_space<vmem>>, %arg8: memref<320x8xbf16, #tpu.memory_space<vmem>>, %arg9: memref<20x20x4xbf16, #tpu.memory_space<vmem>>, %arg10: memref<!tpu.dma_semaphore, #tpu.memory_space<semaphore_mem>>) attributes {dimension_semantics = [#tpu.dimension_semantics<parallel>, #tpu.dimension_semantics<parallel>], iteration_bounds = array<i64: 2, 2>, scalar_prefetch = 0 : i64, scratch_operands = 3 : i64, tpu.core_type = #tpu.core_type<tc>, window_params = [{}, {pipeline_mode = #tpu.pipeline_mode<synchronous>, transform_indices = @transform_1, window_bounds = array<i64: 8, 4>}, {pipeline_mode = #tpu.pipeline_mode<synchronous>, transform_indices = @transform_2, window_bounds = array<i64: 1, 4>}, {pipeline_mode = #tpu.pipeline_mode<synchronous>, transform_indices = @transform_3, window_bounds = array<i64: 4, 4, 8>}, {pipeline_mode = #tpu.pipeline_mode<synchronous>, transform_indices = @transform_4, window_bounds = array<i64: 1, 8>}, {transform_indices = @transform_5, window_bounds = array<i64: 1, 128, 8>}]} {
    %c448_i32 = arith.constant 448 : i32
    %0 = arith.muli %arg0, %c448_i32 : i32
    %c128_i32 = arith.constant 128 : i32
    %1 = arith.muli %arg1, %c128_i32 : i32
    %2 = arith.addi %0, %1 : i32
    %3 = tpu.assume_multiple %2, 8 : i32
    %c0_i32 = arith.constant 0 : i32
    %4 = tpu.memref_slice %arg2[%3, %c0_i32] : memref<896x8xbf16, #tpu.memory_space<any>> -> memref<320x8xbf16, #tpu.memory_space<any>>
    tpu.enqueue_dma source(%4 : memref<320x8xbf16, #tpu.memory_space<any>>) target(%arg8 : memref<320x8xbf16, #tpu.memory_space<vmem>>) target_semaphore(%arg10 : memref<!tpu.dma_semaphore, #tpu.memory_space<semaphore_mem>>)
    %c0_i32_0 = arith.constant 0 : i32
    %5 = tpu.memref_slice %arg2[%3, %c0_i32_0] : memref<896x8xbf16, #tpu.memory_space<any>> -> memref<320x8xbf16, #tpu.memory_space<any>>
    tpu.wait_dma2 semaphore(%arg10 : memref<!tpu.dma_semaphore, #tpu.memory_space<semaphore_mem>>) src(%5 : memref<320x8xbf16, #tpu.memory_space<any>>) dst(%arg8 : memref<320x8xbf16, #tpu.memory_space<vmem>>)
    %c0 = arith.constant 0 : index
    %c0_1 = arith.constant 0 : index
    %6 = vector.load %arg8[%c0, %c0_1] : memref<320x8xbf16, #tpu.memory_space<vmem>>, vector<320x8xbf16>
    %c0_2 = arith.constant 0 : index
    %c0_3 = arith.constant 0 : index
    %7 = vector.load %arg3[%c0_2, %c0_3] : memref<8x4xbf16, #tpu.memory_space<vmem>>, vector<8x4xbf16>
    %cst = arith.constant dense<0.000000e+00> : vector<320x4xf32>
    %8 = tpu.matmul %6, %7, %cst {dimension_numbers = #tpu.dot_dimension_numbers<[1], [0], [0], [1], [0, 0, 1, 1], [], []>} : vector<320x8xbf16>, vector<8x4xbf16>, vector<320x4xf32> -> vector<320x4xf32>
    %c0_4 = arith.constant 0 : index
    %c0_5 = arith.constant 0 : index
    %9 = vector.load %arg4[%c0_4, %c0_5] : memref<1x4xf32, #tpu.memory_space<vmem>>, vector<1x4xf32>
    %10 = vector.broadcast %9 : vector<1x4xf32> to vector<320x4xf32>
    %11 = arith.addf %8, %10 : vector<320x4xf32>
    %12 = arith.negf %11 : vector<320x4xf32>
    %13 = math.exp %12 : vector<320x4xf32>
    %cst_6 = arith.constant 1.000000e+00 : f32
    %14 = vector.broadcast %cst_6 : f32 to vector<320x4xf32>
    %15 = arith.addf %14, %13 : vector<320x4xf32>
    %16 = arith.divf %14, %15 : vector<320x4xf32>
    %17 = arith.mulf %11, %16 : vector<320x4xf32>
    %18 = arith.truncf %17 : vector<320x4xf32> to vector<320x4xbf16>
    %19 = vector.extract_strided_slice %18 {offsets = [96, 0], sizes = [128, 4], strides = [1, 1]} : vector<320x4xbf16> to vector<128x4xbf16>
    %c0_7 = arith.constant 0 : index
    %c0_8 = arith.constant 0 : index
    %c0_9 = arith.constant 0 : index
    %20 = vector.load %arg5[%c0_7, %c0_8, %c0_9] : memref<4x4x8xbf16, #tpu.memory_space<vmem>>, vector<1x4x8xbf16>
    %21 = vector.shape_cast %20 : vector<1x4x8xbf16> to vector<4x8xbf16>
    %cst_10 = arith.constant dense<0.000000e+00> : vector<128x8xf32>
    %22 = tpu.matmul %19, %21, %cst_10 {dimension_numbers = #tpu.dot_dimension_numbers<[1], [0], [0], [1], [0, 0, 1, 1], [], []>} : vector<128x4xbf16>, vector<4x8xbf16>, vector<128x8xf32> -> vector<128x8xf32>
    %c0_11 = arith.constant 0 : index
    %c0_12 = arith.constant 0 : index
    %c0_13 = arith.constant 0 : index
    %23 = vector.load %arg7[%c0_11, %c0_12, %c0_13] : memref<1x128x8xf32, #tpu.memory_space<vmem>>, vector<1x128x8xf32>
    %24 = vector.shape_cast %23 : vector<1x128x8xf32> to vector<128x8xf32>
    %25 = vector.shape_cast %22 : vector<128x8xf32> to vector<1x128x8xf32>
    tpu.vector_store %arg7[%c0_11, %c0_12, %c0_13], %25 {strides = array<i32>} : memref<1x128x8xf32, #tpu.memory_space<vmem>>, vector<1x128x8xf32>,
    %cst_14 = arith.constant 0xFF80 : bf16
    %26 = vector.broadcast %cst_14 : bf16 to vector<20x4x4xbf16>
    %c0_15 = arith.constant 0 : index
    %c16 = arith.constant 16 : index
    %c0_16 = arith.constant 0 : index
    %27 = vector.load %arg9[%c0_15, %c16, %c0_16] : memref<20x20x4xbf16, #tpu.memory_space<vmem>>, vector<20x4x4xbf16>
    tpu.vector_store %arg9[%c0_15, %c16, %c0_16], %26 {strides = array<i32>} : memref<20x20x4xbf16, #tpu.memory_space<vmem>>, vector<20x4x4xbf16>,
    %28 = vector.shape_cast %18 : vector<320x4xbf16> to vector<20x16x4xbf16>
    %c0_17 = arith.constant 0 : index
    %c0_18 = arith.constant 0 : index
    %c0_19 = arith.constant 0 : index
    %29 = vector.load %arg9[%c0_17, %c0_18, %c0_19] : memref<20x20x4xbf16, #tpu.memory_space<vmem>>, vector<20x16x4xbf16>
    tpu.vector_store %arg9[%c0_17, %c0_18, %c0_19], %28 {strides = array<i32>} : memref<20x20x4xbf16, #tpu.memory_space<vmem>>, vector<20x16x4xbf16>,
    %c0_i32_20 = arith.constant 0 : i32
    %30 = arith.cmpi eq, %arg1, %c0_i32_20 : i32
    %31 = arith.extui %30 : i1 to i32
    %c0_i32_21 = arith.constant 0 : i32
    %32 = arith.cmpi ne, %31, %c0_i32_21 : i32
    scf.if %32 {
      %cst_114 = arith.constant 0xFF80 : bf16
      %144 = vector.broadcast %cst_114 : bf16 to vector<6x16x4xbf16>
      %c0_115 = arith.constant 0 : index
      %c0_116 = arith.constant 0 : index
      %c0_117 = arith.constant 0 : index
      %145 = vector.load %arg9[%c0_115, %c0_116, %c0_117] : memref<20x20x4xbf16, #tpu.memory_space<vmem>>, vector<6x16x4xbf16>
      tpu.vector_store %arg9[%c0_115, %c0_116, %c0_117], %144 {strides = array<i32>} : memref<20x20x4xbf16, #tpu.memory_space<vmem>>, vector<6x16x4xbf16>,
    } else {
    }
    %c1_i32 = arith.constant 1 : i32
    %33 = arith.cmpi eq, %arg1, %c1_i32 : i32
    %34 = arith.extui %33 : i1 to i32
    %c0_i32_22 = arith.constant 0 : i32
    %35 = arith.cmpi ne, %34, %c0_i32_22 : i32
    scf.if %35 {
      %cst_114 = arith.constant 0xFF80 : bf16
      %144 = vector.broadcast %cst_114 : bf16 to vector<6x16x4xbf16>
      %c14 = arith.constant 14 : index
      %c0_115 = arith.constant 0 : index
      %c0_116 = arith.constant 0 : index
      %145 = vector.load %arg9[%c14, %c0_115, %c0_116] : memref<20x20x4xbf16, #tpu.memory_space<vmem>>, vector<6x16x4xbf16>
      tpu.vector_store %arg9[%c14, %c0_115, %c0_116], %144 {strides = array<i32>} : memref<20x20x4xbf16, #tpu.memory_space<vmem>>, vector<6x16x4xbf16>,
    } else {
    }
    %c0_23 = arith.constant 0 : index
    %c0_24 = arith.constant 0 : index
    %c0_25 = arith.constant 0 : index
    %36 = vector.load %arg9[%c0_23, %c0_24, %c0_25] : memref<20x20x4xbf16, #tpu.memory_space<vmem>>, vector<16x20x4xbf16>
    %c1 = arith.constant 1 : index
    %c0_26 = arith.constant 0 : index
    %c0_27 = arith.constant 0 : index
    %37 = vector.load %arg9[%c1, %c0_26, %c0_27] : memref<20x20x4xbf16, #tpu.memory_space<vmem>>, vector<16x20x4xbf16>
    %38 = arith.maximumf %36, %37 : vector<16x20x4xbf16>
    %c2 = arith.constant 2 : index
    %c0_28 = arith.constant 0 : index
    %c0_29 = arith.constant 0 : index
    %39 = vector.load %arg9[%c2, %c0_28, %c0_29] : memref<20x20x4xbf16, #tpu.memory_space<vmem>>, vector<16x20x4xbf16>
    %40 = arith.maximumf %38, %39 : vector<16x20x4xbf16>
    %c3 = arith.constant 3 : index
    %c0_30 = arith.constant 0 : index
    %c0_31 = arith.constant 0 : index
    %41 = vector.load %arg9[%c3, %c0_30, %c0_31] : memref<20x20x4xbf16, #tpu.memory_space<vmem>>, vector<16x20x4xbf16>
    %42 = arith.maximumf %40, %41 : vector<16x20x4xbf16>
    %c4 = arith.constant 4 : index
    %c0_32 = arith.constant 0 : index
    %c0_33 = arith.constant 0 : index
    %43 = vector.load %arg9[%c4, %c0_32, %c0_33] : memref<20x20x4xbf16, #tpu.memory_space<vmem>>, vector<16x20x4xbf16>
    %44 = arith.maximumf %42, %43 : vector<16x20x4xbf16>
    %45 = arith.extf %44 : vector<16x20x4xbf16> to vector<16x20x4xf32>
    %c1_i32_34 = arith.constant 1 : i32
    %46 = tpu.dynamic_rotate %45 by %c1_i32_34 dim 1 : vector<16x20x4xf32>, i32 -> vector<16x20x4xf32>
    %47 = arith.maximumf %45, %46 : vector<16x20x4xf32>
    %c2_i32 = arith.constant 2 : i32
    %48 = tpu.dynamic_rotate %45 by %c2_i32 dim 1 : vector<16x20x4xf32>, i32 -> vector<16x20x4xf32>
    %49 = arith.maximumf %47, %48 : vector<16x20x4xf32>
    %c18_i32 = arith.constant 18 : i32
    %50 = tpu.dynamic_rotate %45 by %c18_i32 dim 1 : vector<16x20x4xf32>, i32 -> vector<16x20x4xf32>
    %51 = arith.maximumf %49, %50 : vector<16x20x4xf32>
    %c19_i32 = arith.constant 19 : i32
    %52 = tpu.dynamic_rotate %45 by %c19_i32 dim 1 : vector<16x20x4xf32>, i32 -> vector<16x20x4xf32>
    %53 = arith.maximumf %51, %52 : vector<16x20x4xf32>
    %54 = vector.extract_strided_slice %53 {offsets = [0, 0, 0], sizes = [16, 16, 4], strides = [1, 1, 1]} : vector<16x20x4xf32> to vector<16x16x4xf32>
    %55 = arith.truncf %54 : vector<16x16x4xf32> to vector<16x16x4xbf16>
    %c2_35 = arith.constant 2 : index
    %c0_36 = arith.constant 0 : index
    %c0_37 = arith.constant 0 : index
    %56 = vector.load %arg9[%c2_35, %c0_36, %c0_37] : memref<20x20x4xbf16, #tpu.memory_space<vmem>>, vector<16x16x4xbf16>
    tpu.vector_store %arg9[%c2_35, %c0_36, %c0_37], %55 {strides = array<i32>} : memref<20x20x4xbf16, #tpu.memory_space<vmem>>, vector<16x16x4xbf16>,
    %57 = vector.extract_strided_slice %55 {offsets = [4, 0, 0], sizes = [8, 16, 4], strides = [1, 1, 1]} : vector<16x16x4xbf16> to vector<8x16x4xbf16>
    %c0_38 = arith.constant 0 : index
    %c0_39 = arith.constant 0 : index
    %c0_40 = arith.constant 0 : index
    %58 = vector.load %arg7[%c0_38, %c0_39, %c0_40] : memref<1x128x8xf32, #tpu.memory_space<vmem>>, vector<1x128x8xf32>
    %59 = vector.shape_cast %58 : vector<1x128x8xf32> to vector<128x8xf32>
    %60 = vector.shape_cast %57 : vector<8x16x4xbf16> to vector<128x4xbf16>
    %c1_41 = arith.constant 1 : index
    %c0_42 = arith.constant 0 : index
    %c0_43 = arith.constant 0 : index
    %61 = vector.load %arg5[%c1_41, %c0_42, %c0_43] : memref<4x4x8xbf16, #tpu.memory_space<vmem>>, vector<1x4x8xbf16>
    %62 = vector.shape_cast %61 : vector<1x4x8xbf16> to vector<4x8xbf16>
    %cst_44 = arith.constant dense<0.000000e+00> : vector<128x8xf32>
    %63 = tpu.matmul %60, %62, %cst_44 {dimension_numbers = #tpu.dot_dimension_numbers<[1], [0], [0], [1], [0, 0, 1, 1], [], []>} : vector<128x4xbf16>, vector<4x8xbf16>, vector<128x8xf32> -> vector<128x8xf32>
    %64 = arith.addf %59, %63 : vector<128x8xf32>
    %c0_45 = arith.constant 0 : index
    %c0_46 = arith.constant 0 : index
    %c0_47 = arith.constant 0 : index
    %65 = vector.load %arg7[%c0_45, %c0_46, %c0_47] : memref<1x128x8xf32, #tpu.memory_space<vmem>>, vector<1x128x8xf32>
    %66 = vector.shape_cast %65 : vector<1x128x8xf32> to vector<128x8xf32>
    %67 = vector.shape_cast %64 : vector<128x8xf32> to vector<1x128x8xf32>
    tpu.vector_store %arg7[%c0_45, %c0_46, %c0_47], %67 {strides = array<i32>} : memref<1x128x8xf32, #tpu.memory_space<vmem>>, vector<1x128x8xf32>,
    %c2_48 = arith.constant 2 : index
    %c0_49 = arith.constant 0 : index
    %c0_50 = arith.constant 0 : index
    %68 = vector.load %arg9[%c2_48, %c0_49, %c0_50] : memref<20x20x4xbf16, #tpu.memory_space<vmem>>, vector<12x20x4xbf16>
    %c3_51 = arith.constant 3 : index
    %c0_52 = arith.constant 0 : index
    %c0_53 = arith.constant 0 : index
    %69 = vector.load %arg9[%c3_51, %c0_52, %c0_53] : memref<20x20x4xbf16, #tpu.memory_space<vmem>>, vector<12x20x4xbf16>
    %70 = arith.maximumf %68, %69 : vector<12x20x4xbf16>
    %c4_54 = arith.constant 4 : index
    %c0_55 = arith.constant 0 : index
    %c0_56 = arith.constant 0 : index
    %71 = vector.load %arg9[%c4_54, %c0_55, %c0_56] : memref<20x20x4xbf16, #tpu.memory_space<vmem>>, vector<12x20x4xbf16>
    %72 = arith.maximumf %70, %71 : vector<12x20x4xbf16>
    %c5 = arith.constant 5 : index
    %c0_57 = arith.constant 0 : index
    %c0_58 = arith.constant 0 : index
    %73 = vector.load %arg9[%c5, %c0_57, %c0_58] : memref<20x20x4xbf16, #tpu.memory_space<vmem>>, vector<12x20x4xbf16>
    %74 = arith.maximumf %72, %73 : vector<12x20x4xbf16>
    %c6 = arith.constant 6 : index
    %c0_59 = arith.constant 0 : index
    %c0_60 = arith.constant 0 : index
    %75 = vector.load %arg9[%c6, %c0_59, %c0_60] : memref<20x20x4xbf16, #tpu.memory_space<vmem>>, vector<12x20x4xbf16>
    %76 = arith.maximumf %74, %75 : vector<12x20x4xbf16>
    %77 = arith.extf %76 : vector<12x20x4xbf16> to vector<12x20x4xf32>
    %c1_i32_61 = arith.constant 1 : i32
    %78 = tpu.dynamic_rotate %77 by %c1_i32_61 dim 1 : vector<12x20x4xf32>, i32 -> vector<12x20x4xf32>
    %79 = arith.maximumf %77, %78 : vector<12x20x4xf32>
    %c2_i32_62 = arith.constant 2 : i32
    %80 = tpu.dynamic_rotate %77 by %c2_i32_62 dim 1 : vector<12x20x4xf32>, i32 -> vector<12x20x4xf32>
    %81 = arith.maximumf %79, %80 : vector<12x20x4xf32>
    %c18_i32_63 = arith.constant 18 : i32
    %82 = tpu.dynamic_rotate %77 by %c18_i32_63 dim 1 : vector<12x20x4xf32>, i32 -> vector<12x20x4xf32>
    %83 = arith.maximumf %81, %82 : vector<12x20x4xf32>
    %c19_i32_64 = arith.constant 19 : i32
    %84 = tpu.dynamic_rotate %77 by %c19_i32_64 dim 1 : vector<12x20x4xf32>, i32 -> vector<12x20x4xf32>
    %85 = arith.maximumf %83, %84 : vector<12x20x4xf32>
    %86 = vector.extract_strided_slice %85 {offsets = [0, 0, 0], sizes = [12, 16, 4], strides = [1, 1, 1]} : vector<12x20x4xf32> to vector<12x16x4xf32>
    %87 = arith.truncf %86 : vector<12x16x4xf32> to vector<12x16x4xbf16>
    %c4_65 = arith.constant 4 : index
    %c0_66 = arith.constant 0 : index
    %c0_67 = arith.constant 0 : index
    %88 = vector.load %arg9[%c4_65, %c0_66, %c0_67] : memref<20x20x4xbf16, #tpu.memory_space<vmem>>, vector<12x16x4xbf16>
    tpu.vector_store %arg9[%c4_65, %c0_66, %c0_67], %87 {strides = array<i32>} : memref<20x20x4xbf16, #tpu.memory_space<vmem>>, vector<12x16x4xbf16>,
    %89 = vector.extract_strided_slice %87 {offsets = [2, 0, 0], sizes = [8, 16, 4], strides = [1, 1, 1]} : vector<12x16x4xbf16> to vector<8x16x4xbf16>
    %c0_68 = arith.constant 0 : index
    %c0_69 = arith.constant 0 : index
    %c0_70 = arith.constant 0 : index
    %90 = vector.load %arg7[%c0_68, %c0_69, %c0_70] : memref<1x128x8xf32, #tpu.memory_space<vmem>>, vector<1x128x8xf32>
    %91 = vector.shape_cast %90 : vector<1x128x8xf32> to vector<128x8xf32>
    %92 = vector.shape_cast %89 : vector<8x16x4xbf16> to vector<128x4xbf16>
    %c2_71 = arith.constant 2 : index
    %c0_72 = arith.constant 0 : index
    %c0_73 = arith.constant 0 : index
    %93 = vector.load %arg5[%c2_71, %c0_72, %c0_73] : memref<4x4x8xbf16, #tpu.memory_space<vmem>>, vector<1x4x8xbf16>
    %94 = vector.shape_cast %93 : vector<1x4x8xbf16> to vector<4x8xbf16>
    %cst_74 = arith.constant dense<0.000000e+00> : vector<128x8xf32>
    %95 = tpu.matmul %92, %94, %cst_74 {dimension_numbers = #tpu.dot_dimension_numbers<[1], [0], [0], [1], [0, 0, 1, 1], [], []>} : vector<128x4xbf16>, vector<4x8xbf16>, vector<128x8xf32> -> vector<128x8xf32>
    %96 = arith.addf %91, %95 : vector<128x8xf32>
    %c0_75 = arith.constant 0 : index
    %c0_76 = arith.constant 0 : index
    %c0_77 = arith.constant 0 : index
    %97 = vector.load %arg7[%c0_75, %c0_76, %c0_77] : memref<1x128x8xf32, #tpu.memory_space<vmem>>, vector<1x128x8xf32>
    %98 = vector.shape_cast %97 : vector<1x128x8xf32> to vector<128x8xf32>
    %99 = vector.shape_cast %96 : vector<128x8xf32> to vector<1x128x8xf32>
    tpu.vector_store %arg7[%c0_75, %c0_76, %c0_77], %99 {strides = array<i32>} : memref<1x128x8xf32, #tpu.memory_space<vmem>>, vector<1x128x8xf32>,
    %c4_78 = arith.constant 4 : index
    %c0_79 = arith.constant 0 : index
    %c0_80 = arith.constant 0 : index
    %100 = vector.load %arg9[%c4_78, %c0_79, %c0_80] : memref<20x20x4xbf16, #tpu.memory_space<vmem>>, vector<8x20x4xbf16>
    %c5_81 = arith.constant 5 : index
    %c0_82 = arith.constant 0 : index
    %c0_83 = arith.constant 0 : index
    %101 = vector.load %arg9[%c5_81, %c0_82, %c0_83] : memref<20x20x4xbf16, #tpu.memory_space<vmem>>, vector<8x20x4xbf16>
    %102 = arith.maximumf %100, %101 : vector<8x20x4xbf16>
    %c6_84 = arith.constant 6 : index
    %c0_85 = arith.constant 0 : index
    %c0_86 = arith.constant 0 : index
    %103 = vector.load %arg9[%c6_84, %c0_85, %c0_86] : memref<20x20x4xbf16, #tpu.memory_space<vmem>>, vector<8x20x4xbf16>
    %104 = arith.maximumf %102, %103 : vector<8x20x4xbf16>
    %c7 = arith.constant 7 : index
    %c0_87 = arith.constant 0 : index
    %c0_88 = arith.constant 0 : index
    %105 = vector.load %arg9[%c7, %c0_87, %c0_88] : memref<20x20x4xbf16, #tpu.memory_space<vmem>>, vector<8x20x4xbf16>
    %106 = arith.maximumf %104, %105 : vector<8x20x4xbf16>
    %c8 = arith.constant 8 : index
    %c0_89 = arith.constant 0 : index
    %c0_90 = arith.constant 0 : index
    %107 = vector.load %arg9[%c8, %c0_89, %c0_90] : memref<20x20x4xbf16, #tpu.memory_space<vmem>>, vector<8x20x4xbf16>
    %108 = arith.maximumf %106, %107 : vector<8x20x4xbf16>
    %109 = arith.extf %108 : vector<8x20x4xbf16> to vector<8x20x4xf32>
    %c1_i32_91 = arith.constant 1 : i32
    %110 = tpu.dynamic_rotate %109 by %c1_i32_91 dim 1 : vector<8x20x4xf32>, i32 -> vector<8x20x4xf32>
    %111 = arith.maximumf %109, %110 : vector<8x20x4xf32>
    %c2_i32_92 = arith.constant 2 : i32
    %112 = tpu.dynamic_rotate %109 by %c2_i32_92 dim 1 : vector<8x20x4xf32>, i32 -> vector<8x20x4xf32>
    %113 = arith.maximumf %111, %112 : vector<8x20x4xf32>
    %c18_i32_93 = arith.constant 18 : i32
    %114 = tpu.dynamic_rotate %109 by %c18_i32_93 dim 1 : vector<8x20x4xf32>, i32 -> vector<8x20x4xf32>
    %115 = arith.maximumf %113, %114 : vector<8x20x4xf32>
    %c19_i32_94 = arith.constant 19 : i32
    %116 = tpu.dynamic_rotate %109 by %c19_i32_94 dim 1 : vector<8x20x4xf32>, i32 -> vector<8x20x4xf32>
    %117 = arith.maximumf %115, %116 : vector<8x20x4xf32>
    %118 = vector.extract_strided_slice %117 {offsets = [0, 0, 0], sizes = [8, 16, 4], strides = [1, 1, 1]} : vector<8x20x4xf32> to vector<8x16x4xf32>
    %119 = arith.truncf %118 : vector<8x16x4xf32> to vector<8x16x4xbf16>
    %c0_95 = arith.constant 0 : index
    %c0_96 = arith.constant 0 : index
    %c0_97 = arith.constant 0 : index
    %120 = vector.load %arg7[%c0_95, %c0_96, %c0_97] : memref<1x128x8xf32, #tpu.memory_space<vmem>>, vector<1x128x8xf32>
    %121 = vector.shape_cast %120 : vector<1x128x8xf32> to vector<128x8xf32>
    %122 = vector.shape_cast %119 : vector<8x16x4xbf16> to vector<128x4xbf16>
    %c3_98 = arith.constant 3 : index
    %c0_99 = arith.constant 0 : index
    %c0_100 = arith.constant 0 : index
    %123 = vector.load %arg5[%c3_98, %c0_99, %c0_100] : memref<4x4x8xbf16, #tpu.memory_space<vmem>>, vector<1x4x8xbf16>
    %124 = vector.shape_cast %123 : vector<1x4x8xbf16> to vector<4x8xbf16>
    %cst_101 = arith.constant dense<0.000000e+00> : vector<128x8xf32>
    %125 = tpu.matmul %122, %124, %cst_101 {dimension_numbers = #tpu.dot_dimension_numbers<[1], [0], [0], [1], [0, 0, 1, 1], [], []>} : vector<128x4xbf16>, vector<4x8xbf16>, vector<128x8xf32> -> vector<128x8xf32>
    %126 = arith.addf %121, %125 : vector<128x8xf32>
    %c0_102 = arith.constant 0 : index
    %c0_103 = arith.constant 0 : index
    %c0_104 = arith.constant 0 : index
    %127 = vector.load %arg7[%c0_102, %c0_103, %c0_104] : memref<1x128x8xf32, #tpu.memory_space<vmem>>, vector<1x128x8xf32>
    %128 = vector.shape_cast %127 : vector<1x128x8xf32> to vector<128x8xf32>
    %129 = vector.shape_cast %126 : vector<128x8xf32> to vector<1x128x8xf32>
    tpu.vector_store %arg7[%c0_102, %c0_103, %c0_104], %129 {strides = array<i32>} : memref<1x128x8xf32, #tpu.memory_space<vmem>>, vector<1x128x8xf32>,
    %c0_105 = arith.constant 0 : index
    %c0_106 = arith.constant 0 : index
    %c0_107 = arith.constant 0 : index
    %130 = vector.load %arg7[%c0_105, %c0_106, %c0_107] : memref<1x128x8xf32, #tpu.memory_space<vmem>>, vector<1x128x8xf32>
    %131 = vector.shape_cast %130 : vector<1x128x8xf32> to vector<128x8xf32>
    %c0_108 = arith.constant 0 : index
    %c0_109 = arith.constant 0 : index
    %132 = vector.load %arg6[%c0_108, %c0_109] : memref<1x8xf32, #tpu.memory_space<vmem>>, vector<1x8xf32>
    %133 = vector.broadcast %132 : vector<1x8xf32> to vector<128x8xf32>
    %134 = arith.addf %131, %133 : vector<128x8xf32>
    %135 = arith.negf %134 : vector<128x8xf32>
    %136 = math.exp %135 : vector<128x8xf32>
    %cst_110 = arith.constant 1.000000e+00 : f32
    %137 = vector.broadcast %cst_110 : f32 to vector<128x8xf32>
    %138 = arith.addf %137, %136 : vector<128x8xf32>
    %139 = arith.divf %137, %138 : vector<128x8xf32>
    %140 = arith.mulf %134, %139 : vector<128x8xf32>
    %c0_111 = arith.constant 0 : index
    %c0_112 = arith.constant 0 : index
    %c0_113 = arith.constant 0 : index
    %141 = vector.load %arg7[%c0_111, %c0_112, %c0_113] : memref<1x128x8xf32, #tpu.memory_space<vmem>>, vector<1x128x8xf32>
    %142 = vector.shape_cast %141 : vector<1x128x8xf32> to vector<128x8xf32>
    %143 = vector.shape_cast %140 : vector<128x8xf32> to vector<1x128x8xf32>
    tpu.vector_store %arg7[%c0_111, %c0_112, %c0_113], %143 {strides = array<i32>} : memref<1x128x8xf32, #tpu.memory_space<vmem>>, vector<1x128x8xf32>,
    return
  }
  func.func @transform_1(%arg0: i32, %arg1: i32) -> (i32, i32) {
    %c0_i32 = arith.constant 0 : i32
    %c0_i32_0 = arith.constant 0 : i32
    %c0_i32_1 = arith.constant 0 : i32
    return %c0_i32, %c0_i32_0 : i32, i32
  }
  func.func @transform_2(%arg0: i32, %arg1: i32) -> (i32, i32) {
    %c0_i32 = arith.constant 0 : i32
    %c0_i32_0 = arith.constant 0 : i32
    %c0_i32_1 = arith.constant 0 : i32
    return %c0_i32, %c0_i32_0 : i32, i32
  }
  func.func @transform_3(%arg0: i32, %arg1: i32) -> (i32, i32, i32) {
    %c0_i32 = arith.constant 0 : i32
    %c0_i32_0 = arith.constant 0 : i32
    %c0_i32_1 = arith.constant 0 : i32
    %c0_i32_2 = arith.constant 0 : i32
    return %c0_i32, %c0_i32_0, %c0_i32_1 : i32, i32, i32
  }
  func.func @transform_4(%arg0: i32, %arg1: i32) -> (i32, i32) {
    %c0_i32 = arith.constant 0 : i32
    %c0_i32_0 = arith.constant 0 : i32
    %c0_i32_1 = arith.constant 0 : i32
    return %c0_i32, %c0_i32_0 : i32, i32
  }
  func.func @transform_5(%arg0: i32, %arg1: i32) -> (i32, i32, i32) {
    %c0_i32 = arith.constant 0 : i32
    %c0_i32_0 = arith.constant 0 : i32
    return %arg0, %arg1, %c0_i32 : i32, i32, i32
  }
}

</mosaic_0001>

<bundles_post_ra>
// kernel: tpu_custom_call.1
= control target key start
LH: loop header
LB: loop body
LE: loop exit
PB: predicated region body
PF: predicated region fallthrough
CT: control target
= control target key end

     0   :  { %s7802_s18 = smov 0   ;;  %s7804_s19 = smov 0   ;;  %s11237_s0 = inlined_call_operand.vmem [shape: bf16[896,8], index: 0, kind: input, shape index: {}]   ;;  %s11238_s1 = inlined_call_operand.vmem [shape: bf16[8,4], index: 1, kind: input, shape index: {}]   ;;  %s11239_s2 = inlined_call_operand.vmem [shape: f32[1,4], index: 2, kind: input, shape index: {}]   ;;  %s11240_s3 = inlined_call_operand.vmem [shape: bf16[4,4,8], index: 3, kind: input, shape index: {}]   ;;  %s11241_s4 = inlined_call_operand.vmem [shape: f32[1,8], index: 4, kind: input, shape index: {}]   ;;  %s11242_s5 = inlined_call_operand.vmem [shape: f32[2,256,8], index: 5, kind: output, shape index: {}]  }
   0x1   :  { %s7806_s20 = smov 0   ;;  %s7808_s21 = smov 0  }
   0x2   :  { %s7810_s22 = smov 0  }
   0x3 LB: > { %s24_s23 = sadd.s32 1, %s7759_s20  ;;  %s27_s24 = sadd.s32 1, %s7763_s21  ;;  %s7767_s22 = sphi %s7810_s22, %s15_s22   ;;  %s7763_s21 = sphi %s7808_s21, %s11651_s21   ;;  %s7759_s20 = sphi %s7806_s20, %s11650_s20   ;;  %s7755_s19 = sphi %s7804_s19, %s11649_s19   ;;  %s7751_s18 = sphi %s7802_s18, %s11648_s18  }
   0x4   : > { %p25_p0 = scmp.ge.s32.totalorder %s24_s23, 2  ;;  %p6789_p1 = scmp.ge.s32.totalorder %s7767_s22, 1 }
   0x5   : > { %p167_p2 = scmp.lt.s32.totalorder %s7767_s22, 5 }
   0x6   : > { %s11653_s23 = smov (%p25_p0, %s24_s23), 0  ;;  %s11655_s24 = smov (!%p25_p0, %s27_s24), %s7763_s21 }
   0x7   : > { %p168_p3 = pnand %p6789_p1, %p167_p2  ;;  %p29_p4 = scmp.ge.s32.totalorder %s11655_s24, 2 }
   0x9   : > { %s11657_s24 = smov (%p29_p4, %s11655_s24), 0  ;;  %171 = sbr.rel (%p168_p3) target bundleno = 1429 (0x595), region = 36 }
   0xe   : > { %s6790_s25 = sshll.u32 %s7751_s18, 4  ;;  %p193_p5 = scmp.lt.s32.totalorder %s7755_s19, 1 }
   0xf   : > { %p195_p6 = scmp.lt.s32.totalorder %s6790_s25, 31  ;;  %s204_s26 = smul.u32 448, %s7755_s19 }
  0x10   : > { %s11659_s19 = smov (!%p193_p5, %s7755_s19), 1  ;;  %s6793_s28 = sshll.u32 %s7751_s18, 7 }
  0x11   : > { %s11661_s25 = smov (!%p195_p6, %s6790_s25), 31  ;;  %s6791_s27 = sshll.u32 %s11659_s19, 5 }
  0x12   : > { %s198_s29 = sadd.s32 %s6791_s27, %s11661_s25  ;;  %s206_s30 = sadd.s32 %s6793_s28, %s204_s26 }
  0x13   : > { %s6792_s6 = sshll.u32 %s198_s29, 3  ;;  %s207_s7 = sshra.s32 %s206_s30, 3 }
  0x14   : > { %s7839_s10 = scalar_lea.vmem %s11242_s5, %s6792_s6  ;;  %s6794_s11 = sshll.u32 %s207_s7, 2 }
  0x15   : > { %s7844_s14 = scalar_lea.vmem %s11237_s0, %s6794_s11 }
  0x16   : > { %v221_v0 = vld [vmem:[%s7844_s14] sm:$0xff]  ;;  %v223_v1 = vld [vmem:[%s7844_s14 + $0x8] sm:$0xff]  ;;  %v225_v2 = vld [vmem:[%s7844_s14 + $0x10] sm:$0xff] }
  0x17   : > { %222 = vst [vmem:[#allocation2] sm:$0xff] %v221_v0  ;;  %v227_v3 = vld [vmem:[%s7844_s14 + $0x18] sm:$0xff]  ;;  %v229_v4 = vld [vmem:[%s7844_s14 + $0x20] sm:$0xff]  ;;  %v231_v5 = vld [vmem:[%s7844_s14 + $0x28] sm:$0xff] }
  0x18   : > { %224 = vst [vmem:[#allocation2 + $0x38] sm:$0xff] %v223_v1  ;;  %v233_v6 = vld [vmem:[%s7844_s14 + $0x30] sm:$0xff]  ;;  %v235_v7 = vld [vmem:[%s7844_s14 + $0x38] sm:$0xff]  ;;  %v237_v8 = vld [vmem:[%s7844_s14 + $0x40] sm:$0xff] }
  0x19   : > { %226 = vst [vmem:[#allocation2 + $0x50] sm:$0xff] %v225_v2  ;;  %v239_v9 = vld [vmem:[%s7844_s14 + $0x48] sm:$0xff]  ;;  %v241_v10 = vld [vmem:[%s7844_s14 + $0x50] sm:$0xff]  ;;  %v243_v11 = vld [vmem:[%s7844_s14 + $0x58] sm:$0xff] }
  0x1a   : > { %228 = vst [vmem:[#allocation2 + $0x18] sm:$0xff] %v227_v3  ;;  %v245_v12 = vld [vmem:[%s7844_s14 + $0x60] sm:$0xff]  ;;  %v247_v13 = vld [vmem:[%s7844_s14 + $0x68] sm:$0xff]  ;;  %v249_v14 = vld [vmem:[%s7844_s14 + $0x70] sm:$0xff] }
  0x1b   : > { %230 = vst [vmem:[#allocation2 + $0x30] sm:$0xff] %v229_v4  ;;  %v251_v15 = vld [vmem:[%s7844_s14 + $0x78] sm:$0xff]  ;;  %v253_v16 = vld [vmem:[%s7844_s14 + $0x80] sm:$0xff]  ;;  %v255_v17 = vld [vmem:[%s7844_s14 + $0x88] sm:$0xff] }
  0x1c   : > { %232 = vst [vmem:[#allocation2 + $0x68] sm:$0xff] %v231_v5  ;;  %v257_v18 = vld [vmem:[%s7844_s14 + $0x90] sm:$0xff]  ;;  %v259_v19 = vld [vmem:[%s7844_s14 + $0x98] sm:$0xff] }
  0x1d   : > { %234 = vst [vmem:[#allocation2 + $0x78] sm:$0xff] %v233_v6 }
  0x1e   : > { %236 = vst [vmem:[#allocation2 + $0x80] sm:$0xff] %v235_v7 }
  0x1f   : > { %238 = vst [vmem:[#allocation2 + $0x8] sm:$0xff] %v237_v8 }
  0x20   : > { %240 = vst [vmem:[#allocation2 + $0x88] sm:$0xff] %v239_v9 }
  0x21   : > { %242 = vst [vmem:[#allocation2 + $0x28] sm:$0xff] %v241_v10 }
  0x22   : > { %244 = vst [vmem:[#allocation2 + $0x40] sm:$0xff] %v243_v11 }
  0x23   : > { %246 = vst [vmem:[#allocation2 + $0x58] sm:$0xff] %v245_v12 }
  0x24   : > { %248 = vst [vmem:[#allocation2 + $0x10] sm:$0xff] %v247_v13 }
  0x25   : > { %250 = vst [vmem:[#allocation2 + $0x98] sm:$0xff] %v249_v14 }
  0x26   : > { %252 = vst [vmem:[#allocation2 + $0x60] sm:$0xff] %v251_v15 }
  0x27   : > { %254 = vst [vmem:[#allocation2 + $0x20] sm:$0xff] %v253_v16 }
  0x28   : > { %256 = vst [vmem:[#allocation2 + $0x48] sm:$0xff] %v255_v17 }
  0x29   : > { %258 = vst [vmem:[#allocation2 + $0x70] sm:$0xff] %v257_v18 }
  0x2a   : > { %260 = vst [vmem:[#allocation2 + $0x90] sm:$0xff] %v259_v19 }
  0x2b   : > { %266 = vsyncadd [#allocation4], 2560 }
  0x2c   : > { %7747 = dma.done.wait [#allocation4], 2560 }
  0x2d   : > { %7748 = vsyncadd [#allocation4], 4294964736  ;;  %vm1565_vm0 = vcmask 25600   ;;  %v7769_v20 = vmov 4286644096   ;;  %vm477_vm1 = vcmask 1043456  }
  0x2e   : > { %1566 = vst.msk [vmem:[#allocation3 + $0x8] sm:$0x3] %vm1565_vm0, %v7769_v20  ;;  %v311_v21 = vld [vmem:[%s11238_s1] sm:$0xf]  ;;  %vm416_vm2 = vcmask 64512   ;;  %v6992_v24 = vld [vmem:[#allocation2 + $0x38] sm:$0xff] }
  0x2f   : > { %1567 = vst.msk [vmem:[#allocation3 + $0x14] sm:$0x3] %vm1565_vm0, %v7769_v20  ;;  %v479_v22 = vsel %vm477_vm1, %v311_v21, 0  ;;  %v6991_v23 = vld [vmem:[#allocation2] sm:$0xff]  ;;  %v6993_v25 = vld [vmem:[#allocation2 + $0x50] sm:$0xff]  ;;  %v6994_v26 = vld [vmem:[#allocation2 + $0x18] sm:$0xff] }
  0x30   : > { %1568 = vst.msk [vmem:[#allocation3 + $0x20] sm:$0x3] %vm1565_vm0, %v7769_v20  ;;  %488 = vmatpush.bf16.msra.mxu0 %v479_v22  ;;  %7452 = vmatpush.bf16.msra.mxu2 %v479_v22  ;;  %v6995_v27 = vld [vmem:[#allocation2 + $0x30] sm:$0xff]  ;;  %v6996_v28 = vld [vmem:[#allocation2 + $0x68] sm:$0xff]  ;;  %v6997_v29 = vld [vmem:[#allocation2 + $0x78] sm:$0xff]  ;;  %vm1586_vm7 = vcmask 27648  }
  0x31   : > { %1569 = vst.msk [vmem:[#allocation3 + $0x2c] sm:$0x3] %vm1565_vm0, %v7769_v20  ;;  %7453 = vmatpush.bf16.msra.mxu3 %v479_v22  ;;  %v6998_v30 = vld [vmem:[#allocation2 + $0x80] sm:$0xff]  ;;  %v6999_v32 = vld [vmem:[#allocation2 + $0x8] sm:$0xff]  ;;  %v7004_v37 = vld [vmem:[#allocation2 + $0x10] sm:$0xff]  ;;  %p6943_p7 = scmp.ne.s32.totalorder %s7751_s18, 0 }
  0x32   : > { %1570 = vst.msk [vmem:[#allocation3 + $0x38] sm:$0x3] %vm1565_vm0, %v7769_v20  ;;  %v7900_v31 = vld [vmem:[%s11239_s2] ss:$0 sm:$0xff]  ;;  %v7000_v42 = vld [vmem:[#allocation2 + $0x88] sm:$0xff] }
  0x33   : > { %1571 = vst.msk [vmem:[#allocation3 + $0x44] sm:$0x3] %vm1565_vm0, %v7769_v20  ;;  %6875 = vmatmul.msk.bf16.vlgmr.msra.gmra.mxu0 %vm416_vm2, %v6991_v23  ;;  %6888 = vmatmul.msk.bf16.vlgmr.msra.gmra.mxu2 %vm416_vm2, %v7004_v37  ;;  %v7001_v3 = vld [vmem:[#allocation2 + $0x28] sm:$0xff] }
  0x34   : > { %1572 = vst.msk [vmem:[#allocation3 + $0x50] sm:$0x3] %vm1565_vm0, %v7769_v20 }
  0x35   : > { %1573 = vst.msk [vmem:[#allocation3 + $0x5c] sm:$0x3] %vm1565_vm0, %v7769_v20 }
  0x36   : > { %1574 = vst.msk [vmem:[#allocation3 + $0x68] sm:$0x3] %vm1565_vm0, %v7769_v20 }
  0x37   : > { %1575 = vst.msk [vmem:[#allocation3 + $0x74] sm:$0x3] %vm1565_vm0, %v7769_v20 }
  0x38   : > { %1576 = vst.msk [vmem:[#allocation3 + $0x80] sm:$0x3] %vm1565_vm0, %v7769_v20 }
  0x39   : > { %1577 = vst.msk [vmem:[#allocation3 + $0x8c] sm:$0x3] %vm1565_vm0, %v7769_v20 }
  0x3a   : > { %1578 = vst.msk [vmem:[#allocation3 + $0x98] sm:$0x3] %vm1565_vm0, %v7769_v20 }
  0x3b   : > { %1579 = vst.msk [vmem:[#allocation3 + $0xa4] sm:$0x3] %vm1565_vm0, %v7769_v20 }
  0x3c   : > { %1580 = vst.msk [vmem:[#allocation3 + $0xb0] sm:$0x3] %vm1565_vm0, %v7769_v20 }
  0x3d   : > { %1581 = vst.msk [vmem:[#allocation3 + $0xbc] sm:$0x3] %vm1565_vm0, %v7769_v20 }
  0x3e   : > { %1582 = vst.msk [vmem:[#allocation3 + $0xc8] sm:$0x3] %vm1565_vm0, %v7769_v20 }
  0x3f   : > { %1583 = vst.msk [vmem:[#allocation3 + $0xd4] sm:$0x3] %vm1565_vm0, %v7769_v20 }
  0x40   : > { %1584 = vst.msk [vmem:[#allocation3 + $0xe0] sm:$0x3] %vm1565_vm0, %v7769_v20 }
  0x41   : > { %1585 = vst.msk [vmem:[#allocation3 + $0xec] sm:$0x3] %vm1565_vm0, %v7769_v20 }
  0x43   : > { %6876 = vmatmul.msk.bf16.gmra.mxu0 %vm416_vm2, %v6992_v24 }
  0x53   : > { %6877 = vmatmul.msk.bf16.gmra.mxu0 %vm416_vm2, %v6993_v25 }
  0x63   : > { %6878 = vmatmul.msk.bf16.gmra.mxu0 %vm416_vm2, %v6994_v26 }
  0x73   : > { %6879 = vmatmul.msk.bf16.gmra.mxu0 %vm416_vm2, %v6995_v27 }
  0x83   : > { %6880 = vmatmul.msk.bf16.gmra.mxu0 %vm416_vm2, %v6996_v28 }
  0x93   : > { %6881 = vmatmul.msk.bf16.gmra.mxu0 %vm416_vm2, %v6997_v29 }
  0xa3   : > { %6882 = vmatmul.msk.bf16.gmra.mxu0 %vm416_vm2, %v6998_v30 }
  0xb0   : > { %v490_v33 = vpop.f32.mrf.mxu0 }
  0xb1   : > { %v491_v34 = vadd.f32 %v7900_v31, %v490_v33 }
  0xb3   : > { %v6895_v35 = vmul.f32 -1.442695, %v491_v34  ;;  %6883 = vmatmul.msk.bf16.gmra.mxu0 %vm416_vm2, %v6999_v32 }
  0xb5   : > { %7499 = vpow2.f32 %v6895_v35 }
  0xb8   : > { %v492_v36 = vpop.f32.mrf.mxu0 }
  0xb9   : > { %v7905_v38 = vadd.f32 %v7900_v31, %v492_v36 }
  0xbb   : > { %v7500_v39 = vpop.eup %7499  ;;  %v6896_v40 = vmul.f32 -1.442695, %v7905_v38 }
  0xbc   : > { %v710_v41 = vadd.f32 1.0, %v7500_v39  ;;  %v7002_v39 = vld [vmem:[#allocation2 + $0x40] sm:$0xff] }
  0xbd   : > { %7501 = vpow2.f32 %v6896_v40 }
  0xbe   : > { %7503 = vrcp.f32 %v710_v41  ;;  %v761_v51 = vand.u32 2147483648, %v710_v41  ;;  %v759_v54 = vand.u32 2147483647, %v710_v41  ;;  %vm755_vm4 = vweird.f32 %v710_v41 }
  0xc0   : > { %v495_v43 = vpop.f32.mrf.mxu0  ;;  %v762_v60 = vor.u32 1.1754944e-38, %v761_v51  ;;  %vm760_vm6 = vcmp.eq.f32.partialorder %v759_v54, 8.507059e+37 }
  0xc1   : > { %v7910_v44 = vadd.f32 %v7900_v31, %v495_v43 }
  0xc3   : > { %v7502_v45 = vpop.eup %7501  ;;  %v6897_v46 = vmul.f32 -1.442695, %v7910_v44  ;;  %6884 = vmatmul.msk.bf16.gmra.mxu0 %vm416_vm2, %v7000_v42 }
  0xc4   : > { %v7504_v47 = vpop.eup %7503  ;;  %v711_v48 = vadd.f32 1.0, %v7502_v45 }
  0xc5   : > { %v751_v49 = vmul.f32 %v7504_v47, %v710_v41  ;;  %7505 = vpow2.f32 %v6897_v46  ;;  %vm756_vm3 = vweird.f32 %v7504_v47 }
  0xc6   : > { %7507 = vrcp.f32 %v711_v48  ;;  %vm757_vm5 = vmor %vm755_vm4, %vm756_vm3  ;;  %v774_v4 = vand.u32 2147483647, %v711_v48  ;;  %v776_v5 = vand.u32 2147483648, %v711_v48  ;;  %vm770_vm9 = vweird.f32 %v711_v48 }
  0xc7   : > { %v752_v50 = vsub.f32 1.0, %v751_v49 }
  0xc8   : > { %v497_v52 = vpop.f32.mrf.mxu0  ;;  %v777_v14 = vor.u32 1.1754944e-38, %v776_v5  ;;  %vm775_vm11 = vcmp.eq.f32.partialorder %v774_v4, 8.507059e+37 }
  0xc9   : > { %v753_v53 = vmul.f32 %v7504_v47, %v752_v50  ;;  %v7915_v55 = vadd.f32 %v7900_v31, %v497_v52 }
  0xcb   : > { %v7506_v56 = vpop.eup %7505  ;;  %v754_v57 = vadd.f32 %v7504_v47, %v753_v53  ;;  %v6898_v58 = vmul.f32 -1.442695, %v7915_v55 }
  0xcc   : > { %v7508_v59 = vpop.eup %7507  ;;  %v712_v61 = vadd.f32 1.0, %v7506_v56 }
  0xcd   : > { %v758_v62 = vsel %vm757_vm5, %v7504_v47, %v754_v57  ;;  %v766_v63 = vmul.f32 %v7508_v59, %v711_v48  ;;  %7509 = vpow2.f32 %v6898_v58  ;;  %vm771_vm8 = vweird.f32 %v7508_v59 }
  0xce   : > { %v763_v0 = vsel %vm760_vm6, %v762_v60, %v758_v62  ;;  %7511 = vrcp.f32 %v712_v61  ;;  %vm772_vm10 = vmor %vm770_vm9, %vm771_vm8  ;;  %v789_v21 = vand.u32 2147483647, %v712_v61  ;;  %v791_v22 = vand.u32 2147483648, %v712_v61 }
  0xcf   : > { %v1350_v1 = vmul.f32 %v763_v0, %v491_v34  ;;  %v767_v2 = vsub.f32 1.0, %v766_v63  ;;  %vm785_vm13 = vweird.f32 %v712_v61 }
  0xd0   : > { %v500_v6 = vpop.f32.mrf.mxu0  ;;  %v792_v32 = vor.u32 1.1754944e-38, %v791_v22  ;;  %vm790_vm15 = vcmp.eq.f32.partialorder %v789_v21, 8.507059e+37 }
  0xd1   : > { %v1390_v7 = vpack.c.bf16 %v1350_v1, %v1350_v1  ;;  %v768_v8 = vmul.f32 %v7508_v59, %v767_v2  ;;  %v7919_v9 = vadd.f32 %v7900_v31, %v500_v6 }
  0xd3   : > { %v7510_v10 = vpop.eup %7509  ;;  %1587 = vst.msk [vmem:[#allocation3] sm:$0xf] %vm1586_vm7, %v1390_v7  ;;  %v769_v11 = vadd.f32 %v7508_v59, %v768_v8  ;;  %v6899_v12 = vmul.f32 -1.442695, %v7919_v9  ;;  %6885 = vmatmul.msk.bf16.gmra.mxu0 %vm416_vm2, %v7001_v3 }
  0xd4   : > { %v7512_v13 = vpop.eup %7511  ;;  %v713_v15 = vadd.f32 1.0, %v7510_v10 }
  0xd5   : > { %v773_v16 = vsel %vm772_vm10, %v7508_v59, %v769_v11  ;;  %v781_v17 = vmul.f32 %v7512_v13, %v712_v61  ;;  %7513 = vpow2.f32 %v6899_v12  ;;  %vm786_vm12 = vweird.f32 %v7512_v13  ;;  %v7003_v11 = vld [vmem:[#allocation2 + $0x58] sm:$0xff] }
  0xd6   : > { %v778_v18 = vsel %vm775_vm11, %v777_v14, %v773_v16  ;;  %7515 = vrcp.f32 %v713_v15  ;;  %vm787_vm14 = vmor %vm785_vm13, %vm786_vm12  ;;  %v804_v40 = vand.u32 2147483647, %v713_v15  ;;  %v806_v41 = vand.u32 2147483648, %v713_v15 }
  0xd7   : > { %v1351_v19 = vmul.f32 %v778_v18, %v7905_v38  ;;  %v782_v20 = vsub.f32 1.0, %v781_v17  ;;  %vm800_vm1 = vweird.f32 %v713_v15 }
  0xd8   : > { %v502_v23 = vpop.f32.mrf.mxu0  ;;  %v807_v50 = vor.u32 1.1754944e-38, %v806_v41  ;;  %vm805_vm4 = vcmp.eq.f32.partialorder %v804_v40, 8.507059e+37 }
  0xd9   : > { %v1391_v24 = vpack.c.bf16 %v1351_v19, %v1351_v19  ;;  %v783_v25 = vmul.f32 %v7512_v13, %v782_v20  ;;  %v7926_v26 = vadd.f32 %v7900_v31, %v502_v23 }
  0xdb   : > { %v7514_v27 = vpop.eup %7513  ;;  %1588 = vst.msk [vmem:[#allocation3 + $0x4] sm:$0xf] %vm1586_vm7, %v1391_v24  ;;  %v784_v28 = vadd.f32 %v7512_v13, %v783_v25  ;;  %v6900_v29 = vmul.f32 -1.442695, %v7926_v26 }
  0xdc   : > { %v7516_v30 = vpop.eup %7515  ;;  %v714_v33 = vadd.f32 1.0, %v7514_v27 }
  0xdd   : > { %v788_v34 = vsel %vm787_vm14, %v7512_v13, %v784_v28  ;;  %v796_v35 = vmul.f32 %v7516_v30, %v713_v15  ;;  %7517 = vpow2.f32 %v6900_v29  ;;  %vm801_vm0 = vweird.f32 %v7516_v30 }
  0xde   : > { %v793_v36 = vsel %vm790_vm15, %v792_v32, %v788_v34  ;;  %7519 = vrcp.f32 %v714_v33  ;;  %vm802_vm3 = vmor %vm800_vm1, %vm801_vm0  ;;  %v819_v58 = vand.u32 2147483647, %v714_v33  ;;  %v821_v59 = vand.u32 2147483648, %v714_v33 }
  0xdf   : > { %v1352_v37 = vmul.f32 %v793_v36, %v7910_v44  ;;  %v797_v38 = vsub.f32 1.0, %v796_v35  ;;  %vm815_vm6 = vweird.f32 %v714_v33 }
  0xe0   : > { %v505_v42 = vpop.f32.mrf.mxu0  ;;  %vm820_vm9 = vcmp.eq.f32.partialorder %v819_v58, 8.507059e+37 }
  0xe1   : > { %v1392_v43 = vpack.c.bf16 %v1352_v37, %v1352_v37  ;;  %v798_v45 = vmul.f32 %v7516_v30, %v797_v38  ;;  %v7932_v46 = vadd.f32 %v7900_v31, %v505_v42 }
  0xe3   : > { %v7518_v47 = vpop.eup %7517  ;;  %1589 = vst.msk [vmem:[#allocation3 + $0xc] sm:$0xf] %vm1586_vm7, %v1392_v43  ;;  %v799_v48 = vadd.f32 %v7516_v30, %v798_v45  ;;  %v6901_v49 = vmul.f32 -1.442695, %v7932_v46  ;;  %6886 = vmatmul.msk.bf16.gmra.mxu0 %vm416_vm2, %v7002_v39 }
  0xe4   : > { %v7520_v44 = vpop.eup %7519  ;;  %v715_v51 = vadd.f32 1.0, %v7518_v47 }
  0xe5   : > { %v803_v52 = vsel %vm802_vm3, %v7516_v30, %v799_v48  ;;  %v811_v53 = vmul.f32 %v7520_v44, %v714_v33  ;;  %7521 = vpow2.f32 %v6901_v49  ;;  %vm816_vm5 = vweird.f32 %v7520_v44 }
  0xe6   : > { %v808_v54 = vsel %vm805_vm4, %v807_v50, %v803_v52  ;;  %7523 = vrcp.f32 %v715_v51  ;;  %vm817_vm8 = vmor %vm815_vm6, %vm816_vm5  ;;  %v834_v12 = vand.u32 2147483647, %v715_v51  ;;  %v836_v13 = vand.u32 2147483648, %v715_v51 }
  0xe7   : > { %v1353_v56 = vmul.f32 %v808_v54, %v7915_v55  ;;  %v812_v57 = vsub.f32 1.0, %v811_v53  ;;  %v822_v55 = vor.u32 1.1754944e-38, %v821_v59  ;;  %vm830_vm11 = vweird.f32 %v715_v51 }
  0xe8   : > { %v507_v60 = vpop.f32.mrf.mxu0  ;;  %v837_v21 = vor.u32 1.1754944e-38, %v836_v13  ;;  %vm835_vm13 = vcmp.eq.f32.partialorder %v834_v12, 8.507059e+37 }
  0xe9   : > { %v1393_v61 = vpack.c.bf16 %v1353_v56, %v1353_v56  ;;  %v813_v62 = vmul.f32 %v7520_v44, %v812_v57  ;;  %v7939_v63 = vadd.f32 %v7900_v31, %v507_v60 }
  0xeb   : > { %v7522_v0 = vpop.eup %7521  ;;  %1590 = vst.msk [vmem:[#allocation3 + $0x10] sm:$0xf] %vm1586_vm7, %v1393_v61  ;;  %v814_v1 = vadd.f32 %v7520_v44, %v813_v62  ;;  %v6902_v2 = vmul.f32 -1.442695, %v7939_v63 }
  0xec   : > { %v7524_v3 = vpop.eup %7523  ;;  %v716_v4 = vadd.f32 1.0, %v7522_v0 }
  0xed   : > { %v818_v5 = vsel %vm817_vm8, %v7520_v44, %v814_v1  ;;  %v826_v6 = vmul.f32 %v7524_v3, %v715_v51  ;;  %7525 = vpow2.f32 %v6902_v2  ;;  %vm831_vm10 = vweird.f32 %v7524_v3 }
  0xee   : > { %v823_v7 = vsel %vm820_vm9, %v822_v55, %v818_v5  ;;  %7527 = vrcp.f32 %v716_v4  ;;  %vm832_vm12 = vmor %vm830_vm11, %vm831_vm10  ;;  %v849_v29 = vand.u32 2147483647, %v716_v4  ;;  %v851_v30 = vand.u32 2147483648, %v716_v4 }
  0xef   : > { %v1354_v8 = vmul.f32 %v823_v7, %v7919_v9  ;;  %v827_v10 = vsub.f32 1.0, %v826_v6  ;;  %vm845_vm15 = vweird.f32 %v716_v4 }
  0xf0   : > { %v510_v14 = vpop.f32.mrf.mxu0  ;;  %vm850_vm1 = vcmp.eq.f32.partialorder %v849_v29, 8.507059e+37 }
  0xf1   : > { %v1394_v15 = vpack.c.bf16 %v1354_v8, %v1354_v8  ;;  %v828_v16 = vmul.f32 %v7524_v3, %v827_v10  ;;  %v7945_v17 = vadd.f32 %v7900_v31, %v510_v14 }
  0xf3   : > { %v7526_v18 = vpop.eup %7525  ;;  %1591 = vst.msk [vmem:[#allocation3 + $0x18] sm:$0xf] %vm1586_vm7, %v1394_v15  ;;  %v829_v19 = vadd.f32 %v7524_v3, %v828_v16  ;;  %v6903_v20 = vmul.f32 -1.442695, %v7945_v17  ;;  %6887 = vmatmul.msk.bf16.gmra.mxu0 %vm416_vm2, %v7003_v11 }
  0xf4   : > { %v7528_v9 = vpop.eup %7527  ;;  %v717_v22 = vadd.f32 1.0, %v7526_v18 }
  0xf5   : > { %v833_v23 = vsel %vm832_vm12, %v7524_v3, %v829_v19  ;;  %v841_v24 = vmul.f32 %v7528_v9, %v716_v4  ;;  %7529 = vpow2.f32 %v6903_v20  ;;  %vm846_vm14 = vweird.f32 %v7528_v9 }
  0xf6   : > { %v838_v25 = vsel %vm835_vm13, %v837_v21, %v833_v23  ;;  %7531 = vrcp.f32 %v717_v22  ;;  %vm847_vm0 = vmor %vm845_vm15, %vm846_vm14  ;;  %v864_v48 = vand.u32 2147483647, %v717_v22  ;;  %v866_v49 = vand.u32 2147483648, %v717_v22 }
  0xf7   : > { %v1355_v27 = vmul.f32 %v838_v25, %v7926_v26  ;;  %v842_v28 = vsub.f32 1.0, %v841_v24  ;;  %v852_v26 = vor.u32 1.1754944e-38, %v851_v30  ;;  %vm860_vm4 = vweird.f32 %v717_v22 }
  0xf8   : > { %v512_v32 = vpop.f32.mrf.mxu0  ;;  %vm865_vm6 = vcmp.eq.f32.partialorder %v864_v48, 8.507059e+37 }
  0xf9   : > { %v1395_v33 = vpack.c.bf16 %v1355_v27, %v1355_v27  ;;  %v843_v34 = vmul.f32 %v7528_v9, %v842_v28  ;;  %v7952_v35 = vadd.f32 %v7900_v31, %v512_v32 }
  0xfb   : > { %v7530_v36 = vpop.eup %7529  ;;  %1592 = vst.msk [vmem:[#allocation3 + $0x1c] sm:$0xf] %vm1586_vm7, %v1395_v33  ;;  %v844_v37 = vadd.f32 %v7528_v9, %v843_v34  ;;  %v6904_v38 = vmul.f32 -1.442695, %v7952_v35 }
  0xfc   : > { %v7532_v39 = vpop.eup %7531  ;;  %v718_v40 = vadd.f32 1.0, %v7530_v36 }
  0xfd   : > { %v848_v41 = vsel %vm847_vm0, %v7528_v9, %v844_v37  ;;  %v856_v42 = vmul.f32 %v7532_v39, %v717_v22  ;;  %7533 = vpow2.f32 %v6904_v38  ;;  %vm861_vm3 = vweird.f32 %v7532_v39 }
  0xfe   : > { %v853_v43 = vsel %vm850_vm1, %v852_v26, %v848_v41  ;;  %7535 = vrcp.f32 %v718_v40  ;;  %vm862_vm5 = vmor %vm860_vm4, %vm861_vm3  ;;  %v879_v1 = vand.u32 2147483647, %v718_v40  ;;  %v881_v2 = vand.u32 2147483648, %v718_v40 }
  0xff   : > { %v1356_v45 = vmul.f32 %v853_v43, %v7932_v46  ;;  %v857_v47 = vsub.f32 1.0, %v856_v42  ;;  %v867_v46 = vor.u32 1.1754944e-38, %v866_v49  ;;  %vm875_vm9 = vweird.f32 %v718_v40  ;;  %v1430_v49 = vld [vmem:[%s11240_s3] sm:$0x3] }
 0x100   : > { %v515_v44 = vpop.f32.mrf.mxu0  ;;  %vm880_vm11 = vcmp.eq.f32.partialorder %v879_v1, 8.507059e+37  ;;  %vm1496_vm4 = vcmask 1041408  }
 0x101   : > { %v1396_v50 = vpack.c.bf16 %v1356_v45, %v1356_v45  ;;  %v858_v51 = vmul.f32 %v7532_v39, %v857_v47  ;;  %v7958_v52 = vadd.f32 %v7900_v31, %v515_v44 }
 0x103   : > { %v7534_v53 = vpop.eup %7533  ;;  %1593 = vst.msk [vmem:[#allocation3 + $0x24] sm:$0xf] %vm1586_vm7, %v1396_v50  ;;  %v859_v54 = vadd.f32 %v7532_v39, %v858_v51  ;;  %v6905_v56 = vmul.f32 -1.442695, %v7958_v52 }
 0x104   : > { %v7536_v57 = vpop.eup %7535  ;;  %v719_v58 = vadd.f32 1.0, %v7534_v53 }
 0x105   : > { %v863_v59 = vsel %vm862_vm5, %v7532_v39, %v859_v54  ;;  %v871_v60 = vmul.f32 %v7536_v57, %v718_v40  ;;  %7537 = vpow2.f32 %v6905_v56  ;;  %vm876_vm8 = vweird.f32 %v7536_v57  ;;  %v7005_v39 = vld [vmem:[#allocation2 + $0x98] sm:$0xff] }
 0x106   : > { %v868_v61 = vsel %vm865_vm6, %v867_v46, %v863_v59  ;;  %7539 = vrcp.f32 %v719_v58  ;;  %vm877_vm10 = vmor %vm875_vm9, %vm876_vm8  ;;  %v894_v18 = vand.u32 2147483647, %v719_v58  ;;  %v896_v19 = vand.u32 2147483648, %v719_v58  ;;  %6889 = vmatmul.msk.bf16.gmra.mxu2 %vm416_vm2, %v7005_v39 }
 0x107   : > { %v1357_v62 = vmul.f32 %v868_v61, %v7939_v63  ;;  %v872_v0 = vsub.f32 1.0, %v871_v60  ;;  %v882_v63 = vor.u32 1.1754944e-38, %v881_v2  ;;  %vm890_vm13 = vweird.f32 %v719_v58 }
 0x108   : > { %v517_v3 = vpop.f32.mrf.mxu0  ;;  %vm895_vm15 = vcmp.eq.f32.partialorder %v894_v18, 8.507059e+37  ;;  %v1498_v56 = vsel %vm1496_vm4, %v1430_v49, 0 }
 0x109   : > { %v1397_v55 = vpack.c.bf16 %v1357_v62, %v1357_v62  ;;  %v873_v4 = vmul.f32 %v7536_v57, %v872_v0  ;;  %v7964_v5 = vadd.f32 %v7900_v31, %v517_v3  ;;  %1507 = vmatpush.bf16.msra.mxu1 %v1498_v56  ;;  %7454 = vmatpush.bf16.msrb.mxu3 %v1498_v56 }
 0x10b   : > { %v7538_v6 = vpop.eup %7537  ;;  %1594 = vst.msk [vmem:[#allocation3 + $0x28] sm:$0xf] %vm1586_vm7, %v1397_v55  ;;  %v874_v7 = vadd.f32 %v7536_v57, %v873_v4  ;;  %v6906_v8 = vmul.f32 -1.442695, %v7964_v5 }
 0x10c   : > { %v7540_v10 = vpop.eup %7539  ;;  %v720_v11 = vadd.f32 1.0, %v7538_v6 }
 0x10d   : > { %v878_v12 = vsel %vm877_vm10, %v7536_v57, %v874_v7  ;;  %v886_v13 = vmul.f32 %v7540_v10, %v719_v58  ;;  %7541 = vpow2.f32 %v6906_v8  ;;  %vm891_vm12 = vweird.f32 %v7540_v10 }
 0x10e   : > { %v883_v14 = vsel %vm880_vm11, %v882_v63, %v878_v12  ;;  %7543 = vrcp.f32 %v720_v11  ;;  %vm892_vm14 = vmor %vm890_vm13, %vm891_vm12  ;;  %v909_v36 = vand.u32 2147483647, %v720_v11  ;;  %v911_v37 = vand.u32 2147483648, %v720_v11 }
 0x10f   : > { %v1358_v15 = vmul.f32 %v883_v14, %v7945_v17  ;;  %v887_v16 = vsub.f32 1.0, %v886_v13  ;;  %v897_v17 = vor.u32 1.1754944e-38, %v896_v19  ;;  %vm905_vm1 = vweird.f32 %v720_v11 }
 0x110   : > { %v520_v20 = vpop.f32.mrf.mxu0  ;;  %v912_v47 = vor.u32 1.1754944e-38, %v911_v37  ;;  %vm910_vm5 = vcmp.eq.f32.partialorder %v909_v36, 8.507059e+37 }
 0x111   : > { %v1398_v9 = vpack.c.bf16 %v1358_v15, %v1358_v15  ;;  %v888_v21 = vmul.f32 %v7540_v10, %v887_v16  ;;  %v7970_v22 = vadd.f32 %v7900_v31, %v520_v20  ;;  %v7006_v15 = vld [vmem:[#allocation2 + $0x60] sm:$0xff] }
 0x113   : > { %v7542_v23 = vpop.eup %7541  ;;  %1595 = vst.msk [vmem:[#allocation3 + $0x30] sm:$0xf] %vm1586_vm7, %v1398_v9  ;;  %v889_v24 = vadd.f32 %v7540_v10, %v888_v21  ;;  %v6907_v25 = vmul.f32 -1.442695, %v7970_v22 }
 0x114   : > { %v7544_v27 = vpop.eup %7543  ;;  %v721_v28 = vadd.f32 1.0, %v7542_v23 }
 0x115   : > { %v893_v29 = vsel %vm892_vm14, %v7540_v10, %v889_v24  ;;  %v901_v30 = vmul.f32 %v7544_v27, %v720_v11  ;;  %7545 = vpow2.f32 %v6907_v25  ;;  %vm906_vm0 = vweird.f32 %v7544_v27 }
 0x116   : > { %v898_v32 = vsel %vm895_vm15, %v897_v17, %v893_v29  ;;  %7547 = vrcp.f32 %v721_v28  ;;  %vm907_vm3 = vmor %vm905_vm1, %vm906_vm0  ;;  %v924_v57 = vand.u32 2147483647, %v721_v28  ;;  %v926_v46 = vand.u32 2147483648, %v721_v28  ;;  %6890 = vmatmul.msk.bf16.gmra.mxu2 %vm416_vm2, %v7006_v15 }
 0x117   : > { %v1359_v33 = vmul.f32 %v898_v32, %v7952_v35  ;;  %v902_v34 = vsub.f32 1.0, %v901_v30  ;;  %vm920_vm8 = vweird.f32 %v721_v28 }
 0x118   : > { %v522_v38 = vpop.f32.mrf.mxu0  ;;  %v927_v2 = vor.u32 1.1754944e-38, %v926_v46  ;;  %vm925_vm10 = vcmp.eq.f32.partialorder %v924_v57, 8.507059e+37 }
 0x119   : > { %v1399_v26 = vpack.c.bf16 %v1359_v33, %v1359_v33  ;;  %v903_v40 = vmul.f32 %v7544_v27, %v902_v34  ;;  %v7976_v41 = vadd.f32 %v7900_v31, %v522_v38 }
 0x11b   : > { %v7546_v42 = vpop.eup %7545  ;;  %1596 = vst.msk [vmem:[#allocation3 + $0x34] sm:$0xf] %vm1586_vm7, %v1399_v26  ;;  %v904_v43 = vadd.f32 %v7544_v27, %v903_v40  ;;  %v6908_v35 = vmul.f32 -1.442695, %v7976_v41 }
 0x11c   : > { %v7548_v45 = vpop.eup %7547  ;;  %v722_v48 = vadd.f32 1.0, %v7546_v42 }
 0x11d   : > { %v908_v44 = vsel %vm907_vm3, %v7544_v27, %v904_v43  ;;  %v916_v50 = vmul.f32 %v7548_v45, %v721_v28  ;;  %7549 = vpow2.f32 %v6908_v35  ;;  %vm921_vm6 = vweird.f32 %v7548_v45 }
 0x11e   : > { %v913_v51 = vsel %vm910_vm5, %v912_v47, %v908_v44  ;;  %7551 = vrcp.f32 %v722_v48  ;;  %vm922_vm9 = vmor %vm920_vm8, %vm921_vm6  ;;  %v939_v10 = vand.u32 2147483647, %v722_v48  ;;  %v941_v63 = vand.u32 2147483648, %v722_v48 }
 0x11f   : > { %v1360_v53 = vmul.f32 %v913_v51, %v7958_v52  ;;  %v917_v54 = vsub.f32 1.0, %v916_v50  ;;  %vm935_vm12 = vweird.f32 %v722_v48 }
 0x120   : > { %v525_v58 = vpop.f32.mrf.mxu0  ;;  %v942_v9 = vor.u32 1.1754944e-38, %v941_v63  ;;  %vm940_vm14 = vcmp.eq.f32.partialorder %v939_v10, 8.507059e+37 }
 0x121   : > { %v1400_v59 = vpack.c.bf16 %v1360_v53, %v1360_v53  ;;  %v918_v60 = vmul.f32 %v7548_v45, %v917_v54  ;;  %v7987_v61 = vadd.f32 %v7900_v31, %v525_v58  ;;  %v7007_v53 = vld [vmem:[#allocation2 + $0x20] sm:$0xff] }
 0x123   : > { %v7550_v62 = vpop.eup %7549  ;;  %1597 = vst.msk [vmem:[#allocation3 + $0x3c] sm:$0xf] %vm1586_vm7, %v1400_v59  ;;  %v919_v0 = vadd.f32 %v7548_v45, %v918_v60  ;;  %v6909_v52 = vmul.f32 -1.442695, %v7987_v61 }
 0x124   : > { %v7552_v1 = vpop.eup %7551  ;;  %v723_v3 = vadd.f32 1.0, %v7550_v62 }
 0x125   : > { %v923_v55 = vsel %vm922_vm9, %v7548_v45, %v919_v0  ;;  %v931_v4 = vmul.f32 %v7552_v1, %v722_v48  ;;  %7553 = vpow2.f32 %v6909_v52  ;;  %vm936_vm11 = vweird.f32 %v7552_v1 }
 0x126   : > { %v928_v6 = vsel %vm925_vm10, %v927_v2, %v923_v55  ;;  %7555 = vrcp.f32 %v723_v3  ;;  %vm937_vm13 = vmor %vm935_vm12, %vm936_vm11  ;;  %v954_v28 = vand.u32 2147483647, %v723_v3  ;;  %v956_v29 = vand.u32 2147483648, %v723_v3  ;;  %6891 = vmatmul.msk.bf16.gmra.mxu2 %vm416_vm2, %v7007_v53 }
 0x127   : > { %v1361_v7 = vmul.f32 %v928_v6, %v7964_v5  ;;  %v932_v8 = vsub.f32 1.0, %v931_v4  ;;  %v7009_v5 = vld [vmem:[#allocation2 + $0x70] sm:$0xff]  ;;  %vm950_vm0 = vweird.f32 %v723_v3  ;;  %vm1471_vm10 = vcmask 31744   ;;  %v555_v4 = vpop.f32.mrf.mxu2 }
 0x128   : > { %v527_v11 = vpop.f32.mrf.mxu0  ;;  %6893 = vmatmul.msk.bf16.vlgmr.msra.gmra.mxu3 %vm416_vm2, %v7009_v5  ;;  %vm955_vm3 = vcmp.eq.f32.partialorder %v954_v28, 8.507059e+37 }
 0x129   : > { %v1401_v12 = vpack.c.bf16 %v1361_v7, %v1361_v7  ;;  %v933_v13 = vmul.f32 %v7552_v1, %v932_v8  ;;  %v7993_v14 = vadd.f32 %v7900_v31, %v527_v11 }
 0x12b   : > { %v7554_v16 = vpop.eup %7553  ;;  %1598 = vst.msk [vmem:[#allocation3 + $0x40] sm:$0xf] %vm1586_vm7, %v1401_v12  ;;  %v934_v18 = vadd.f32 %v7552_v1, %v933_v13  ;;  %v6910_v19 = vmul.f32 -1.442695, %v7993_v14 }
 0x12c   : > { %v7556_v20 = vpop.eup %7555  ;;  %v724_v21 = vadd.f32 1.0, %v7554_v16 }
 0x12d   : > { %v938_v23 = vsel %vm937_vm13, %v7552_v1, %v934_v18  ;;  %v946_v24 = vmul.f32 %v7556_v20, %v723_v3  ;;  %7557 = vpow2.f32 %v6910_v19  ;;  %vm951_vm15 = vweird.f32 %v7556_v20 }
 0x12e   : > { %v943_v25 = vsel %vm940_vm14, %v942_v9, %v938_v23  ;;  %7559 = vrcp.f32 %v724_v21  ;;  %vm952_vm1 = vmor %vm950_vm0, %vm951_vm15  ;;  %v969_v47 = vand.u32 2147483647, %v724_v21  ;;  %v971_v48 = vand.u32 2147483648, %v724_v21 }
 0x12f   : > { %v1362_v27 = vmul.f32 %v943_v25, %v7970_v22  ;;  %v947_v17 = vsub.f32 1.0, %v946_v24  ;;  %v957_v22 = vor.u32 1.1754944e-38, %v956_v29  ;;  %vm965_vm6 = vweird.f32 %v724_v21 }
 0x130   : > { %v530_v30 = vpop.f32.mrf.mxu0  ;;  %vm970_vm9 = vcmp.eq.f32.partialorder %v969_v47, 8.507059e+37  ;;  %v972_v59 = vor.u32 1.1754944e-38, %v971_v48  ;;  %v8025_v24 = vadd.f32 %v7900_v31, %v555_v4 }
 0x131   : > { %v1402_v32 = vpack.c.bf16 %v1362_v27, %v1362_v27  ;;  %v948_v33 = vmul.f32 %v7556_v20, %v947_v17  ;;  %v8001_v34 = vadd.f32 %v7900_v31, %v530_v30  ;;  %v557_v30 = vpop.f32.mrf.mxu2 }
 0x133   : > { %v7558_v36 = vpop.eup %7557  ;;  %1599 = vst.msk [vmem:[#allocation3 + $0x48] sm:$0xf] %vm1586_vm7, %v1402_v32  ;;  %v949_v37 = vadd.f32 %v7556_v20, %v948_v33  ;;  %v6911_v38 = vmul.f32 -1.442695, %v8001_v34  ;;  %v1447_v62 = vunpack.c.l.b16 %v1402_v32  ;;  %v6921_v32 = vmul.f32 -1.442695, %v8025_v24 }
 0x134   : > { %v7560_v39 = vpop.eup %7559  ;;  %v725_v26 = vadd.f32 1.0, %v7558_v36  ;;  %v8032_v33 = vadd.f32 %v7900_v31, %v557_v30 }
 0x135   : > { %v953_v40 = vsel %vm952_vm1, %v7556_v20, %v949_v37  ;;  %v961_v42 = vmul.f32 %v7560_v39, %v724_v21  ;;  %7561 = vpow2.f32 %v6911_v38  ;;  %vm966_vm5 = vweird.f32 %v7560_v39 }
 0x136   : > { %v958_v43 = vsel %vm955_vm3, %v957_v22, %v953_v40  ;;  %7563 = vrcp.f32 %v725_v26  ;;  %vm967_vm8 = vmor %vm965_vm6, %vm966_vm5  ;;  %v984_v6 = vand.u32 2147483647, %v725_v26  ;;  %v986_v7 = vand.u32 2147483648, %v725_v26 }
 0x137   : > { %v1363_v35 = vmul.f32 %v958_v43, %v7976_v41  ;;  %v962_v45 = vsub.f32 1.0, %v961_v42  ;;  %v7010_v41 = vld [vmem:[#allocation2 + $0x90] sm:$0xff]  ;;  %vm980_vm12 = vweird.f32 %v725_v26  ;;  %v6922_v40 = vmul.f32 -1.442695, %v8032_v33  ;;  %v7008_v42 = vld [vmem:[#allocation2 + $0x48] sm:$0xff] }
 0x138   : > { %v532_v49 = vpop.f32.mrf.mxu0  ;;  %6894 = vmatmul.msk.bf16.gmra.mxu3 %vm416_vm2, %v7010_v41  ;;  %v987_v16 = vor.u32 1.1754944e-38, %v986_v7  ;;  %vm985_vm14 = vcmp.eq.f32.partialorder %v984_v6, 8.507059e+37  ;;  %6892 = vmatmul.msk.bf16.gmra.mxu2 %vm416_vm2, %v7008_v42 }
 0x139   : > { %v1403_v44 = vpack.c.bf16 %v1363_v35, %v1363_v35  ;;  %v963_v50 = vmul.f32 %v7560_v39, %v962_v45  ;;  %v8007_v51 = vadd.f32 %v7900_v31, %v532_v49 }
 0x13b   : > { %v7562_v54 = vpop.eup %7561  ;;  %v1448_v56 = vunpack.c.l.b16 %v1403_v44  ;;  %1600 = vst.msk [vmem:[#allocation3 + $0x4c] sm:$0xf] %vm1586_vm7, %v1403_v44  ;;  %v964_v57 = vadd.f32 %v7560_v39, %v963_v50  ;;  %v6912_v46 = vmul.f32 -1.442695, %v8007_v51 }
 0x13c   : > { %v7564_v58 = vpop.eup %7563  ;;  %v726_v60 = vadd.f32 1.0, %v7562_v54 }
 0x13d   : > { %v968_v0 = vsel %vm967_vm8, %v7560_v39, %v964_v57  ;;  %v976_v52 = vmul.f32 %v7564_v58, %v725_v26  ;;  %7565 = vpow2.f32 %v6912_v46  ;;  %v1463_v55 = vpack.c.b16 %v1448_v56, %v1447_v62 }
 0x13e   : > { %v973_v1 = vsel %vm970_vm9, %v972_v59, %v968_v0  ;;  %7567 = vrcp.f32 %v726_v60  ;;  %vm981_vm11 = vweird.f32 %v7564_v58  ;;  %v999_v23 = vand.u32 2147483647, %v726_v60 }
 0x13f   : > { %v1364_v2 = vmul.f32 %v973_v1, %v7987_v61  ;;  %v977_v3 = vsub.f32 1.0, %v976_v52  ;;  %6935 = vmatmul.msk.bf16.vlgmr.msra.gmra.mxu1 %vm1471_vm10, %v1463_v55  ;;  %vm982_vm13 = vmor %vm980_vm12, %vm981_vm11  ;;  %v1001_v25 = vand.u32 2147483648, %v726_v60  ;;  %vm995_vm0 = vweird.f32 %v726_v60 }
 0x140   : > { %v535_v8 = vpop.f32.mrf.mxu0  ;;  %vm1000_vm1 = vcmp.eq.f32.partialorder %v999_v23, 8.507059e+37 }
 0x141   : > { %v1404_v10 = vpack.c.bf16 %v1364_v2, %v1364_v2  ;;  %v978_v63 = vmul.f32 %v7564_v58, %v977_v3  ;;  %v8016_v11 = vadd.f32 %v7900_v31, %v535_v8  ;;  %v1002_v22 = vor.u32 1.1754944e-38, %v1001_v25 }
 0x143   : > { %v7566_v12 = vpop.eup %7565  ;;  %1601 = vst.msk [vmem:[#allocation3 + $0x54] sm:$0xf] %vm1586_vm7, %v1404_v10  ;;  %v979_v13 = vadd.f32 %v7564_v58, %v978_v63  ;;  %v6913_v61 = vmul.f32 -1.442695, %v8016_v11  ;;  %v1449_v43 = vunpack.c.l.b16 %v1404_v10 }
 0x144   : > { %v7568_v15 = vpop.eup %7567  ;;  %v8020_v18 = vadd.f32 1.0, %v7566_v12 }
 0x145   : > { %v983_v19 = vsel %vm982_vm13, %v7564_v58, %v979_v13  ;;  %v991_v5 = vmul.f32 %v7568_v15, %v726_v60  ;;  %7569 = vpow2.f32 %v6913_v61  ;;  %vm996_vm15 = vweird.f32 %v7568_v15 }
 0x146   : > { %v988_v20 = vsel %vm985_vm14, %v987_v16, %v983_v19  ;;  %7571 = vrcp.f32 %v8020_v18  ;;  %vm997_vm3 = vmor %vm995_vm0, %vm996_vm15  ;;  %v1014_v50 = vand.u32 2147483647, %v8020_v18  ;;  %v1016_v53 = vand.u32 2147483648, %v8020_v18 }
 0x147   : > { %v1365_v9 = vmul.f32 %v988_v20, %v7993_v14  ;;  %v992_v21 = vsub.f32 1.0, %v991_v5  ;;  %7573 = vpow2.f32 %v6921_v32  ;;  %vm1010_vm6 = vweird.f32 %v8020_v18 }
 0x148   : > { %v537_v27 = vpop.f32.mrf.mxu0  ;;  %v1017_v0 = vor.u32 1.1754944e-38, %v1016_v53  ;;  %vm1015_vm9 = vcmp.eq.f32.partialorder %v1014_v50, 8.507059e+37 }
 0x149   : > { %v1405_v17 = vpack.c.bf16 %v1365_v9, %v1365_v9  ;;  %v993_v28 = vmul.f32 %v7568_v15, %v992_v21  ;;  %v8028_v29 = vadd.f32 %v7900_v31, %v537_v27 }
 0x14b   : > { %v7570_v14 = vpop.eup %7569  ;;  %v1450_v36 = vunpack.c.l.b16 %v1405_v17  ;;  %1602 = vst.msk [vmem:[#allocation3 + $0x58] sm:$0xf] %vm1586_vm7, %v1405_v17  ;;  %v994_v37 = vadd.f32 %v7568_v15, %v993_v28  ;;  %v6914_v38 = vmul.f32 -1.442695, %v8028_v29 }
 0x14c   : > { %v7572_v39 = vpop.eup %7571  ;;  %v728_v26 = vadd.f32 1.0, %v7570_v14 }
 0x14d   : > { %v998_v35 = vsel %vm997_vm3, %v7568_v15, %v994_v37  ;;  %v1006_v45 = vmul.f32 %v7572_v39, %v8020_v18  ;;  %7575 = vpow2.f32 %v6914_v38  ;;  %v1464_v44 = vpack.c.b16 %v1450_v36, %v1449_v43  ;;  %v7574_v41 = vpop.eup %7573 }
 0x14e   : > { %v1003_v47 = vsel %vm1000_vm1, %v1002_v22, %v998_v35  ;;  %7577 = vrcp.f32 %v728_v26  ;;  %vm1011_vm5 = vweird.f32 %v7572_v39  ;;  %v8052_v60 = vadd.f32 1.0, %v7574_v41 }
 0x14f   : > { %v1366_v48 = vmul.f32 %v1003_v47, %v8001_v34  ;;  %v1007_v49 = vsub.f32 1.0, %v1006_v45  ;;  %7579 = vpow2.f32 %v6922_v40  ;;  %6936 = vmatmul.msk.bf16.gmra.mxu1 %vm1471_vm10, %v1464_v44  ;;  %vm1012_vm8 = vmor %vm1010_vm6, %vm1011_vm5  ;;  %v1029_v7 = vand.u32 2147483647, %v728_v26  ;;  %v8087_v40 = vld [vmem:[%s11239_s2] ss:$0 sm:$0xff] }
 0x150   : > { %v540_v54 = vpop.f32.mrf.mxu0  ;;  %v1031_v8 = vand.u32 2147483648, %v728_v26  ;;  %vm1025_vm12 = vweird.f32 %v728_v26  ;;  %vm1145_vm0 = vweird.f32 %v8052_v60  ;;  %v1149_v36 = vand.u32 2147483647, %v8052_v60 }
 0x151   : > { %v8042_v56 = vpack.c.bf16 %v1366_v48, %v1366_v48  ;;  %v1008_v57 = vmul.f32 %v7572_v39, %v1007_v49  ;;  %v8046_v46 = vadd.f32 %v7900_v31, %v540_v54  ;;  %vm1030_vm14 = vcmp.eq.f32.partialorder %v1029_v7, 8.507059e+37 }
 0x152   : > { %v1032_v19 = vor.u32 1.1754944e-38, %v1031_v8  ;;  %v1151_v37 = vand.u32 2147483648, %v8052_v60 }
 0x153   : > { %v7576_v58 = vpop.eup %7575  ;;  %1603 = vst.msk [vmem:[#allocation3 + $0x60] sm:$0xf] %vm1586_vm7, %v8042_v56  ;;  %v1009_v34 = vadd.f32 %v7572_v39, %v1008_v57  ;;  %v6915_v59 = vmul.f32 -1.442695, %v8046_v46  ;;  %v1451_v9 = vunpack.c.l.b16 %v8042_v56 }
 0x154   : > { %v7578_v62 = vpop.eup %7577  ;;  %v8054_v52 = vadd.f32 1.0, %v7576_v58  ;;  %v1152_v54 = vor.u32 1.1754944e-38, %v1151_v37 }
 0x155   : > { %v1013_v1 = vsel %vm1012_vm8, %v7572_v39, %v1009_v34  ;;  %v1021_v2 = vmul.f32 %v7578_v62, %v728_v26  ;;  %7581 = vpow2.f32 %v6915_v59  ;;  %v7580_v3 = vpop.eup %7579  ;;  %vm1026_vm11 = vweird.f32 %v7578_v62 }
 0x156   : > { %v1018_v55 = vsel %vm1015_vm9, %v1017_v0, %v1013_v1  ;;  %7583 = vrcp.f32 %v8054_v52  ;;  %v8059_v63 = vadd.f32 1.0, %v7580_v3  ;;  %vm1027_vm13 = vmor %vm1025_vm12, %vm1026_vm11  ;;  %v1044_v27 = vand.u32 2147483647, %v8054_v52 }
 0x157   : > { %v1367_v4 = vmul.f32 %v1018_v55, %v8007_v51  ;;  %v1022_v6 = vsub.f32 1.0, %v1021_v2  ;;  %7585 = vrcp.f32 %v8052_v60  ;;  %v1046_v30 = vand.u32 2147483648, %v8054_v52 }
 0x158   : > { %v542_v10 = vpop.f32.mrf.mxu0  ;;  %7587 = vrcp.f32 %v8059_v63  ;;  %vm1040_vm3 = vweird.f32 %v8054_v52  ;;  %vm1045_vm6 = vcmp.eq.f32.partialorder %v1044_v27, 8.507059e+37  ;;  %vm1150_vm9 = vcmp.eq.f32.partialorder %v1149_v36, 8.507059e+37 }
 0x159   : > { %v1407_v12 = vpack.c.bf16 %v1367_v4, %v1367_v4  ;;  %v1023_v13 = vmul.f32 %v7578_v62, %v1022_v6  ;;  %v8062_v61 = vadd.f32 %v7900_v31, %v542_v10  ;;  %v1047_v48 = vor.u32 1.1754944e-38, %v1046_v30 }
 0x15a   : > { %vm1160_vm11 = vweird.f32 %v8059_v63  ;;  %v1164_v10 = vand.u32 2147483647, %v8059_v63 }
 0x15b   : > { %v7582_v15 = vpop.eup %7581  ;;  %1604 = vst.msk [vmem:[#allocation3 + $0x64] sm:$0xf] %vm1586_vm7, %v1407_v12  ;;  %v1024_v51 = vadd.f32 %v7578_v62, %v1023_v13  ;;  %v6916_v16 = vmul.f32 -1.442695, %v8062_v61  ;;  %v1452_v23 = vunpack.c.l.b16 %v1407_v12 }
 0x15c   : > { %v7584_v18 = vpop.eup %7583  ;;  %v8067_v5 = vadd.f32 1.0, %v7582_v15 }
 0x15d   : > { %v7586_v20 = vpop.eup %7585  ;;  %v1028_v31 = vsel %vm1027_vm13, %v7578_v62, %v1024_v51  ;;  %v1036_v21 = vmul.f32 %v7584_v18, %v8054_v52  ;;  %7589 = vpow2.f32 %v6916_v16  ;;  %vm1041_vm15 = vweird.f32 %v7584_v18 }
 0x15e   : > { %v1033_v25 = vsel %vm1030_vm14, %v1032_v19, %v1028_v31  ;;  %7591 = vrcp.f32 %v8067_v5  ;;  %v1141_v32 = vmul.f32 %v7586_v20, %v8052_v60  ;;  %v8076_v14 = vpop.eup %7587  ;;  %vm1146_vm1 = vweird.f32 %v7586_v20  ;;  %vm8097_vm5 = vmor %vm1040_vm3, %vm1041_vm15 }
 0x15f   : > { %v1368_v17 = vmul.f32 %v1033_v25, %v8016_v11  ;;  %v1037_v28 = vsub.f32 1.0, %v1036_v21  ;;  %v1465_v11 = vpack.c.b16 %v1452_v23, %v1451_v9  ;;  %v1156_v43 = vmul.f32 %v8076_v14, %v8059_v63  ;;  %vm8106_vm8 = vmor %vm1145_vm0, %vm1146_vm1 }
 0x160   : > { %v545_v38 = vpop.f32.mrf.mxu0  ;;  %v1142_v26 = vsub.f32 1.0, %v1141_v32  ;;  %v1059_v60 = vand.u32 2147483647, %v8067_v5  ;;  %v1166_v62 = vand.u32 2147483648, %v8059_v63  ;;  %v1061_v1 = vand.u32 2147483648, %v8067_v5 }
 0x161   : > { %v8081_v39 = vpack.c.bf16 %v1368_v17, %v1368_v17  ;;  %v1038_v22 = vmul.f32 %v7584_v18, %v1037_v28  ;;  %v8090_v42 = vadd.f32 %v8087_v40, %v545_v38  ;;  %6937 = vmatmul.msk.bf16.gmra.mxu1 %vm1471_vm10, %v1465_v11  ;;  %v1157_v57 = vsub.f32 1.0, %v1156_v43 }
 0x162   : > { %v1143_v49 = vmul.f32 %v7586_v20, %v1142_v26  ;;  %vm1161_vm13 = vweird.f32 %v8076_v14  ;;  %v1167_v12 = vor.u32 1.1754944e-38, %v1166_v62  ;;  %vm1055_vm14 = vweird.f32 %v8067_v5 }
 0x163   : > { %v7590_v35 = vpop.eup %7589  ;;  %1605 = vst.msk [vmem:[#allocation3 + $0x6c] sm:$0xf] %vm1586_vm7, %v8081_v39  ;;  %v1039_v45 = vadd.f32 %v7584_v18, %v1038_v22  ;;  %v6917_v56 = vmul.f32 -1.442695, %v8090_v42  ;;  %v1158_v55 = vmul.f32 %v8076_v14, %v1157_v57  ;;  %vm8132_vm15 = vmor %vm1160_vm11, %vm1161_vm13  ;;  %v1062_v19 = vor.u32 1.1754944e-38, %v1061_v1 }
 0x164   : > { %v7592_v44 = vpop.eup %7591  ;;  %v8101_v50 = vadd.f32 1.0, %v7590_v35  ;;  %v1144_v34 = vadd.f32 %v7586_v20, %v1143_v49  ;;  %vm1165_vm1 = vcmp.eq.f32.partialorder %v1164_v10, 8.507059e+37  ;;  %vm1060_vm3 = vcmp.eq.f32.partialorder %v1059_v60, 8.507059e+37 }
 0x165   : > { %v1043_v41 = vsel %vm8097_vm5, %v7584_v18, %v1039_v45  ;;  %v1051_v58 = vmul.f32 %v7592_v44, %v8067_v5  ;;  %vm1056_vm12 = vweird.f32 %v7592_v44  ;;  %v1453_v31 = vunpack.c.l.b16 %v8081_v39 }
 0x166   : > { %v1048_v59 = vsel %vm1045_vm6, %v1047_v48, %v1043_v41  ;;  %7593 = vrcp.f32 %v8101_v50  ;;  %v1148_v2 = vsel %vm8106_vm8, %v7586_v20, %v1144_v34  ;;  %vm1057_vm0 = vmor %vm1055_vm14, %vm1056_vm12  ;;  %v1074_v32 = vand.u32 2147483647, %v8101_v50 }
 0x167   : > { %v1369_v0 = vmul.f32 %v1048_v59, %v8028_v29  ;;  %v1052_v52 = vsub.f32 1.0, %v1051_v58  ;;  %v1153_v3 = vsel %vm1150_vm9, %v1152_v54, %v1148_v2  ;;  %7595 = vpow2.f32 %v6917_v56 }
 0x168   : > { %v547_v4 = vpop.f32.mrf.mxu0  ;;  %v1376_v8 = vmul.f32 %v1153_v3, %v8025_v24  ;;  %v1159_v29 = vadd.f32 %v8076_v14, %v1158_v55  ;;  %vm1070_vm6 = vweird.f32 %v8101_v50  ;;  %vm1075_vm9 = vcmp.eq.f32.partialorder %v1074_v32, 8.507059e+37 }
 0x169   : > { %v1409_v6 = vpack.c.bf16 %v1369_v0, %v1369_v0  ;;  %v1053_v7 = vmul.f32 %v7592_v44, %v1052_v52  ;;  %v8137_v24 = vadd.f32 %v8087_v40, %v547_v4 }
 0x16a   : > { %v8130_v15 = vpack.c.bf16 %v1376_v8, %v1376_v8  ;;  %v1163_v63 = vsel %vm8132_vm15, %v8076_v14, %v1159_v29  ;;  %v1076_v14 = vand.u32 2147483648, %v8101_v50 }
 0x16b   : > { %1606 = vst.msk [vmem:[#allocation3 + $0x70] sm:$0xf] %vm1586_vm7, %v1409_v6  ;;  %v1054_v13 = vadd.f32 %v7592_v44, %v1053_v7  ;;  %v1454_v18 = vunpack.c.l.b16 %v1409_v6  ;;  %v1168_v23 = vsel %vm1165_vm1, %v1167_v12, %v1163_v63  ;;  %v6918_v25 = vmul.f32 -1.442695, %v8137_v24 }
 0x16c   : > { %v7594_v16 = vpop.eup %7593  ;;  %1613 = vst.msk [vmem:[#allocation3 + $0x9c] sm:$0xf] %vm1586_vm7, %v8130_v15  ;;  %v1377_v30 = vmul.f32 %v1168_v23, %v8032_v33  ;;  %v1077_v33 = vor.u32 1.1754944e-38, %v1076_v14 }
 0x16d   : > { %v1058_v20 = vsel %vm1057_vm0, %v7592_v44, %v1054_v13  ;;  %v1066_v5 = vmul.f32 %v7594_v16, %v8101_v50  ;;  %v7596_v9 = vpop.eup %7595  ;;  %7597 = vpow2.f32 %v6918_v25  ;;  %v1466_v36 = vpack.c.b16 %v1454_v18, %v1453_v31 }
 0x16e   : > { %v1063_v21 = vsel %vm1060_vm3, %v1062_v19, %v1058_v20  ;;  %v732_v28 = vadd.f32 1.0, %v7596_v9  ;;  %vm1071_vm5 = vweird.f32 %v7594_v16  ;;  %v8151_v39 = vpack.c.bf16 %v1377_v30, %v1377_v30 }
 0x16f   : > { %v1370_v27 = vmul.f32 %v1063_v21, %v8046_v46  ;;  %v1067_v17 = vsub.f32 1.0, %v1066_v5  ;;  %vm1072_vm8 = vmor %vm1070_vm6, %vm1071_vm5 }
 0x170   : > { %v550_v37 = vpop.f32.mrf.mxu0  ;;  %7599 = vrcp.f32 %v732_v28  ;;  %1614 = vst.msk [vmem:[#allocation3 + $0xa0] sm:$0xf] %vm1586_vm7, %v8151_v39  ;;  %v1089_v57 = vand.u32 2147483647, %v732_v28  ;;  %v1091_v41 = vand.u32 2147483648, %v732_v28  ;;  %vm1085_vm12 = vweird.f32 %v732_v28 }
 0x171   : > { %v1410_v38 = vpack.c.bf16 %v1370_v27, %v1370_v27  ;;  %v1068_v22 = vmul.f32 %v7594_v16, %v1067_v17  ;;  %v8154_v26 = vadd.f32 %v8087_v40, %v550_v37  ;;  %6938 = vmatmul.msk.bf16.gmra.mxu1 %vm1471_vm10, %v1466_v36 }
 0x172   : > { %v1092_v1 = vor.u32 1.1754944e-38, %v1091_v41  ;;  %vm1090_vm14 = vcmp.eq.f32.partialorder %v1089_v57, 8.507059e+37 }
 0x173   : > { %1607 = vst.msk [vmem:[#allocation3 + $0x78] sm:$0xf] %vm1586_vm7, %v1410_v38  ;;  %v1069_v46 = vadd.f32 %v7594_v16, %v1068_v22  ;;  %v6919_v11 = vmul.f32 -1.442695, %v8154_v26  ;;  %v7598_v35 = vpop.eup %7597  ;;  %v1455_v62 = vunpack.c.l.b16 %v1410_v38 }
 0x174   : > { %v733_v49 = vadd.f32 1.0, %v7598_v35 }
 0x175   : > { %v1073_v43 = vsel %vm1072_vm8, %v7594_v16, %v1069_v46  ;;  %7601 = vpow2.f32 %v6919_v11 }
 0x176   : > { %v1078_v45 = vsel %vm1075_vm9, %v1077_v33, %v1073_v43  ;;  %v7600_v47 = vpop.eup %7599  ;;  %7603 = vrcp.f32 %v733_v49  ;;  %v1106_v8 = vand.u32 2147483648, %v733_v49  ;;  %v1104_v13 = vand.u32 2147483647, %v733_v49 }
 0x177   : > { %v1371_v48 = vmul.f32 %v1078_v45, %v8062_v61  ;;  %v1081_v44 = vmul.f32 %v7600_v47, %v732_v28  ;;  %vm1086_vm11 = vweird.f32 %v7600_v47  ;;  %vm1100_vm0 = vweird.f32 %v733_v49 }
 0x178   : > { %v552_v50 = vpop.f32.mrf.mxu0  ;;  %vm1087_vm13 = vmor %vm1085_vm12, %vm1086_vm11  ;;  %v1107_v63 = vor.u32 1.1754944e-38, %v1106_v8  ;;  %vm1105_vm3 = vcmp.eq.f32.partialorder %v1104_v13, 8.507059e+37 }
 0x179   : > { %v1411_v53 = vpack.c.bf16 %v1371_v48, %v1371_v48  ;;  %v1082_v54 = vsub.f32 1.0, %v1081_v44  ;;  %v8164_v56 = vadd.f32 %v8087_v40, %v552_v50 }
 0x17b   : > { %1608 = vst.msk [vmem:[#allocation3 + $0x7c] sm:$0xf] %vm1586_vm7, %v1411_v53  ;;  %v7602_v58 = vpop.eup %7601  ;;  %v1456_v34 = vunpack.c.l.b16 %v1411_v53  ;;  %v1083_v59 = vmul.f32 %v7600_v47, %v1082_v54  ;;  %v6920_v60 = vmul.f32 -1.442695, %v8164_v56 }
 0x17c   : > { %v734_v61 = vadd.f32 1.0, %v7602_v58  ;;  %v7604_v52 = vpop.eup %7603 }
 0x17d   : > { %v1084_v0 = vadd.f32 %v7600_v47, %v1083_v59  ;;  %7605 = vpow2.f32 %v6920_v60  ;;  %v1096_v3 = vmul.f32 %v7604_v52, %v733_v49  ;;  %v1467_v55 = vpack.c.b16 %v1456_v34, %v1455_v62 }
 0x17e   : > { %7607 = vrcp.f32 %v734_v61  ;;  %vm1101_vm15 = vweird.f32 %v7604_v52  ;;  %v1119_v9 = vand.u32 2147483647, %v734_v61  ;;  %v1121_v31 = vand.u32 2147483648, %v734_v61 }
 0x17f   : > { %v1088_v2 = vsel %vm1087_vm13, %v7600_v47, %v1084_v0  ;;  %v1097_v7 = vsub.f32 1.0, %v1096_v3  ;;  %vm1102_vm1 = vmor %vm1100_vm0, %vm1101_vm15  ;;  %vm1115_vm6 = vweird.f32 %v734_v61  ;;  %v1462_v62 = vunpack.c.l.b16 %v8151_v39 }
 0x180   : > { %v1093_v4 = vsel %vm1090_vm14, %v1092_v1, %v1088_v2  ;;  %vm1120_vm9 = vcmp.eq.f32.partialorder %v1119_v9, 8.507059e+37  ;;  %v1122_v28 = vor.u32 1.1754944e-38, %v1121_v31 }
 0x181   : > { %v1372_v6 = vmul.f32 %v1093_v4, %v8090_v42  ;;  %v1098_v12 = vmul.f32 %v7604_v52, %v1097_v7  ;;  %6939 = vmatmul.msk.bf16.gmra.mxu1 %vm1471_vm10, %v1467_v55 }
 0x183   : > { %v7606_v29 = vpop.eup %7605  ;;  %v1412_v10 = vpack.c.bf16 %v1372_v6, %v1372_v6  ;;  %v1099_v18 = vadd.f32 %v7604_v52, %v1098_v12 }
 0x184   : > { %v7608_v51 = vpop.eup %7607  ;;  %v735_v16 = vadd.f32 1.0, %v7606_v29 }
 0x185   : > { %1609 = vst.msk [vmem:[#allocation3 + $0x84] sm:$0xf] %vm1586_vm7, %v1412_v10  ;;  %v1111_v19 = vmul.f32 %v7608_v51, %v734_v61  ;;  %v1103_v42 = vsel %vm1102_vm1, %v7604_v52, %v1099_v18  ;;  %vm1116_vm5 = vweird.f32 %v7608_v51  ;;  %v1457_v30 = vunpack.c.l.b16 %v1412_v10 }
 0x186   : > { %7609 = vrcp.f32 %v735_v16  ;;  %v1108_v5 = vsel %vm1105_vm3, %v1107_v63, %v1103_v42  ;;  %vm1117_vm8 = vmor %vm1115_vm6, %vm1116_vm5  ;;  %v1136_v46 = vand.u32 2147483648, %v735_v16  ;;  %v1134_v43 = vand.u32 2147483647, %v735_v16 }
 0x187   : > { %v1112_v20 = vsub.f32 1.0, %v1111_v19  ;;  %v1373_v21 = vmul.f32 %v1108_v5, %v8137_v24  ;;  %vm1130_vm12 = vweird.f32 %v735_v16  ;;  %v1461_v61 = vunpack.c.l.b16 %v8130_v15 }
 0x188   : > { %v1137_v45 = vor.u32 1.1754944e-38, %v1136_v46  ;;  %vm1135_vm14 = vcmp.eq.f32.partialorder %v1134_v43, 8.507059e+37 }
 0x189   : > { %v1113_v23 = vmul.f32 %v7608_v51, %v1112_v20  ;;  %v1413_v25 = vpack.c.bf16 %v1373_v21, %v1373_v21  ;;  %v560_v53 = vpop.f32.mrf.mxu2  ;;  %v1470_v2 = vpack.c.b16 %v1462_v62, %v1461_v61 }
 0x18a   : > { %v561_v57 = vadd.f32 %v8087_v40, %v560_v53 }
 0x18b   : > { %v1114_v27 = vadd.f32 %v7608_v51, %v1113_v23  ;;  %v1458_v32 = vunpack.c.l.b16 %v1413_v25  ;;  %1610 = vst.msk [vmem:[#allocation3 + $0x88] sm:$0xf] %vm1586_vm7, %v1413_v25 }
 0x18c   : > { %v7610_v17 = vpop.eup %7609  ;;  %v6923_v41 = vmul.f32 -1.442695, %v561_v57 }
 0x18d   : > { %v1118_v14 = vsel %vm1117_vm8, %v7608_v51, %v1114_v27  ;;  %v1126_v36 = vmul.f32 %v7610_v17, %v735_v16  ;;  %v1468_v38 = vpack.c.b16 %v1458_v32, %v1457_v30  ;;  %vm1131_vm11 = vweird.f32 %v7610_v17 }
 0x18e   : > { %v1123_v37 = vsel %vm1120_vm9, %v1122_v28, %v1118_v14  ;;  %vm1132_vm13 = vmor %vm1130_vm12, %vm1131_vm11  ;;  %7611 = vpow2.f32 %v6923_v41 }
 0x18f   : > { %v1374_v22 = vmul.f32 %v1123_v37, %v8154_v26  ;;  %v1127_v24 = vsub.f32 1.0, %v1126_v36  ;;  %6940 = vmatmul.msk.bf16.vlgmr.msrb.gmra.mxu3 %vm1471_vm10, %v1468_v38 }
 0x191   : > { %v1414_v33 = vpack.c.bf16 %v1374_v22, %v1374_v22  ;;  %v1128_v11 = vmul.f32 %v7610_v17, %v1127_v24  ;;  %v562_v58 = vpop.f32.mrf.mxu2 }
 0x192   : > { %v8181_v34 = vadd.f32 %v8087_v40, %v562_v58 }
 0x193   : > { %1611 = vst.msk [vmem:[#allocation3 + $0x90] sm:$0xf] %vm1586_vm7, %v1414_v33  ;;  %v1129_v35 = vadd.f32 %v7610_v17, %v1128_v11  ;;  %v1459_v44 = vunpack.c.l.b16 %v1414_v33 }
 0x194   : > { %v7612_v59 = vpop.eup %7611 }
 0x195   : > { %v1133_v47 = vsel %vm1132_vm13, %v7610_v17, %v1129_v35  ;;  %v738_v60 = vadd.f32 1.0, %v7612_v59 }
 0x196   : > { %v1138_v48 = vsel %vm1135_vm14, %v1137_v45, %v1133_v47 }
 0x197   : > { %v1375_v49 = vmul.f32 %v1138_v48, %v8164_v56  ;;  %v6924_v56 = vmul.f32 -1.442695, %v8181_v34  ;;  %vm1175_vm15 = vweird.f32 %v738_v60  ;;  %v1179_v8 = vand.u32 2147483647, %v738_v60 }
 0x198   : > { %v1181_v29 = vand.u32 2147483648, %v738_v60 }
 0x199   : > { %v1415_v26 = vpack.c.bf16 %v1375_v49, %v1375_v49  ;;  %7613 = vpow2.f32 %v6924_v56  ;;  %v565_v0 = vpop.f32.mrf.mxu2  ;;  %vm1180_vm3 = vcmp.eq.f32.partialorder %v1179_v8, 8.507059e+37 }
 0x19a   : > { %7615 = vrcp.f32 %v738_v60  ;;  %v8187_v52 = vadd.f32 %v8087_v40, %v565_v0  ;;  %v1182_v51 = vor.u32 1.1754944e-38, %v1181_v29 }
 0x19b   : > { %v1460_v50 = vunpack.c.l.b16 %v1415_v26  ;;  %1612 = vst.msk [vmem:[#allocation3 + $0x94] sm:$0xf] %vm1586_vm7, %v1415_v26 }
 0x19c   : > { %v6925_v4 = vmul.f32 -1.442695, %v8187_v52 }
 0x19d   : > { %v1469_v54 = vpack.c.b16 %v1460_v50, %v1459_v44 }
 0x19f   : > { %6941 = vmatmul.msk.bf16.gmra.mxu3 %vm1471_vm10, %v1469_v54  ;;  %v7614_v1 = vpop.eup %7613 }
 0x1a0   : > { %v7616_v3 = vpop.eup %7615  ;;  %v739_v55 = vadd.f32 1.0, %v7614_v1 }
 0x1a1   : > { %v1171_v6 = vmul.f32 %v7616_v3, %v738_v60  ;;  %vm1176_vm0 = vweird.f32 %v7616_v3  ;;  %v567_v13 = vpop.f32.mrf.mxu2 }
 0x1a2   : > { %7617 = vrcp.f32 %v739_v55  ;;  %vm1177_vm1 = vmor %vm1175_vm15, %vm1176_vm0  ;;  %v8196_v16 = vadd.f32 %v8087_v40, %v567_v13  ;;  %vm1190_vm5 = vweird.f32 %v739_v55  ;;  %v1196_v9 = vand.u32 2147483648, %v739_v55 }
 0x1a3   : > { %v1172_v15 = vsub.f32 1.0, %v1171_v6  ;;  %7619 = vpow2.f32 %v6925_v4  ;;  %v1194_v28 = vand.u32 2147483647, %v739_v55 }
 0x1a4   : > { %v6926_v63 = vmul.f32 -1.442695, %v8196_v16  ;;  %v1197_v22 = vor.u32 1.1754944e-38, %v1196_v9 }
 0x1a5   : > { %v1173_v10 = vmul.f32 %v7616_v3, %v1172_v15  ;;  %vm1195_vm9 = vcmp.eq.f32.partialorder %v1194_v28, 8.507059e+37 }
 0x1a7   : > { %v1174_v18 = vadd.f32 %v7616_v3, %v1173_v10 }
 0x1a8   : > { %v7618_v19 = vpop.eup %7617 }
 0x1a9   : > { %v7620_v42 = vpop.eup %7619  ;;  %v1178_v20 = vsel %vm1177_vm1, %v7616_v3, %v1174_v18  ;;  %v1186_v5 = vmul.f32 %v7618_v19, %v739_v55  ;;  %vm1191_vm6 = vweird.f32 %v7618_v19  ;;  %v570_v38 = vpop.f32.mrf.mxu2 }
 0x1aa   : > { %v1183_v21 = vsel %vm1180_vm3, %v1182_v51, %v1178_v20  ;;  %v740_v23 = vadd.f32 1.0, %v7620_v42  ;;  %vm1192_vm8 = vmor %vm1190_vm5, %vm1191_vm6  ;;  %v8207_v46 = vadd.f32 %v8087_v40, %v570_v38 }
 0x1ab   : > { %v580_v7 = vpop.f32.mrf.mxu3  ;;  %v1378_v27 = vmul.f32 %v1183_v21, %v561_v57  ;;  %v1187_v17 = vsub.f32 1.0, %v1186_v5 }
 0x1ac   : > { %v8192_v39 = vadd.f32 %v8087_v40, %v580_v7  ;;  %v6927_v45 = vmul.f32 -1.442695, %v8207_v46  ;;  %v1209_v49 = vand.u32 2147483647, %v740_v23  ;;  %v1211_v53 = vand.u32 2147483648, %v740_v23 }
 0x1ad   : > { %v1418_v32 = vpack.c.bf16 %v1378_v27, %v1378_v27  ;;  %v1188_v36 = vmul.f32 %v7618_v19, %v1187_v17  ;;  %vm1205_vm11 = vweird.f32 %v740_v23 }
 0x1ae   : > { %v6931_v12 = vmul.f32 -1.442695, %v8192_v39  ;;  %vm8220_vm13 = vcmp.eq.f32.partialorder %v1209_v49, 8.507059e+37  ;;  %v1212_v1 = vor.u32 1.1754944e-38, %v1211_v53 }
 0x1af   : > { %6942 = vmatmul.msk.bf16.gmra.mxu3 %vm1471_vm10, %v1470_v2  ;;  %1615 = vst.msk [vmem:[#allocation3 + $0xa8] sm:$0xf] %vm1586_vm7, %v1418_v32  ;;  %v1189_v33 = vadd.f32 %v7618_v19, %v1188_v36 }
 0x1b0   : > { %7621 = vpow2.f32 %v6931_v12 }
 0x1b1   : > { %7623 = vpow2.f32 %v6926_v63  ;;  %v1193_v43 = vsel %vm1192_vm8, %v7618_v19, %v1189_v33  ;;  %v572_v6 = vpop.f32.mrf.mxu2 }
 0x1b2   : > { %7625 = vrcp.f32 %v740_v23  ;;  %v1198_v48 = vsel %vm1195_vm9, %v1197_v22, %v1193_v43  ;;  %v8239_v15 = vadd.f32 %v8087_v40, %v572_v6 }
 0x1b3   : > { %v582_v31 = vpop.f32.mrf.mxu3  ;;  %v1379_v44 = vmul.f32 %v1198_v48, %v8181_v34 }
 0x1b4   : > { %v8200_v25 = vadd.f32 %v8087_v40, %v582_v31  ;;  %v6928_v42 = vmul.f32 -1.442695, %v8239_v15 }
 0x1b5   : > { %v1419_v41 = vpack.c.bf16 %v1379_v44, %v1379_v44 }
 0x1b6   : > { %v7622_v30 = vpop.eup %7621  ;;  %v6932_v37 = vmul.f32 -1.442695, %v8200_v25 }
 0x1b7   : > { %v746_v24 = vadd.f32 1.0, %v7622_v30  ;;  %v7624_v11 = vpop.eup %7623  ;;  %1616 = vst.msk [vmem:[#allocation3 + $0xac] sm:$0xf] %vm1586_vm7, %v1419_v41 }
 0x1b8   : > { %7627 = vpow2.f32 %v6932_v37  ;;  %v8210_v35 = vadd.f32 1.0, %v7624_v11  ;;  %v7626_v47 = vpop.eup %7625 }
 0x1b9   : > { %7629 = vrcp.f32 %v746_v24  ;;  %v1201_v50 = vmul.f32 %v7626_v47, %v740_v23  ;;  %v1299_v54 = vand.u32 2147483647, %v746_v24  ;;  %vm1206_vm12 = vweird.f32 %v7626_v47 }
 0x1ba   : > { %7631 = vrcp.f32 %v8210_v35  ;;  %v1301_v61 = vand.u32 2147483648, %v746_v24  ;;  %vm8229_vm14 = vmor %vm1205_vm11, %vm1206_vm12  ;;  %vm1295_vm15 = vweird.f32 %v746_v24  ;;  %vm1220_vm3 = vweird.f32 %v8210_v35 }
 0x1bb   : > { %v585_v26 = vpop.f32.mrf.mxu3  ;;  %7633 = vpow2.f32 %v6927_v45  ;;  %v1202_v59 = vsub.f32 1.0, %v1201_v50  ;;  %vm8233_vm1 = vcmp.eq.f32.partialorder %v1299_v54, 8.507059e+37  ;;  %v1226_v51 = vand.u32 2147483648, %v8210_v35  ;;  %v575_v45 = vpop.f32.mrf.mxu2 }
 0x1bc   : > { %v1509_v14 = vpop.f32.mrf.mxu1  ;;  %v8216_v56 = vadd.f32 %v8087_v40, %v585_v26  ;;  %v1302_v12 = vor.u32 1.1754944e-38, %v1301_v61  ;;  %v1224_v21 = vand.u32 2147483647, %v8210_v35 }
 0x1bd   : > { %1549 = vst.msk [vmem:[%s7839_s10] sm:$0xff] %vm416_vm2, %v1509_v14  ;;  %v1203_v0 = vmul.f32 %v7626_v47, %v1202_v59 }
 0x1be   : > { %v7628_v57 = vpop.eup %7627  ;;  %v6933_v3 = vmul.f32 -1.442695, %v8216_v56  ;;  %vm1225_vm9 = vcmp.eq.f32.partialorder %v1224_v21, 8.507059e+37 }
 0x1bf   : > { %v7630_v60 = vpop.eup %7629  ;;  %v8224_v62 = vadd.f32 1.0, %v7628_v57  ;;  %v1204_v8 = vadd.f32 %v7626_v47, %v1203_v0 }
 0x1c0   : > { %v1291_v2 = vmul.f32 %v7630_v60, %v746_v24  ;;  %vm1296_vm0 = vweird.f32 %v7630_v60  ;;  %v7632_v7 = vpop.eup %7631  ;;  %v1227_v24 = vor.u32 1.1754944e-38, %v1226_v51 }
 0x1c1   : > { %7635 = vrcp.f32 %v8224_v62  ;;  %v7634_v10 = vpop.eup %7633  ;;  %v1216_v13 = vmul.f32 %v7632_v7, %v8210_v35  ;;  %v1208_v18 = vsel %vm8229_vm14, %v7626_v47, %v1204_v8  ;;  %vm8253_vm5 = vmor %vm1295_vm15, %vm1296_vm0  ;;  %vm1221_vm6 = vweird.f32 %v7632_v7 }
 0x1c2   : > { %v1292_v29 = vsub.f32 1.0, %v1291_v2  ;;  %7637 = vpow2.f32 %v6933_v3  ;;  %v8246_v63 = vadd.f32 1.0, %v7634_v10  ;;  %v1213_v5 = vsel %vm8220_vm13, %v1212_v1, %v1208_v18  ;;  %vm8272_vm8 = vmor %vm1220_vm3, %vm1221_vm6 }
 0x1c3   : > { %v587_v20 = vpop.f32.mrf.mxu3  ;;  %v1217_v31 = vsub.f32 1.0, %v1216_v13  ;;  %v1380_v23 = vmul.f32 %v1213_v5, %v8187_v52  ;;  %v1314_v28 = vand.u32 2147483647, %v8224_v62  ;;  %v1316_v14 = vand.u32 2147483648, %v8224_v62  ;;  %v577_v8 = vpop.f32.mrf.mxu2 }
 0x1c4   : > { %v1511_v58 = vpop.f32.mrf.mxu1  ;;  %v1293_v19 = vmul.f32 %v7630_v60, %v1292_v29  ;;  %7639 = vrcp.f32 %v8246_v63  ;;  %v8265_v36 = vadd.f32 %v8087_v40, %v587_v20  ;;  %vm1310_vm11 = vweird.f32 %v8224_v62 }
 0x1c5   : > { %1550 = vst.msk [vmem:[%s7839_s10 + $0x8] sm:$0xff] %vm416_vm2, %v1511_v58  ;;  %v1218_v32 = vmul.f32 %v7632_v7, %v1217_v31  ;;  %7641 = vpow2.f32 %v6928_v42  ;;  %v1420_v38 = vpack.c.bf16 %v1380_v23, %v1380_v23  ;;  %vm8284_vm13 = vcmp.eq.f32.partialorder %v1314_v28, 8.507059e+37 }
 0x1c6   : > { %v1294_v17 = vadd.f32 %v7630_v60, %v1293_v19  ;;  %v1317_v44 = vor.u32 1.1754944e-38, %v1316_v14  ;;  %v6934_v50 = vmul.f32 -1.442695, %v8265_v36  ;;  %vm1235_vm15 = vweird.f32 %v8246_v63 }
 0x1c7   : > { %v7636_v30 = vpop.eup %7635  ;;  %v1219_v43 = vadd.f32 %v7632_v7, %v1218_v32  ;;  %1617 = vst.msk [vmem:[#allocation3 + $0xb4] sm:$0xf] %vm1586_vm7, %v1420_v38  ;;  %v1241_v34 = vand.u32 2147483648, %v8246_v63  ;;  %v1239_v1 = vand.u32 2147483647, %v8246_v63  ;;  %v8306_v3 = vadd.f32 %v8087_v40, %v575_v45 }
 0x1c8   : > { %v7638_v37 = vpop.eup %7637  ;;  %v1298_v52 = vsel %vm8253_vm5, %v7630_v60, %v1294_v17  ;;  %v1306_v33 = vmul.f32 %v7636_v30, %v8224_v62  ;;  %vm1311_vm12 = vweird.f32 %v7636_v30  ;;  %v8324_v18 = vadd.f32 %v8087_v40, %v577_v8 }
 0x1c9   : > { %v1303_v11 = vsel %vm8233_vm1, %v1302_v12, %v1298_v52  ;;  %v748_v48 = vadd.f32 1.0, %v7638_v37  ;;  %v1223_v49 = vsel %vm8272_vm8, %v7632_v7, %v1219_v43  ;;  %vm8292_vm14 = vmor %vm1310_vm11, %vm1311_vm12  ;;  %v1242_v7 = vor.u32 1.1754944e-38, %v1241_v34 }
 0x1ca   : > { %v1386_v47 = vmul.f32 %v1303_v11, %v8192_v39  ;;  %v1307_v35 = vsub.f32 1.0, %v1306_v33  ;;  %v7640_v53 = vpop.eup %7639  ;;  %v1228_v57 = vsel %vm1225_vm9, %v1227_v24, %v1223_v49  ;;  %v6929_v51 = vmul.f32 -1.442695, %v8306_v3 }
 0x1cb   : > { %7643 = vrcp.f32 %v748_v48  ;;  %v7642_v39 = vpop.eup %7641  ;;  %v1381_v58 = vmul.f32 %v1228_v57, %v8196_v16  ;;  %v1231_v60 = vmul.f32 %v7640_v53, %v8246_v63  ;;  %vm1236_vm0 = vweird.f32 %v7640_v53 }
 0x1cc   : > { %v1514_v27 = vpop.f32.mrf.mxu1  ;;  %v1426_v54 = vpack.c.bf16 %v1386_v47, %v1386_v47  ;;  %v1308_v41 = vmul.f32 %v7636_v30, %v1307_v35  ;;  %v8301_v16 = vadd.f32 1.0, %v7642_v39  ;;  %7645 = vpow2.f32 %v6934_v50  ;;  %vm8318_vm1 = vmor %vm1235_vm15, %vm1236_vm0 }
 0x1cd   : > { %1551 = vst.msk [vmem:[%s7839_s10 + $0x10] sm:$0xff] %vm416_vm2, %v1514_v27  ;;  %v1421_v62 = vpack.c.bf16 %v1381_v58, %v1381_v58  ;;  %v1232_v2 = vsub.f32 1.0, %v1231_v60  ;;  %v1329_v13 = vand.u32 2147483647, %v748_v48  ;;  %vm1240_vm3 = vcmp.eq.f32.partialorder %v1239_v1, 8.507059e+37 }
 0x1ce   : > { %1623 = vst.msk [vmem:[#allocation3 + $0xd8] sm:$0xf] %vm1586_vm7, %v1426_v54  ;;  %v1309_v0 = vadd.f32 %v7636_v30, %v1308_v41  ;;  %7647 = vrcp.f32 %v8301_v16  ;;  %v1331_v20 = vand.u32 2147483648, %v748_v48  ;;  %vm1325_vm5 = vweird.f32 %v748_v48 }
 0x1cf   : > { %1618 = vst.msk [vmem:[#allocation3 + $0xb8] sm:$0xf] %vm1586_vm7, %v1421_v62  ;;  %v1233_v6 = vmul.f32 %v7640_v53, %v1232_v2  ;;  %7649 = vpow2.f32 %v6929_v51  ;;  %vm8330_vm8 = vcmp.eq.f32.partialorder %v1329_v13, 8.507059e+37  ;;  %vm1250_vm11 = vweird.f32 %v8301_v16 }
 0x1d0   : > { %v1313_v55 = vsel %vm8292_vm14, %v7636_v30, %v1309_v0  ;;  %v1332_v30 = vor.u32 1.1754944e-38, %v1331_v20  ;;  %v1254_v37 = vand.u32 2147483647, %v8301_v16  ;;  %v1256_v38 = vand.u32 2147483648, %v8301_v16 }
 0x1d1   : > { %v1318_v4 = vsel %vm8284_vm13, %v1317_v44, %v1313_v55  ;;  %v7644_v29 = vpop.eup %7643  ;;  %v1234_v19 = vadd.f32 %v7640_v53, %v1233_v6 }
 0x1d2   : > { %v1387_v10 = vmul.f32 %v1318_v4, %v8200_v25  ;;  %v1321_v42 = vmul.f32 %v7644_v29, %v748_v48  ;;  %v6930_v25 = vmul.f32 -1.442695, %v8324_v18  ;;  %v7646_v9 = vpop.eup %7645  ;;  %vm1326_vm6 = vweird.f32 %v7644_v29 }
 0x1d3   : > { %v1238_v63 = vsel %vm8318_vm1, %v7640_v53, %v1234_v19  ;;  %v749_v27 = vadd.f32 1.0, %v7646_v9  ;;  %vm8336_vm9 = vmor %vm1325_vm5, %vm1326_vm6  ;;  %v1257_v48 = vor.u32 1.1754944e-38, %v1256_v38  ;;  %vm1255_vm14 = vcmp.eq.f32.partialorder %v1254_v37, 8.507059e+37 }
 0x1d4   : > { %v1516_v61 = vpop.f32.mrf.mxu1  ;;  %v1427_v5 = vpack.c.bf16 %v1387_v10, %v1387_v10  ;;  %v1322_v31 = vsub.f32 1.0, %v1321_v42  ;;  %v7648_v21 = vpop.eup %7647  ;;  %v1243_v40 = vsel %vm1240_vm3, %v1242_v7, %v1238_v63  ;;  %7651 = vpow2.f32 %v6930_v25 }
 0x1d5   : > { %1552 = vst.msk [vmem:[%s7839_s10 + $0x18] sm:$0xff] %vm416_vm2, %v1516_v61  ;;  %v1382_v17 = vmul.f32 %v1243_v40, %v8207_v46  ;;  %v1246_v32 = vmul.f32 %v7648_v21, %v8301_v16  ;;  %7653 = vrcp.f32 %v749_v27  ;;  %vm1251_vm12 = vweird.f32 %v7648_v21  ;;  %v7650_v46 = vpop.eup %7649 }
 0x1d6   : > { %1624 = vst.msk [vmem:[#allocation3 + $0xdc] sm:$0xf] %vm1586_vm7, %v1427_v5  ;;  %v1323_v28 = vmul.f32 %v7644_v29, %v1322_v31  ;;  %v744_v45 = vadd.f32 1.0, %v7650_v46  ;;  %vm1252_vm13 = vmor %vm1250_vm11, %vm1251_vm12  ;;  %vm1340_vm15 = vweird.f32 %v749_v27  ;;  %v1346_v39 = vand.u32 2147483648, %v749_v27 }
 0x1d7   : > { %v1422_v52 = vpack.c.bf16 %v1382_v17, %v1382_v17  ;;  %v1247_v33 = vsub.f32 1.0, %v1246_v32 }
 0x1d8   : > { %v1324_v24 = vadd.f32 %v7644_v29, %v1323_v28  ;;  %7655 = vrcp.f32 %v744_v45  ;;  %v1271_v1 = vand.u32 2147483648, %v744_v45  ;;  %v1347_v16 = vor.u32 1.1754944e-38, %v1346_v39 }
 0x1d9   : > { %1619 = vst.msk [vmem:[#allocation3 + $0xc0] sm:$0xf] %vm1586_vm7, %v1422_v52  ;;  %v1248_v43 = vmul.f32 %v7648_v21, %v1247_v33  ;;  %vm1265_vm5 = vweird.f32 %v744_v45 }
 0x1da   : > { %v1328_v11 = vsel %vm8336_vm9, %v7644_v29, %v1324_v24  ;;  %v7652_v47 = vpop.eup %7651  ;;  %v1272_v7 = vor.u32 1.1754944e-38, %v1271_v1 }
 0x1db   : > { %v1333_v35 = vsel %vm8330_vm8, %v1332_v30, %v1328_v11  ;;  %v1249_v26 = vadd.f32 %v7648_v21, %v1248_v43  ;;  %v7654_v44 = vpop.eup %7653  ;;  %v745_v50 = vadd.f32 1.0, %v7652_v47 }
 0x1dc   : > { %v1388_v49 = vmul.f32 %v1333_v35, %v8216_v56  ;;  %v1336_v57 = vmul.f32 %v7654_v44, %v749_v27  ;;  %vm1341_vm0 = vweird.f32 %v7654_v44  ;;  %v1344_v56 = vand.u32 2147483647, %v749_v27 }
 0x1dd   : > { %v1253_v54 = vsel %vm1252_vm13, %v7648_v21, %v1249_v26  ;;  %7657 = vrcp.f32 %v745_v50  ;;  %vm1342_vm1 = vmor %vm1340_vm15, %vm1341_vm0  ;;  %vm1280_vm8 = vweird.f32 %v745_v50  ;;  %v1286_v12 = vand.u32 2147483648, %v745_v50 }
 0x1de   : > { %v1519_v22 = vpop.f32.mrf.mxu1  ;;  %v1428_v53 = vpack.c.bf16 %v1388_v49, %v1388_v49  ;;  %v1258_v41 = vsel %vm1255_vm14, %v1257_v48, %v1253_v54  ;;  %v1337_v60 = vsub.f32 1.0, %v1336_v57  ;;  %v7656_v34 = vpop.eup %7655  ;;  %vm1345_vm3 = vcmp.eq.f32.partialorder %v1344_v56, 8.507059e+37 }
 0x1df   : > { %1553 = vst.msk [vmem:[%s7839_s10 + $0x20] sm:$0xff] %vm416_vm2, %v1519_v22  ;;  %v1383_v58 = vmul.f32 %v1258_v41, %v8239_v15  ;;  %v1261_v62 = vmul.f32 %v7656_v34, %v744_v45  ;;  %vm1266_vm6 = vweird.f32 %v7656_v34  ;;  %v1269_v15 = vand.u32 2147483647, %v744_v45 }
 0x1e0   : > { %1625 = vst.msk [vmem:[#allocation3 + $0xe4] sm:$0xf] %vm1586_vm7, %v1428_v53  ;;  %v1338_v0 = vmul.f32 %v7654_v44, %v1337_v60  ;;  %vm1267_vm9 = vmor %vm1265_vm5, %vm1266_vm6  ;;  %v1284_v42 = vand.u32 2147483647, %v745_v50  ;;  %v1287_v63 = vor.u32 1.1754944e-38, %v1286_v12 }
 0x1e1   : > { %v1423_v61 = vpack.c.bf16 %v1383_v58, %v1383_v58  ;;  %v1262_v4 = vsub.f32 1.0, %v1261_v62  ;;  %vm1270_vm12 = vcmp.eq.f32.partialorder %v1269_v15, 8.507059e+37 }
 0x1e2   : > { %v1339_v2 = vadd.f32 %v7654_v44, %v1338_v0  ;;  %vm1285_vm14 = vcmp.eq.f32.partialorder %v1284_v42, 8.507059e+37 }
 0x1e3   : > { %1620 = vst.msk [vmem:[#allocation3 + $0xc4] sm:$0xf] %vm1586_vm7, %v1423_v61  ;;  %v7658_v55 = vpop.eup %7657  ;;  %v1263_v10 = vmul.f32 %v7656_v34, %v1262_v4 }
 0x1e4   : > { %v1343_v6 = vsel %vm1342_vm1, %v7654_v44, %v1339_v2  ;;  %v1276_v8 = vmul.f32 %v7658_v55, %v745_v50  ;;  %vm1281_vm11 = vweird.f32 %v7658_v55 }
 0x1e5   : > { %v1348_v29 = vsel %vm1345_vm3, %v1347_v16, %v1343_v6  ;;  %v1264_v20 = vadd.f32 %v7656_v34, %v1263_v10  ;;  %vm1282_vm13 = vmor %vm1280_vm8, %vm1281_vm11 }
 0x1e6   : > { %v1521_v59 = vpop.f32.mrf.mxu1  ;;  %v1389_v13 = vmul.f32 %v1348_v29, %v8265_v36  ;;  %v1277_v19 = vsub.f32 1.0, %v1276_v8 }
 0x1e7   : > { %1554 = vst.msk [vmem:[%s7839_s10 + $0x28] sm:$0xff] %vm416_vm2, %v1521_v59  ;;  %v1268_v9 = vsel %vm1267_vm9, %v7656_v34, %v1264_v20 }
 0x1e8   : > { %v1429_v5 = vpack.c.bf16 %v1389_v13, %v1389_v13  ;;  %v1278_v25 = vmul.f32 %v7658_v55, %v1277_v19  ;;  %v1273_v31 = vsel %vm1270_vm12, %v1272_v7, %v1268_v9 }
 0x1e9   : > { %v1384_v21 = vmul.f32 %v1273_v31, %v8306_v3 }
 0x1ea   : > { %1626 = vst.msk [vmem:[#allocation3 + $0xe8] sm:$0xf] %vm1586_vm7, %v1429_v5  ;;  %v1279_v36 = vadd.f32 %v7658_v55, %v1278_v25 }
 0x1eb   : > { %v1424_v23 = vpack.c.bf16 %v1384_v21, %v1384_v21 }
 0x1ec   : > { %v1283_v40 = vsel %vm1282_vm13, %v7658_v55, %v1279_v36 }
 0x1ed   : > { %v1288_v27 = vsel %vm1285_vm14, %v1287_v63, %v1283_v40  ;;  %1621 = vst.msk [vmem:[#allocation3 + $0xcc] sm:$0xf] %vm1586_vm7, %v1424_v23 }
 0x1ee   : > { %v1524_v51 = vpop.f32.mrf.mxu1  ;;  %v1385_v17 = vmul.f32 %v1288_v27, %v8324_v18 }
 0x1ef   : > { %1555 = vst.msk [vmem:[%s7839_s10 + $0x30] sm:$0xff] %vm416_vm2, %v1524_v51 }
 0x1f0   : > { %v1425_v30 = vpack.c.bf16 %v1385_v17, %v1385_v17 }
 0x1f2   : > { %1622 = vst.msk [vmem:[#allocation3 + $0xd0] sm:$0xf] %vm1586_vm7, %v1425_v30 }
 0x1f6   : > { %v1526_v28 = vpop.f32.mrf.mxu1 }
 0x1f7   : > { %1556 = vst.msk [vmem:[%s7839_s10 + $0x38] sm:$0xff] %vm416_vm2, %v1526_v28 }
 0x1fe   : > { %v1529_v32 = vpop.f32.mrf.mxu1 }
 0x1ff   : > { %1557 = vst.msk [vmem:[%s7839_s10 + $0x40] sm:$0xff] %vm416_vm2, %v1529_v32 }
 0x206   : > { %v1531_v3 = vpop.f32.mrf.mxu1 }
 0x207   : > { %1558 = vst.msk [vmem:[%s7839_s10 + $0x48] sm:$0xff] %vm416_vm2, %v1531_v3 }
 0x212   : > { %v1534_v14 = vpop.f32.mrf.mxu3 }
 0x213   : > { %1559 = vst.msk [vmem:[%s7839_s10 + $0x50] sm:$0xff] %vm416_vm2, %v1534_v14 }
 0x21a   : > { %v1536_v18 = vpop.f32.mrf.mxu3 }
 0x21b   : > { %1560 = vst.msk [vmem:[%s7839_s10 + $0x58] sm:$0xff] %vm416_vm2, %v1536_v18 }
 0x222   : > { %v1539_v37 = vpop.f32.mrf.mxu3 }
 0x223   : > { %1561 = vst.msk [vmem:[%s7839_s10 + $0x60] sm:$0xff] %vm416_vm2, %v1539_v37 }
 0x22a   : > { %v1541_v38 = vpop.f32.mrf.mxu3 }
 0x22b   : > { %1562 = vst.msk [vmem:[%s7839_s10 + $0x68] sm:$0xff] %vm416_vm2, %v1541_v38 }
 0x232   : > { %v1544_v52 = vpop.f32.mrf.mxu3 }
 0x233   : > { %1563 = vst.msk [vmem:[%s7839_s10 + $0x70] sm:$0xff] %vm416_vm2, %v1544_v52 }
 0x237   : > { %1630 = sbr.rel (%p6943_p7) target bundleno = 585 (0x249), region = 59 }
 0x23a   : > { %v1546_v22 = vpop.f32.mrf.mxu3 }
 0x23b   : > { %1564 = vst.msk [vmem:[%s7839_s10 + $0x78] sm:$0xff] %vm416_vm2, %v1546_v22 }
 0x23c   : > { %v7770_v24 = vmov 4286644096  }
 0x23d   : > { %1631 = vst.msk [vmem:[#allocation3] sm:$0xf] %vm1586_vm7, %v7770_v24 }
 0x23e   : > { %1632 = vst.msk [vmem:[#allocation3 + $0x4] sm:$0xf] %vm1586_vm7, %v7770_v24 }
 0x23f   : > { %1633 = vst.msk [vmem:[#allocation3 + $0xc] sm:$0xf] %vm1586_vm7, %v7770_v24 }
 0x240   : > { %1634 = vst.msk [vmem:[#allocation3 + $0x10] sm:$0xf] %vm1586_vm7, %v7770_v24 }
 0x241   : > { %1635 = vst.msk [vmem:[#allocation3 + $0x18] sm:$0xf] %vm1586_vm7, %v7770_v24 }
 0x242   : > { %1636 = vst.msk [vmem:[#allocation3 + $0x1c] sm:$0xf] %vm1586_vm7, %v7770_v24 }
 0x243   : > { %1637 = vst.msk [vmem:[#allocation3 + $0x24] sm:$0xf] %vm1586_vm7, %v7770_v24 }
 0x244   : > { %1638 = vst.msk [vmem:[#allocation3 + $0x28] sm:$0xf] %vm1586_vm7, %v7770_v24 }
 0x245   : > { %1639 = vst.msk [vmem:[#allocation3 + $0x30] sm:$0xf] %vm1586_vm7, %v7770_v24 }
 0x246   : > { %1640 = vst.msk [vmem:[#allocation3 + $0x34] sm:$0xf] %vm1586_vm7, %v7770_v24 }
 0x247   : > { %1641 = vst.msk [vmem:[#allocation3 + $0x3c] sm:$0xf] %vm1586_vm7, %v7770_v24 }
 0x248   : > { %1642 = vst.msk [vmem:[#allocation3 + $0x40] sm:$0xf] %vm1586_vm7, %v7770_v24 }
 0x249 PF: > { %p6944_p8 = scmp.ne.s32.totalorder %s7751_s18, 1 }
 0x24b   : > { %1646 = sbr.rel (%p6944_p8) target bundleno = 605 (0x25d), region = 63 }
 0x250   : > { %v7771_v33 = vmov 4286644096  }
 0x251   : > { %1648 = vst.msk [vmem:[#allocation3 + $0xa8] sm:$0xf] %vm1586_vm7, %v7771_v33 }
 0x252   : > { %1649 = vst.msk [vmem:[#allocation3 + $0xac] sm:$0xf] %vm1586_vm7, %v7771_v33 }
 0x253   : > { %1650 = vst.msk [vmem:[#allocation3 + $0xb4] sm:$0xf] %vm1586_vm7, %v7771_v33 }
 0x254   : > { %1651 = vst.msk [vmem:[#allocation3 + $0xb8] sm:$0xf] %vm1586_vm7, %v7771_v33 }
 0x255   : > { %1652 = vst.msk [vmem:[#allocation3 + $0xc0] sm:$0xf] %vm1586_vm7, %v7771_v33 }
 0x256   : > { %1653 = vst.msk [vmem:[#allocation3 + $0xc4] sm:$0xf] %vm1586_vm7, %v7771_v33 }
 0x257   : > { %1654 = vst.msk [vmem:[#allocation3 + $0xcc] sm:$0xf] %vm1586_vm7, %v7771_v33 }
 0x258   : > { %1655 = vst.msk [vmem:[#allocation3 + $0xd0] sm:$0xf] %vm1586_vm7, %v7771_v33 }
 0x259   : > { %1656 = vst.msk [vmem:[#allocation3 + $0xd8] sm:$0xf] %vm1586_vm7, %v7771_v33 }
 0x25a   : > { %1657 = vst.msk [vmem:[#allocation3 + $0xdc] sm:$0xf] %vm1586_vm7, %v7771_v33 }
 0x25b   : > { %1658 = vst.msk [vmem:[#allocation3 + $0xe4] sm:$0xf] %vm1586_vm7, %v7771_v33 }
 0x25c   : > { %1659 = vst.msk [vmem:[#allocation3 + $0xe8] sm:$0xf] %vm1586_vm7, %v7771_v33 }
 0x25d PF: > { %v6945_v46 = vld [vmem:[%s11240_s3 + $0x2] sm:$0x3]  ;;  %v8415_v43 = vld [vmem:[#allocation3 + $0x8] sm:$0x3]  ;;  %v8419_v35 = vld [vmem:[#allocation3 + $0xc] sm:$0xff]   ;;  %vm2720_vm15 = vcmask 1047556  }
 0x25e   : > { %v8413_v11 = vld [vmem:[#allocation3] sm:$0xff]   ;;  %v3607_v45 = vsel %vm1496_vm4, %v6945_v46, 0  ;;  %v8421_v48 = vld [vmem:[#allocation3 + $0x14] sm:$0x3]  ;;  %v7371_v49 = vld [vmem:[#allocation3 + $0x18] sm:$0xff]   ;;  %v1759_v41 = vunpack.c.l.bf16 %v8415_v43  ;;  %v1760_v60 = vunpack.c.l.bf16 %v8419_v35  ;;  %vm2865_vm0 = vcmask 1044480  }
 0x25f   : > { %v7013_v47 = vunpack.c.l.bf16 %v8413_v11  ;;  %3616 = vmatpush.bf16.msrb.mxu2 %v3607_v45  ;;  %v7014_v26 = vunpack.c.h.bf16 %v8413_v11  ;;  %v8424_v44 = vunpack.c.l.bf16 %v7371_v49  ;;  %v8426_v50 = vunpack.c.h.bf16 %v7371_v49  ;;  %v8428_v53 = vld [vmem:[#allocation3 + $0x20] sm:$0x3]  ;;  %v8430_v54 = vld [vmem:[#allocation3 + $0x24] sm:$0xff]   ;;  %v8432_v57 = vld [vmem:[#allocation3 + $0x2c] sm:$0x3] }
 0x260   : > { %v7372_v39 = vld [vmem:[#allocation3 + $0x30] sm:$0xff]   ;;  %v8435_v58 = vld [vmem:[#allocation3 + $0x38] sm:$0x3]  ;;  %v8437_v59 = vld [vmem:[#allocation3 + $0x3c] sm:$0xff]   ;;  %vm3010_vm1 = vcmask 1045504   ;;  %vm3315_vm3 = vcmask 1046528  }
 0x261   : > { %v8443_v0 = vunpack.c.l.bf16 %v7372_v39  ;;  %v8445_v1 = vunpack.c.h.bf16 %v7372_v39  ;;  %v8447_v16 = vld [vmem:[#allocation3 + $0x44] sm:$0x3]  ;;  %v7373_v62 = vld [vmem:[#allocation3 + $0x48] sm:$0xff]   ;;  %v8449_v2 = vld [vmem:[#allocation3 + $0x50] sm:$0x3] }
 0x262   : > { %v8453_v15 = vunpack.c.l.bf16 %v7373_v62  ;;  %v8455_v6 = vunpack.c.h.bf16 %v7373_v62  ;;  %v8457_v7 = vld [vmem:[#allocation3 + $0x54] sm:$0xff]   ;;  %v8459_v8 = vld [vmem:[#allocation3 + $0x5c] sm:$0x3]  ;;  %v7374_v29 = vld [vmem:[#allocation3 + $0x60] sm:$0xff]   ;;  %v1774_v40 = vunpack.c.l.bf16 %v8447_v16  ;;  %v1777_v23 = vunpack.c.l.bf16 %v8449_v2 }
 0x263   : > { %v8463_v13 = vunpack.c.l.bf16 %v7374_v29  ;;  %v8465_v51 = vunpack.c.h.bf16 %v7374_v29  ;;  %v8467_v19 = vld [vmem:[#allocation3 + $0x68] sm:$0x3]  ;;  %v7375_v42 = vld [vmem:[#allocation3 + $0x78] sm:$0xff]   ;;  %v8469_v20 = vld [vmem:[#allocation3 + $0x80] sm:$0x3]  ;;  %v1778_v30 = vunpack.c.l.bf16 %v8457_v7  ;;  %v1779_v32 = vunpack.c.h.bf16 %v8457_v7 }
 0x264   : > { %v8473_v9 = vunpack.c.l.bf16 %v7375_v42  ;;  %v8475_v63 = vunpack.c.h.bf16 %v7375_v42  ;;  %v1709_v31 = vld [vmem:[#allocation3 + $0xc] sm:$0xff]   ;;  %v1711_v36 = vld [vmem:[#allocation3 + $0x14] sm:$0x3]  ;;  %v1714_v21 = vld [vmem:[#allocation3 + $0x20] sm:$0x3]  ;;  %v1780_v3 = vunpack.c.l.bf16 %v8459_v8 }
 0x265   : > { %v1715_v27 = vld [vmem:[#allocation3 + $0x24] sm:$0xff]   ;;  %v1717_v17 = vld [vmem:[#allocation3 + $0x2c] sm:$0x3]  ;;  %v1720_v28 = vld [vmem:[#allocation3 + $0x38] sm:$0x3]  ;;  %v1805_v22 = vunpack.c.l.bf16 %v1709_v31  ;;  %v1806_v24 = vunpack.c.h.bf16 %v1709_v31  ;;  %v1807_v33 = vunpack.c.l.bf16 %v1711_v36  ;;  %v1810_v39 = vunpack.c.l.bf16 %v1714_v21 }
 0x266   : > { %11360 = vst [vmem:[#allocation7_spill] sm:$0xff] %v8473_v9  ;;  %v1721_v18 = vld [vmem:[#allocation3 + $0x3c] sm:$0xff]   ;;  %v1723_v37 = vld [vmem:[#allocation3 + $0x44] sm:$0x3]  ;;  %v1726_v38 = vld [vmem:[#allocation3 + $0x50] sm:$0x3]  ;;  %v1811_v16 = vunpack.c.l.bf16 %v1715_v27  ;;  %v1812_v62 = vunpack.c.h.bf16 %v1715_v27  ;;  %v1813_v2 = vunpack.c.l.bf16 %v1717_v17  ;;  %v1816_v42 = vunpack.c.l.bf16 %v1720_v28 }
 0x267   : > { %11361 = vst [vmem:[#allocation8_spill] sm:$0xff] %v8475_v63  ;;  %v1727_v46 = vld [vmem:[#allocation3 + $0x54] sm:$0xff]   ;;  %v1729_v45 = vld [vmem:[#allocation3 + $0x5c] sm:$0x3]  ;;  %v1732_v49 = vld [vmem:[#allocation3 + $0x68] sm:$0x3]  ;;  %v1817_v14 = vunpack.c.l.bf16 %v1721_v18  ;;  %v1818_v25 = vunpack.c.h.bf16 %v1721_v18  ;;  %v1819_v5 = vunpack.c.l.bf16 %v1723_v37  ;;  %v1822_v10 = vunpack.c.l.bf16 %v1726_v38 }
 0x268   : > { %v1733_v7 = vld [vmem:[#allocation3 + $0x6c] sm:$0xff]   ;;  %v1735_v29 = vld [vmem:[#allocation3 + $0x74] sm:$0x3]  ;;  %v1739_v8 = vld [vmem:[#allocation3 + $0x84] sm:$0xff]   ;;  %v1823_v52 = vunpack.c.l.bf16 %v1727_v46  ;;  %v1824_v4 = vunpack.c.h.bf16 %v1727_v46  ;;  %v1825_v31 = vunpack.c.l.bf16 %v1729_v45  ;;  %v1828_v36 = vunpack.c.l.bf16 %v1732_v49 }
 0x269   : > { %v1741_v12 = vld [vmem:[#allocation3 + $0x8c] sm:$0x3]  ;;  %v1829_v55 = vunpack.c.l.bf16 %v1733_v7  ;;  %v1830_v61 = vunpack.c.h.bf16 %v1733_v7  ;;  %v1831_v34 = vunpack.c.l.bf16 %v1735_v29  ;;  %v1835_v21 = vunpack.c.l.bf16 %v1739_v8  ;;  %v8564_v7 = vld [vmem:[#allocation3 + $0x90] sm:$0xff]  }
 0x26a   : > { %v1836_v56 = vunpack.c.h.bf16 %v1739_v8  ;;  %v1837_v27 = vunpack.c.l.bf16 %v1741_v12  ;;  %v8486_v17 = vmax.f32 %v7013_v47, %v1805_v22  ;;  %v8490_v28 = vmax.f32 %v7014_v26, %v1806_v24  ;;  %11371 = vst [vmem:[#allocation9_spill] sm:$0xff] %v8564_v7 }
 0x26b   : > { %v8494_v18 = vmax.f32 %v1759_v41, %v1807_v33  ;;  %v8499_v37 = vmax.f32 %v1760_v60, %v8424_v44  ;;  %v11362_v12 = vunpack.c.h.bf16 %v8419_v35  ;;  %v11363_v47 = vunpack.c.l.bf16 %v8421_v48 }
 0x26c   : > { %v8511_v11 = vmax.f32 %v8424_v44, %v1811_v16  ;;  %v8514_v43 = vmax.f32 %v8426_v50, %v1812_v62  ;;  %v11364_v26 = vunpack.c.l.bf16 %v8428_v53  ;;  %v11365_v60 = vunpack.c.l.bf16 %v8430_v54 }
 0x26d   : > { %v8504_v38 = vmax.f32 %v11362_v12, %v8426_v50  ;;  %v8508_v22 = vmax.f32 %v11363_v47, %v1810_v39  ;;  %v11366_v48 = vunpack.c.h.bf16 %v8430_v54  ;;  %v11367_v33 = vunpack.c.l.bf16 %v8432_v57 }
 0x26e   : > { %v8518_v41 = vmax.f32 %v11364_v26, %v1813_v2  ;;  %v8523_v35 = vmax.f32 %v11365_v60, %v8443_v0  ;;  %v8535_v45 = vmax.f32 %v8443_v0, %v1817_v14  ;;  %v8538_v53 = vmax.f32 %v8445_v1, %v1818_v25  ;;  %v1965_v26 = vld [vmem:[#allocation3 + $0x54] sm:$0xff]   ;;  %v1970_v60 = vld [vmem:[#allocation3 + $0x68] sm:$0x3] }
 0x26f   : > { %v8528_v24 = vmax.f32 %v11366_v48, %v8445_v1  ;;  %v8532_v46 = vmax.f32 %v11367_v33, %v1816_v42  ;;  %v11368_v49 = vunpack.c.l.bf16 %v8435_v58  ;;  %v11369_v16 = vunpack.c.l.bf16 %v8437_v59  ;;  %v1973_v33 = vld [vmem:[#allocation3 + $0x74] sm:$0x3] }
 0x270   : > { %v11370_v57 = vunpack.c.h.bf16 %v8437_v59  ;;  %v8554_v2 = vmax.f32 %v1774_v40, %v1822_v10  ;;  %v8557_v14 = vmax.f32 %v8453_v15, %v1823_v52  ;;  %v8560_v25 = vmax.f32 %v8455_v6, %v1824_v4  ;;  %v1953_v40 = vld [vmem:[#allocation3 + $0x24] sm:$0xff]   ;;  %v1955_v52 = vld [vmem:[#allocation3 + $0x2c] sm:$0x3]  ;;  %v1958_v4 = vld [vmem:[#allocation3 + $0x38] sm:$0x3] }
 0x271   : > { %v8542_v39 = vmax.f32 %v11368_v49, %v1819_v5  ;;  %v8547_v54 = vmax.f32 %v11369_v16, %v8453_v15  ;;  %v8562_v58 = vmax.f32 %v1777_v23, %v1825_v31  ;;  %v1952_v5 = vld [vmem:[#allocation3 + $0x20] sm:$0x3]  ;;  %v8567_v29 = vmax.f32 %v1778_v30, %v8463_v13 }
 0x272   : > { %v8552_v62 = vmax.f32 %v11370_v57, %v8455_v6  ;;  %v8570_v59 = vmax.f32 %v1779_v32, %v8465_v51  ;;  %v8572_v8 = vmax.f32 %v1780_v3, %v1828_v36  ;;  %v8575_v10 = vmax.f32 %v8463_v13, %v1829_v55  ;;  %v1959_v3 = vld [vmem:[#allocation3 + $0x3c] sm:$0xff]   ;;  %v1961_v36 = vld [vmem:[#allocation3 + $0x44] sm:$0x3]  ;;  %v1964_v55 = vld [vmem:[#allocation3 + $0x50] sm:$0x3] }
 0x273   : > { %v8578_v23 = vmax.f32 %v8465_v51, %v1830_v61  ;;  %v11374_v42 = vunpack.c.l.bf16 %v8467_v19  ;;  %v8585_v30 = vmax.f32 %v8473_v9, %v1835_v21  ;;  %v8588_v32 = vmax.f32 %v8475_v63, %v1836_v56  ;;  %v1967_v61 = vld [vmem:[#allocation3 + $0x5c] sm:$0x3]  ;;  %v1971_v21 = vld [vmem:[#allocation3 + $0x6c] sm:$0xff]   ;;  %v1976_v49 = vld [vmem:[#allocation3 + $0x80] sm:$0x3] }
 0x274   : > { %11372 = vst [vmem:[#allocation10_spill] sm:$0xff] %v8575_v10  ;;  %v11378_v12 = vunpack.c.l.bf16 %v8469_v20  ;;  %v2048_v48 = vunpack.c.l.bf16 %v1952_v5  ;;  %v2049_v56 = vunpack.c.l.bf16 %v1953_v40  ;;  %v2050_v16 = vunpack.c.h.bf16 %v1953_v40 }
 0x275   : > { %11373 = vst [vmem:[#allocation11_spill] sm:$0xff] %v8578_v23  ;;  %v8582_v31 = vmax.f32 %v11374_v42, %v1831_v34  ;;  %v2051_v57 = vunpack.c.l.bf16 %v1955_v52  ;;  %v2054_v42 = vunpack.c.l.bf16 %v1958_v4  ;;  %v2056_v20 = vunpack.c.h.bf16 %v1959_v3 }
 0x276   : > { %11376 = vst [vmem:[#allocation13_spill] sm:$0xff] %v8585_v30  ;;  %v8592_v47 = vmax.f32 %v11378_v12, %v1837_v27  ;;  %v2055_v30 = vunpack.c.l.bf16 %v1959_v3  ;;  %v2057_v27 = vunpack.c.l.bf16 %v1961_v36  ;;  %v2060_v12 = vunpack.c.l.bf16 %v1964_v55  ;;  %v2215_v55 = vld [vmem:[#allocation3 + $0x84] sm:$0xff]  }
 0x277   : > { %11375 = vst [vmem:[#allocation12_spill] sm:$0xff] %v8582_v31  ;;  %v2062_v31 = vunpack.c.h.bf16 %v1965_v26  ;;  %v2063_v23 = vunpack.c.l.bf16 %v1967_v61  ;;  %v2066_v63 = vunpack.c.l.bf16 %v1970_v60  ;;  %v2067_v19 = vunpack.c.l.bf16 %v1971_v21  ;;  %v2211_v61 = vld [vmem:[#allocation3 + $0x74] sm:$0x3] }
 0x278   : > { %11377 = vst [vmem:[#allocation14_spill] sm:$0xff] %v8588_v32  ;;  %v1982_v32 = vld [vmem:[#allocation3 + $0x98] sm:$0x3]  ;;  %v2068_v10 = vunpack.c.h.bf16 %v1971_v21  ;;  %v2069_v34 = vunpack.c.l.bf16 %v1973_v33  ;;  %v2072_v5 = vunpack.c.l.bf16 %v1976_v49  ;;  %v8601_v52 = vmax.f32 %v8494_v18, %v2048_v48 }
 0x279   : > { %11379 = vst [vmem:[#allocation15_spill] sm:$0xff] %v8592_v47  ;;  %v2061_v47 = vunpack.c.l.bf16 %v1965_v26  ;;  %v2078_v7 = vunpack.c.l.bf16 %v1982_v32  ;;  %v8604_v4 = vmax.f32 %v8499_v37, %v2049_v56  ;;  %v8607_v3 = vmax.f32 %v8504_v38, %v2050_v16 }
 0x27a   : > { %v8610_v36 = vmax.f32 %v8508_v22, %v2051_v57  ;;  %v8617_v26 = vmax.f32 %v8518_v41, %v2054_v42  ;;  %v8620_v18 = vmax.f32 %v8523_v35, %v2055_v30  ;;  %v8623_v37 = vmax.f32 %v8528_v24, %v2056_v20  ;;  %v2191_v30 = vld [vmem:[#allocation3 + $0x24] sm:$0xff]   ;;  %v2203_v42 = vld [vmem:[#allocation3 + $0x54] sm:$0xff]   ;;  %v2205_v57 = vld [vmem:[#allocation3 + $0x5c] sm:$0x3] }
 0x27b   : > { %v8626_v38 = vmax.f32 %v8532_v46, %v2057_v27  ;;  %v8633_v60 = vmax.f32 %v8542_v39, %v2060_v12  ;;  %v8636_v41 = vmax.f32 %v8547_v54, %v2061_v47  ;;  %v8639_v35 = vmax.f32 %v8552_v62, %v2062_v31  ;;  %v2193_v62 = vld [vmem:[#allocation3 + $0x2c] sm:$0x3]  ;;  %v2196_v31 = vld [vmem:[#allocation3 + $0x38] sm:$0x3]  ;;  %v2208_v46 = vld [vmem:[#allocation3 + $0x68] sm:$0x3] }
 0x27c   : > { %v8642_v24 = vmax.f32 %v8554_v2, %v2063_v23  ;;  %v8649_v21 = vmax.f32 %v8562_v58, %v2066_v63  ;;  %v8652_v39 = vmax.f32 %v8567_v29, %v2067_v19  ;;  %v8655_v54 = vmax.f32 %v8570_v59, %v2068_v10  ;;  %v2197_v2 = vld [vmem:[#allocation3 + $0x3c] sm:$0xff]   ;;  %v2199_v29 = vld [vmem:[#allocation3 + $0x44] sm:$0x3]  ;;  %v2202_v19 = vld [vmem:[#allocation3 + $0x50] sm:$0x3] }
 0x27d   : > { %v8658_v23 = vmax.f32 %v8572_v8, %v2069_v34  ;;  %v11389_v59 = vld [vmem:[#allocation9_spill] sm:$0xff]  ;;  %v2288_v32 = vunpack.c.h.bf16 %v2191_v30  ;;  %v2289_v40 = vunpack.c.l.bf16 %v2193_v62  ;;  %v2292_v9 = vunpack.c.l.bf16 %v2196_v31 }
 0x27e   : > { %11380 = vst [vmem:[#allocation16_spill] sm:$0xff] %v8652_v39  ;;  %v11387_v63 = vld [vmem:[#allocation12_spill] sm:$0xff]  ;;  %v11390_v10 = vunpack.c.l.bf16 %v11389_v59  ;;  %v11391_v20 = vld [vmem:[#allocation13_spill] sm:$0xff]  ;;  %v11393_v8 = vunpack.c.h.bf16 %v11389_v59  ;;  %v2294_v59 = vunpack.c.h.bf16 %v2197_v2  ;;  %v2311_v56 = vunpack.c.l.bf16 %v2215_v55 }
 0x27f   : > { %11381 = vst [vmem:[#allocation17_spill] sm:$0xff] %v8655_v54  ;;  %v8665_v58 = vmax.f32 %v11387_v63, %v2072_v5  ;;  %v11394_v34 = vld [vmem:[#allocation14_spill] sm:$0xff]  ;;  %v2287_v63 = vunpack.c.l.bf16 %v2191_v30  ;;  %v2214_v22 = vld [vmem:[#allocation3 + $0x80] sm:$0x3]  ;;  %v2312_v39 = vunpack.c.h.bf16 %v2215_v55 }
 0x280   : > { %11382 = vst [vmem:[#allocation18_spill] sm:$0xff] %v8658_v23  ;;  %v8670_v27 = vmax.f32 %v11391_v20, %v11390_v10  ;;  %v8675_v12 = vmax.f32 %v11394_v34, %v11393_v8  ;;  %v11396_v49 = vld [vmem:[#allocation15_spill] sm:$0xff]  ;;  %v2293_v10 = vunpack.c.l.bf16 %v2197_v2  ;;  %v2217_v20 = vld [vmem:[#allocation3 + $0x8c] sm:$0x3]  ;;  %v2298_v8 = vunpack.c.l.bf16 %v2202_v19 }
 0x281   : > { %11388 = vst [vmem:[#allocation12_spill] sm:$0xff] %v8665_v58  ;;  %v8678_v48 = vmax.f32 %v11396_v49, %v2078_v7  ;;  %v2209_v5 = vld [vmem:[#allocation3 + $0x6c] sm:$0xff]   ;;  %v2295_v58 = vunpack.c.l.bf16 %v2199_v29  ;;  %v2299_v34 = vunpack.c.l.bf16 %v2203_v42  ;;  %v2300_v7 = vunpack.c.h.bf16 %v2203_v42 }
 0x282   : > { %11392 = vst [vmem:[#allocation13_spill] sm:$0xff] %v8670_v27  ;;  %v2221_v27 = vld [vmem:[#allocation3 + $0x9c] sm:$0xff]   ;;  %v2301_v49 = vunpack.c.l.bf16 %v2205_v57  ;;  %v2305_v16 = vunpack.c.l.bf16 %v2209_v5  ;;  %v2306_v33 = vunpack.c.h.bf16 %v2209_v5  ;;  %v2307_v23 = vunpack.c.l.bf16 %v2211_v61 }
 0x283   : > { %11395 = vst [vmem:[#allocation14_spill] sm:$0xff] %v8675_v12  ;;  %v2223_v12 = vld [vmem:[#allocation3 + $0xa4] sm:$0x3]  ;;  %v2310_v54 = vunpack.c.l.bf16 %v2214_v22  ;;  %v2313_v30 = vunpack.c.l.bf16 %v2217_v20  ;;  %v2317_v62 = vunpack.c.l.bf16 %v2221_v27  ;;  %v2318_v31 = vunpack.c.h.bf16 %v2221_v27  ;;  %v2458_v22 = vld [vmem:[#allocation3 + $0x98] sm:$0x3] }
 0x284   : > { %11397 = vst [vmem:[#allocation15_spill] sm:$0xff] %v8678_v48  ;;  %v2304_v48 = vunpack.c.l.bf16 %v2208_v46  ;;  %v2319_v47 = vunpack.c.l.bf16 %v2223_v12  ;;  %v11398_v2 = vmax.f32 %v8486_v17, %v8424_v44  ;;  %v11399_v19 = vmax.f32 %v8490_v28, %v8426_v50 }
 0x285   : > { %v8691_v46 = vmax.f32 %v8601_v52, %v2289_v40  ;;  %v8698_v61 = vmax.f32 %v8610_v36, %v2292_v9  ;;  %v11400_v44 = vmax.f32 %v8511_v11, %v8443_v0  ;;  %v11401_v50 = vmax.f32 %v8514_v43, %v8445_v1  ;;  %v2447_v9 = vld [vmem:[#allocation3 + $0x6c] sm:$0xff]  }
 0x286   : > { %v8683_v29 = vmax.f32 %v11398_v2, %v2287_v63  ;;  %v8688_v57 = vmax.f32 %v11399_v19, %v2288_v32  ;;  %v8711_v40 = vmax.f32 %v8617_v26, %v2295_v58  ;;  %v8718_v36 = vmax.f32 %v8626_v38, %v2298_v8  ;;  %v11409_v63 = vld [vmem:[#allocation7_spill] sm:$0xff]  ;;  %v2455_v52 = vld [vmem:[#allocation3 + $0x8c] sm:$0x3] }
 0x287   : > { %v8703_v17 = vmax.f32 %v11400_v44, %v2293_v10  ;;  %v8708_v28 = vmax.f32 %v11401_v50, %v2294_v59  ;;  %v11402_v11 = vmax.f32 %v8535_v45, %v8453_v15  ;;  %v11403_v43 = vmax.f32 %v8538_v53, %v8455_v6  ;;  %v8745_v53 = vld [vmem:[#allocation3 + $0xa8] sm:$0xff]   ;;  %v2437_v50 = vld [vmem:[#allocation3 + $0x44] sm:$0x3] }
 0x288   : > { %v8731_v26 = vmax.f32 %v8633_v60, %v2301_v49  ;;  %v8738_v59 = vmax.f32 %v8642_v24, %v2304_v48  ;;  %v11404_v45 = vmax.f32 %v8557_v14, %v8463_v13  ;;  %v11406_v60 = vmax.f32 %v8560_v25, %v8465_v51  ;;  %v11411_v24 = vld [vmem:[#allocation8_spill] sm:$0xff]  ;;  %v11414_v49 = vld [vmem:[#allocation10_spill] sm:$0xff]  ;;  %v11416_v25 = vld [vmem:[#allocation11_spill] sm:$0xff] }
 0x289   : > { %v8723_v32 = vmax.f32 %v11402_v11, %v2299_v34  ;;  %v8728_v42 = vmax.f32 %v11403_v43, %v2300_v7  ;;  %v8753_v5 = vmax.f32 %v8649_v21, %v2307_v23  ;;  %v2434_v34 = vld [vmem:[#allocation3 + $0x38] sm:$0x3]  ;;  %v2435_v14 = vld [vmem:[#allocation3 + $0x3c] sm:$0xff]   ;;  %v11415_v2 = vmax.f32 %v11414_v49, %v11409_v63  ;;  %v2440_v11 = vld [vmem:[#allocation3 + $0x50] sm:$0x3] }
 0x28a   : > { %v8743_v27 = vmax.f32 %v11404_v45, %v2305_v16  ;;  %v8750_v12 = vmax.f32 %v11406_v60, %v2306_v33  ;;  %v11413_v16 = vld [vmem:[#allocation18_spill] sm:$0xff]  ;;  %v11417_v33 = vmax.f32 %v11416_v25, %v11411_v24  ;;  %v11418_v21 = vld [vmem:[#allocation12_spill] sm:$0xff]  ;;  %v11419_v45 = vld [vmem:[#allocation13_spill] sm:$0xff]  ;;  %v2543_v48 = vunpack.c.l.bf16 %v2447_v9 }
 0x28b   : > { %11408 = vst [vmem:[#allocation21_spill] sm:$0xff] %v8753_v5  ;;  %v2358_v7 = vmax.f32 %v11413_v16, %v2310_v54  ;;  %v2359_v19 = vmax.f32 %v11415_v2, %v2311_v56  ;;  %v2361_v23 = vmax.f32 %v11418_v21, %v2313_v30  ;;  %v2441_v43 = vld [vmem:[#allocation3 + $0x54] sm:$0xff]   ;;  %v2365_v60 = vmax.f32 %v11419_v45, %v2317_v62  ;;  %v11420_v8 = vld [vmem:[#allocation14_spill] sm:$0xff]  ;;  %v2443_v54 = vld [vmem:[#allocation3 + $0x5c] sm:$0x3] }
 0x28c   : > { %11405 = vst [vmem:[#allocation19_spill] sm:$0xff] %v8743_v27  ;;  %v2360_v44 = vmax.f32 %v11417_v33, %v2312_v39  ;;  %v2366_v20 = vmax.f32 %v11420_v8, %v2318_v31  ;;  %v11421_v38 = vld [vmem:[#allocation15_spill] sm:$0xff]  ;;  %v2446_v16 = vld [vmem:[#allocation3 + $0x68] sm:$0x3]  ;;  %v7161_v56 = vunpack.c.l.bf16 %v8745_v53  ;;  %v2452_v2 = vld [vmem:[#allocation3 + $0x80] sm:$0x3]  ;;  %v7162_v39 = vunpack.c.h.bf16 %v8745_v53 }
 0x28d   : > { %11407 = vst [vmem:[#allocation20_spill] sm:$0xff] %v8750_v12  ;;  %v2367_v58 = vmax.f32 %v11421_v38, %v2319_v47  ;;  %v2449_v49 = vld [vmem:[#allocation3 + $0x74] sm:$0x3]  ;;  %v2453_v25 = vld [vmem:[#allocation3 + $0x84] sm:$0xff]   ;;  %v2530_v30 = vunpack.c.l.bf16 %v2434_v34  ;;  %v2531_v33 = vunpack.c.l.bf16 %v2435_v14  ;;  %v2532_v21 = vunpack.c.h.bf16 %v2435_v14  ;;  %v2464_v62 = vld [vmem:[#allocation3 + $0xb0] sm:$0x3] }
 0x28e   : > { %v2533_v45 = vunpack.c.l.bf16 %v2437_v50  ;;  %v2536_v31 = vunpack.c.l.bf16 %v2440_v11  ;;  %v2537_v8 = vunpack.c.l.bf16 %v2441_v43  ;;  %v2538_v47 = vunpack.c.h.bf16 %v2441_v43 }
 0x28f   : > { %v2539_v38 = vunpack.c.l.bf16 %v2443_v54  ;;  %v2542_v55 = vunpack.c.l.bf16 %v2446_v16  ;;  %v2544_v10 = vunpack.c.h.bf16 %v2447_v9  ;;  %v2545_v5 = vunpack.c.l.bf16 %v2449_v49 }
 0x290   : > { %v2548_v12 = vunpack.c.l.bf16 %v2452_v2  ;;  %v2549_v24 = vunpack.c.l.bf16 %v2453_v25  ;;  %v2550_v27 = vunpack.c.h.bf16 %v2453_v25  ;;  %v2551_v63 = vunpack.c.l.bf16 %v2455_v52  ;;  %v11430_v25 = vld [vmem:[#allocation8_spill] sm:$0xff] }
 0x291   : > { %v2554_v53 = vunpack.c.l.bf16 %v2458_v22  ;;  %v2560_v34 = vunpack.c.l.bf16 %v2464_v62  ;;  %v2576_v14 = vmax.f32 %v8683_v29, %v8443_v0  ;;  %v2577_v50 = vmax.f32 %v8688_v57, %v8445_v1 }
 0x292   : > { %v2578_v11 = vmax.f32 %v8691_v46, %v2530_v30  ;;  %v11422_v43 = vmax.f32 %v8604_v4, %v8443_v0  ;;  %v11423_v9 = vmax.f32 %v8607_v3, %v8445_v1  ;;  %v2581_v52 = vmax.f32 %v8698_v61, %v2533_v45 }
 0x293   : > { %v2582_v22 = vmax.f32 %v8703_v17, %v8453_v15  ;;  %v2583_v29 = vmax.f32 %v8708_v28, %v8455_v6  ;;  %v2584_v57 = vmax.f32 %v8711_v40, %v2536_v31  ;;  %v11424_v46 = vmax.f32 %v8620_v18, %v8453_v15 }
 0x294   : > { %v2579_v54 = vmax.f32 %v11422_v43, %v2531_v33  ;;  %v2580_v16 = vmax.f32 %v11423_v9, %v2532_v21  ;;  %v11425_v0 = vmax.f32 %v8623_v37, %v8455_v6  ;;  %v2587_v1 = vmax.f32 %v8718_v36, %v2539_v38  ;;  %v11428_v37 = vld [vmem:[#allocation7_spill] sm:$0xff]  ;;  %v11432_v33 = vld [vmem:[#allocation21_spill] sm:$0xff]  ;;  %v11433_v21 = vld [vmem:[#allocation16_spill] sm:$0xff] }
 0x295   : > { %v2585_v49 = vmax.f32 %v11424_v46, %v2537_v8  ;;  %v2588_v3 = vmax.f32 %v8723_v32, %v8463_v13  ;;  %v2589_v61 = vmax.f32 %v8728_v42, %v8465_v51  ;;  %v2590_v17 = vmax.f32 %v8731_v26, %v2542_v55  ;;  %v11429_v36 = vld [vmem:[#allocation19_spill] sm:$0xff]  ;;  %v11431_v32 = vld [vmem:[#allocation20_spill] sm:$0xff] }
 0x296   : > { %v2586_v4 = vmax.f32 %v11425_v0, %v2538_v47  ;;  %v11426_v28 = vmax.f32 %v8636_v41, %v8463_v13  ;;  %v11427_v15 = vmax.f32 %v8639_v35, %v8465_v51  ;;  %v2593_v6 = vmax.f32 %v8738_v59, %v2545_v5  ;;  %v11435_v13 = vld [vmem:[#allocation17_spill] sm:$0xff] }
 0x297   : > { %v2594_v2 = vmax.f32 %v11429_v36, %v11428_v37  ;;  %v2595_v30 = vmax.f32 %v11431_v32, %v11430_v25  ;;  %v2596_v42 = vmax.f32 %v11432_v33, %v2548_v12  ;;  %v11434_v55 = vmax.f32 %v11433_v21, %v11428_v37  ;;  %v11437_v35 = vld [vmem:[#allocation9_spill] sm:$0xff] }
 0x298   : > { %v2591_v40 = vmax.f32 %v11426_v28, %v2543_v48  ;;  %v2592_v18 = vmax.f32 %v11427_v15, %v2544_v10  ;;  %v11436_v41 = vmax.f32 %v11435_v13, %v11430_v25  ;;  %v2599_v51 = vmax.f32 %v2358_v7, %v2551_v63 }
 0x299   : > { %v2597_v26 = vmax.f32 %v11434_v55, %v2549_v24  ;;  %v11438_v10 = vunpack.c.l.bf16 %v11437_v35  ;;  %v11439_v5 = vunpack.c.h.bf16 %v11437_v35  ;;  %v2602_v45 = vmax.f32 %v2361_v23, %v2554_v53 }
 0x29a   : > { %v2598_v48 = vmax.f32 %v11436_v41, %v2550_v27  ;;  %v2606_v31 = vmax.f32 %v2365_v60, %v7161_v56  ;;  %v8823_v8 = vmax.f32 %v2366_v20, %v7162_v39  ;;  %v8825_v12 = vmax.f32 %v2367_v58, %v2560_v34 }
 0x29b   : > { %v2600_v59 = vmax.f32 %v2359_v19, %v11438_v10  ;;  %v2601_v62 = vmax.f32 %v2360_v44, %v11439_v5  ;;  %v2624_v47 = vpack.c.bf16 %v2576_v14, %v2576_v14  ;;  %v2625_v38 = vpack.c.bf16 %v2577_v50, %v2577_v50 }
 0x29c   : > { %v2626_v24 = vpack.c.bf16 %v2578_v11, %v2578_v11  ;;  %v2627_v43 = vpack.c.bf16 %v2579_v54, %v2579_v54  ;;  %v2628_v9 = vpack.c.bf16 %v2580_v16, %v2580_v16  ;;  %v2629_v46 = vpack.c.bf16 %v2581_v52, %v2581_v52 }
 0x29d   : > { %v2630_v27 = vpack.c.bf16 %v2582_v22, %v2582_v22  ;;  %v2631_v63 = vpack.c.bf16 %v2583_v29, %v2583_v29  ;;  %v2632_v7 = vpack.c.bf16 %v2584_v57, %v2584_v57  ;;  %v2633_v0 = vpack.c.bf16 %v2585_v49, %v2585_v49 }
 0x29e   : > { %v2634_v19 = vpack.c.bf16 %v2586_v4, %v2586_v4  ;;  %v2635_v28 = vpack.c.bf16 %v2587_v1, %v2587_v1  ;;  %v2636_v15 = vpack.c.bf16 %v2588_v3, %v2588_v3  ;;  %v2637_v44 = vpack.c.bf16 %v2589_v61, %v2589_v61 }
 0x29f   : > { %v2638_v23 = vpack.c.bf16 %v2590_v17, %v2590_v17  ;;  %v2639_v60 = vpack.c.bf16 %v2591_v40, %v2591_v40  ;;  %v2640_v20 = vpack.c.bf16 %v2592_v18, %v2592_v18  ;;  %v2641_v56 = vpack.c.bf16 %v2593_v6, %v2593_v6 }
 0x2a0   : > { %v2642_v58 = vpack.c.bf16 %v2594_v2, %v2594_v2  ;;  %v2643_v39 = vpack.c.bf16 %v2595_v30, %v2595_v30  ;;  %v2644_v53 = vpack.c.bf16 %v2596_v42, %v2596_v42  ;;  %v2645_v34 = vpack.c.bf16 %v2597_v26, %v2597_v26 }
 0x2a1   : > { %v2646_v14 = vpack.c.bf16 %v2598_v48, %v2598_v48  ;;  %v2647_v50 = vpack.c.bf16 %v2599_v51, %v2599_v51  ;;  %v2648_v11 = vpack.c.bf16 %v2600_v59, %v2600_v59  ;;  %v2649_v54 = vpack.c.bf16 %v2601_v62, %v2601_v62 }
 0x2a2   : > { %v2650_v16 = vpack.c.bf16 %v2602_v45, %v2602_v45  ;;  %v2654_v52 = vpack.c.bf16 %v2606_v31, %v2606_v31  ;;  %v2655_v22 = vpack.c.bf16 %v8823_v8, %v8823_v8  ;;  %v2656_v29 = vpack.c.bf16 %v8825_v12, %v8825_v12 }
 0x2a3   : > { %v8831_v57 = vunpack.c.l.bf16 %v2624_v47  ;;  %v8833_v49 = vunpack.c.l.bf16 %v2625_v38  ;;  %v2674_v4 = vunpack.c.l.bf16 %v2626_v24  ;;  %v8835_v1 = vunpack.c.l.bf16 %v2627_v43 }
 0x2a4   : > { %v8837_v3 = vunpack.c.l.bf16 %v2628_v9  ;;  %v2677_v61 = vunpack.c.l.bf16 %v2629_v46  ;;  %v8839_v17 = vunpack.c.l.bf16 %v2630_v27  ;;  %v8841_v40 = vunpack.c.l.bf16 %v2631_v63 }
 0x2a5   : > { %v2680_v18 = vunpack.c.l.bf16 %v2632_v7  ;;  %v8843_v6 = vunpack.c.l.bf16 %v2633_v0  ;;  %v8845_v37 = vunpack.c.l.bf16 %v2634_v19  ;;  %v2683_v36 = vunpack.c.l.bf16 %v2635_v28 }
 0x2a6   : > { %v8847_v2 = vunpack.c.l.bf16 %v2636_v15  ;;  %v8849_v25 = vunpack.c.l.bf16 %v2637_v44  ;;  %v2686_v32 = vunpack.c.l.bf16 %v2638_v23  ;;  %v8851_v30 = vunpack.c.l.bf16 %v2639_v60 }
 0x2a7   : > { %11440 = vst [vmem:[#allocation18_spill] sm:$0xff] %v8845_v37  ;;  %v8853_v33 = vunpack.c.l.bf16 %v2640_v20  ;;  %v2689_v42 = vunpack.c.l.bf16 %v2641_v56  ;;  %v8855_v21 = vunpack.c.l.bf16 %v2642_v58  ;;  %v8857_v55 = vunpack.c.l.bf16 %v2643_v39 }
 0x2a8   : > { %11441 = vst [vmem:[#allocation10_spill] sm:$0xff] %v8847_v2  ;;  %v8859_v26 = vunpack.c.l.bf16 %v2645_v34  ;;  %v2692_v13 = vunpack.c.l.bf16 %v2644_v53  ;;  %v8861_v41 = vunpack.c.l.bf16 %v2646_v14  ;;  %v2695_v48 = vunpack.c.l.bf16 %v2647_v50 }
 0x2a9   : > { %11442 = vst [vmem:[#allocation11_spill] sm:$0xff] %v8849_v25  ;;  %v8863_v51 = vunpack.c.l.bf16 %v2648_v11  ;;  %v8865_v35 = vunpack.c.l.bf16 %v2649_v54  ;;  %v2698_v10 = vunpack.c.l.bf16 %v2650_v16  ;;  %v8867_v59 = vunpack.c.l.bf16 %v2654_v52 }
 0x2aa   : > { %11443 = vst [vmem:[#allocation12_spill] sm:$0xff] %v8851_v30  ;;  %v2721_v5 = vrot.slane %v8831_v57, 4  ;;  %v2723_v62 = vrot.slane %v8835_v1, 4  ;;  %v2725_v45 = vrot.slane %v8839_v17, 4  ;;  %v2727_v31 = vrot.slane %v8843_v6, 4 }
 0x2ab   : > { %11444 = vst [vmem:[#allocation13_spill] sm:$0xff] %v8853_v33  ;;  %v2729_v8 = vrot.slane %v8847_v2, 4  ;;  %v2731_v12 = vrot.slane %v8851_v30, 4  ;;  %v2733_v47 = vrot.slane %v8855_v21, 4  ;;  %v2735_v38 = vrot.slane %v8859_v26, 4 }
 0x2ac   : > { %11445 = vst [vmem:[#allocation14_spill] sm:$0xff] %v8855_v21  ;;  %v8877_v24 = vunpack.c.l.bf16 %v2655_v22  ;;  %v2704_v43 = vunpack.c.l.bf16 %v2656_v29  ;;  %v8880_v9 = vsel %vm2720_vm15, %v2721_v5, %v2674_v4  ;;  %v8883_v46 = vsel %vm2720_vm15, %v2723_v62, %v2677_v61 }
 0x2ad   : > { %11446 = vst [vmem:[#allocation15_spill] sm:$0xff] %v8857_v55  ;;  %v8886_v27 = vsel %vm2720_vm15, %v2725_v45, %v2680_v18  ;;  %v8889_v63 = vsel %vm2720_vm15, %v2727_v31, %v2683_v36  ;;  %v8892_v7 = vsel %vm2720_vm15, %v2729_v8, %v2686_v32  ;;  %v8895_v0 = vsel %vm2720_vm15, %v2731_v12, %v2689_v42 }
 0x2ae   : > { %11447 = vst [vmem:[#allocation7_spill] sm:$0xff] %v8859_v26  ;;  %v8898_v19 = vsel %vm2720_vm15, %v2733_v47, %v2692_v13  ;;  %v8901_v28 = vsel %vm2720_vm15, %v2735_v38, %v2695_v48  ;;  %v2737_v15 = vrot.slane %v8863_v51, 4  ;;  %v2741_v44 = vrot.slane %v8867_v59, 4 }
 0x2af   : > { %11448 = vst [vmem:[#allocation19_spill] sm:$0xff] %v8861_v41  ;;  %v2753_v23 = vrot.slane %v8833_v49, 4  ;;  %v2754_v60 = vrot.slane %v8837_v3, 4  ;;  %v2755_v20 = vrot.slane %v8841_v40, 4  ;;  %v2756_v56 = vrot.slane %v8845_v37, 4 }
 0x2b0   : > { %11449 = vst [vmem:[#allocation8_spill] sm:$0xff] %v8863_v51  ;;  %v8910_v58 = vsel %vm2720_vm15, %v2737_v15, %v2698_v10  ;;  %v8913_v39 = vsel %vm2720_vm15, %v2741_v44, %v2704_v43  ;;  %v2757_v53 = vrot.slane %v8849_v25, 4  ;;  %v2758_v34 = vrot.slane %v8853_v33, 4 }
 0x2b1   : > { %11450 = vst [vmem:[#allocation20_spill] sm:$0xff] %v8865_v35  ;;  %v2759_v14 = vrot.slane %v8857_v55, 4  ;;  %v2760_v50 = vrot.slane %v8861_v41, 4  ;;  %v2761_v11 = vrot.slane %v8865_v35, 4  ;;  %v2763_v54 = vrot.slane %v8877_v24, 4 }
 0x2b2   : > { %11451 = vst [vmem:[#allocation21_spill] sm:$0xff] %v8867_v59  ;;  %v2769_v16 = vrot.slane %v8880_v9, 4  ;;  %v2770_v52 = vrot.slane %v8883_v46, 4  ;;  %v2771_v22 = vrot.slane %v8886_v27, 4  ;;  %v2772_v29 = vrot.slane %v8889_v63, 4 }
 0x2b3   : > { %11452 = vst [vmem:[#allocation16_spill] sm:$0xff] %v8877_v24  ;;  %v2773_v4 = vrot.slane %v8892_v7, 4  ;;  %v2774_v61 = vrot.slane %v8895_v0, 4  ;;  %v2775_v18 = vrot.slane %v8898_v19, 4  ;;  %v2776_v36 = vrot.slane %v8901_v28, 4 }
 0x2b4   : > { %11453 = vst [vmem:[#allocation17_spill] sm:$0xff] %v8880_v9  ;;  %v2777_v32 = vrot.slane %v8910_v58, 4  ;;  %v2779_v42 = vrot.slane %v8913_v39, 4  ;;  %v8932_v13 = vsel %vm2720_vm15, %v2753_v23, %v2721_v5  ;;  %v8935_v48 = vsel %vm2720_vm15, %v2754_v60, %v2723_v62 }
 0x2b5   : > { %11454 = vst [vmem:[#allocation9_spill] sm:$0xff] %v8883_v46  ;;  %v8938_v10 = vsel %vm2720_vm15, %v2755_v20, %v2725_v45  ;;  %v8941_v43 = vsel %vm2720_vm15, %v2756_v56, %v2727_v31  ;;  %v8944_v24 = vsel %vm2720_vm15, %v2757_v53, %v2729_v8  ;;  %v8947_v59 = vsel %vm2720_vm15, %v2758_v34, %v2731_v12 }
 0x2b6   : > { %11455 = vst [vmem:[#allocation22_spill] sm:$0xff] %v8886_v27  ;;  %v8950_v35 = vsel %vm2720_vm15, %v2759_v14, %v2733_v47  ;;  %v8953_v5 = vsel %vm2720_vm15, %v2760_v50, %v2735_v38  ;;  %v8956_v62 = vsel %vm2720_vm15, %v2761_v11, %v2737_v15  ;;  %v8959_v45 = vsel %vm2720_vm15, %v2769_v16, %v2753_v23 }
 0x2b7   : > { %11456 = vst [vmem:[#allocation23_spill] sm:$0xff] %v8889_v63  ;;  %v8962_v31 = vsel %vm2720_vm15, %v2763_v54, %v2741_v44  ;;  %v8965_v8 = vsel %vm2720_vm15, %v2770_v52, %v2754_v60  ;;  %v8968_v12 = vsel %vm2720_vm15, %v2771_v22, %v2755_v20  ;;  %v8971_v47 = vsel %vm2720_vm15, %v2772_v29, %v2756_v56 }
 0x2b8   : > { %11457 = vst [vmem:[#allocation24_spill] sm:$0xff] %v8892_v7  ;;  %v8974_v38 = vsel %vm2720_vm15, %v2773_v4, %v2757_v53  ;;  %v8977_v15 = vsel %vm2720_vm15, %v2774_v61, %v2758_v34  ;;  %v8980_v23 = vsel %vm2720_vm15, %v2775_v18, %v2759_v14  ;;  %v8983_v44 = vsel %vm2720_vm15, %v2776_v36, %v2760_v50 }
 0x2b9   : > { %11458 = vst [vmem:[#allocation25_spill] sm:$0xff] %v8895_v0  ;;  %v2866_v60 = vrot.slane %v8880_v9, 3  ;;  %v2867_v20 = vrot.slane %v8932_v13, 3  ;;  %v2869_v56 = vrot.slane %v8959_v45, 3  ;;  %v2871_v16 = vrot.slane %v8883_v46, 3 }
 0x2ba   : > { %11459 = vst [vmem:[#allocation26_spill] sm:$0xff] %v8898_v19  ;;  %v2872_v53 = vrot.slane %v8935_v48, 3  ;;  %v2874_v34 = vrot.slane %v8965_v8, 3  ;;  %v2876_v52 = vrot.slane %v8886_v27, 3  ;;  %v8993_v14 = vsel %vm2720_vm15, %v2777_v32, %v2761_v11 }
 0x2bb   : > { %11460 = vst [vmem:[#allocation27_spill] sm:$0xff] %v8901_v28  ;;  %v8996_v50 = vsel %vm2720_vm15, %v2779_v42, %v2763_v54  ;;  %v2877_v22 = vrot.slane %v8938_v10, 3  ;;  %v2879_v29 = vrot.slane %v8968_v12, 3  ;;  %v9001_v4 = vsel %vm2865_vm0, %v2866_v60, %v2867_v20 }
 0x2bc   : > { %11461 = vst [vmem:[#allocation28_spill] sm:$0xff] %v8910_v58  ;;  %v9004_v61 = vsel %vm2865_vm0, %v2867_v20, %v2869_v56  ;;  %v2881_v18 = vrot.slane %v8889_v63, 3  ;;  %v2882_v36 = vrot.slane %v8941_v43, 3  ;;  %v9009_v11 = vsel %vm2865_vm0, %v2871_v16, %v2872_v53 }
 0x2bd   : > { %11462 = vst [vmem:[#allocation29_spill] sm:$0xff] %v8941_v43  ;;  %v9012_v54 = vsel %vm2865_vm0, %v2872_v53, %v2874_v34  ;;  %v2884_v32 = vrot.slane %v8971_v47, 3  ;;  %v2886_v42 = vrot.slane %v8892_v7, 3  ;;  %v9017_v60 = vsel %vm2865_vm0, %v2876_v52, %v2877_v22 }
 0x2be   : > { %11463 = vst [vmem:[#allocation30_spill] sm:$0xff] %v8944_v24  ;;  %v2887_v20 = vrot.slane %v8944_v24, 3  ;;  %v2889_v56 = vrot.slane %v8974_v38, 3  ;;  %v2891_v63 = vrot.slane %v8895_v0, 3  ;;  %v9023_v43 = vsel %vm2865_vm0, %v2877_v22, %v2879_v29 }
 0x2bf   : > { %11464 = vst [vmem:[#allocation31_spill] sm:$0xff] %v8953_v5  ;;  %v2892_v16 = vrot.slane %v8947_v59, 3  ;;  %v2894_v53 = vrot.slane %v8977_v15, 3  ;;  %v2896_v34 = vrot.slane %v8898_v19, 3  ;;  %v9029_v7 = vsel %vm2865_vm0, %v2881_v18, %v2882_v36 }
 0x2c0   : > { %11465 = vst [vmem:[#allocation32_spill] sm:$0xff] %v8974_v38  ;;  %v9032_v52 = vsel %vm2865_vm0, %v2882_v36, %v2884_v32  ;;  %v2897_v24 = vrot.slane %v8950_v35, 3  ;;  %v2899_v38 = vrot.slane %v8980_v23, 3  ;;  %v9037_v0 = vsel %vm2865_vm0, %v2886_v42, %v2887_v20 }
 0x2c1   : > { %11466 = vst [vmem:[#allocation33_spill] sm:$0xff] %v8980_v23  ;;  %v9040_v22 = vsel %vm2865_vm0, %v2887_v20, %v2889_v56  ;;  %v2901_v29 = vrot.slane %v8901_v28, 3  ;;  %v2902_v19 = vrot.slane %v8953_v5, 3  ;;  %v9045_v18 = vsel %vm2865_vm0, %v2891_v63, %v2892_v16 }
 0x2c2   : > { %11467 = vst [vmem:[#allocation34_spill] sm:$0xff] %v8993_v14  ;;  %v9048_v36 = vsel %vm2865_vm0, %v2892_v16, %v2894_v53  ;;  %v2904_v32 = vrot.slane %v8983_v44, 3  ;;  %v2906_v23 = vrot.slane %v8910_v58, 3  ;;  %v9053_v42 = vsel %vm2865_vm0, %v2896_v34, %v2897_v24 }
 0x2c3   : > { %11468 = vst [vmem:[#allocation35_spill] sm:$0xff] %v8996_v50  ;;  %v2907_v20 = vrot.slane %v8956_v62, 3  ;;  %v2909_v56 = vrot.slane %v8993_v14, 3  ;;  %v2916_v28 = vrot.slane %v8913_v39, 3  ;;  %v9059_v5 = vsel %vm2865_vm0, %v2897_v24, %v2899_v38 }
 0x2c4   : > { %v9062_v63 = vsel %vm2865_vm0, %v2901_v29, %v2902_v19  ;;  %v2917_v16 = vrot.slane %v8962_v31, 3  ;;  %v2919_v53 = vrot.slane %v8996_v50, 3  ;;  %v9067_v58 = vsel %vm2865_vm0, %v2902_v19, %v2904_v32  ;;  %v11480_v51 = vld [vmem:[#allocation29_spill] sm:$0xff] }
 0x2c5   : > { %11469 = vst [vmem:[#allocation36_spill] sm:$0xff] %v9067_v58  ;;  %v9070_v34 = vsel %vm2865_vm0, %v2906_v23, %v2907_v20  ;;  %v9073_v14 = vsel %vm2865_vm0, %v2907_v20, %v2909_v56  ;;  %v3012_v20 = vrot.slane %v8932_v13, 2  ;;  %v3014_v50 = vrot.slane %v8959_v45, 2  ;;  %v11477_v23 = vld [vmem:[#allocation23_spill] sm:$0xff] }
 0x2c6   : > { %11470 = vst [vmem:[#allocation37_spill] sm:$0xff] %v9070_v34  ;;  %v9078_v38 = vsel %vm2865_vm0, %v2916_v28, %v2917_v16  ;;  %v9081_v29 = vsel %vm2865_vm0, %v2917_v16, %v2919_v53  ;;  %v3017_v56 = vrot.slane %v8935_v48, 2  ;;  %v3019_v24 = vrot.slane %v8965_v8, 2  ;;  %v11491_v41 = vld [vmem:[#allocation31_spill] sm:$0xff] }
 0x2c7   : > { %11471 = vst [vmem:[#allocation38_spill] sm:$0xff] %v9073_v14  ;;  %v3022_v53 = vrot.slane %v8938_v10, 2  ;;  %v3024_v13 = vrot.slane %v8968_v12, 2  ;;  %v11478_v28 = vrot.slane %v8880_v9, 2  ;;  %v3015_v8 = vsel %vm3010_vm1, %v3012_v20, %v3014_v50  ;;  %v11482_v14 = vld [vmem:[#allocation30_spill] sm:$0xff] }
 0x2c8   : > { %11472 = vst [vmem:[#allocation39_spill] sm:$0xff] %v9078_v38  ;;  %v11479_v16 = vrot.slane %v8883_v46, 2  ;;  %v3027_v58 = vrot.slane %v11480_v51, 2  ;;  %v3020_v19 = vsel %vm3010_vm1, %v3017_v56, %v3019_v24  ;;  %v3029_v32 = vrot.slane %v8971_v47, 2  ;;  %v11484_v38 = vld [vmem:[#allocation32_spill] sm:$0xff]  ;;  %v11487_v12 = vld [vmem:[#allocation26_spill] sm:$0xff] }
 0x2c9   : > { %11473 = vst [vmem:[#allocation40_spill] sm:$0xff] %v9081_v29  ;;  %v3013_v48 = vsel %vm3010_vm1, %v11478_v28, %v3012_v20  ;;  %v11481_v29 = vld [vmem:[#allocation24_spill] sm:$0xff]  ;;  %v3032_v45 = vrot.slane %v11482_v14, 2  ;;  %v11483_v9 = vrot.slane %v8886_v27, 2  ;;  %v3034_v50 = vrot.slane %v11484_v38, 2  ;;  %v11485_v20 = vld [vmem:[#allocation25_spill] sm:$0xff] }
 0x2ca   : > { %v3018_v10 = vsel %vm3010_vm1, %v11479_v16, %v3017_v56  ;;  %v3037_v16 = vrot.slane %v8947_v59, 2  ;;  %v3025_v51 = vsel %vm3010_vm1, %v3022_v53, %v3024_v13  ;;  %v11486_v24 = vrot.slane %v11477_v23, 2  ;;  %v11489_v34 = vld [vmem:[#allocation33_spill] sm:$0xff]  ;;  %v11490_v13 = vld [vmem:[#allocation27_spill] sm:$0xff]  ;;  %v11495_v23 = vld [vmem:[#allocation34_spill] sm:$0xff] }
 0x2cb   : > { %v3023_v28 = vsel %vm3010_vm1, %v11483_v9, %v3022_v53  ;;  %v3039_v56 = vrot.slane %v8977_v15, 2  ;;  %v3030_v27 = vsel %vm3010_vm1, %v3027_v58, %v3029_v32  ;;  %v11488_v9 = vrot.slane %v11481_v29, 2  ;;  %v11493_v29 = vld [vmem:[#allocation28_spill] sm:$0xff] }
 0x2cc   : > { %v3028_v47 = vsel %vm3010_vm1, %v11486_v24, %v3027_v58  ;;  %v3042_v46 = vrot.slane %v8950_v35, 2  ;;  %v3044_v59 = vrot.slane %v11489_v34, 2  ;;  %v3035_v53 = vsel %vm3010_vm1, %v3032_v45, %v3034_v50 }
 0x2cd   : > { %v3033_v38 = vsel %vm3010_vm1, %v11488_v9, %v3032_v45  ;;  %v3047_v24 = vrot.slane %v11491_v41, 2  ;;  %v3049_v15 = vrot.slane %v8983_v44, 2  ;;  %v11492_v14 = vrot.slane %v11485_v20, 2  ;;  %v11497_v9 = vld [vmem:[#allocation35_spill] sm:$0xff] }
 0x2ce   : > { %v3040_v32 = vsel %vm3010_vm1, %v3037_v16, %v3039_v56  ;;  %v3052_v35 = vrot.slane %v8956_v62, 2  ;;  %v11494_v34 = vrot.slane %v11487_v12, 2  ;;  %v3045_v50 = vsel %vm3010_vm1, %v3042_v46, %v3044_v59 }
 0x2cf   : > { %v3038_v58 = vsel %vm3010_vm1, %v11492_v14, %v3037_v16  ;;  %v3054_v41 = vrot.slane %v11495_v23, 2  ;;  %v11496_v20 = vrot.slane %v11490_v13, 2  ;;  %v3050_v16 = vsel %vm3010_vm1, %v3047_v24, %v3049_v15 }
 0x2d0   : > { %v3043_v45 = vsel %vm3010_vm1, %v11494_v34, %v3042_v46  ;;  %v3062_v56 = vrot.slane %v8962_v31, 2  ;;  %v3064_v62 = vrot.slane %v11497_v9, 2  ;;  %v11498_v12 = vrot.slane %v11493_v29, 2 }
 0x2d1   : > { %v3048_v14 = vsel %vm3010_vm1, %v11496_v20, %v3047_v24  ;;  %v3055_v46 = vsel %vm3010_vm1, %v3052_v35, %v3054_v41  ;;  %v11499_v23 = vmax.f32 %v8831_v57, %v9001_v4  ;;  %v11500_v20 = vmax.f32 %v8833_v49, %v9004_v61 }
 0x2d2   : > { %v3053_v34 = vsel %vm3010_vm1, %v11498_v12, %v3052_v35  ;;  %v11501_v31 = vrot.slane %v8913_v39, 2  ;;  %v3065_v15 = vsel %vm3010_vm1, %v3062_v56, %v3064_v62  ;;  %v11502_v12 = vmax.f32 %v8835_v1, %v9009_v11  ;;  %v11517_v62 = vld [vmem:[#allocation36_spill] sm:$0xff] }
 0x2d3   : > { %v9190_v59 = vmax.f32 %v11499_v23, %v3013_v48  ;;  %v9195_v44 = vmax.f32 %v11500_v20, %v3015_v8  ;;  %v11503_v4 = vmax.f32 %v8837_v3, %v9012_v54  ;;  %v11504_v61 = vmax.f32 %v8839_v17, %v9017_v60  ;;  %v11520_v23 = vld [vmem:[#allocation8_spill] sm:$0xff]  ;;  %v11521_v20 = vld [vmem:[#allocation37_spill] sm:$0xff] }
 0x2d4   : > { %v3063_v24 = vsel %vm3010_vm1, %v11501_v31, %v3062_v56  ;;  %v9204_v9 = vmax.f32 %v11502_v12, %v3018_v10  ;;  %v11505_v35 = vmax.f32 %v8841_v40, %v9023_v43  ;;  %v11506_v11 = vmax.f32 %v8843_v6, %v9029_v7  ;;  %v11516_v56 = vld [vmem:[#allocation19_spill] sm:$0xff]  ;;  %v11524_v31 = vld [vmem:[#allocation20_spill] sm:$0xff]  ;;  %v11525_v12 = vld [vmem:[#allocation38_spill] sm:$0xff] }
 0x2d5   : > { %v9209_v48 = vmax.f32 %v11503_v4, %v3020_v19  ;;  %v9214_v8 = vmax.f32 %v11504_v61, %v3023_v28  ;;  %v11507_v54 = vmax.f32 %v8845_v37, %v9032_v52  ;;  %v11508_v60 = vmax.f32 %v8847_v2, %v9037_v0 }
 0x2d6   : > { %v9219_v41 = vmax.f32 %v11505_v35, %v3025_v51  ;;  %v9224_v10 = vmax.f32 %v11506_v11, %v3028_v47  ;;  %v11509_v43 = vmax.f32 %v8849_v25, %v9040_v22  ;;  %v11510_v7 = vmax.f32 %v8851_v30, %v9045_v18  ;;  %v11528_v11 = vld [vmem:[#allocation21_spill] sm:$0xff] }
 0x2d7   : > { %v9229_v19 = vmax.f32 %v11507_v54, %v3030_v27  ;;  %v9234_v28 = vmax.f32 %v11508_v60, %v3033_v38  ;;  %v11511_v52 = vmax.f32 %v8853_v33, %v9048_v36  ;;  %v11512_v0 = vmax.f32 %v8855_v21, %v9053_v42 }
 0x2d8   : > { %v9239_v51 = vmax.f32 %v11509_v43, %v3035_v53  ;;  %v9244_v47 = vmax.f32 %v11510_v7, %v3038_v58  ;;  %v11513_v22 = vmax.f32 %v8857_v55, %v9059_v5  ;;  %v11514_v18 = vmax.f32 %v8859_v26, %v9062_v63  ;;  %v11532_v43 = vld [vmem:[#allocation16_spill] sm:$0xff] }
 0x2d9   : > { %v9249_v27 = vmax.f32 %v11511_v52, %v3040_v32  ;;  %v9254_v38 = vmax.f32 %v11512_v0, %v3043_v45  ;;  %v11518_v36 = vmax.f32 %v11516_v56, %v11517_v62  ;;  %v11522_v42 = vmax.f32 %v11520_v23, %v11521_v20  ;;  %v11536_v62 = vld [vmem:[#allocation17_spill] sm:$0xff] }
 0x2da   : > { %v9259_v53 = vmax.f32 %v11513_v22, %v3045_v50  ;;  %v9264_v58 = vmax.f32 %v11514_v18, %v3048_v14  ;;  %v11526_v5 = vmax.f32 %v11524_v31, %v11525_v12  ;;  %v3187_v4 = vrot.slane %v8831_v57, 2 }
 0x2db   : > { %v9269_v32 = vmax.f32 %v11518_v36, %v3050_v16  ;;  %v9274_v45 = vmax.f32 %v11522_v42, %v3053_v34  ;;  %v3188_v63 = vrot.slane %v8833_v49, 2  ;;  %v3191_v14 = vrot.slane %v8835_v1, 2  ;;  %v11529_v34 = vld [vmem:[#allocation39_spill] sm:$0xff]  ;;  %v11538_v42 = vld [vmem:[#allocation9_spill] sm:$0xff] }
 0x2dc   : > { %11515 = vst [vmem:[#allocation29_spill] sm:$0xff] %v9264_v58  ;;  %v9279_v50 = vmax.f32 %v11526_v5, %v3055_v46  ;;  %v3192_v61 = vrot.slane %v8837_v3, 2  ;;  %v3195_v16 = vrot.slane %v8839_v17, 2  ;;  %v3196_v35 = vrot.slane %v8841_v40, 2  ;;  %v11533_v46 = vld [vmem:[#allocation40_spill] sm:$0xff]  ;;  %v11570_v58 = vld [vmem:[#allocation19_spill] sm:$0xff] }
 0x2dd   : > { %11519 = vst [vmem:[#allocation30_spill] sm:$0xff] %v9269_v32  ;;  %v11530_v54 = vmax.f32 %v11528_v11, %v11529_v34  ;;  %v11534_v7 = vmax.f32 %v11532_v43, %v11533_v46  ;;  %v3199_v0 = vrot.slane %v8843_v6, 2  ;;  %v3200_v22 = vrot.slane %v8845_v37, 2  ;;  %v11540_v34 = vld [vmem:[#allocation22_spill] sm:$0xff] }
 0x2de   : > { %11523 = vst [vmem:[#allocation32_spill] sm:$0xff] %v9274_v45  ;;  %v9300_v18 = vsel %vm3010_vm1, %v3187_v4, %v3188_v63  ;;  %v11537_v36 = vrot.slane %v11536_v62, 2  ;;  %v11539_v12 = vrot.slane %v11538_v42, 2  ;;  %v9316_v5 = vsel %vm3010_vm1, %v3195_v16, %v3196_v35  ;;  %v11565_v45 = vld [vmem:[#allocation13_spill] sm:$0xff]  ;;  %v11568_v32 = vld [vmem:[#allocation26_spill] sm:$0xff] }
 0x2df   : > { %11527 = vst [vmem:[#allocation33_spill] sm:$0xff] %v9279_v50  ;;  %v9290_v60 = vmax.f32 %v11530_v54, %v3063_v24  ;;  %v9295_v52 = vmax.f32 %v11534_v7, %v3065_v15  ;;  %v9308_v24 = vsel %vm3010_vm1, %v3191_v14, %v3192_v61  ;;  %v11541_v54 = vrot.slane %v11540_v34, 2 }
 0x2e0   : > { %v9305_v20 = vsel %vm3010_vm1, %v3188_v63, %v11537_v36  ;;  %v9313_v15 = vsel %vm3010_vm1, %v3192_v61, %v11539_v12  ;;  %v3203_v46 = vrot.slane %v8847_v2, 2  ;;  %v3204_v63 = vrot.slane %v8849_v25, 2  ;;  %v11542_v12 = vld [vmem:[#allocation23_spill] sm:$0xff] }
 0x2e1   : > { %11531 = vst [vmem:[#allocation27_spill] sm:$0xff] %v9290_v60  ;;  %v9321_v4 = vsel %vm3010_vm1, %v3196_v35, %v11541_v54  ;;  %v3207_v14 = vrot.slane %v8851_v30, 2  ;;  %v3208_v7 = vrot.slane %v8853_v33, 2  ;;  %v3211_v36 = vrot.slane %v8855_v21, 2  ;;  %v11544_v33 = vld [vmem:[#allocation24_spill] sm:$0xff] }
 0x2e2   : > { %11535 = vst [vmem:[#allocation31_spill] sm:$0xff] %v9295_v52  ;;  %v3212_v61 = vrot.slane %v8857_v55, 2  ;;  %v9330_v16 = vsel %vm3010_vm1, %v3199_v0, %v3200_v22  ;;  %v11543_v37 = vrot.slane %v11542_v12, 2  ;;  %v3215_v54 = vrot.slane %v8859_v26, 2  ;;  %v11546_v55 = vld [vmem:[#allocation25_spill] sm:$0xff]  ;;  %v11564_v52 = vld [vmem:[#allocation12_spill] sm:$0xff] }
 0x2e3   : > { %v3216_v25 = vrot.slane %v11516_v56, 2  ;;  %v9340_v30 = vsel %vm3010_vm1, %v3203_v46, %v3204_v63  ;;  %v11545_v2 = vrot.slane %v11544_v33, 2  ;;  %v9348_v0 = vsel %vm3010_vm1, %v3207_v14, %v3208_v7  ;;  %v11548_v56 = vld [vmem:[#allocation26_spill] sm:$0xff] }
 0x2e4   : > { %v9335_v35 = vsel %vm3010_vm1, %v3200_v22, %v11543_v37  ;;  %v11547_v12 = vrot.slane %v11546_v55, 2  ;;  %v9356_v22 = vsel %vm3010_vm1, %v3211_v36, %v3212_v61  ;;  %v11549_v26 = vrot.slane %v11548_v56, 2 }
 0x2e5   : > { %v9345_v21 = vsel %vm3010_vm1, %v3204_v63, %v11545_v2  ;;  %v3219_v33 = vrot.slane %v11520_v23, 2  ;;  %v3220_v2 = vrot.slane %v11524_v31, 2  ;;  %v9366_v63 = vsel %vm3010_vm1, %v3215_v54, %v3216_v25 }
 0x2e6   : > { %v9353_v37 = vsel %vm3010_vm1, %v3208_v7, %v11547_v12  ;;  %v9361_v46 = vsel %vm3010_vm1, %v3212_v61, %v11549_v26  ;;  %11550 = vst [vmem:[#allocation28_spill] sm:$0xff] %v9366_v63  ;;  %v11551_v14 = vrot.slane %v11490_v13, 2  ;;  %v3227_v36 = vrot.slane %v11528_v11, 2  ;;  %v11569_v63 = vld [vmem:[#allocation7_spill] sm:$0xff] }
 0x2e7   : > { %v3228_v12 = vrot.slane %v11532_v43, 2  ;;  %v9376_v56 = vsel %vm3010_vm1, %v3219_v33, %v3220_v2  ;;  %v11554_v26 = vrot.slane %v11493_v29, 2  ;;  %v3317_v31 = vrot.slane %v8833_v49, 1 }
 0x2e8   : > { %v9371_v7 = vsel %vm3010_vm1, %v3216_v25, %v11551_v14  ;;  %11553 = vst [vmem:[#allocation35_spill] sm:$0xff] %v9376_v56  ;;  %v11557_v14 = vrot.slane %v8913_v39, 2  ;;  %v3319_v33 = vrot.slane %v11536_v62, 1  ;;  %v3322_v54 = vrot.slane %v8837_v3, 1  ;;  %v11562_v56 = vld [vmem:[#allocation11_spill] sm:$0xff] }
 0x2e9   : > { %11552 = vst [vmem:[#allocation34_spill] sm:$0xff] %v9371_v7  ;;  %v9381_v61 = vsel %vm3010_vm1, %v3220_v2, %v11554_v26  ;;  %v9388_v25 = vsel %vm3010_vm1, %v3227_v36, %v3228_v12  ;;  %v3316_v26 = vrot.slane %v8831_v57, 1  ;;  %v3321_v36 = vrot.slane %v8835_v1, 1 }
 0x2ea   : > { %11555 = vst [vmem:[#allocation36_spill] sm:$0xff] %v9381_v61  ;;  %v9393_v43 = vsel %vm3010_vm1, %v3228_v12, %v11557_v14  ;;  %v3324_v7 = vrot.slane %v11538_v42, 1  ;;  %v3326_v14 = vrot.slane %v8839_v17, 1  ;;  %v3327_v2 = vrot.slane %v8841_v40, 1  ;;  %v11559_v42 = vld [vmem:[#allocation18_spill] sm:$0xff]  ;;  %v11560_v17 = vld [vmem:[#allocation23_spill] sm:$0xff] }
 0x2eb   : > { %11556 = vst [vmem:[#allocation8_spill] sm:$0xff] %v9388_v25  ;;  %v3318_v49 = vsel %vm3315_vm3, %v3316_v26, %v3317_v31  ;;  %v3329_v62 = vrot.slane %v11540_v34, 1  ;;  %v3331_v1 = vrot.slane %v8843_v6, 1  ;;  %v3320_v3 = vsel %vm3315_vm3, %v3317_v31, %v3319_v33  ;;  %v11561_v40 = vld [vmem:[#allocation10_spill] sm:$0xff] }
 0x2ec   : > { %11558 = vst [vmem:[#allocation37_spill] sm:$0xff] %v9393_v43  ;;  %v3323_v61 = vsel %vm3315_vm3, %v3321_v36, %v3322_v54  ;;  %v3325_v12 = vsel %vm3315_vm3, %v3322_v54, %v3324_v7  ;;  %v3332_v25 = vrot.slane %v11559_v42, 1  ;;  %v3334_v60 = vrot.slane %v11560_v17, 1  ;;  %v11563_v43 = vld [vmem:[#allocation24_spill] sm:$0xff]  ;;  %v11566_v42 = vld [vmem:[#allocation14_spill] sm:$0xff] }
 0x2ed   : > { %v3336_v50 = vrot.slane %v11561_v40, 1  ;;  %v3337_v57 = vrot.slane %v11562_v56, 1  ;;  %v3339_v26 = vrot.slane %v11563_v43, 1  ;;  %v3328_v34 = vsel %vm3315_vm3, %v3326_v14, %v3327_v2  ;;  %v11567_v40 = vld [vmem:[#allocation15_spill] sm:$0xff] }
 0x2ee   : > { %v3341_v6 = vrot.slane %v11564_v52, 1  ;;  %v3342_v31 = vrot.slane %v11565_v45, 1  ;;  %v3344_v33 = vrot.slane %v11546_v55, 1  ;;  %v3330_v7 = vsel %vm3315_vm3, %v3327_v2, %v3329_v62 }
 0x2ef   : > { %v3333_v54 = vsel %vm3315_vm3, %v3331_v1, %v3332_v25  ;;  %v3335_v36 = vsel %vm3315_vm3, %v3332_v25, %v3334_v60  ;;  %v3346_v17 = vrot.slane %v11566_v42, 1  ;;  %v3338_v56 = vsel %vm3315_vm3, %v3336_v50, %v3337_v57  ;;  %v11571_v1 = vld [vmem:[#allocation20_spill] sm:$0xff] }
 0x2f0   : > { %v3340_v43 = vsel %vm3315_vm3, %v3337_v57, %v3339_v26  ;;  %v3347_v14 = vrot.slane %v11567_v40, 1  ;;  %v3349_v52 = vrot.slane %v11568_v32, 1  ;;  %v3351_v45 = vrot.slane %v11569_v63, 1  ;;  %v11572_v42 = vld [vmem:[#allocation16_spill] sm:$0xff] }
 0x2f1   : > { %v3352_v55 = vrot.slane %v11570_v58, 1  ;;  %v3354_v2 = vrot.slane %v11490_v13, 1  ;;  %v3356_v62 = vrot.slane %v11520_v23, 1  ;;  %v3343_v60 = vsel %vm3315_vm3, %v3341_v6, %v3342_v31 }
 0x2f2   : > { %v3345_v25 = vsel %vm3315_vm3, %v3342_v31, %v3344_v33  ;;  %v3357_v50 = vrot.slane %v11571_v1, 1  ;;  %v3359_v57 = vrot.slane %v11493_v29, 1  ;;  %v3348_v26 = vsel %vm3315_vm3, %v3346_v17, %v3347_v14 }
 0x2f3   : > { %v3350_v32 = vsel %vm3315_vm3, %v3347_v14, %v3349_v52  ;;  %v3366_v63 = vrot.slane %v11528_v11, 1  ;;  %v3367_v58 = vrot.slane %v11572_v42, 1  ;;  %v3353_v13 = vsel %vm3315_vm3, %v3351_v45, %v3352_v55 }
 0x2f4   : > { %v3355_v23 = vsel %vm3315_vm3, %v3352_v55, %v3354_v2  ;;  %v3358_v6 = vsel %vm3315_vm3, %v3356_v62, %v3357_v50  ;;  %v3369_v31 = vrot.slane %v8913_v39, 1  ;;  %v3360_v33 = vsel %vm3315_vm3, %v3357_v50, %v3359_v57  ;;  %v11602_v57 = vld [vmem:[#allocation31_spill] sm:$0xff] }
 0x2f5   : > { %v3368_v29 = vsel %vm3315_vm3, %v3366_v63, %v3367_v58  ;;  %v11573_v17 = vmax.f32 %v9190_v59, %v9300_v18  ;;  %v11574_v11 = vmax.f32 %v9195_v44, %v9305_v20  ;;  %v11575_v45 = vmax.f32 %v9204_v9, %v9308_v24 }
 0x2f6   : > { %v3370_v52 = vsel %vm3315_vm3, %v3367_v58, %v3369_v31  ;;  %v11576_v39 = vmax.f32 %v9209_v48, %v9313_v15  ;;  %v11577_v62 = vmax.f32 %v9214_v8, %v9316_v5  ;;  %v11578_v59 = vmax.f32 %v9219_v41, %v9321_v4 }
 0x2f7   : > { %v3428_v40 = vmax.f32 %v11573_v17, %v3318_v49  ;;  %v3429_v14 = vmax.f32 %v11574_v11, %v3320_v3  ;;  %v3430_v55 = vmax.f32 %v11575_v45, %v3323_v61  ;;  %v11579_v44 = vmax.f32 %v9224_v10, %v9330_v16  ;;  %v11587_v61 = vld [vmem:[#allocation29_spill] sm:$0xff]  ;;  %v11590_v49 = vld [vmem:[#allocation30_spill] sm:$0xff] }
 0x2f8   : > { %v3431_v2 = vmax.f32 %v11576_v39, %v3325_v12  ;;  %v3432_v1 = vmax.f32 %v11577_v62, %v3328_v34  ;;  %v3433_v18 = vmax.f32 %v11578_v59, %v3330_v7  ;;  %v11580_v9 = vmax.f32 %v9229_v19, %v9335_v35  ;;  %v11588_v12 = vld [vmem:[#allocation28_spill] sm:$0xff]  ;;  %v11591_v3 = vld [vmem:[#allocation34_spill] sm:$0xff]  ;;  %v11594_v7 = vld [vmem:[#allocation35_spill] sm:$0xff] }
 0x2f9   : > { %v9502_v20 = vmax.f32 %v11579_v44, %v3333_v54  ;;  %v11581_v48 = vmax.f32 %v9234_v28, %v9340_v30  ;;  %v11582_v8 = vmax.f32 %v9239_v51, %v9345_v21  ;;  %v11583_v41 = vmax.f32 %v9244_v47, %v9348_v0  ;;  %v11593_v34 = vld [vmem:[#allocation32_spill] sm:$0xff]  ;;  %v11596_v54 = vld [vmem:[#allocation33_spill] sm:$0xff]  ;;  %v4092_v44 = vld [vmem:[#allocation3 + $0x50] sm:$0x3] }
 0x2fa   : > { %v9507_v24 = vmax.f32 %v11580_v9, %v3335_v36  ;;  %v11584_v10 = vmax.f32 %v9249_v27, %v9353_v37  ;;  %v11585_v19 = vmax.f32 %v9254_v38, %v9356_v22  ;;  %v11586_v30 = vmax.f32 %v9259_v53, %v9361_v46  ;;  %v11597_v36 = vld [vmem:[#allocation36_spill] sm:$0xff]  ;;  %v11599_v46 = vld [vmem:[#allocation27_spill] sm:$0xff]  ;;  %v3911_v39 = vld [vmem:[#allocation3 + $0x44] sm:$0x3] }
 0x2fb   : > { %v3436_v15 = vmax.f32 %v11581_v48, %v3338_v56  ;;  %v3437_v5 = vmax.f32 %v11582_v8, %v3340_v43  ;;  %v3438_v4 = vmax.f32 %v11583_v41, %v3343_v60  ;;  %v11589_v21 = vmax.f32 %v11587_v61, %v11588_v12  ;;  %v11600_v60 = vld [vmem:[#allocation8_spill] sm:$0xff]  ;;  %v3734_v8 = vld [vmem:[#allocation3 + $0x44] sm:$0x3]  ;;  %v3914_v12 = vld [vmem:[#allocation3 + $0x50] sm:$0x3] }
 0x2fc   : > { %v3439_v16 = vmax.f32 %v11584_v10, %v3345_v25  ;;  %v3440_v35 = vmax.f32 %v11585_v19, %v3348_v26  ;;  %v3441_v28 = vmax.f32 %v11586_v30, %v3350_v32  ;;  %v11592_v47 = vmax.f32 %v11590_v49, %v11591_v3  ;;  %v11603_v26 = vld [vmem:[#allocation37_spill] sm:$0xff]  ;;  %v4273_v19 = vld [vmem:[#allocation3 + $0x5c] sm:$0x3] }
 0x2fd   : > { %v3442_v51 = vmax.f32 %v11589_v21, %v3353_v13  ;;  %v11595_v27 = vmax.f32 %v11593_v34, %v11594_v7  ;;  %v11598_v38 = vmax.f32 %v11596_v54, %v11597_v36  ;;  %v3460_v56 = vpack.c.bf16 %v3428_v40, %v3428_v40  ;;  %v3692_v13 = vld [vmem:[#allocation3 + $0x20] sm:$0x3]  ;;  %v3728_v40 = vld [vmem:[#allocation3 + $0x2c] sm:$0x3]  ;;  %v7376_v21 = vld [vmem:[#allocation3 + $0x90] sm:$0xff]  }
 0x2fe   : > { %v3443_v0 = vmax.f32 %v11592_v47, %v3355_v23  ;;  %v3461_v43 = vpack.c.bf16 %v3429_v14, %v3429_v14  ;;  %v3462_v53 = vpack.c.bf16 %v3430_v55, %v3430_v55  ;;  %v11601_v25 = vmax.f32 %v11599_v46, %v11600_v60  ;;  %v3695_v23 = vld [vmem:[#allocation3 + $0x2c] sm:$0x3]  ;;  %v3908_v55 = vld [vmem:[#allocation3 + $0x38] sm:$0x3] }
 0x2ff   : > { %v3444_v37 = vmax.f32 %v11595_v27, %v3358_v6  ;;  %v3445_v22 = vmax.f32 %v11598_v38, %v3360_v33  ;;  %v11604_v32 = vmax.f32 %v11602_v57, %v11603_v26  ;;  %v3463_v42 = vpack.c.bf16 %v3431_v2, %v3431_v2  ;;  %3492 = vst.msk [vmem:[#allocation3 + $0x18] sm:$0xf] %vm1586_vm7, %v3460_v56  ;;  %v9586_v60 = vld [vmem:[#allocation3 + $0x78] sm:$0xff]  }
 0x300   : > { %v3448_v50 = vmax.f32 %v11601_v25, %v3368_v29  ;;  %v3464_v58 = vpack.c.bf16 %v3432_v1, %v3432_v1  ;;  %v3465_v6 = vpack.c.bf16 %v3433_v18, %v3433_v18  ;;  %v3466_v31 = vpack.c.bf16 %v9502_v20, %v9502_v20  ;;  %v3731_v29 = vld [vmem:[#allocation3 + $0x38] sm:$0x3]  ;;  %3493 = vst.msk [vmem:[#allocation3 + $0x1c] sm:$0xf] %vm1586_vm7, %v3461_v43  ;;  %v4089_v18 = vld [vmem:[#allocation3 + $0x44] sm:$0x3] }
 0x301   : > { %v3449_v63 = vmax.f32 %v11604_v32, %v3370_v52  ;;  %v3467_v33 = vpack.c.bf16 %v9507_v24, %v9507_v24  ;;  %v3468_v17 = vpack.c.bf16 %v3436_v15, %v3436_v15  ;;  %v3469_v11 = vpack.c.bf16 %v3437_v5, %v3437_v5  ;;  %3494 = vst.msk [vmem:[#allocation3 + $0x24] sm:$0xf] %vm1586_vm7, %v3462_v53  ;;  %v3698_v15 = vld [vmem:[#allocation3 + $0x38] sm:$0x3]  ;;  %v9582_v53 = vld [vmem:[#allocation3 + $0x6c] sm:$0xff]  }
 0x302   : > { %v9550_v14 = vpack.c.bf16 %v3438_v4, %v3438_v4  ;;  %v9552_v52 = vpack.c.bf16 %v3439_v16, %v3439_v16  ;;  %v9554_v45 = vpack.c.bf16 %v3440_v35, %v3440_v35  ;;  %v9557_v2 = vpack.c.bf16 %v3441_v28, %v3441_v28  ;;  %3495 = vst.msk [vmem:[#allocation3 + $0x28] sm:$0xf] %vm1586_vm7, %v3463_v42  ;;  %v4270_v16 = vld [vmem:[#allocation3 + $0x50] sm:$0x3]  ;;  %v1756_v25 = vld [vmem:[#allocation3 + $0xc8] sm:$0x3] }
 0x303   : > { %v9559_v62 = vpack.c.bf16 %v3442_v51, %v3442_v51  ;;  %v9561_v1 = vpack.c.bf16 %v3443_v0, %v3443_v0  ;;  %v9563_v59 = vpack.c.bf16 %v3444_v37, %v3444_v37  ;;  %v9566_v20 = vpack.c.bf16 %v3445_v22, %v3445_v22  ;;  %3496 = vst.msk [vmem:[#allocation3 + $0x30] sm:$0xf] %vm1586_vm7, %v3464_v58 }
 0x304   : > { %11605 = vst [vmem:[#allocation38_spill] sm:$0xff] %v9554_v45  ;;  %v3558_v9 = vunpack.c.l.b16 %v3468_v17  ;;  %v3559_v24 = vunpack.c.l.b16 %v3469_v11  ;;  %v3764_v48 = vunpack.c.l.bf16 %v3692_v13  ;;  %v3767_v5 = vunpack.c.l.bf16 %v3695_v23 }
 0x305   : > { %11606 = vst [vmem:[#allocation21_spill] sm:$0xff] %v9557_v2  ;;  %v3800_v41 = vunpack.c.l.bf16 %v3728_v40  ;;  %v3803_v4 = vunpack.c.l.bf16 %v3731_v29  ;;  %v3980_v10 = vunpack.c.l.bf16 %v3908_v55  ;;  %v9570_v35 = vpack.c.bf16 %v3448_v50, %v3448_v50 }
 0x306   : > { %11607 = vst [vmem:[#allocation39_spill] sm:$0xff] %v9559_v62  ;;  %v9572_v30 = vpack.c.bf16 %v3449_v63, %v3449_v63  ;;  %v3574_v28 = vpack.c.b16 %v3559_v24, %v3558_v9  ;;  %v3983_v61 = vunpack.c.l.bf16 %v3911_v39  ;;  %v4161_v3 = vunpack.c.l.bf16 %v4089_v18 }
 0x307   : > { %11608 = vst [vmem:[#allocation40_spill] sm:$0xff] %v9561_v1  ;;  %v3836_v51 = vmax.f32 %v3764_v48, %v3800_v41  ;;  %v3839_v49 = vmax.f32 %v3767_v5, %v3803_v4  ;;  %v4164_v47 = vunpack.c.l.bf16 %v4092_v44  ;;  %v4342_v0 = vunpack.c.l.bf16 %v4270_v16  ;;  %v7172_v37 = vld [vmem:[#allocation3 + $0x18] sm:$0xff]  }
 0x308   : > { %11609 = vst [vmem:[#allocation17_spill] sm:$0xff] %v9563_v59  ;;  %6946 = vmatmul.msk.bf16.vlgmr.msrb.gmra.mxu2 %vm1471_vm10, %v3574_v28  ;;  %v4345_v34 = vunpack.c.l.bf16 %v4273_v19  ;;  %v3770_v7 = vunpack.c.l.bf16 %v3698_v15  ;;  %v3806_v27 = vunpack.c.l.bf16 %v3734_v8  ;;  %v3986_v38 = vunpack.c.l.bf16 %v3914_v12  ;;  %v4276_v19 = vld [vmem:[#allocation3 + $0x68] sm:$0x3] }
 0x309   : > { %11610 = vst [vmem:[#allocation9_spill] sm:$0xff] %v9566_v20  ;;  %v4016_v54 = vmax.f32 %v3836_v51, %v3980_v10  ;;  %v4019_v36 = vmax.f32 %v3839_v49, %v3983_v61  ;;  %v9579_v22 = vunpack.c.l.bf16 %v7376_v21  ;;  %v7173_v56 = vunpack.c.l.bf16 %v7172_v37  ;;  %v3693_v50 = vld [vmem:[#allocation3 + $0x24] sm:$0xff]  }
 0x30a   : > { %11611 = vst [vmem:[#allocation22_spill] sm:$0xff] %v9570_v35  ;;  %v7174_v43 = vunpack.c.h.bf16 %v7172_v37  ;;  %v9584_v46 = vunpack.c.h.bf16 %v7376_v21  ;;  %v3726_v57 = vld [vmem:[#allocation3 + $0x24] sm:$0xff]   ;;  %v3842_v63 = vmax.f32 %v3770_v7, %v3806_v27  ;;  %v3765_v58 = vunpack.c.l.bf16 %v3693_v50 }
 0x30b   : > { %11612 = vst [vmem:[#allocation25_spill] sm:$0xff] %v9572_v30  ;;  %v4197_v26 = vmax.f32 %v4016_v54, %v4161_v3  ;;  %v4200_v32 = vmax.f32 %v4019_v36, %v4164_v47  ;;  %v3766_v13 = vunpack.c.h.bf16 %v3693_v50  ;;  %v3798_v23 = vunpack.c.l.bf16 %v3726_v57 }
 0x30c   : > { %3497 = vst.msk [vmem:[#allocation3 + $0x34] sm:$0xf] %vm1586_vm7, %v3465_v6  ;;  %v3799_v6 = vunpack.c.h.bf16 %v3726_v57  ;;  %v4022_v8 = vmax.f32 %v3842_v63, %v3986_v38  ;;  %v4348_v38 = vunpack.c.l.bf16 %v4276_v19 }
 0x30d   : > { %3498 = vst.msk [vmem:[#allocation3 + $0x3c] sm:$0xf] %vm1586_vm7, %v3466_v31  ;;  %v4095_v31 = vld [vmem:[#allocation3 + $0x5c] sm:$0x3]  ;;  %v4381_v40 = vmax.f32 %v4200_v32, %v4345_v34  ;;  %v3834_v18 = vmax.f32 %v7173_v56, %v3798_v23 }
 0x30e   : > { %3499 = vst.msk [vmem:[#allocation3 + $0x40] sm:$0xf] %vm1586_vm7, %v3467_v33  ;;  %v3835_v44 = vmax.f32 %v7174_v43, %v3799_v6  ;;  %v4167_v5 = vunpack.c.l.bf16 %v4095_v31 }
 0x30f   : > { %3500 = vst.msk [vmem:[#allocation3 + $0x48] sm:$0xf] %vm1586_vm7, %v3468_v17  ;;  %v4378_v17 = vmax.f32 %v4197_v26, %v4342_v0  ;;  %v4417_v15 = vpack.c.bf16 %v4381_v40, %v4381_v40 }
 0x310   : > { %3501 = vst.msk [vmem:[#allocation3 + $0x4c] sm:$0xf] %vm1586_vm7, %v3469_v11  ;;  %v4203_v36 = vmax.f32 %v4022_v8, %v4167_v5 }
 0x311   : > { %3502 = vst.msk [vmem:[#allocation3 + $0x54] sm:$0xf] %vm1586_vm7, %v9550_v14  ;;  %v4414_v48 = vpack.c.bf16 %v4378_v17, %v4378_v17 }
 0x312   : > { %3503 = vst.msk [vmem:[#allocation3 + $0x58] sm:$0xf] %vm1586_vm7, %v9552_v52 }
 0x313   : > { %3504 = vst.msk [vmem:[#allocation3 + $0x60] sm:$0xf] %vm1586_vm7, %v9554_v45  ;;  %v7413_v33 = vld [vmem:[#allocation3 + $0x30] sm:$0xff]   ;;  %v4450_v31 = vunpack.c.l.bf16 %v4414_v48 }
 0x314   : > { %3505 = vst.msk [vmem:[#allocation3 + $0x64] sm:$0xf] %vm1586_vm7, %v9557_v2  ;;  %v9600_v55 = vunpack.c.l.bf16 %v7413_v33  ;;  %v9602_v39 = vunpack.c.h.bf16 %v7413_v33  ;;  %v4453_v33 = vunpack.c.l.bf16 %v4417_v15 }
 0x315   : > { %3508 = vst.msk [vmem:[#allocation3 + $0x78] sm:$0xf] %vm1586_vm7, %v9563_v59  ;;  %v3909_v9 = vld [vmem:[#allocation3 + $0x3c] sm:$0xff]  }
 0x316   : > { %v4087_v24 = vld [vmem:[#allocation3 + $0x3c] sm:$0xff]   ;;  %3509 = vst.msk [vmem:[#allocation3 + $0x7c] sm:$0xf] %vm1586_vm7, %v9566_v20  ;;  %v3837_v41 = vmax.f32 %v3765_v58, %v9600_v55  ;;  %v3838_v4 = vmax.f32 %v3766_v13, %v9602_v39  ;;  %v3981_v10 = vunpack.c.l.bf16 %v3909_v9  ;;  %v3982_v16 = vunpack.c.h.bf16 %v3909_v9  ;;  %v6954_v9 = vld [vmem:[%s11240_s3 + $0x4] sm:$0x3] }
 0x317   : > { %v7409_v28 = vld [vmem:[#allocation3 + $0x48] sm:$0xff]   ;;  %v4014_v61 = vmax.f32 %v3834_v18, %v9600_v55  ;;  %v4015_v12 = vmax.f32 %v3835_v44, %v9602_v39  ;;  %v4159_v21 = vunpack.c.l.bf16 %v4087_v24  ;;  %v4160_v51 = vunpack.c.h.bf16 %v4087_v24  ;;  %3506 = vst.msk [vmem:[#allocation3 + $0x6c] sm:$0xf] %vm1586_vm7, %v9559_v62  ;;  %v3732_v24 = vld [vmem:[#allocation3 + $0x3c] sm:$0xff]  }
 0x318   : > { %v9614_v49 = vunpack.c.l.bf16 %v7409_v28  ;;  %v9616_v3 = vunpack.c.h.bf16 %v7409_v28  ;;  %v4017_v47 = vmax.f32 %v3837_v41, %v3981_v10  ;;  %v4018_v0 = vmax.f32 %v3838_v4, %v3982_v16  ;;  %3507 = vst.msk [vmem:[#allocation3 + $0x70] sm:$0xf] %vm1586_vm7, %v9561_v1 }
 0x319   : > { %v3705_v34 = vld [vmem:[#allocation3 + $0x54] sm:$0xff]   ;;  %v4195_v27 = vmax.f32 %v4014_v61, %v4159_v21  ;;  %v4196_v37 = vmax.f32 %v4015_v12, %v4160_v51  ;;  %3512 = vst.msk [vmem:[#allocation3 + $0x90] sm:$0xf] %vm1586_vm7, %v9570_v35  ;;  %v5167_v28 = vsel %vm1496_vm4, %v6954_v9, 0  ;;  %v3804_v61 = vunpack.c.l.bf16 %v3732_v24 }
 0x31a   : > { %v3738_v7 = vld [vmem:[#allocation3 + $0x54] sm:$0xff]   ;;  %v3777_v56 = vunpack.c.l.bf16 %v3705_v34  ;;  %v3778_v43 = vunpack.c.h.bf16 %v3705_v34  ;;  %3513 = vst.msk [vmem:[#allocation3 + $0x94] sm:$0xf] %vm1586_vm7, %v9572_v30  ;;  %v4198_v32 = vmax.f32 %v4017_v47, %v9614_v49  ;;  %v4199_v63 = vmax.f32 %v4018_v0, %v9616_v3  ;;  %5176 = vmatpush.bf16.msra.mxu3 %v5167_v28 }
 0x31b   : > { %v4271_v54 = vld [vmem:[#allocation3 + $0x54] sm:$0xff]   ;;  %v3810_v50 = vunpack.c.l.bf16 %v3738_v7  ;;  %v3811_v57 = vunpack.c.h.bf16 %v3738_v7  ;;  %v7410_v26 = vld [vmem:[#allocation3 + $0x60] sm:$0xff]   ;;  %v4376_v17 = vmax.f32 %v4195_v27, %v9614_v49  ;;  %v4377_v40 = vmax.f32 %v4196_v37, %v9616_v3 }
 0x31c   : > { %v4343_v58 = vunpack.c.l.bf16 %v4271_v54  ;;  %v4344_v13 = vunpack.c.h.bf16 %v4271_v54  ;;  %v9626_v23 = vunpack.c.l.bf16 %v7410_v26  ;;  %v9628_v6 = vunpack.c.h.bf16 %v7410_v26  ;;  %v9635_v8 = vld [vmem:[#allocation3 + $0x54] sm:$0xff]  }
 0x31d   : > { %v9638_v5 = vmax.f32 %v9614_v49, %v3810_v50  ;;  %v9641_v41 = vmax.f32 %v9616_v3, %v3811_v57  ;;  %v4412_v4 = vpack.c.bf16 %v4376_v17, %v4376_v17  ;;  %v4413_v10 = vpack.c.bf16 %v4377_v40, %v4377_v40 }
 0x31e   : > { %v4379_v18 = vmax.f32 %v4198_v32, %v4343_v58  ;;  %v4380_v44 = vmax.f32 %v4199_v63, %v4344_v13  ;;  %v9644_v48 = vmax.f32 %v3777_v56, %v9626_v23  ;;  %v9647_v15 = vmax.f32 %v3778_v43, %v9628_v6 }
 0x31f   : > { %v3805_v12 = vunpack.c.h.bf16 %v3732_v24  ;;  %v4165_v21 = vunpack.c.l.bf16 %v9635_v8  ;;  %v9651_v51 = vunpack.c.l.bf16 %v4412_v4  ;;  %v9653_v47 = vunpack.c.l.bf16 %v4413_v10 }
 0x320   : > { %11613 = vst [vmem:[#allocation18_spill] sm:$0xff] %v9644_v48  ;;  %v4415_v16 = vpack.c.bf16 %v4379_v18, %v4379_v18  ;;  %v4416_v19 = vpack.c.bf16 %v4380_v44, %v4380_v44  ;;  %v9660_v7 = vmax.f32 %v9600_v55, %v3804_v61  ;;  %v4166_v37 = vunpack.c.h.bf16 %v9635_v8 }
 0x321   : > { %11614 = vst [vmem:[#allocation23_spill] sm:$0xff] %v9647_v15  ;;  %v9663_v27 = vmax.f32 %v9602_v39, %v3805_v12  ;;  %v9666_v54 = vmax.f32 %v4203_v36, %v4348_v38  ;;  %v4484_v56 = vrot.slane %v9651_v51, 4  ;;  %v4508_v50 = vrot.slane %v9653_v47, 4 }
 0x322   : > { %v9655_v0 = vunpack.c.l.bf16 %v4415_v16  ;;  %v9657_v34 = vunpack.c.l.bf16 %v4416_v19  ;;  %v4832_v26 = vrot.slane %v9651_v51, 2  ;;  %v4833_v55 = vrot.slane %v9653_v47, 2 }
 0x323   : > { %v4485_v63 = vsel %vm2720_vm15, %v4484_v56, %v4450_v31  ;;  %v4532_v38 = vsel %vm2720_vm15, %v4508_v50, %v4484_v56  ;;  %v3561_v8 = vunpack.c.l.b16 %v9552_v52  ;;  %v9746_v52 = vld [vmem:[#allocation3 + $0xa4] sm:$0x3]  ;;  %v1852_v1 = vunpack.c.l.bf16 %v1756_v25 }
 0x324   : > { %v4486_v43 = vrot.slane %v9655_v0, 4  ;;  %v4509_v57 = vrot.slane %v9657_v34, 4  ;;  %v4836_v32 = vrot.slane %v9655_v0, 2  ;;  %v4837_v39 = vrot.slane %v9657_v34, 2 }
 0x325   : > { %v4520_v13 = vrot.slane %v4485_v63, 4  ;;  %v4592_v40 = vrot.slane %v4485_v63, 3  ;;  %v4593_v18 = vrot.slane %v4532_v38, 3  ;;  %v4700_v24 = vrot.slane %v4485_v63, 2 }
 0x326   : > { %v4487_v36 = vsel %vm2720_vm15, %v4486_v43, %v4453_v33  ;;  %v4533_v58 = vsel %vm2720_vm15, %v4509_v57, %v4486_v43  ;;  %v4701_v4 = vrot.slane %v4532_v38, 2 }
 0x327   : > { %v4521_v17 = vrot.slane %v4487_v36, 4  ;;  %v4597_v44 = vrot.slane %v4487_v36, 3  ;;  %v4598_v9 = vrot.slane %v4533_v58, 3  ;;  %v4544_v10 = vsel %vm2720_vm15, %v4520_v13, %v4508_v50 }
 0x328   : > { %v4594_v31 = vsel %vm2865_vm0, %v4592_v40, %v4593_v18  ;;  %v4705_v19 = vrot.slane %v4487_v36, 2  ;;  %v4595_v33 = vrot.slane %v4544_v10, 3  ;;  %v4702_v43 = vsel %vm3010_vm1, %v4700_v24, %v4701_v4 }
 0x329   : > { %v4545_v16 = vsel %vm2720_vm15, %v4521_v17, %v4509_v57  ;;  %v4599_v28 = vsel %vm2865_vm0, %v4597_v44, %v4598_v9  ;;  %v4676_v12 = vmax.f32 %v9651_v51, %v4594_v31  ;;  %v4703_v11 = vrot.slane %v4544_v10, 2 }
 0x32a   : > { %v4600_v61 = vrot.slane %v4545_v16, 3  ;;  %v4678_v56 = vmax.f32 %v9655_v0, %v4599_v28  ;;  %v4706_v42 = vrot.slane %v4533_v58, 2  ;;  %v4596_v38 = vsel %vm2865_vm0, %v4593_v18, %v4595_v33 }
 0x32b   : > { %v4708_v57 = vrot.slane %v4545_v16, 2  ;;  %v4784_v13 = vmax.f32 %v4676_v12, %v4702_v43  ;;  %v4677_v17 = vmax.f32 %v9653_v47, %v4596_v38  ;;  %v4704_v44 = vsel %vm3010_vm1, %v4701_v4, %v4703_v11 }
 0x32c   : > { %v4601_v50 = vsel %vm2865_vm0, %v4598_v9, %v4600_v61  ;;  %v4707_v31 = vsel %vm3010_vm1, %v4705_v19, %v4706_v42  ;;  %v4834_v10 = vsel %vm3010_vm1, %v4832_v26, %v4833_v55  ;;  %v4835_v58 = vsel %vm3010_vm1, %v4833_v55, %v4700_v24 }
 0x32d   : > { %v4679_v40 = vmax.f32 %v9657_v34, %v4601_v50  ;;  %v4709_v28 = vsel %vm3010_vm1, %v4706_v42, %v4708_v57  ;;  %v4786_v29 = vmax.f32 %v4678_v56, %v4707_v31  ;;  %v4785_v18 = vmax.f32 %v4677_v17, %v4704_v44 }
 0x32e   : > { %v4838_v9 = vsel %vm3010_vm1, %v4836_v32, %v4837_v39  ;;  %v4839_v16 = vsel %vm3010_vm1, %v4837_v39, %v4705_v19  ;;  %v4904_v61 = vmax.f32 %v4784_v13, %v4834_v10  ;;  %v4928_v43 = vrot.slane %v9651_v51, 1 }
 0x32f   : > { %v4787_v33 = vmax.f32 %v4679_v40, %v4709_v28  ;;  %v4906_v12 = vmax.f32 %v4786_v29, %v4838_v9  ;;  %v4929_v11 = vrot.slane %v9653_v47, 1  ;;  %v4905_v4 = vmax.f32 %v4785_v18, %v4835_v58  ;;  %v9722_v40 = vld [vmem:[#allocation3 + $0x74] sm:$0x3]  ;;  %v9733_v28 = vld [vmem:[#allocation3 + $0x8c] sm:$0x3]  ;;  %v9738_v58 = vld [vmem:[#allocation3 + $0x9c] sm:$0xff]  }
 0x330   : > { %v4931_v42 = vrot.slane %v4485_v63, 1  ;;  %v4933_v56 = vrot.slane %v9655_v0, 1  ;;  %v4934_v55 = vrot.slane %v9657_v34, 1  ;;  %v4936_v24 = vrot.slane %v4487_v36, 1 }
 0x331   : > { %v4907_v38 = vmax.f32 %v4787_v33, %v4839_v16  ;;  %v4930_v26 = vsel %vm3315_vm3, %v4928_v43, %v4929_v11  ;;  %v4020_v32 = vmax.f32 %v9660_v7, %v9614_v49  ;;  %v4021_v51 = vmax.f32 %v9663_v27, %v9616_v3  ;;  %v7377_v3 = vld [vmem:[#allocation3 + $0xa8] sm:$0xff]   ;;  %v7385_v27 = vld [vmem:[#allocation3 + $0xc0] sm:$0xff]   ;;  %v1753_v43 = vld [vmem:[#allocation3 + $0xbc] sm:$0x3] }
 0x332   : > { %v4932_v39 = vsel %vm3315_vm3, %v4929_v11, %v4931_v42  ;;  %v5012_v29 = vmax.f32 %v4904_v61, %v4930_v26  ;;  %v4420_v47 = vpack.c.bf16 %v9666_v54, %v9666_v54  ;;  %v4935_v63 = vsel %vm3315_vm3, %v4933_v56, %v4934_v55 }
 0x333   : > { %v4937_v0 = vsel %vm3315_vm3, %v4934_v55, %v4936_v24  ;;  %v5013_v19 = vmax.f32 %v4905_v4, %v4932_v39  ;;  %v4201_v34 = vmax.f32 %v4020_v32, %v4165_v21  ;;  %v9714_v36 = vmax.f32 %v4906_v12, %v4935_v63  ;;  %v9751_v4 = vld [vmem:[#allocation3 + $0xb0] sm:$0x3]  ;;  %v9757_v55 = vld [vmem:[#allocation3 + $0xb4] sm:$0xff]   ;;  %v9759_v24 = vld [vmem:[#allocation3 + $0xbc] sm:$0x3] }
 0x334   : > { %v9716_v49 = vmax.f32 %v4907_v38, %v4937_v0  ;;  %v5036_v7 = vpack.c.bf16 %v5012_v29, %v5012_v29  ;;  %v4202_v50 = vmax.f32 %v4021_v51, %v4166_v37  ;;  %v4456_v13 = vunpack.c.l.bf16 %v4420_v47  ;;  %v9731_v37 = vld [vmem:[#allocation3 + $0x84] sm:$0xff]   ;;  %v1744_v0 = vld [vmem:[#allocation3 + $0x98] sm:$0x3] }
 0x335   : > { %v5037_v57 = vpack.c.bf16 %v5013_v19, %v5013_v19  ;;  %v4382_v54 = vmax.f32 %v4201_v34, %v9626_v23  ;;  %v3560_v17 = vunpack.c.l.b16 %v9550_v14  ;;  %v9736_v14 = vld [vmem:[#allocation3 + $0x98] sm:$0x3]  ;;  %v9740_v18 = vunpack.c.l.bf16 %v7377_v3  ;;  %v1747_v39 = vld [vmem:[#allocation3 + $0xa4] sm:$0x3] }
 0x336   : > { %v4383_v31 = vmax.f32 %v4202_v50, %v9628_v6  ;;  %5060 = vst.msk [vmem:[#allocation3 + $0x30] sm:$0xf] %vm1586_vm7, %v5036_v7  ;;  %v9742_v33 = vunpack.c.h.bf16 %v7377_v3  ;;  %v9744_v9 = vunpack.c.l.bf16 %v7385_v27  ;;  %v9748_v12 = vunpack.c.h.bf16 %v7385_v27  ;;  %v1738_v27 = vld [vmem:[#allocation3 + $0x80] sm:$0x3]  ;;  %v1751_v38 = vld [vmem:[#allocation3 + $0xb4] sm:$0xff]  }
 0x337   : > { %v4418_v10 = vpack.c.bf16 %v4382_v54, %v4382_v54  ;;  %5061 = vst.msk [vmem:[#allocation3 + $0x34] sm:$0xf] %vm1586_vm7, %v5037_v57  ;;  %v3575_v61 = vpack.c.b16 %v3561_v8, %v3560_v17  ;;  %v1834_v17 = vunpack.c.l.bf16 %v1738_v27  ;;  %v1840_v30 = vunpack.c.l.bf16 %v1744_v0 }
 0x338   : > { %v4419_v16 = vpack.c.bf16 %v4383_v31, %v4383_v31  ;;  %v1849_v59 = vunpack.c.l.bf16 %v1753_v43  ;;  %v11621_v25 = vunpack.c.h.bf16 %v9731_v37 }
 0x339   : > { %v4454_v11 = vunpack.c.l.bf16 %v4418_v10  ;;  %6947 = vmatmul.msk.bf16.gmra.mxu2 %vm1471_vm10, %v3575_v61 }
 0x33a   : > { %v4455_v26 = vunpack.c.l.bf16 %v4419_v16 }
 0x33b   : > { %v4488_v51 = vrot.slane %v4454_v11, 4  ;;  %v4840_v47 = vrot.slane %v4454_v11, 2  ;;  %v4938_v63 = vrot.slane %v4454_v11, 1 }
 0x33c   : > { %v4510_v19 = vrot.slane %v4455_v26, 4  ;;  %v4841_v34 = vrot.slane %v4455_v26, 2  ;;  %v4939_v7 = vrot.slane %v4455_v26, 1 }
 0x33d   : > { %v4489_v3 = vsel %vm2720_vm15, %v4488_v51, %v4456_v13  ;;  %v1745_v13 = vld [vmem:[#allocation3 + $0x9c] sm:$0xff]  }
 0x33e   : > { %v4522_v31 = vrot.slane %v4489_v3, 4  ;;  %v4534_v8 = vsel %vm2720_vm15, %v4510_v19, %v4488_v51  ;;  %v4602_v10 = vrot.slane %v4489_v3, 3  ;;  %v4710_v16 = vrot.slane %v4489_v3, 2 }
 0x33f   : > { %v4603_v61 = vrot.slane %v4534_v8, 3  ;;  %v4711_v44 = vrot.slane %v4534_v8, 2  ;;  %v4842_v21 = vsel %vm3010_vm1, %v4840_v47, %v4841_v34  ;;  %v4940_v50 = vsel %vm3315_vm3, %v4938_v63, %v4939_v7  ;;  %v1750_v8 = vld [vmem:[#allocation3 + $0xb0] sm:$0x3] }
 0x340   : > { %v4546_v29 = vsel %vm2720_vm15, %v4522_v31, %v4510_v19  ;;  %v4843_v57 = vsel %vm3010_vm1, %v4841_v34, %v4710_v16  ;;  %v4941_v54 = vrot.slane %v4489_v3, 1  ;;  %v1841_v19 = vunpack.c.l.bf16 %v1745_v13 }
 0x341   : > { %v4604_v32 = vsel %vm2865_vm0, %v4602_v10, %v4603_v61  ;;  %v4605_v51 = vrot.slane %v4546_v29, 3  ;;  %v4712_v56 = vsel %vm3010_vm1, %v4710_v16, %v4711_v44  ;;  %v4713_v42 = vrot.slane %v4546_v29, 2 }
 0x342   : > { %v4680_v47 = vmax.f32 %v4454_v11, %v4604_v32  ;;  %v4942_v63 = vsel %vm3315_vm3, %v4939_v7, %v4941_v54  ;;  %v1842_v27 = vunpack.c.h.bf16 %v1745_v13  ;;  %v1843_v31 = vunpack.c.l.bf16 %v1747_v39 }
 0x343   : > { %v4606_v34 = vsel %vm2865_vm0, %v4603_v61, %v4605_v51  ;;  %v4714_v3 = vsel %vm3010_vm1, %v4711_v44, %v4713_v42  ;;  %v1846_v20 = vunpack.c.l.bf16 %v1750_v8  ;;  %v1847_v16 = vunpack.c.l.bf16 %v1751_v38  ;;  %v1977_v8 = vld [vmem:[#allocation3 + $0x84] sm:$0xff]  }
 0x344   : > { %v4681_v10 = vmax.f32 %v4455_v26, %v4606_v34  ;;  %v4788_v35 = vmax.f32 %v4680_v47, %v4712_v56  ;;  %v1848_v29 = vunpack.c.h.bf16 %v1751_v38  ;;  %v11615_v11 = vunpack.c.l.bf16 %v9586_v60 }
 0x345   : > { %v11616_v32 = vunpack.c.l.bf16 %v9582_v53  ;;  %v11617_v61 = vunpack.c.h.bf16 %v9586_v60  ;;  %v11618_v44 = vunpack.c.h.bf16 %v9582_v53  ;;  %v11619_v26 = vunpack.c.l.bf16 %v9722_v40 }
 0x346   : > { %v4789_v0 = vmax.f32 %v4681_v10, %v4714_v3  ;;  %v4908_v54 = vmax.f32 %v4788_v35, %v4842_v21  ;;  %v11620_v38 = vunpack.c.l.bf16 %v9731_v37  ;;  %v1887_v39 = vmax.f32 %v11621_v25, %v9584_v46  ;;  %v1997_v25 = vld [vmem:[#allocation3 + $0xd4] sm:$0x3] }
 0x347   : > { %v1880_v7 = vmax.f32 %v11616_v32, %v11615_v11  ;;  %v1881_v42 = vmax.f32 %v11618_v44, %v11617_v61  ;;  %v1882_v56 = vmax.f32 %v11619_v26, %v1834_v17  ;;  %v11622_v13 = vunpack.c.l.bf16 %v9733_v28  ;;  %v1983_v11 = vld [vmem:[#allocation3 + $0x9c] sm:$0xff]   ;;  %v1985_v32 = vld [vmem:[#allocation3 + $0xa4] sm:$0x3]  ;;  %v1989_v61 = vld [vmem:[#allocation3 + $0xb4] sm:$0xff]  }
 0x348   : > { %v1886_v43 = vmax.f32 %v11620_v38, %v9579_v22  ;;  %v9799_v35 = vmax.f32 %v9579_v22, %v1841_v19  ;;  %v4909_v60 = vmax.f32 %v4789_v0, %v4843_v57  ;;  %v5016_v53 = vmax.f32 %v4908_v54, %v4940_v50  ;;  %v1979_v57 = vld [vmem:[#allocation3 + $0x8c] sm:$0x3] }
 0x349   : > { %v1888_v51 = vmax.f32 %v11622_v13, %v1840_v30  ;;  %v9802_v21 = vmax.f32 %v9584_v46, %v1842_v27  ;;  %v11623_v40 = vunpack.c.l.bf16 %v9736_v14  ;;  %v11624_v47 = vunpack.c.l.bf16 %v9738_v58  ;;  %v1995_v38 = vld [vmem:[#allocation3 + $0xcc] sm:$0xff]  }
 0x34a   : > { %v11625_v28 = vunpack.c.h.bf16 %v9738_v58  ;;  %v11626_v19 = vunpack.c.l.bf16 %v9746_v52  ;;  %v9815_v50 = vmax.f32 %v9740_v18, %v1847_v16  ;;  %v5017_v3 = vmax.f32 %v4909_v60, %v4942_v63  ;;  %v1988_v58 = vld [vmem:[#allocation3 + $0xb0] sm:$0x3] }
 0x34b   : > { %v1891_v17 = vmax.f32 %v11623_v40, %v1843_v31  ;;  %v1892_v37 = vmax.f32 %v11624_v47, %v9740_v18  ;;  %v9817_v27 = vpack.c.bf16 %v5016_v53, %v5016_v53  ;;  %v9820_v14 = vmax.f32 %v9742_v33, %v1848_v29  ;;  %v1991_v29 = vld [vmem:[#allocation3 + $0xbc] sm:$0x3] }
 0x34c   : > { %v1893_v30 = vmax.f32 %v11625_v28, %v9742_v33  ;;  %v1894_v34 = vmax.f32 %v11626_v19, %v1846_v20  ;;  %v11627_v31 = vunpack.c.l.bf16 %v9751_v4  ;;  %v11628_v52 = vunpack.c.l.bf16 %v9757_v55  ;;  %v1994_v4 = vld [vmem:[#allocation3 + $0xc8] sm:$0x3] }
 0x34d   : > { %v11629_v16 = vunpack.c.h.bf16 %v9757_v55  ;;  %v11630_v63 = vunpack.c.l.bf16 %v9759_v24  ;;  %v2073_v44 = vunpack.c.l.bf16 %v1977_v8  ;;  %v9832_v26 = vpack.c.bf16 %v5017_v3, %v5017_v3 }
 0x34e   : > { %v1897_v10 = vmax.f32 %v11627_v31, %v1849_v59  ;;  %v1898_v20 = vmax.f32 %v11628_v52, %v9744_v9  ;;  %v5118_v59 = vunpack.c.l.b16 %v9817_v27  ;;  %v2074_v13 = vunpack.c.h.bf16 %v1977_v8 }
 0x34f   : > { %v1899_v0 = vmax.f32 %v11629_v16, %v9748_v12  ;;  %v1900_v54 = vmax.f32 %v11630_v63, %v1852_v1  ;;  %v2075_v60 = vunpack.c.l.bf16 %v1979_v57  ;;  %v2079_v53 = vunpack.c.l.bf16 %v1983_v11 }
 0x350   : > { %v2080_v40 = vunpack.c.h.bf16 %v1983_v11  ;;  %v2081_v47 = vunpack.c.l.bf16 %v1985_v32  ;;  %v2084_v55 = vunpack.c.l.bf16 %v1988_v58  ;;  %v5119_v28 = vunpack.c.l.b16 %v9832_v26 }
 0x351   : > { %v2085_v24 = vunpack.c.l.bf16 %v1989_v61  ;;  %v2086_v1 = vunpack.c.h.bf16 %v1989_v61  ;;  %v2087_v19 = vunpack.c.l.bf16 %v1991_v29  ;;  %v2090_v31 = vunpack.c.l.bf16 %v1994_v4  ;;  %v9846_v61 = vld [vmem:[#allocation3 + $0xd8] sm:$0xff]  }
 0x352   : > { %v2091_v52 = vunpack.c.l.bf16 %v1995_v38  ;;  %v2092_v3 = vunpack.c.h.bf16 %v1995_v38  ;;  %v2093_v16 = vunpack.c.l.bf16 %v1997_v25  ;;  %v5134_v63 = vpack.c.b16 %v5119_v28, %v5118_v59  ;;  %v2229_v38 = vld [vmem:[#allocation3 + $0xbc] sm:$0x3]  ;;  %v2232_v25 = vld [vmem:[#allocation3 + $0xc8] sm:$0x3] }
 0x353   : > { %v9836_v62 = vmax.f32 %v1880_v7, %v2073_v44  ;;  %v9838_v2 = vmax.f32 %v1881_v42, %v2074_v13  ;;  %v2123_v8 = vmax.f32 %v1882_v56, %v2075_v60  ;;  %v9840_v57 = vmax.f32 %v1886_v43, %v2079_v53  ;;  %v2220_v56 = vld [vmem:[#allocation3 + $0x98] sm:$0x3]  ;;  %v2226_v43 = vld [vmem:[#allocation3 + $0xb0] sm:$0x3]  ;;  %v2235_v60 = vld [vmem:[#allocation3 + $0xd4] sm:$0x3] }
 0x354   : > { %v9842_v11 = vmax.f32 %v1887_v39, %v2080_v40  ;;  %v2129_v32 = vmax.f32 %v1888_v51, %v2081_v47  ;;  %v2130_v58 = vmax.f32 %v9799_v35, %v9740_v18  ;;  %6955 = vmatmul.msk.bf16.vlgmr.msra.gmra.mxu3 %vm1471_vm10, %v5134_v63  ;;  %v2131_v29 = vmax.f32 %v9802_v21, %v9742_v33  ;;  %v2227_v39 = vld [vmem:[#allocation3 + $0xb4] sm:$0xff]   ;;  %v2233_v13 = vld [vmem:[#allocation3 + $0xcc] sm:$0xff]   ;;  %v2238_v53 = vld [vmem:[#allocation3 + $0xe0] sm:$0x3] }
 0x355   : > { %v2132_v7 = vmax.f32 %v1891_v17, %v2084_v55  ;;  %v9851_v44 = vmax.f32 %v1892_v37, %v2085_v24  ;;  %v9853_v42 = vmax.f32 %v1893_v30, %v2086_v1  ;;  %v2135_v59 = vmax.f32 %v1894_v34, %v2087_v19 }
 0x356   : > { %v2136_v51 = vmax.f32 %v9815_v50, %v9744_v9  ;;  %v2137_v35 = vmax.f32 %v9820_v14, %v9748_v12  ;;  %v2138_v4 = vmax.f32 %v1897_v10, %v2090_v31  ;;  %v2139_v21 = vmax.f32 %v1898_v20, %v2091_v52 }
 0x357   : > { %v2140_v17 = vmax.f32 %v1899_v0, %v2092_v3  ;;  %v2141_v37 = vmax.f32 %v1900_v54, %v2093_v16  ;;  %v7137_v30 = vunpack.c.l.bf16 %v9846_v61  ;;  %v11330_v40 = vunpack.c.h.bf16 %v9846_v61 }
 0x358   : > { %v2316_v34 = vunpack.c.l.bf16 %v2220_v56  ;;  %v2322_v47 = vunpack.c.l.bf16 %v2226_v43  ;;  %v2323_v55 = vunpack.c.l.bf16 %v2227_v39  ;;  %v2324_v50 = vunpack.c.h.bf16 %v2227_v39  ;;  %v2459_v43 = vld [vmem:[#allocation3 + $0x9c] sm:$0xff]   ;;  %v2461_v39 = vld [vmem:[#allocation3 + $0xa4] sm:$0x3] }
 0x359   : > { %v2325_v28 = vunpack.c.l.bf16 %v2229_v38  ;;  %v2328_v24 = vunpack.c.l.bf16 %v2232_v25  ;;  %v2329_v14 = vunpack.c.l.bf16 %v2233_v13  ;;  %v2330_v10 = vunpack.c.h.bf16 %v2233_v13  ;;  %v2479_v13 = vld [vmem:[#allocation3 + $0xec] sm:$0x3] }
 0x35a   : > { %v2331_v1 = vunpack.c.l.bf16 %v2235_v60  ;;  %v2334_v19 = vunpack.c.l.bf16 %v2238_v53  ;;  %v2362_v20 = vmax.f32 %v9836_v62, %v9579_v22  ;;  %v2363_v0 = vmax.f32 %v9838_v2, %v9584_v46  ;;  %v2465_v46 = vld [vmem:[#allocation3 + $0xb4] sm:$0xff]  }
 0x35b   : > { %v2364_v54 = vmax.f32 %v2123_v8, %v2316_v34  ;;  %v2368_v31 = vmax.f32 %v9840_v57, %v9740_v18  ;;  %v2369_v52 = vmax.f32 %v9842_v11, %v9742_v33  ;;  %v2370_v3 = vmax.f32 %v2129_v32, %v2322_v47  ;;  %v2467_v8 = vld [vmem:[#allocation3 + $0xbc] sm:$0x3]  ;;  %v2470_v18 = vld [vmem:[#allocation3 + $0xc8] sm:$0x3]  ;;  %v2471_v32 = vld [vmem:[#allocation3 + $0xcc] sm:$0xff]  }
 0x35c   : > { %v2371_v16 = vmax.f32 %v2130_v58, %v2323_v55  ;;  %v2372_v63 = vmax.f32 %v2131_v29, %v2324_v50  ;;  %v2373_v56 = vmax.f32 %v2132_v7, %v2325_v28  ;;  %v2374_v38 = vmax.f32 %v9851_v44, %v9744_v9  ;;  %v2473_v58 = vld [vmem:[#allocation3 + $0xd4] sm:$0x3]  ;;  %v2476_v29 = vld [vmem:[#allocation3 + $0xe0] sm:$0x3]  ;;  %v2477_v44 = vld [vmem:[#allocation3 + $0xe4] sm:$0xff]  }
 0x35d   : > { %v2375_v62 = vmax.f32 %v9853_v42, %v9748_v12  ;;  %v2376_v2 = vmax.f32 %v2135_v59, %v2328_v24  ;;  %v2377_v22 = vmax.f32 %v2136_v51, %v2329_v14  ;;  %v2378_v57 = vmax.f32 %v2137_v35, %v2330_v10 }
 0x35e   : > { %v2379_v25 = vmax.f32 %v2138_v4, %v2331_v1  ;;  %v2380_v33 = vmax.f32 %v2139_v21, %v7137_v30  ;;  %v2381_v11 = vmax.f32 %v2140_v17, %v11330_v40  ;;  %v2382_v7 = vmax.f32 %v2141_v37, %v2334_v19 }
 0x35f   : > { %v2555_v42 = vunpack.c.l.bf16 %v2459_v43  ;;  %v2556_v59 = vunpack.c.h.bf16 %v2459_v43  ;;  %v2557_v51 = vunpack.c.l.bf16 %v2461_v39  ;;  %v2561_v60 = vunpack.c.l.bf16 %v2465_v46 }
 0x360   : > { %v2562_v53 = vunpack.c.h.bf16 %v2465_v46  ;;  %v2563_v34 = vunpack.c.l.bf16 %v2467_v8  ;;  %v2566_v35 = vunpack.c.l.bf16 %v2470_v18  ;;  %v2567_v4 = vunpack.c.l.bf16 %v2471_v32 }
 0x361   : > { %v2568_v47 = vunpack.c.h.bf16 %v2471_v32  ;;  %v2569_v55 = vunpack.c.l.bf16 %v2473_v58  ;;  %v2572_v21 = vunpack.c.l.bf16 %v2476_v29  ;;  %v2573_v50 = vunpack.c.l.bf16 %v2477_v44 }
 0x362   : > { %v2574_v28 = vunpack.c.h.bf16 %v2477_v44  ;;  %v2575_v17 = vunpack.c.l.bf16 %v2479_v13  ;;  %v2603_v24 = vmax.f32 %v2362_v20, %v2555_v42  ;;  %v2604_v14 = vmax.f32 %v2363_v0, %v2556_v59 }
 0x363   : > { %v2605_v10 = vmax.f32 %v2364_v54, %v2557_v51  ;;  %v2609_v37 = vmax.f32 %v2368_v31, %v2561_v60  ;;  %v2610_v1 = vmax.f32 %v2369_v52, %v2562_v53  ;;  %v2611_v19 = vmax.f32 %v2370_v3, %v2563_v34 }
 0x364   : > { %v2612_v43 = vmax.f32 %v2371_v16, %v9744_v9  ;;  %v2613_v39 = vmax.f32 %v2372_v63, %v9748_v12  ;;  %v2614_v46 = vmax.f32 %v2373_v56, %v2566_v35  ;;  %v2615_v8 = vmax.f32 %v2374_v38, %v2567_v4 }
 0x365   : > { %v2616_v18 = vmax.f32 %v2375_v62, %v2568_v47  ;;  %v2617_v40 = vmax.f32 %v2376_v2, %v2569_v55  ;;  %v2618_v32 = vmax.f32 %v2377_v22, %v7137_v30  ;;  %v11631_v58 = vunpack.c.h.bf16 %v9846_v61 }
 0x366   : > { %v2620_v20 = vmax.f32 %v2379_v25, %v2572_v21  ;;  %v2621_v0 = vmax.f32 %v2380_v33, %v2573_v50  ;;  %v2622_v54 = vmax.f32 %v2381_v11, %v2574_v28  ;;  %v2623_v31 = vmax.f32 %v2382_v7, %v2575_v17 }
 0x367   : > { %v2619_v29 = vmax.f32 %v2378_v57, %v11631_v58  ;;  %v2651_v52 = vpack.c.bf16 %v2603_v24, %v2603_v24  ;;  %v2652_v3 = vpack.c.bf16 %v2604_v14, %v2604_v14  ;;  %v2653_v44 = vpack.c.bf16 %v2605_v10, %v2605_v10 }
 0x368   : > { %v2657_v9 = vpack.c.bf16 %v2609_v37, %v2609_v37  ;;  %v2658_v16 = vpack.c.bf16 %v2610_v1, %v2610_v1  ;;  %v2659_v12 = vpack.c.bf16 %v2611_v19, %v2611_v19  ;;  %v2660_v63 = vpack.c.bf16 %v2612_v43, %v2612_v43 }
 0x369   : > { %v2661_v56 = vpack.c.bf16 %v2613_v39, %v2613_v39  ;;  %v2662_v38 = vpack.c.bf16 %v2614_v46, %v2614_v46  ;;  %v2663_v62 = vpack.c.bf16 %v2615_v8, %v2615_v8  ;;  %v2664_v2 = vpack.c.bf16 %v2616_v18, %v2616_v18 }
 0x36a   : > { %v2665_v13 = vpack.c.bf16 %v2617_v40, %v2617_v40  ;;  %v2666_v30 = vpack.c.bf16 %v2618_v32, %v2618_v32  ;;  %v2667_v22 = vpack.c.bf16 %v2619_v29, %v2619_v29  ;;  %v2668_v61 = vpack.c.bf16 %v2620_v20, %v2620_v20 }
 0x36b   : > { %v2669_v57 = vpack.c.bf16 %v2621_v0, %v2621_v0  ;;  %v2670_v25 = vpack.c.bf16 %v2622_v54, %v2622_v54  ;;  %v2671_v33 = vpack.c.bf16 %v2623_v31, %v2623_v31  ;;  %v9883_v11 = vunpack.c.l.bf16 %v2651_v52  ;;  %v9934_v54 = vld [vmem:[#allocation3 + $0x3c] sm:$0xff]  }
 0x36c   : > { %v9885_v7 = vunpack.c.l.bf16 %v2652_v3  ;;  %v2701_v42 = vunpack.c.l.bf16 %v2653_v44  ;;  %v9887_v59 = vunpack.c.l.bf16 %v2657_v9  ;;  %v9889_v51 = vunpack.c.l.bf16 %v2658_v16  ;;  %11632 = vst [vmem:[#allocation10_spill] sm:$0xff] %v9934_v54 }
 0x36d   : > { %v2707_v60 = vunpack.c.l.bf16 %v2659_v12  ;;  %v9891_v53 = vunpack.c.l.bf16 %v2660_v63  ;;  %v9893_v34 = vunpack.c.l.bf16 %v2661_v56  ;;  %v2710_v40 = vunpack.c.l.bf16 %v2662_v38 }
 0x36e   : > { %v9895_v35 = vunpack.c.l.bf16 %v2663_v62  ;;  %v9897_v4 = vunpack.c.l.bf16 %v2664_v2  ;;  %v2713_v47 = vunpack.c.l.bf16 %v2665_v13  ;;  %v9899_v55 = vunpack.c.l.bf16 %v2666_v30  ;;  %v9958_v13 = vld [vmem:[#allocation3 + $0x48] sm:$0xff]  }
 0x36f   : > { %v9901_v21 = vunpack.c.l.bf16 %v2667_v22  ;;  %v2716_v50 = vunpack.c.l.bf16 %v2668_v61  ;;  %v9903_v28 = vunpack.c.l.bf16 %v2669_v57  ;;  %v9905_v17 = vunpack.c.l.bf16 %v2670_v25  ;;  %11634 = vst [vmem:[#allocation11_spill] sm:$0xff] %v9958_v13 }
 0x370   : > { %v2719_v24 = vunpack.c.l.bf16 %v2671_v33  ;;  %v2739_v14 = vrot.slane %v9883_v11, 4  ;;  %v2743_v10 = vrot.slane %v9887_v59, 4  ;;  %v2745_v37 = vrot.slane %v9891_v53, 4  ;;  %5064 = vst.msk [vmem:[#allocation3 + $0x48] sm:$0xf] %vm1586_vm7, %v9817_v27 }
 0x371   : > { %v2747_v1 = vrot.slane %v9895_v35, 4  ;;  %v2749_v19 = vrot.slane %v9899_v55, 4  ;;  %v2751_v43 = vrot.slane %v9903_v28, 4  ;;  %v2762_v39 = vrot.slane %v9885_v7, 4  ;;  %5065 = vst.msk [vmem:[#allocation3 + $0x4c] sm:$0xf] %vm1586_vm7, %v9832_v26 }
 0x372   : > { %v9915_v46 = vsel %vm2720_vm15, %v2739_v14, %v2701_v42  ;;  %v9918_v8 = vsel %vm2720_vm15, %v2743_v10, %v2707_v60  ;;  %v9921_v18 = vsel %vm2720_vm15, %v2745_v37, %v2710_v40  ;;  %v2764_v32 = vrot.slane %v9889_v51, 4 }
 0x373   : > { %v9925_v58 = vsel %vm2720_vm15, %v2747_v1, %v2713_v47  ;;  %v9928_v29 = vsel %vm2720_vm15, %v2749_v19, %v2716_v50  ;;  %v9931_v20 = vsel %vm2720_vm15, %v2751_v43, %v2719_v24  ;;  %v2765_v0 = vrot.slane %v9893_v34, 4 }
 0x374   : > { %v2766_v31 = vrot.slane %v9897_v4, 4  ;;  %v2767_v52 = vrot.slane %v9901_v21, 4  ;;  %v2768_v3 = vrot.slane %v9905_v17, 4  ;;  %v2778_v44 = vrot.slane %v9915_v46, 4 }
 0x375   : > { %v11633_v9 = vpack.c.bf16 %v9714_v36, %v9714_v36  ;;  %v2780_v16 = vrot.slane %v9918_v8, 4  ;;  %v2781_v12 = vrot.slane %v9921_v18, 4  ;;  %v2782_v63 = vrot.slane %v9925_v58, 4 }
 0x376   : > { %v2783_v56 = vrot.slane %v9928_v29, 4  ;;  %v2784_v38 = vrot.slane %v9931_v20, 4  ;;  %v9950_v62 = vsel %vm2720_vm15, %v2762_v39, %v2739_v14  ;;  %v9953_v2 = vsel %vm2720_vm15, %v2764_v32, %v2743_v10 }
 0x377   : > { %5062 = vst.msk [vmem:[#allocation3 + $0x3c] sm:$0xf] %vm1586_vm7, %v11633_v9  ;;  %v9956_v36 = vsel %vm2720_vm15, %v2765_v0, %v2745_v37  ;;  %v11635_v30 = vpack.c.bf16 %v9716_v49, %v9716_v49  ;;  %v9965_v22 = vsel %vm2720_vm15, %v2766_v31, %v2747_v1  ;;  %v9968_v61 = vsel %vm2720_vm15, %v2767_v52, %v2749_v19 }
 0x378   : > { %v9971_v57 = vsel %vm2720_vm15, %v2768_v3, %v2751_v43  ;;  %v2810_v25 = vsel %vm2720_vm15, %v2778_v44, %v2762_v39  ;;  %v9977_v33 = vsel %vm2720_vm15, %v2780_v16, %v2764_v32  ;;  %v9980_v49 = vsel %vm2720_vm15, %v2781_v12, %v2765_v0 }
 0x379   : > { %5063 = vst.msk [vmem:[#allocation3 + $0x40] sm:$0xf] %vm1586_vm7, %v11635_v30  ;;  %v9983_v42 = vsel %vm2720_vm15, %v2782_v63, %v2766_v31  ;;  %v9986_v60 = vsel %vm2720_vm15, %v2783_v56, %v2767_v52  ;;  %v9991_v40 = vsel %vm2720_vm15, %v2784_v38, %v2768_v3  ;;  %v2911_v27 = vrot.slane %v9915_v46, 3 }
 0x37a   : > { %v2912_v47 = vrot.slane %v9950_v62, 3  ;;  %v2914_v50 = vrot.slane %v2810_v25, 3  ;;  %v2921_v24 = vrot.slane %v9918_v8, 3  ;;  %v2922_v14 = vrot.slane %v9953_v2, 3 }
 0x37b   : > { %v2924_v10 = vrot.slane %v9977_v33, 3  ;;  %v2926_v37 = vrot.slane %v9921_v18, 3  ;;  %v2927_v19 = vrot.slane %v9956_v36, 3  ;;  %v2929_v43 = vrot.slane %v9980_v49, 3 }
 0x37c   : > { %v10000_v1 = vsel %vm2865_vm0, %v2911_v27, %v2912_v47  ;;  %v10003_v26 = vsel %vm2865_vm0, %v2912_v47, %v2914_v50  ;;  %v10008_v39 = vsel %vm2865_vm0, %v2921_v24, %v2922_v14  ;;  %v2931_v0 = vrot.slane %v9925_v58, 3 }
 0x37d   : > { %v10011_v32 = vsel %vm2865_vm0, %v2922_v14, %v2924_v10  ;;  %v2932_v31 = vrot.slane %v9965_v22, 3  ;;  %v2928_v52 = vsel %vm2865_vm0, %v2926_v37, %v2927_v19  ;;  %v2930_v3 = vsel %vm2865_vm0, %v2927_v19, %v2929_v43 }
 0x37e   : > { %v2934_v44 = vrot.slane %v9983_v42, 3  ;;  %v2936_v9 = vrot.slane %v9928_v29, 3  ;;  %v2937_v12 = vrot.slane %v9968_v61, 3  ;;  %v2939_v63 = vrot.slane %v9986_v60, 3 }
 0x37f   : > { %v2933_v16 = vsel %vm2865_vm0, %v2931_v0, %v2932_v31  ;;  %v2941_v56 = vrot.slane %v9931_v20, 3  ;;  %v2942_v30 = vrot.slane %v9971_v57, 3  ;;  %v2944_v27 = vrot.slane %v9991_v40, 3 }
 0x380   : > { %v2935_v38 = vsel %vm2865_vm0, %v2932_v31, %v2934_v44  ;;  %v2996_v47 = vmax.f32 %v9883_v11, %v10000_v1  ;;  %v2938_v50 = vsel %vm2865_vm0, %v2936_v9, %v2937_v12  ;;  %v2940_v24 = vsel %vm2865_vm0, %v2937_v12, %v2939_v63 }
 0x381   : > { %v2997_v14 = vmax.f32 %v9885_v7, %v10003_v26  ;;  %v3000_v10 = vmax.f32 %v9887_v59, %v10008_v39  ;;  %v2943_v37 = vsel %vm2865_vm0, %v2941_v56, %v2942_v30  ;;  %v2945_v19 = vsel %vm2865_vm0, %v2942_v30, %v2944_v27 }
 0x382   : > { %v3001_v43 = vmax.f32 %v9889_v51, %v10011_v32  ;;  %v3002_v0 = vmax.f32 %v9891_v53, %v2928_v52  ;;  %v3003_v1 = vmax.f32 %v9893_v34, %v2930_v3  ;;  %v3004_v31 = vmax.f32 %v9895_v35, %v2933_v16 }
 0x383   : > { %v3005_v44 = vmax.f32 %v9897_v4, %v2935_v38  ;;  %v3006_v26 = vmax.f32 %v9899_v55, %v2938_v50  ;;  %v3007_v9 = vmax.f32 %v9901_v21, %v2940_v24  ;;  %v3008_v39 = vmax.f32 %v9903_v28, %v2943_v37 }
 0x384   : > { %v3009_v12 = vmax.f32 %v9905_v17, %v2945_v19  ;;  %v3056_v63 = vrot.slane %v9915_v46, 2  ;;  %v3057_v32 = vrot.slane %v9950_v62, 2  ;;  %v3059_v56 = vrot.slane %v2810_v25, 2 }
 0x385   : > { %v3066_v52 = vrot.slane %v9918_v8, 2  ;;  %v3067_v3 = vrot.slane %v9953_v2, 2  ;;  %v3069_v16 = vrot.slane %v9977_v33, 2  ;;  %v3071_v38 = vrot.slane %v9921_v18, 2 }
 0x386   : > { %v3072_v30 = vrot.slane %v9956_v36, 2  ;;  %v3074_v27 = vrot.slane %v9980_v49, 2  ;;  %v3058_v50 = vsel %vm3010_vm1, %v3056_v63, %v3057_v32  ;;  %v3060_v24 = vsel %vm3010_vm1, %v3057_v32, %v3059_v56 }
 0x387   : > { %v3068_v37 = vsel %vm3010_vm1, %v3066_v52, %v3067_v3  ;;  %v3076_v62 = vrot.slane %v9925_v58, 2  ;;  %v3070_v25 = vsel %vm3010_vm1, %v3067_v3, %v3069_v16  ;;  %v3077_v19 = vrot.slane %v9965_v22, 2 }
 0x388   : > { %v3073_v2 = vsel %vm3010_vm1, %v3071_v38, %v3072_v30  ;;  %v3075_v33 = vsel %vm3010_vm1, %v3072_v30, %v3074_v27  ;;  %v3079_v36 = vrot.slane %v9983_v42, 2  ;;  %v3081_v49 = vrot.slane %v9928_v29, 2 }
 0x389   : > { %v3082_v45 = vrot.slane %v9968_v61, 2  ;;  %v3084_v32 = vrot.slane %v9986_v60, 2  ;;  %v3078_v56 = vsel %vm3010_vm1, %v3076_v62, %v3077_v19  ;;  %v3086_v15 = vrot.slane %v9931_v20, 2 }
 0x38a   : > { %v3087_v3 = vrot.slane %v9971_v57, 2  ;;  %v3089_v16 = vrot.slane %v9991_v40, 2  ;;  %v3080_v30 = vsel %vm3010_vm1, %v3077_v19, %v3079_v36  ;;  %v10073_v27 = vmax.f32 %v2996_v47, %v3058_v50 }
 0x38b   : > { %v3083_v22 = vsel %vm3010_vm1, %v3081_v49, %v3082_v45  ;;  %v3085_v42 = vsel %vm3010_vm1, %v3082_v45, %v3084_v32  ;;  %v10077_v48 = vmax.f32 %v2997_v14, %v3060_v24  ;;  %v10079_v54 = vmax.f32 %v3000_v10, %v3068_v37 }
 0x38c   : > { %v3088_v61 = vsel %vm3010_vm1, %v3086_v15, %v3087_v3  ;;  %v3090_v60 = vsel %vm3010_vm1, %v3087_v3, %v3089_v16  ;;  %v10081_v13 = vmax.f32 %v3001_v43, %v3070_v25  ;;  %v10083_v57 = vmax.f32 %v3002_v0, %v3073_v2 }
 0x38d   : > { %v10085_v40 = vmax.f32 %v3003_v1, %v3075_v33  ;;  %v10087_v19 = vmax.f32 %v3004_v31, %v3078_v56  ;;  %v10089_v36 = vmax.f32 %v3005_v44, %v3080_v30  ;;  %v10091_v45 = vmax.f32 %v3006_v26, %v3083_v22 }
 0x38e   : > { %v10093_v47 = vmax.f32 %v3007_v9, %v3085_v42  ;;  %v10095_v50 = vmax.f32 %v3008_v39, %v3088_v61  ;;  %v10097_v14 = vmax.f32 %v3009_v12, %v3090_v60  ;;  %v3223_v10 = vrot.slane %v9883_v11, 2 }
 0x38f   : > { %v3224_v43 = vrot.slane %v9885_v7, 2  ;;  %v3231_v0 = vrot.slane %v9887_v59, 2  ;;  %v3232_v1 = vrot.slane %v9889_v51, 2  ;;  %v3235_v31 = vrot.slane %v9891_v53, 2 }
 0x390   : > { %v3236_v44 = vrot.slane %v9893_v34, 2  ;;  %v3239_v26 = vrot.slane %v9895_v35, 2  ;;  %v3240_v12 = vrot.slane %v9897_v4, 2  ;;  %v3243_v24 = vrot.slane %v9899_v55, 2 }
 0x391   : > { %v3225_v9 = vsel %vm3010_vm1, %v3223_v10, %v3224_v43  ;;  %v3226_v39 = vsel %vm3010_vm1, %v3224_v43, %v3056_v63  ;;  %v3233_v37 = vsel %vm3010_vm1, %v3231_v0, %v3232_v1  ;;  %v3234_v25 = vsel %vm3010_vm1, %v3232_v1, %v3066_v52 }
 0x392   : > { %v3237_v2 = vsel %vm3010_vm1, %v3235_v31, %v3236_v44  ;;  %v3238_v33 = vsel %vm3010_vm1, %v3236_v44, %v3071_v38  ;;  %v3241_v32 = vsel %vm3010_vm1, %v3239_v26, %v3240_v12  ;;  %v3242_v56 = vsel %vm3010_vm1, %v3240_v12, %v3076_v62 }
 0x393   : > { %v3244_v3 = vrot.slane %v9901_v21, 2  ;;  %v3247_v63 = vrot.slane %v9903_v28, 2  ;;  %v3248_v16 = vrot.slane %v9905_v17, 2  ;;  %v3301_v30 = vmax.f32 %v10073_v27, %v3225_v9 }
 0x394   : > { %v3302_v22 = vmax.f32 %v10077_v48, %v3226_v39  ;;  %v3305_v52 = vmax.f32 %v10079_v54, %v3233_v37  ;;  %v3306_v61 = vmax.f32 %v10081_v13, %v3234_v25  ;;  %v3307_v62 = vmax.f32 %v10083_v57, %v3237_v2 }
 0x395   : > { %v3245_v42 = vsel %vm3010_vm1, %v3243_v24, %v3244_v3  ;;  %v3246_v38 = vsel %vm3010_vm1, %v3244_v3, %v3081_v49  ;;  %v3249_v60 = vsel %vm3010_vm1, %v3247_v63, %v3248_v16  ;;  %v3250_v10 = vsel %vm3010_vm1, %v3248_v16, %v3086_v15 }
 0x396   : > { %v3308_v43 = vmax.f32 %v10085_v40, %v3238_v33  ;;  %v3309_v27 = vmax.f32 %v10087_v19, %v3241_v32  ;;  %v3310_v48 = vmax.f32 %v10089_v36, %v3242_v56  ;;  %v3311_v54 = vmax.f32 %v10091_v45, %v3245_v42  ;;  %v3701_v42 = vld [vmem:[#allocation3 + $0x44] sm:$0x3] }
 0x397   : > { %v3312_v0 = vmax.f32 %v10093_v47, %v3246_v38  ;;  %v3313_v49 = vmax.f32 %v10095_v50, %v3249_v60  ;;  %v3314_v13 = vmax.f32 %v10097_v14, %v3250_v10  ;;  %v3361_v57 = vrot.slane %v9883_v11, 1  ;;  %v3704_v38 = vld [vmem:[#allocation3 + $0x50] sm:$0x3] }
 0x398   : > { %v3362_v1 = vrot.slane %v9885_v7, 1  ;;  %v3364_v15 = vrot.slane %v9915_v46, 1  ;;  %v3371_v40 = vrot.slane %v9887_v59, 1  ;;  %v3372_v19 = vrot.slane %v9889_v51, 1 }
 0x399   : > { %v3374_v36 = vrot.slane %v9918_v8, 1  ;;  %v3376_v45 = vrot.slane %v9891_v53, 1  ;;  %v3377_v14 = vrot.slane %v9893_v34, 1  ;;  %v3379_v11 = vrot.slane %v9921_v18, 1 }
 0x39a   : > { %v3363_v47 = vsel %vm3315_vm3, %v3361_v57, %v3362_v1  ;;  %v3365_v50 = vsel %vm3315_vm3, %v3362_v1, %v3364_v15  ;;  %v3373_v7 = vsel %vm3315_vm3, %v3371_v40, %v3372_v19  ;;  %v3381_v59 = vrot.slane %v9895_v35, 1  ;;  %v3740_v1 = vld [vmem:[#allocation3 + $0x5c] sm:$0x3]  ;;  %v3743_v15 = vld [vmem:[#allocation3 + $0x68] sm:$0x3] }
 0x39b   : > { %v3375_v46 = vsel %vm3315_vm3, %v3372_v19, %v3374_v36  ;;  %v3382_v51 = vrot.slane %v9897_v4, 1  ;;  %v3378_v8 = vsel %vm3315_vm3, %v3376_v45, %v3377_v14  ;;  %v3380_v53 = vsel %vm3315_vm3, %v3377_v14, %v3379_v11  ;;  %v3744_v19 = vld [vmem:[#allocation3 + $0x6c] sm:$0xff]   ;;  %v3746_v36 = vld [vmem:[#allocation3 + $0x74] sm:$0x3] }
 0x39c   : > { %v3384_v31 = vrot.slane %v9925_v58, 1  ;;  %v3386_v44 = vrot.slane %v9899_v55, 1  ;;  %v3387_v18 = vrot.slane %v9901_v21, 1  ;;  %v3389_v26 = vrot.slane %v9928_v29, 1  ;;  %v11637_v45 = vld [vmem:[#allocation10_spill] sm:$0xff] }
 0x39d   : > { %v3383_v34 = vsel %vm3315_vm3, %v3381_v59, %v3382_v51  ;;  %v3391_v9 = vrot.slane %v9903_v28, 1  ;;  %v3392_v4 = vrot.slane %v9905_v17, 1  ;;  %v3394_v39 = vrot.slane %v9931_v20, 1 }
 0x39e   : > { %v3385_v35 = vsel %vm3315_vm3, %v3382_v51, %v3384_v31  ;;  %v3446_v12 = vmax.f32 %v3301_v30, %v3363_v47  ;;  %v3388_v24 = vsel %vm3315_vm3, %v3386_v44, %v3387_v18  ;;  %v3390_v58 = vsel %vm3315_vm3, %v3387_v18, %v3389_v26  ;;  %v3915_v44 = vld [vmem:[#allocation3 + $0x54] sm:$0xff]  }
 0x39f   : > { %v3447_v55 = vmax.f32 %v3302_v22, %v3365_v50  ;;  %v3450_v37 = vmax.f32 %v3305_v52, %v3373_v7  ;;  %v3393_v25 = vsel %vm3315_vm3, %v3391_v9, %v3392_v4  ;;  %v3395_v21 = vsel %vm3315_vm3, %v3392_v4, %v3394_v39  ;;  %v3917_v4 = vld [vmem:[#allocation3 + $0x5c] sm:$0x3]  ;;  %v3920_v39 = vld [vmem:[#allocation3 + $0x68] sm:$0x3] }
 0x3a0   : > { %v3451_v29 = vmax.f32 %v3306_v61, %v3375_v46  ;;  %v3452_v2 = vmax.f32 %v3307_v62, %v3378_v8  ;;  %v3453_v28 = vmax.f32 %v3308_v43, %v3380_v53  ;;  %v3454_v33 = vmax.f32 %v3309_v27, %v3383_v34  ;;  %v3737_v61 = vld [vmem:[#allocation3 + $0x50] sm:$0x3]  ;;  %v3707_v27 = vld [vmem:[#allocation3 + $0x5c] sm:$0x3] }
 0x3a1   : > { %v3455_v32 = vmax.f32 %v3310_v48, %v3385_v35  ;;  %v10165_v56 = vmax.f32 %v3311_v54, %v3388_v24  ;;  %v4026_v17 = vmax.f32 %v9638_v5, %v9626_v23  ;;  %v4027_v20 = vmax.f32 %v9641_v41, %v9628_v6  ;;  %v3710_v48 = vld [vmem:[#allocation3 + $0x68] sm:$0x3]  ;;  %v7421_v34 = vld [vmem:[#allocation3 + $0x78] sm:$0xff]  }
 0x3a2   : > { %v10171_v3 = vmax.f32 %v3312_v0, %v3390_v58  ;;  %v10173_v63 = vpack.c.bf16 %v3446_v12, %v3446_v12  ;;  %v10175_v16 = vmax.f32 %v3313_v49, %v3393_v25  ;;  %v10177_v30 = vpack.c.bf16 %v3447_v55, %v3447_v55  ;;  %v3923_v25 = vld [vmem:[#allocation3 + $0x74] sm:$0x3] }
 0x3a3   : > { %v10179_v22 = vpack.c.bf16 %v3450_v37, %v3450_v37  ;;  %v10181_v52 = vpack.c.bf16 %v3451_v29, %v3451_v29  ;;  %v10183_v62 = vmax.f32 %v3314_v13, %v3395_v21  ;;  %v3484_v60 = vpack.c.bf16 %v3452_v2, %v3452_v2  ;;  %v11636_v13 = vld [vmem:[#allocation11_spill] sm:$0xff] }
 0x3a4   : > { %v3485_v10 = vpack.c.bf16 %v3453_v28, %v3453_v28  ;;  %v3486_v43 = vpack.c.bf16 %v3454_v33, %v3454_v33  ;;  %3510 = vst.msk [vmem:[#allocation3 + $0x84] sm:$0xf] %vm1586_vm7, %v10173_v63  ;;  %v3487_v54 = vpack.c.bf16 %v3455_v32, %v3455_v32  ;;  %v3488_v0 = vpack.c.bf16 %v10165_v56, %v10165_v56  ;;  %v3921_v37 = vld [vmem:[#allocation3 + $0x6c] sm:$0xff]   ;;  %v3926_v33 = vld [vmem:[#allocation3 + $0x80] sm:$0x3] }
 0x3a5   : > { %v3489_v49 = vpack.c.bf16 %v10171_v3, %v10171_v3  ;;  %3511 = vst.msk [vmem:[#allocation3 + $0x88] sm:$0xf] %vm1586_vm7, %v10177_v30  ;;  %v7201_v57 = vunpack.c.l.bf16 %v11636_v13  ;;  %v7202_v40 = vunpack.c.h.bf16 %v11636_v13  ;;  %v3771_v47 = vunpack.c.l.bf16 %v11637_v45  ;;  %v4101_v13 = vld [vmem:[#allocation3 + $0x74] sm:$0x3] }
 0x3a6   : > { %3514 = vst.msk [vmem:[#allocation3 + $0x9c] sm:$0xf] %vm1586_vm7, %v10179_v22  ;;  %v3772_v50 = vunpack.c.h.bf16 %v11637_v45  ;;  %v3773_v14 = vunpack.c.l.bf16 %v3701_v42  ;;  %v3490_v11 = vpack.c.bf16 %v10175_v16, %v10175_v16  ;;  %v3776_v7 = vunpack.c.l.bf16 %v3704_v38 }
 0x3a7   : > { %3515 = vst.msk [vmem:[#allocation3 + $0xa0] sm:$0xf] %vm1586_vm7, %v10181_v52  ;;  %v3779_v46 = vunpack.c.l.bf16 %v3707_v27  ;;  %v3782_v59 = vunpack.c.l.bf16 %v3710_v48  ;;  %v3491_v51 = vpack.c.bf16 %v10183_v62, %v10183_v62  ;;  %v3809_v8 = vunpack.c.l.bf16 %v3737_v61 }
 0x3a8   : > { %3516 = vst.msk [vmem:[#allocation3 + $0xa8] sm:$0xf] %vm1586_vm7, %v3484_v60  ;;  %v3812_v53 = vunpack.c.l.bf16 %v3740_v1  ;;  %v3815_v31 = vunpack.c.l.bf16 %v3743_v15  ;;  %v3816_v18 = vunpack.c.l.bf16 %v3744_v19  ;;  %v3817_v26 = vunpack.c.h.bf16 %v3744_v19  ;;  %v7425_v60 = vld [vmem:[#allocation3 + $0x60] sm:$0xff]   ;;  %v11638_v1 = vld [vmem:[#allocation18_spill] sm:$0xff] }
 0x3a9   : > { %3517 = vst.msk [vmem:[#allocation3 + $0xac] sm:$0xf] %vm1586_vm7, %v3485_v10  ;;  %v3818_v9 = vunpack.c.l.bf16 %v3746_v36  ;;  %v3843_v35 = vmax.f32 %v3771_v47, %v7201_v57  ;;  %v3844_v12 = vmax.f32 %v3772_v50, %v7202_v40  ;;  %v3845_v24 = vmax.f32 %v3773_v14, %v3809_v8  ;;  %v4098_v10 = vld [vmem:[#allocation3 + $0x68] sm:$0x3]  ;;  %v4104_v36 = vld [vmem:[#allocation3 + $0x80] sm:$0x3] }
 0x3aa   : > { %3518 = vst.msk [vmem:[#allocation3 + $0xb4] sm:$0xf] %vm1586_vm7, %v3486_v43  ;;  %v3848_v58 = vmax.f32 %v3776_v7, %v3812_v53  ;;  %v3851_v55 = vmax.f32 %v3779_v46, %v3815_v31  ;;  %v3852_v21 = vmax.f32 %v9626_v23, %v3816_v18  ;;  %v3853_v29 = vmax.f32 %v9628_v6, %v3817_v26  ;;  %v4107_v7 = vld [vmem:[#allocation3 + $0x8c] sm:$0x3] }
 0x3ab   : > { %3519 = vst.msk [vmem:[#allocation3 + $0xb8] sm:$0xf] %vm1586_vm7, %v3487_v54  ;;  %v3854_v2 = vmax.f32 %v3782_v59, %v3818_v9  ;;  %v10211_v28 = vunpack.c.l.bf16 %v7421_v34  ;;  %v10214_v32 = vunpack.c.h.bf16 %v7421_v34  ;;  %v3987_v56 = vunpack.c.l.bf16 %v3915_v44 }
 0x3ac   : > { %3520 = vst.msk [vmem:[#allocation3 + $0xc0] sm:$0xf] %vm1586_vm7, %v3488_v0  ;;  %v3988_v3 = vunpack.c.h.bf16 %v3915_v44  ;;  %v3989_v16 = vunpack.c.l.bf16 %v3917_v4  ;;  %v3992_v42 = vunpack.c.l.bf16 %v3920_v39  ;;  %v3993_v38 = vunpack.c.l.bf16 %v3921_v37  ;;  %v4099_v0 = vld [vmem:[#allocation3 + $0x6c] sm:$0xff]   ;;  %v4105_v45 = vld [vmem:[#allocation3 + $0x84] sm:$0xff]  }
 0x3ad   : > { %3521 = vst.msk [vmem:[#allocation3 + $0xc4] sm:$0xf] %vm1586_vm7, %v3489_v49  ;;  %v3994_v61 = vunpack.c.h.bf16 %v3921_v37  ;;  %v3995_v62 = vunpack.c.l.bf16 %v3923_v25  ;;  %v3998_v43 = vunpack.c.l.bf16 %v3926_v33  ;;  %v4023_v27 = vmax.f32 %v3843_v35, %v3987_v56  ;;  %v11639_v49 = vld [vmem:[#allocation23_spill] sm:$0xff]  ;;  %v4282_v25 = vld [vmem:[#allocation3 + $0x80] sm:$0x3] }
 0x3ae   : > { %3522 = vst.msk [vmem:[#allocation3 + $0xcc] sm:$0xf] %vm1586_vm7, %v3490_v11  ;;  %v4024_v48 = vmax.f32 %v3844_v12, %v3988_v3  ;;  %v4025_v54 = vmax.f32 %v3845_v24, %v3989_v16  ;;  %v4028_v57 = vmax.f32 %v3848_v58, %v3992_v42  ;;  %v4029_v15 = vmax.f32 %v11638_v1, %v3993_v38  ;;  %v4277_v4 = vld [vmem:[#allocation3 + $0x6c] sm:$0xff]   ;;  %v4279_v37 = vld [vmem:[#allocation3 + $0x74] sm:$0x3] }
 0x3af   : > { %3523 = vst.msk [vmem:[#allocation3 + $0xd0] sm:$0xf] %vm1586_vm7, %v3491_v51  ;;  %v4030_v40 = vmax.f32 %v11639_v49, %v3994_v61  ;;  %v4031_v19 = vmax.f32 %v3851_v55, %v3995_v62  ;;  %v4032_v47 = vmax.f32 %v3852_v21, %v10211_v28  ;;  %v4033_v50 = vmax.f32 %v3853_v29, %v10214_v32  ;;  %v7432_v39 = vld [vmem:[#allocation3 + $0x90] sm:$0xff]   ;;  %v4283_v21 = vld [vmem:[#allocation3 + $0x84] sm:$0xff]   ;;  %v4285_v3 = vld [vmem:[#allocation3 + $0x8c] sm:$0x3] }
 0x3b0   : > { %v4034_v14 = vmax.f32 %v3854_v2, %v3998_v43  ;;  %v7249_v11 = vunpack.c.l.bf16 %v7425_v60  ;;  %v7250_v46 = vunpack.c.h.bf16 %v7425_v60  ;;  %v4170_v59 = vunpack.c.l.bf16 %v4098_v10  ;;  %v4288_v16 = vld [vmem:[#allocation3 + $0x98] sm:$0x3] }
 0x3b1   : > { %v4171_v8 = vunpack.c.l.bf16 %v4099_v0  ;;  %v4172_v53 = vunpack.c.h.bf16 %v4099_v0  ;;  %v4173_v51 = vunpack.c.l.bf16 %v4101_v13  ;;  %v4176_v31 = vunpack.c.l.bf16 %v4104_v36 }
 0x3b2   : > { %v4177_v44 = vunpack.c.l.bf16 %v4105_v45  ;;  %v4178_v34 = vunpack.c.h.bf16 %v4105_v45  ;;  %v4179_v18 = vunpack.c.l.bf16 %v4107_v7  ;;  %v4204_v26 = vmax.f32 %v4023_v27, %v7249_v11 }
 0x3b3   : > { %v4205_v9 = vmax.f32 %v4024_v48, %v7250_v46  ;;  %v4206_v35 = vmax.f32 %v4025_v54, %v4170_v59  ;;  %v4207_v12 = vmax.f32 %v4026_v17, %v4171_v8  ;;  %v4208_v24 = vmax.f32 %v4027_v20, %v4172_v53 }
 0x3b4   : > { %v4209_v58 = vmax.f32 %v4028_v57, %v4173_v51  ;;  %v4210_v55 = vmax.f32 %v4029_v15, %v10211_v28  ;;  %v4211_v29 = vmax.f32 %v4030_v40, %v10214_v32  ;;  %v4212_v2 = vmax.f32 %v4031_v19, %v4176_v31 }
 0x3b5   : > { %v4213_v33 = vmax.f32 %v4032_v47, %v4177_v44  ;;  %v4214_v56 = vmax.f32 %v4033_v50, %v4178_v34  ;;  %v4215_v42 = vmax.f32 %v4034_v14, %v4179_v18  ;;  %v7281_v23 = vunpack.c.l.bf16 %v7432_v39 }
 0x3b6   : > { %v7282_v5 = vunpack.c.h.bf16 %v7432_v39  ;;  %v4349_v17 = vunpack.c.l.bf16 %v4277_v4  ;;  %v4350_v38 = vunpack.c.h.bf16 %v4277_v4  ;;  %v4351_v6 = vunpack.c.l.bf16 %v4279_v37 }
 0x3b7   : > { %v4354_v41 = vunpack.c.l.bf16 %v4282_v25  ;;  %v4355_v20 = vunpack.c.l.bf16 %v4283_v21  ;;  %v4356_v61 = vunpack.c.h.bf16 %v4283_v21  ;;  %v4357_v62 = vunpack.c.l.bf16 %v4285_v3 }
 0x3b8   : > { %v4360_v60 = vunpack.c.l.bf16 %v4288_v16  ;;  %v4385_v10 = vmax.f32 %v4204_v26, %v4349_v17  ;;  %v4386_v43 = vmax.f32 %v4205_v9, %v4350_v38  ;;  %v4387_v27 = vmax.f32 %v4206_v35, %v4351_v6 }
 0x3b9   : > { %v4388_v48 = vmax.f32 %v4207_v12, %v10211_v28  ;;  %v4389_v54 = vmax.f32 %v4208_v24, %v10214_v32  ;;  %v4390_v0 = vmax.f32 %v4209_v58, %v4354_v41  ;;  %v4391_v13 = vmax.f32 %v4210_v55, %v4355_v20 }
 0x3ba   : > { %v4392_v57 = vmax.f32 %v4211_v29, %v4356_v61  ;;  %v4393_v1 = vmax.f32 %v4212_v2, %v4357_v62  ;;  %v4394_v15 = vmax.f32 %v4213_v33, %v7281_v23  ;;  %v4395_v49 = vmax.f32 %v4214_v56, %v7282_v5 }
 0x3bb   : > { %v4396_v40 = vmax.f32 %v4215_v42, %v4360_v60  ;;  %v4421_v19 = vpack.c.bf16 %v4385_v10, %v4385_v10  ;;  %v4422_v36 = vpack.c.bf16 %v4386_v43, %v4386_v43  ;;  %v4423_v45 = vpack.c.bf16 %v4387_v27, %v4387_v27 }
 0x3bc   : > { %v4424_v47 = vpack.c.bf16 %v4388_v48, %v4388_v48  ;;  %v4425_v50 = vpack.c.bf16 %v4389_v54, %v4389_v54  ;;  %v4426_v14 = vpack.c.bf16 %v4390_v0, %v4390_v0  ;;  %v4427_v11 = vpack.c.bf16 %v4391_v13, %v4391_v13 }
 0x3bd   : > { %v4428_v7 = vpack.c.bf16 %v4392_v57, %v4392_v57  ;;  %v4429_v46 = vpack.c.bf16 %v4393_v1, %v4393_v1  ;;  %v4430_v59 = vpack.c.bf16 %v4394_v15, %v4394_v15  ;;  %v4431_v8 = vpack.c.bf16 %v4395_v49, %v4395_v49 }
 0x3be   : > { %v4432_v53 = vpack.c.bf16 %v4396_v40, %v4396_v40  ;;  %v10233_v51 = vunpack.c.l.bf16 %v4421_v19  ;;  %v10235_v31 = vunpack.c.l.bf16 %v4422_v36  ;;  %v4459_v44 = vunpack.c.l.bf16 %v4423_v45 }
 0x3bf   : > { %v10237_v34 = vunpack.c.l.bf16 %v4424_v47  ;;  %v10239_v18 = vunpack.c.l.bf16 %v4425_v50  ;;  %v4462_v26 = vunpack.c.l.bf16 %v4426_v14  ;;  %v10241_v9 = vunpack.c.l.bf16 %v4427_v11 }
 0x3c0   : > { %v10243_v35 = vunpack.c.l.bf16 %v4428_v7  ;;  %v4465_v4 = vunpack.c.l.bf16 %v4429_v46  ;;  %v10245_v39 = vunpack.c.l.bf16 %v4430_v59  ;;  %v10247_v12 = vunpack.c.l.bf16 %v4431_v8 }
 0x3c1   : > { %v4468_v24 = vunpack.c.l.bf16 %v4432_v53  ;;  %v4490_v58 = vrot.slane %v10233_v51, 4  ;;  %v4492_v55 = vrot.slane %v10237_v34, 4  ;;  %v4494_v37 = vrot.slane %v10241_v9, 4 }
 0x3c2   : > { %v4511_v25 = vrot.slane %v10235_v31, 4  ;;  %v4512_v21 = vrot.slane %v10239_v18, 4  ;;  %v4496_v2 = vrot.slane %v10245_v39, 4  ;;  %v4513_v33 = vrot.slane %v10243_v35, 4 }
 0x3c3   : > { %v10255_v29 = vsel %vm2720_vm15, %v4490_v58, %v4459_v44  ;;  %v4514_v56 = vrot.slane %v10247_v12, 4  ;;  %v10261_v3 = vsel %vm2720_vm15, %v4492_v55, %v4462_v26  ;;  %v10264_v16 = vsel %vm2720_vm15, %v4494_v37, %v4465_v4 }
 0x3c4   : > { %v4523_v42 = vrot.slane %v10255_v29, 4  ;;  %v4535_v23 = vsel %vm2720_vm15, %v4511_v25, %v4490_v58  ;;  %v10269_v5 = vsel %vm2720_vm15, %v4496_v2, %v4468_v24  ;;  %v4524_v17 = vrot.slane %v10261_v3, 4 }
 0x3c5   : > { %v4525_v38 = vrot.slane %v10264_v16, 4  ;;  %v4536_v6 = vsel %vm2720_vm15, %v4512_v21, %v4492_v55  ;;  %v4526_v41 = vrot.slane %v10269_v5, 4  ;;  %v4537_v20 = vsel %vm2720_vm15, %v4513_v33, %v4494_v37 }
 0x3c6   : > { %v4538_v61 = vsel %vm2720_vm15, %v4514_v56, %v4496_v2  ;;  %v4547_v62 = vsel %vm2720_vm15, %v4523_v42, %v4511_v25  ;;  %v4548_v60 = vsel %vm2720_vm15, %v4524_v17, %v4512_v21  ;;  %v4607_v43 = vrot.slane %v10255_v29, 3 }
 0x3c7   : > { %v4549_v10 = vsel %vm2720_vm15, %v4525_v38, %v4513_v33  ;;  %v4608_v27 = vrot.slane %v4535_v23, 3  ;;  %v4550_v48 = vsel %vm2720_vm15, %v4526_v41, %v4514_v56  ;;  %v4610_v54 = vrot.slane %v4547_v62, 3 }
 0x3c8   : > { %v4612_v0 = vrot.slane %v10261_v3, 3  ;;  %v4613_v13 = vrot.slane %v4536_v6, 3  ;;  %v4615_v1 = vrot.slane %v4548_v60, 3  ;;  %v4617_v15 = vrot.slane %v10264_v16, 3 }
 0x3c9   : > { %v4609_v57 = vsel %vm2865_vm0, %v4607_v43, %v4608_v27  ;;  %v4618_v49 = vrot.slane %v4537_v20, 3  ;;  %v4611_v40 = vsel %vm2865_vm0, %v4608_v27, %v4610_v54  ;;  %v4620_v36 = vrot.slane %v4549_v10, 3 }
 0x3ca   : > { %v4614_v19 = vsel %vm2865_vm0, %v4612_v0, %v4613_v13  ;;  %v4622_v45 = vrot.slane %v10269_v5, 3  ;;  %v4616_v47 = vsel %vm2865_vm0, %v4613_v13, %v4615_v1  ;;  %v4623_v14 = vrot.slane %v4538_v61, 3 }
 0x3cb   : > { %v4619_v50 = vsel %vm2865_vm0, %v4617_v15, %v4618_v49  ;;  %v4625_v11 = vrot.slane %v4550_v48, 3  ;;  %v4621_v7 = vsel %vm2865_vm0, %v4618_v49, %v4620_v36  ;;  %v4682_v46 = vmax.f32 %v10233_v51, %v4609_v57 }
 0x3cc   : > { %v4683_v59 = vmax.f32 %v10235_v31, %v4611_v40  ;;  %v4684_v8 = vmax.f32 %v10237_v34, %v4614_v19  ;;  %v4624_v53 = vsel %vm2865_vm0, %v4622_v45, %v4623_v14  ;;  %v4685_v26 = vmax.f32 %v10239_v18, %v4616_v47 }
 0x3cd   : > { %v4626_v44 = vsel %vm2865_vm0, %v4623_v14, %v4625_v11  ;;  %v4686_v4 = vmax.f32 %v10241_v9, %v4619_v50  ;;  %v4687_v24 = vmax.f32 %v10243_v35, %v4621_v7  ;;  %v4688_v58 = vmax.f32 %v10245_v39, %v4624_v53 }
 0x3ce   : > { %v4689_v55 = vmax.f32 %v10247_v12, %v4626_v44  ;;  %v4715_v37 = vrot.slane %v10255_v29, 2  ;;  %v4716_v25 = vrot.slane %v4535_v23, 2  ;;  %v4718_v21 = vrot.slane %v4547_v62, 2 }
 0x3cf   : > { %v4720_v2 = vrot.slane %v10261_v3, 2  ;;  %v4721_v33 = vrot.slane %v4536_v6, 2  ;;  %v4723_v56 = vrot.slane %v4548_v60, 2  ;;  %v4725_v42 = vrot.slane %v10264_v16, 2 }
 0x3d0   : > { %v4726_v17 = vrot.slane %v4537_v20, 2  ;;  %v4728_v38 = vrot.slane %v4549_v10, 2  ;;  %v4717_v41 = vsel %vm3010_vm1, %v4715_v37, %v4716_v25  ;;  %v4719_v43 = vsel %vm3010_vm1, %v4716_v25, %v4718_v21 }
 0x3d1   : > { %v4722_v27 = vsel %vm3010_vm1, %v4720_v2, %v4721_v33  ;;  %v4730_v54 = vrot.slane %v10269_v5, 2  ;;  %v4724_v0 = vsel %vm3010_vm1, %v4721_v33, %v4723_v56  ;;  %v4731_v6 = vrot.slane %v4538_v61, 2 }
 0x3d2   : > { %v4727_v23 = vsel %vm3010_vm1, %v4725_v42, %v4726_v17  ;;  %v4729_v62 = vsel %vm3010_vm1, %v4726_v17, %v4728_v38  ;;  %v4733_v60 = vrot.slane %v4550_v48, 2  ;;  %v4790_v13 = vmax.f32 %v4682_v46, %v4717_v41 }
 0x3d3   : > { %v4791_v57 = vmax.f32 %v4683_v59, %v4719_v43  ;;  %v4792_v20 = vmax.f32 %v4684_v8, %v4722_v27  ;;  %v4732_v10 = vsel %vm3010_vm1, %v4730_v54, %v4731_v6  ;;  %v4793_v1 = vmax.f32 %v4685_v26, %v4724_v0 }
 0x3d4   : > { %v4794_v15 = vmax.f32 %v4686_v4, %v4727_v23  ;;  %v4795_v49 = vmax.f32 %v4687_v24, %v4729_v62  ;;  %v4734_v40 = vsel %vm3010_vm1, %v4731_v6, %v4733_v60  ;;  %v4796_v19 = vmax.f32 %v4688_v58, %v4732_v10 }
 0x3d5   : > { %v4844_v36 = vrot.slane %v10233_v51, 2  ;;  %v4845_v45 = vrot.slane %v10235_v31, 2  ;;  %v4797_v47 = vmax.f32 %v4689_v55, %v4734_v40  ;;  %v4848_v50 = vrot.slane %v10237_v34, 2  ;;  %v6963_v40 = vld [vmem:[%s11240_s3 + $0x6] sm:$0x3] }
 0x3d6   : > { %v4849_v61 = vrot.slane %v10239_v18, 2  ;;  %v4852_v48 = vrot.slane %v10241_v9, 2  ;;  %v4853_v7 = vrot.slane %v10243_v35, 2  ;;  %v4856_v46 = vrot.slane %v10245_v39, 2 }
 0x3d7   : > { %v4846_v14 = vsel %vm3010_vm1, %v4844_v36, %v4845_v45  ;;  %v4847_v11 = vsel %vm3010_vm1, %v4845_v45, %v4715_v37  ;;  %v4857_v53 = vrot.slane %v10247_v12, 2  ;;  %v4944_v38 = vrot.slane %v10235_v31, 1  ;;  %v7292_v45 = vld [vmem:[#allocation3 + $0x30] sm:$0xff]  }
 0x3d8   : > { %v4850_v59 = vsel %vm3010_vm1, %v4848_v50, %v4849_v61  ;;  %v4851_v8 = vsel %vm3010_vm1, %v4849_v61, %v4720_v2  ;;  %v4910_v44 = vmax.f32 %v4790_v13, %v4846_v14  ;;  %v4854_v26 = vsel %vm3010_vm1, %v4852_v48, %v4853_v7  ;;  %v10358_v50 = vld [vmem:[#allocation3 + $0x6c] sm:$0xff]  }
 0x3d9   : > { %v4855_v4 = vsel %vm3010_vm1, %v4853_v7, %v4725_v42  ;;  %v4911_v24 = vmax.f32 %v4791_v57, %v4847_v11  ;;  %v4912_v58 = vmax.f32 %v4792_v20, %v4850_v59  ;;  %v4858_v55 = vsel %vm3010_vm1, %v4856_v46, %v4857_v53  ;;  %v5274_v7 = vld [vmem:[#allocation3 + $0x3c] sm:$0xff]   ;;  %v5276_v46 = vld [vmem:[#allocation3 + $0x44] sm:$0x3] }
 0x3da   : > { %v4859_v37 = vsel %vm3010_vm1, %v4857_v53, %v4730_v54  ;;  %v4913_v25 = vmax.f32 %v4793_v1, %v4851_v8  ;;  %v4914_v21 = vmax.f32 %v4794_v15, %v4854_v26  ;;  %v4915_v33 = vmax.f32 %v4795_v49, %v4855_v4  ;;  %v11640_v53 = vld [vmem:[#allocation38_spill] sm:$0xff]  ;;  %v11641_v26 = vld [vmem:[#allocation21_spill] sm:$0xff] }
 0x3db   : > { %v4916_v56 = vmax.f32 %v4796_v19, %v4858_v55  ;;  %v4917_v17 = vmax.f32 %v4797_v47, %v4859_v37  ;;  %v4943_v2 = vrot.slane %v10233_v51, 1  ;;  %v4946_v41 = vrot.slane %v10255_v29, 1  ;;  %v5252_v47 = vld [vmem:[#allocation3 + $0x38] sm:$0x3] }
 0x3dc   : > { %v4948_v43 = vrot.slane %v10237_v34, 1  ;;  %v4949_v42 = vrot.slane %v10239_v18, 1  ;;  %v4951_v27 = vrot.slane %v10261_v3, 1  ;;  %v4953_v0 = vrot.slane %v10241_v9, 1 }
 0x3dd   : > { %v4954_v54 = vrot.slane %v10243_v35, 1  ;;  %v4956_v23 = vrot.slane %v10264_v16, 1  ;;  %v4945_v62 = vsel %vm3315_vm3, %v4943_v2, %v4944_v38  ;;  %v4947_v51 = vsel %vm3315_vm3, %v4944_v38, %v4946_v41 }
 0x3de   : > { %v4950_v31 = vsel %vm3315_vm3, %v4948_v43, %v4949_v42  ;;  %v4958_v29 = vrot.slane %v10245_v39, 1  ;;  %v4952_v34 = vsel %vm3315_vm3, %v4949_v42, %v4951_v27  ;;  %v4959_v9 = vrot.slane %v10247_v12, 1  ;;  %v5255_v43 = vld [vmem:[#allocation3 + $0x44] sm:$0x3]  ;;  %v5279_v42 = vld [vmem:[#allocation3 + $0x50] sm:$0x3] }
 0x3df   : > { %v4955_v18 = vsel %vm3315_vm3, %v4953_v0, %v4954_v54  ;;  %v4957_v3 = vsel %vm3315_vm3, %v4954_v54, %v4956_v23  ;;  %v4961_v35 = vrot.slane %v10269_v5, 1  ;;  %v5018_v6 = vmax.f32 %v4910_v44, %v4945_v62  ;;  %v5638_v62 = vld [vmem:[#allocation3 + $0x68] sm:$0x3] }
 0x3e0   : > { %v5019_v16 = vmax.f32 %v4911_v24, %v4947_v51  ;;  %v5020_v60 = vmax.f32 %v4912_v58, %v4950_v31  ;;  %v4960_v13 = vsel %vm3315_vm3, %v4958_v29, %v4959_v9  ;;  %v5021_v57 = vmax.f32 %v4913_v25, %v4952_v34  ;;  %v7324_v24 = vld [vmem:[#allocation3 + $0x48] sm:$0xff]   ;;  %v5396_v58 = vld [vmem:[#allocation3 + $0x50] sm:$0x3] }
 0x3e1   : > { %v5022_v20 = vmax.f32 %v4914_v21, %v4955_v18  ;;  %v5023_v10 = vmax.f32 %v4915_v33, %v4957_v3  ;;  %v4962_v39 = vsel %vm3315_vm3, %v4959_v9, %v4961_v35  ;;  %v5024_v1 = vmax.f32 %v4916_v56, %v4960_v13  ;;  %v5517_v33 = vld [vmem:[#allocation3 + $0x5c] sm:$0x3] }
 0x3e2   : > { %v5042_v15 = vpack.c.bf16 %v5018_v6, %v5018_v6  ;;  %v5043_v49 = vpack.c.bf16 %v5019_v16, %v5019_v16  ;;  %v5025_v12 = vmax.f32 %v4917_v17, %v4962_v39  ;;  %v10352_v19 = vpack.c.bf16 %v5020_v60, %v5020_v60  ;;  %v5253_v56 = vld [vmem:[#allocation3 + $0x3c] sm:$0xff]  }
 0x3e3   : > { %v10354_v5 = vpack.c.bf16 %v5021_v57, %v5021_v57  ;;  %v10356_v36 = vpack.c.bf16 %v5022_v20, %v5022_v20  ;;  %v10360_v61 = vpack.c.bf16 %v5023_v10, %v5023_v10  ;;  %v10362_v48 = vpack.c.bf16 %v5024_v1, %v5024_v1  ;;  %v5399_v18 = vld [vmem:[#allocation3 + $0x5c] sm:$0x3]  ;;  %v5520_v20 = vld [vmem:[#allocation3 + $0x68] sm:$0x3] }
 0x3e4   : > { %v5120_v14 = vunpack.c.l.b16 %v5042_v15  ;;  %v5121_v11 = vunpack.c.l.b16 %v5043_v49  ;;  %5066 = vst.msk [vmem:[#allocation3 + $0x54] sm:$0xf] %vm1586_vm7, %v5042_v15  ;;  %v10365_v59 = vpack.c.bf16 %v5025_v12, %v5025_v12  ;;  %v6247_v8 = vsel %vm1496_vm4, %v6963_v40, 0 }
 0x3e5   : > { %5067 = vst.msk [vmem:[#allocation3 + $0x58] sm:$0xf] %vm1586_vm7, %v5043_v49  ;;  %v3562_v44 = vunpack.c.l.b16 %v11640_v53  ;;  %v3563_v4 = vunpack.c.l.b16 %v11641_v26  ;;  %6256 = vmatpush.bf16.msrb.mxu1 %v6247_v8  ;;  %v7293_v37 = vunpack.c.l.bf16 %v7292_v45  ;;  %v7294_v25 = vunpack.c.h.bf16 %v7292_v45  ;;  %v11642_v8 = vld [vmem:[#allocation39_spill] sm:$0xff] }
 0x3e6   : > { %v5135_v55 = vpack.c.b16 %v5121_v11, %v5120_v14  ;;  %5068 = vst.msk [vmem:[#allocation3 + $0x60] sm:$0xf] %vm1586_vm7, %v10352_v19  ;;  %v5300_v21 = vunpack.c.l.bf16 %v5252_v47  ;;  %v5322_v2 = vunpack.c.l.bf16 %v5274_v7  ;;  %v5323_v38 = vunpack.c.h.bf16 %v5274_v7 }
 0x3e7   : > { %5069 = vst.msk [vmem:[#allocation3 + $0x64] sm:$0xf] %vm1586_vm7, %v10354_v5  ;;  %v3576_v17 = vpack.c.b16 %v3563_v4, %v3562_v44  ;;  %v5324_v41 = vunpack.c.l.bf16 %v5276_v46  ;;  %v3783_v27 = vunpack.c.l.bf16 %v10358_v50  ;;  %v10379_v0 = vunpack.c.l.bf16 %v7324_v24 }
 0x3e8   : > { %6956 = vmatmul.msk.bf16.gmra.mxu3 %vm1471_vm10, %v5135_v55  ;;  %5070 = vst.msk [vmem:[#allocation3 + $0x6c] sm:$0xf] %vm1586_vm7, %v10356_v36  ;;  %v10381_v54 = vunpack.c.h.bf16 %v7324_v24  ;;  %v5444_v23 = vunpack.c.l.bf16 %v5396_v58  ;;  %v5346_v51 = vmax.f32 %v7293_v37, %v5322_v2  ;;  %v5347_v31 = vmax.f32 %v7294_v25, %v5323_v38  ;;  %v11643_v25 = vld [vmem:[#allocation40_spill] sm:$0xff]  ;;  %v5641_v38 = vld [vmem:[#allocation3 + $0x74] sm:$0x3] }
 0x3e9   : > { %5071 = vst.msk [vmem:[#allocation3 + $0x70] sm:$0xf] %vm1586_vm7, %v10360_v61  ;;  %6948 = vmatmul.msk.bf16.gmra.mxu2 %vm1471_vm10, %v3576_v17  ;;  %v5348_v29 = vmax.f32 %v5300_v21, %v5324_v41  ;;  %v5565_v34 = vunpack.c.l.bf16 %v5517_v33  ;;  %v5301_v3 = vunpack.c.l.bf16 %v5253_v56  ;;  %v5302_v9 = vunpack.c.h.bf16 %v5253_v56 }
 0x3ea   : > { %v5303_v35 = vunpack.c.l.bf16 %v5255_v43  ;;  %v5327_v6 = vunpack.c.l.bf16 %v5279_v42  ;;  %5072 = vst.msk [vmem:[#allocation3 + $0x78] sm:$0xf] %vm1586_vm7, %v10362_v48  ;;  %v5466_v16 = vmax.f32 %v5346_v51, %v10379_v0  ;;  %v5467_v60 = vmax.f32 %v5347_v31, %v10381_v54 }
 0x3eb   : > { %v5468_v13 = vmax.f32 %v5348_v29, %v5444_v23  ;;  %v5686_v57 = vunpack.c.l.bf16 %v5638_v62  ;;  %5073 = vst.msk [vmem:[#allocation3 + $0x7c] sm:$0xf] %vm1586_vm7, %v10365_v59  ;;  %v5349_v39 = vmax.f32 %v5301_v3, %v10379_v0  ;;  %v5350_v1 = vmax.f32 %v5302_v9, %v10381_v54 }
 0x3ec   : > { %v5515_v10 = vld [vmem:[#allocation3 + $0x54] sm:$0xff]   ;;  %v5351_v15 = vmax.f32 %v5303_v35, %v5327_v6  ;;  %v5447_v40 = vunpack.c.l.bf16 %v5399_v18  ;;  %v5122_v7 = vunpack.c.l.b16 %v10352_v19  ;;  %v5123_v46 = vunpack.c.l.b16 %v10354_v5 }
 0x3ed   : > { %v5397_v49 = vld [vmem:[#allocation3 + $0x54] sm:$0xff]   ;;  %v5563_v12 = vunpack.c.l.bf16 %v5515_v10  ;;  %v5564_v45 = vunpack.c.h.bf16 %v5515_v10  ;;  %v5589_v47 = vmax.f32 %v5468_v13, %v5565_v34  ;;  %v3564_v53 = vunpack.c.l.b16 %v11642_v8  ;;  %v10405_v34 = vld [vmem:[#allocation3 + $0x50] sm:$0x3] }
 0x3ee   : > { %v5445_v14 = vunpack.c.l.bf16 %v5397_v49  ;;  %v7356_v11 = vld [vmem:[#allocation3 + $0x60] sm:$0xff]   ;;  %v5568_v44 = vunpack.c.l.bf16 %v5520_v20  ;;  %v5136_v37 = vpack.c.b16 %v5123_v46, %v5122_v7  ;;  %v3565_v21 = vunpack.c.l.b16 %v11643_v25  ;;  %v10407_v18 = vld [vmem:[#allocation3 + $0x54] sm:$0xff]  }
 0x3ef   : > { %v5587_v26 = vmax.f32 %v5466_v16, %v5563_v12  ;;  %v5588_v4 = vmax.f32 %v5467_v60, %v5564_v45  ;;  %v10397_v24 = vunpack.c.l.bf16 %v7356_v11  ;;  %v10399_v58 = vunpack.c.h.bf16 %v7356_v11 }
 0x3f0   : > { %v5710_v55 = vmax.f32 %v5589_v47, %v5686_v57  ;;  %v5446_v33 = vunpack.c.h.bf16 %v5397_v49  ;;  %v5639_v56 = vld [vmem:[#allocation3 + $0x6c] sm:$0xff]   ;;  %v5469_v5 = vmax.f32 %v5349_v39, %v5445_v14  ;;  %v5471_v2 = vmax.f32 %v5351_v15, %v5447_v40 }
 0x3f1   : > { %v5708_v17 = vmax.f32 %v5587_v26, %v10397_v24  ;;  %v5709_v19 = vmax.f32 %v5588_v4, %v10399_v58  ;;  %v5687_v42 = vunpack.c.l.bf16 %v5639_v56  ;;  %v5688_v23 = vunpack.c.h.bf16 %v5639_v56 }
 0x3f2   : > { %v5734_v41 = vpack.c.bf16 %v5710_v55, %v5710_v55  ;;  %v5470_v43 = vmax.f32 %v5350_v1, %v5446_v33  ;;  %v5590_v31 = vmax.f32 %v5469_v5, %v10397_v24  ;;  %v5592_v29 = vmax.f32 %v5471_v2, %v5568_v44 }
 0x3f3   : > { %v5732_v62 = vpack.c.bf16 %v5708_v17, %v5708_v17  ;;  %v5733_v51 = vpack.c.bf16 %v5709_v19, %v5709_v19  ;;  %v3784_v3 = vunpack.c.h.bf16 %v10358_v50  ;;  %v3577_v9 = vpack.c.b16 %v3565_v21, %v3564_v53 }
 0x3f4   : > { %v5591_v35 = vmax.f32 %v5470_v43, %v10399_v58  ;;  %v5689_v6 = vunpack.c.l.bf16 %v5641_v38  ;;  %v5758_v13 = vunpack.c.l.bf16 %v5734_v41  ;;  %v5711_v57 = vmax.f32 %v5590_v31, %v5687_v42 }
 0x3f5   : > { %v5756_v16 = vunpack.c.l.bf16 %v5732_v62  ;;  %v5757_v60 = vunpack.c.l.bf16 %v5733_v51  ;;  %v5306_v39 = vunpack.c.l.bf16 %v10405_v34  ;;  %v5328_v1 = vunpack.c.l.bf16 %v10407_v18 }
 0x3f6   : > { %v5712_v20 = vmax.f32 %v5591_v35, %v5688_v23  ;;  %v5713_v10 = vmax.f32 %v5592_v29, %v5689_v6  ;;  %v5735_v14 = vpack.c.bf16 %v5711_v57, %v5711_v57 }
 0x3f7   : > { %v5780_v15 = vrot.slane %v5756_v16, 4  ;;  %v5796_v49 = vrot.slane %v5757_v60, 4  ;;  %v6012_v40 = vrot.slane %v5756_v16, 2  ;;  %v6013_v12 = vrot.slane %v5757_v60, 2 }
 0x3f8   : > { %v6076_v45 = vrot.slane %v5756_v16, 1  ;;  %v6077_v47 = vrot.slane %v5757_v60, 1  ;;  %6957 = vmatmul.msk.bf16.gmra.mxu3 %vm1471_vm10, %v5136_v37  ;;  %v5736_v11 = vpack.c.bf16 %v5712_v20, %v5712_v20  ;;  %v5737_v53 = vpack.c.bf16 %v5713_v10, %v5713_v10 }
 0x3f9   : > { %v5781_v7 = vsel %vm2720_vm15, %v5780_v15, %v5758_v13  ;;  %v5812_v46 = vsel %vm2720_vm15, %v5796_v49, %v5780_v15  ;;  %v6014_v8 = vsel %vm3010_vm1, %v6012_v40, %v6013_v12  ;;  %6949 = vmatmul.msk.bf16.gmra.mxu2 %vm1471_vm10, %v3577_v9  ;;  %v5759_v37 = vunpack.c.l.bf16 %v5735_v14 }
 0x3fa   : > { %v5804_v44 = vrot.slane %v5781_v7, 4  ;;  %v5852_v26 = vrot.slane %v5781_v7, 3  ;;  %v5853_v4 = vrot.slane %v5812_v46, 3  ;;  %v5924_v55 = vrot.slane %v5781_v7, 2 }
 0x3fb   : > { %v5925_v25 = vrot.slane %v5812_v46, 2  ;;  %v6078_v21 = vsel %vm3315_vm3, %v6076_v45, %v6077_v47  ;;  %v6079_v33 = vrot.slane %v5781_v7, 1  ;;  %v5760_v5 = vunpack.c.l.bf16 %v5736_v11 }
 0x3fc   : > { %v5820_v56 = vsel %vm2720_vm15, %v5804_v44, %v5796_v49  ;;  %v5854_v17 = vsel %vm2865_vm0, %v5852_v26, %v5853_v4  ;;  %v6015_v19 = vsel %vm3010_vm1, %v6013_v12, %v5924_v55  ;;  %v5761_v23 = vunpack.c.l.bf16 %v5737_v53 }
 0x3fd   : > { %v5855_v2 = vrot.slane %v5820_v56, 3  ;;  %v5908_v38 = vmax.f32 %v5756_v16, %v5854_v17  ;;  %v5926_v41 = vsel %vm3010_vm1, %v5924_v55, %v5925_v25  ;;  %v5927_v43 = vrot.slane %v5820_v56, 2 }
 0x3fe   : > { %v6080_v42 = vsel %vm3315_vm3, %v6077_v47, %v6079_v33  ;;  %v5782_v62 = vrot.slane %v5759_v37, 4  ;;  %v5797_v51 = vrot.slane %v5760_v5, 4  ;;  %v6016_v35 = vrot.slane %v5759_v37, 2 }
 0x3ff   : > { %v5856_v31 = vsel %vm2865_vm0, %v5853_v4, %v5855_v2  ;;  %v5928_v29 = vsel %vm3010_vm1, %v5925_v25, %v5927_v43  ;;  %v5980_v9 = vmax.f32 %v5908_v38, %v5926_v41  ;;  %v6017_v16 = vrot.slane %v5760_v5, 2  ;;  %v5282_v43 = vld [vmem:[#allocation3 + $0x5c] sm:$0x3] }
 0x400   : > { %v5909_v6 = vmax.f32 %v5757_v60, %v5856_v31  ;;  %v5783_v13 = vsel %vm2720_vm15, %v5782_v62, %v5761_v23  ;;  %v5813_v57 = vsel %vm2720_vm15, %v5797_v51, %v5782_v62  ;;  %v6081_v60 = vrot.slane %v5759_v37, 1 }
 0x401   : > { %v6060_v20 = vmax.f32 %v5980_v9, %v6014_v8  ;;  %v5805_v10 = vrot.slane %v5783_v13, 4  ;;  %v5857_v15 = vrot.slane %v5783_v13, 3  ;;  %v5858_v49 = vrot.slane %v5813_v57, 3 }
 0x402   : > { %v5981_v40 = vmax.f32 %v5909_v6, %v5928_v29  ;;  %v5929_v12 = vrot.slane %v5783_v13, 2  ;;  %v5930_v45 = vrot.slane %v5813_v57, 2  ;;  %v6018_v47 = vsel %vm3010_vm1, %v6016_v35, %v6017_v16  ;;  %v11644_v29 = vld [vmem:[#allocation17_spill] sm:$0xff] }
 0x403   : > { %v6132_v14 = vmax.f32 %v6060_v20, %v6078_v21  ;;  %v5821_v11 = vsel %vm2720_vm15, %v5805_v10, %v5797_v51  ;;  %v5859_v7 = vsel %vm2865_vm0, %v5857_v15, %v5858_v49  ;;  %v6082_v25 = vrot.slane %v5760_v5, 1  ;;  %v11645_v35 = vld [vmem:[#allocation9_spill] sm:$0xff]  ;;  %v5402_v20 = vld [vmem:[#allocation3 + $0x68] sm:$0x3]  ;;  %v5521_v10 = vld [vmem:[#allocation3 + $0x6c] sm:$0xff]  }
 0x404   : > { %v6061_v46 = vmax.f32 %v5981_v40, %v6015_v19  ;;  %v5860_v53 = vrot.slane %v5821_v11, 3  ;;  %v5910_v44 = vmax.f32 %v5759_v37, %v5859_v7  ;;  %v5931_v26 = vsel %vm3010_vm1, %v5929_v12, %v5930_v45 }
 0x405   : > { %v6148_v8 = vpack.c.bf16 %v6132_v14, %v6132_v14  ;;  %v5932_v4 = vrot.slane %v5821_v11, 2  ;;  %v6019_v55 = vsel %vm3010_vm1, %v6017_v16, %v5929_v12  ;;  %v6084_v21 = vrot.slane %v5783_v13, 1  ;;  %v5523_v12 = vld [vmem:[#allocation3 + $0x74] sm:$0x3]  ;;  %v7449_v11 = vld [vmem:[#allocation3 + $0x78] sm:$0xff]  }
 0x406   : > { %v6133_v33 = vmax.f32 %v6061_v46, %v6080_v42  ;;  %v5861_v56 = vsel %vm2865_vm0, %v5858_v49, %v5860_v53  ;;  %v5982_v17 = vmax.f32 %v5910_v44, %v5931_v26  ;;  %v6083_v19 = vsel %vm3315_vm3, %v6081_v60, %v6082_v25  ;;  %v5644_v53 = vld [vmem:[#allocation3 + $0x80] sm:$0x3] }
 0x407   : > { %v6198_v2 = vunpack.c.l.b16 %v6148_v8  ;;  %v5911_v38 = vmax.f32 %v5760_v5, %v5861_v56  ;;  %v5933_v41 = vsel %vm3010_vm1, %v5930_v45, %v5932_v4  ;;  %v6085_v62 = vsel %vm3315_vm3, %v6082_v25, %v6084_v21  ;;  %v3713_v56 = vld [vmem:[#allocation3 + $0x74] sm:$0x3] }
 0x408   : > { %v6149_v37 = vpack.c.bf16 %v6133_v33, %v6133_v33  ;;  %v6062_v23 = vmax.f32 %v5982_v17, %v6018_v47  ;;  %v5124_v51 = vunpack.c.l.b16 %v10356_v36  ;;  %v5125_v42 = vunpack.c.l.b16 %v10360_v61 }
 0x409   : > { %v5983_v31 = vmax.f32 %v5911_v38, %v5933_v41  ;;  %v3566_v9 = vunpack.c.l.b16 %v11644_v29  ;;  %v3567_v6 = vunpack.c.l.b16 %v11645_v35  ;;  %v5329_v57 = vunpack.c.h.bf16 %v10407_v18 }
 0x40a   : > { %v6199_v13 = vunpack.c.l.b16 %v6149_v37  ;;  %v6134_v5 = vmax.f32 %v6062_v23, %v6083_v19  ;;  %v5330_v16 = vunpack.c.l.bf16 %v5282_v43  ;;  %v5137_v49 = vpack.c.b16 %v5125_v42, %v5124_v51  ;;  %v10470_v23 = vld [vmem:[#allocation3 + $0x84] sm:$0xff]  }
 0x40b   : > { %v6063_v15 = vmax.f32 %v5983_v31, %v6019_v55  ;;  %v3578_v40 = vpack.c.b16 %v3567_v6, %v3566_v9  ;;  %v5352_v36 = vmax.f32 %v10379_v0, %v5328_v1  ;;  %v5353_v47 = vmax.f32 %v10381_v54, %v5329_v57 }
 0x40c   : > { %v6214_v61 = vpack.c.b16 %v6199_v13, %v6198_v2  ;;  %v6150_v45 = vpack.c.bf16 %v6134_v5, %v6134_v5  ;;  %v5354_v14 = vmax.f32 %v5306_v39, %v5330_v16  ;;  %6958 = vmatmul.msk.bf16.gmra.mxu3 %vm1471_vm10, %v5137_v49  ;;  %v5450_v60 = vunpack.c.l.bf16 %v5402_v20  ;;  %v3927_v5 = vld [vmem:[#allocation3 + $0x84] sm:$0xff]   ;;  %v3929_v20 = vld [vmem:[#allocation3 + $0x8c] sm:$0x3] }
 0x40d   : > { %v6135_v7 = vmax.f32 %v6063_v15, %v6085_v62  ;;  %6950 = vmatmul.msk.bf16.gmra.mxu2 %vm1471_vm10, %v3578_v40  ;;  %v5472_v46 = vmax.f32 %v5352_v36, %v10397_v24  ;;  %v5569_v18 = vunpack.c.l.bf16 %v5521_v10  ;;  %v5473_v54 = vmax.f32 %v5353_v47, %v10399_v58 }
 0x40e   : > { %6964 = vmatmul.msk.bf16.vlgmr.msrb.gmra.mxu1 %vm1471_vm10, %v6214_v61  ;;  %v10452_v0 = vunpack.c.l.b16 %v6150_v45  ;;  %v5570_v1 = vunpack.c.h.bf16 %v5521_v10  ;;  %v5571_v34 = vunpack.c.l.bf16 %v5523_v12  ;;  %v5474_v44 = vmax.f32 %v5354_v14, %v5450_v60 }
 0x40f   : > { %v6151_v39 = vpack.c.bf16 %v6135_v7, %v6135_v7  ;;  %v5593_v26 = vmax.f32 %v5472_v46, %v5569_v18  ;;  %v10455_v8 = vunpack.c.l.bf16 %v7449_v11  ;;  %v10457_v55 = vunpack.c.h.bf16 %v7449_v11 }
 0x410   : > { %v5594_v4 = vmax.f32 %v5473_v54, %v5570_v1  ;;  %v5692_v25 = vunpack.c.l.bf16 %v5644_v53  ;;  %v5126_v33 = vunpack.c.l.b16 %v10362_v48  ;;  %v5595_v21 = vmax.f32 %v5474_v44, %v5571_v34  ;;  %v3749_v48 = vld [vmem:[#allocation3 + $0x80] sm:$0x3] }
 0x411   : > { %v10460_v17 = vunpack.c.l.b16 %v6151_v39  ;;  %v5714_v2 = vmax.f32 %v5593_v26, %v10455_v8  ;;  %v5127_v38 = vunpack.c.l.b16 %v10365_v59  ;;  %v3855_v41 = vmax.f32 %v3783_v27, %v10211_v28  ;;  %v10475_v59 = vld [vmem:[#allocation3 + $0x84] sm:$0xff]  }
 0x412   : > { %v5715_v19 = vmax.f32 %v5594_v4, %v10457_v55  ;;  %v3568_v43 = vunpack.c.l.b16 %v10173_v63  ;;  %v3569_v37 = vunpack.c.l.b16 %v10177_v30  ;;  %v3856_v62 = vmax.f32 %v3784_v3, %v10214_v32 }
 0x413   : > { %v5716_v51 = vmax.f32 %v5595_v21, %v5692_v25  ;;  %v5738_v31 = vpack.c.bf16 %v5714_v2, %v5714_v2  ;;  %v3785_v42 = vunpack.c.l.bf16 %v3713_v56  ;;  %v6215_v27 = vpack.c.b16 %v10460_v17, %v10452_v0  ;;  %v7427_v25 = vld [vmem:[#allocation3 + $0x90] sm:$0xff]   ;;  %v4110_v2 = vld [vmem:[#allocation3 + $0x98] sm:$0x3] }
 0x414   : > { %v5739_v29 = vpack.c.bf16 %v5715_v19, %v5715_v19  ;;  %v5138_v9 = vpack.c.b16 %v5127_v38, %v5126_v33  ;;  %v3579_v63 = vpack.c.b16 %v3569_v37, %v3568_v43  ;;  %v3789_v6 = vunpack.c.l.bf16 %v10470_v23  ;;  %v4289_v38 = vld [vmem:[#allocation3 + $0x9c] sm:$0xff]  }
 0x415   : > { %v5740_v35 = vpack.c.bf16 %v5716_v51, %v5716_v51  ;;  %v5762_v30 = vunpack.c.l.bf16 %v5738_v31  ;;  %v3821_v13 = vunpack.c.l.bf16 %v3749_v48  ;;  %v3790_v50 = vunpack.c.h.bf16 %v10470_v23  ;;  %v4291_v48 = vld [vmem:[#allocation3 + $0xa4] sm:$0x3]  ;;  %v10632_v23 = vld [vmem:[#allocation3 + $0x98] sm:$0x3] }
 0x416   : > { %v5763_v57 = vunpack.c.l.bf16 %v5739_v29  ;;  %v3822_v3 = vunpack.c.l.bf16 %v10475_v59  ;;  %v3823_v16 = vunpack.c.h.bf16 %v10475_v59  ;;  %v3999_v45 = vunpack.c.l.bf16 %v3927_v5 }
 0x417   : > { %v5764_v10 = vunpack.c.l.bf16 %v5740_v35  ;;  %v5784_v15 = vrot.slane %v5762_v30, 4  ;;  %v6020_v49 = vrot.slane %v5762_v30, 2  ;;  %v6086_v40 = vrot.slane %v5762_v30, 1 }
 0x418   : > { %v5798_v36 = vrot.slane %v5763_v57, 4  ;;  %v6021_v12 = vrot.slane %v5763_v57, 2  ;;  %v6087_v61 = vrot.slane %v5763_v57, 1  ;;  %v3857_v14 = vmax.f32 %v3785_v42, %v3821_v13 }
 0x419   : > { %v5785_v47 = vsel %vm2720_vm15, %v5784_v15, %v5764_v10  ;;  %v4000_v11 = vunpack.c.h.bf16 %v3927_v5  ;;  %v4001_v7 = vunpack.c.l.bf16 %v3929_v20  ;;  %v4035_v4 = vmax.f32 %v3855_v41, %v3999_v45 }
 0x41a   : > { %v5806_v60 = vrot.slane %v5785_v47, 4  ;;  %v5814_v46 = vsel %vm2720_vm15, %v5798_v36, %v5784_v15  ;;  %v5862_v18 = vrot.slane %v5785_v47, 3  ;;  %v5934_v53 = vrot.slane %v5785_v47, 2  ;;  %v5285_v15 = vld [vmem:[#allocation3 + $0x68] sm:$0x3] }
 0x41b   : > { %v5863_v0 = vrot.slane %v5814_v46, 3  ;;  %v5935_v54 = vrot.slane %v5814_v46, 2  ;;  %v6022_v1 = vsel %vm3010_vm1, %v6020_v49, %v6021_v12  ;;  %v6088_v34 = vsel %vm3315_vm3, %v6086_v40, %v6087_v61  ;;  %v5403_v46 = vld [vmem:[#allocation3 + $0x6c] sm:$0xff]  }
 0x41c   : > { %v5822_v39 = vsel %vm2720_vm15, %v5806_v60, %v5798_v36  ;;  %v6023_v44 = vsel %vm3010_vm1, %v6021_v12, %v5934_v53  ;;  %v6089_v26 = vrot.slane %v5785_v47, 1  ;;  %6959 = vmatmul.msk.bf16.gmra.mxu3 %vm1471_vm10, %v5138_v9  ;;  %v4036_v37 = vmax.f32 %v3856_v62, %v4000_v11  ;;  %v5259_v9 = vld [vmem:[#allocation3 + $0x54] sm:$0xff]  }
 0x41d   : > { %v5864_v33 = vsel %vm2865_vm0, %v5862_v18, %v5863_v0  ;;  %v5865_v56 = vrot.slane %v5822_v39, 3  ;;  %v5936_v17 = vsel %vm3010_vm1, %v5934_v53, %v5935_v54  ;;  %v5937_v21 = vrot.slane %v5822_v39, 2  ;;  %6951 = vmatmul.msk.bf16.gmra.mxu2 %vm1471_vm10, %v3579_v63 }
 0x41e   : > { %6965 = vmatmul.msk.bf16.gmra.mxu1 %vm1471_vm10, %v6215_v27  ;;  %v5912_v19 = vmax.f32 %v5762_v30, %v5864_v33  ;;  %v6090_v43 = vsel %vm3315_vm3, %v6087_v61, %v6089_v26  ;;  %v4037_v41 = vmax.f32 %v3857_v14, %v4001_v7  ;;  %v10497_v42 = vunpack.c.l.bf16 %v7427_v25  ;;  %v5261_v27 = vld [vmem:[#allocation3 + $0x5c] sm:$0x3]  ;;  %v5405_v33 = vld [vmem:[#allocation3 + $0x74] sm:$0x3] }
 0x41f   : > { %v5866_v51 = vsel %vm2865_vm0, %v5863_v0, %v5865_v56  ;;  %v5938_v31 = vsel %vm3010_vm1, %v5935_v54, %v5937_v21  ;;  %v10499_v29 = vunpack.c.h.bf16 %v7427_v25  ;;  %v4182_v13 = vunpack.c.l.bf16 %v4110_v2 }
 0x420   : > { %v5913_v63 = vmax.f32 %v5763_v57, %v5866_v51  ;;  %v5984_v35 = vmax.f32 %v5912_v19, %v5936_v17  ;;  %v4361_v5 = vunpack.c.l.bf16 %v4289_v38  ;;  %v4216_v30 = vmax.f32 %v4035_v4, %v10497_v42 }
 0x421   : > { %v4217_v62 = vmax.f32 %v4036_v37, %v10499_v29  ;;  %v4362_v20 = vunpack.c.h.bf16 %v4289_v38  ;;  %v4363_v10 = vunpack.c.l.bf16 %v4291_v48  ;;  %v4218_v36 = vmax.f32 %v4037_v41, %v4182_v13 }
 0x422   : > { %v5985_v49 = vmax.f32 %v5913_v63, %v5938_v31  ;;  %v6064_v40 = vmax.f32 %v5984_v35, %v6022_v1  ;;  %v5307_v12 = vunpack.c.l.bf16 %v5259_v9  ;;  %v4397_v61 = vmax.f32 %v4216_v30, %v4361_v5 }
 0x423   : > { %v4398_v45 = vmax.f32 %v4217_v62, %v4362_v20  ;;  %v5308_v47 = vunpack.c.h.bf16 %v5259_v9  ;;  %v5309_v14 = vunpack.c.l.bf16 %v5261_v27  ;;  %v4399_v7 = vmax.f32 %v4218_v36, %v4363_v10  ;;  %v5526_v9 = vld [vmem:[#allocation3 + $0x80] sm:$0x3] }
 0x424   : > { %v6065_v57 = vmax.f32 %v5985_v49, %v6023_v44  ;;  %v6136_v11 = vmax.f32 %v6064_v40, %v6088_v34  ;;  %v5333_v60 = vunpack.c.l.bf16 %v5285_v15  ;;  %v10506_v18 = vmax.f32 %v10211_v28, %v3822_v3  ;;  %v3716_v36 = vld [vmem:[#allocation3 + $0x80] sm:$0x3] }
 0x425   : > { %v10511_v53 = vmax.f32 %v10214_v32, %v3823_v16  ;;  %v4433_v0 = vpack.c.bf16 %v4397_v61, %v4397_v61  ;;  %v4434_v54 = vpack.c.bf16 %v4398_v45, %v4398_v45  ;;  %v4435_v26 = vpack.c.bf16 %v4399_v7, %v4399_v7 }
 0x426   : > { %v6137_v1 = vmax.f32 %v6065_v57, %v6090_v43  ;;  %v6152_v39 = vpack.c.bf16 %v6136_v11, %v6136_v11  ;;  %v5355_v34 = vmax.f32 %v5307_v12, %v10397_v24  ;;  %v5356_v25 = vmax.f32 %v5308_v47, %v10399_v58  ;;  %v3752_v57 = vld [vmem:[#allocation3 + $0x8c] sm:$0x3] }
 0x427   : > { %v4469_v44 = vunpack.c.l.bf16 %v4433_v0  ;;  %v4470_v4 = vunpack.c.l.bf16 %v4434_v54  ;;  %v5451_v56 = vunpack.c.l.bf16 %v5403_v46  ;;  %v4471_v17 = vunpack.c.l.bf16 %v4435_v26  ;;  %v3932_v0 = vld [vmem:[#allocation3 + $0x98] sm:$0x3] }
 0x428   : > { %v6153_v28 = vpack.c.bf16 %v6137_v1, %v6137_v1  ;;  %v6202_v3 = vunpack.c.l.b16 %v6152_v39  ;;  %v5357_v59 = vmax.f32 %v5309_v14, %v5333_v60  ;;  %v5452_v43 = vunpack.c.h.bf16 %v5403_v46  ;;  %v5647_v14 = vld [vmem:[#allocation3 + $0x8c] sm:$0x3] }
 0x429   : > { %v4498_v21 = vrot.slane %v4469_v44, 4  ;;  %v4515_v32 = vrot.slane %v4470_v4, 4  ;;  %v4860_v16 = vrot.slane %v4469_v44, 2  ;;  %v4861_v2 = vrot.slane %v4470_v4, 2 }
 0x42a   : > { %v6203_v38 = vunpack.c.l.b16 %v6153_v28  ;;  %v4963_v19 = vrot.slane %v4469_v44, 1  ;;  %v5453_v37 = vunpack.c.l.bf16 %v5405_v33  ;;  %v4964_v51 = vrot.slane %v4470_v4, 1 }
 0x42b   : > { %v4499_v41 = vsel %vm2720_vm15, %v4498_v21, %v4471_v17  ;;  %v4539_v48 = vsel %vm2720_vm15, %v4515_v32, %v4498_v21  ;;  %v10517_v31 = vmax.f32 %v5355_v34, %v5451_v56  ;;  %v4862_v62 = vsel %vm3010_vm1, %v4860_v16, %v4861_v2  ;;  %v4111_v34 = vld [vmem:[#allocation3 + $0x9c] sm:$0xff]   ;;  %v7433_v17 = vld [vmem:[#allocation3 + $0xa8] sm:$0xff]  }
 0x42c   : > { %v6216_v63 = vpack.c.b16 %v6203_v38, %v6202_v3  ;;  %v4527_v35 = vrot.slane %v4499_v41, 4  ;;  %v4627_v13 = vrot.slane %v4499_v41, 3  ;;  %v4628_v5 = vrot.slane %v4539_v48, 3  ;;  %v4113_v3 = vld [vmem:[#allocation3 + $0xa4] sm:$0x3] }
 0x42d   : > { %v4735_v27 = vrot.slane %v4499_v41, 2  ;;  %v4736_v30 = vrot.slane %v4539_v48, 2  ;;  %v4966_v20 = vrot.slane %v4499_v41, 1  ;;  %v5477_v49 = vmax.f32 %v5357_v59, %v5453_v37 }
 0x42e   : > { %6966 = vmatmul.msk.bf16.gmra.mxu1 %vm1471_vm10, %v6216_v63  ;;  %v4551_v10 = vsel %vm2720_vm15, %v4527_v35, %v4515_v32  ;;  %v4629_v15 = vsel %vm2865_vm0, %v4627_v13, %v4628_v5  ;;  %v5574_v40 = vunpack.c.l.bf16 %v5526_v9  ;;  %v4965_v7 = vsel %vm3315_vm3, %v4963_v19, %v4964_v51 }
 0x42f   : > { %v4630_v12 = vrot.slane %v4551_v10, 3  ;;  %v4690_v61 = vmax.f32 %v4469_v44, %v4629_v15  ;;  %v4737_v45 = vsel %vm3010_vm1, %v4735_v27, %v4736_v30  ;;  %v4738_v47 = vrot.slane %v4551_v10, 2  ;;  %v5264_v15 = vld [vmem:[#allocation3 + $0x68] sm:$0x3] }
 0x430   : > { %v4863_v11 = vsel %vm3010_vm1, %v4861_v2, %v4735_v27  ;;  %v4967_v60 = vsel %vm3315_vm3, %v4964_v51, %v4966_v20  ;;  %v10527_v46 = vmax.f32 %v5356_v25, %v5452_v43  ;;  %v5598_v26 = vmax.f32 %v5477_v49, %v5574_v40  ;;  %v4294_v43 = vld [vmem:[#allocation3 + $0xb0] sm:$0x3]  ;;  %v5288_v49 = vld [vmem:[#allocation3 + $0x74] sm:$0x3] }
 0x431   : > { %v4631_v54 = vsel %vm2865_vm0, %v4628_v5, %v4630_v12  ;;  %v4739_v1 = vsel %vm3010_vm1, %v4736_v30, %v4738_v47  ;;  %v4798_v39 = vmax.f32 %v4690_v61, %v4737_v45  ;;  %v5695_v33 = vunpack.c.l.bf16 %v5647_v14 }
 0x432   : > { %v4691_v44 = vmax.f32 %v4470_v4, %v4631_v54  ;;  %v3788_v56 = vunpack.c.l.bf16 %v3716_v36  ;;  %v3824_v28 = vunpack.c.l.bf16 %v3752_v57  ;;  %v4004_v21 = vunpack.c.l.bf16 %v3932_v0 }
 0x433   : > { %v4918_v59 = vmax.f32 %v4798_v39, %v4862_v62  ;;  %v4038_v25 = vmax.f32 %v10506_v18, %v10497_v42  ;;  %v4039_v32 = vmax.f32 %v10511_v53, %v10499_v29  ;;  %v5719_v2 = vmax.f32 %v5598_v26, %v5695_v33  ;;  %v5286_v18 = vld [vmem:[#allocation3 + $0x6c] sm:$0xff]  }
 0x434   : > { %v4799_v16 = vmax.f32 %v4691_v44, %v4739_v1  ;;  %v3860_v38 = vmax.f32 %v3788_v56, %v3824_v28  ;;  %v4183_v19 = vunpack.c.l.bf16 %v4111_v34  ;;  %v4184_v4 = vunpack.c.h.bf16 %v4111_v34  ;;  %v10550_v1 = vld [vmem:[#allocation3 + $0x8c] sm:$0x3] }
 0x435   : > { %v5026_v37 = vmax.f32 %v4918_v59, %v4965_v7  ;;  %v4185_v41 = vunpack.c.l.bf16 %v4113_v3  ;;  %v10535_v48 = vunpack.c.l.bf16 %v7433_v17  ;;  %v5596_v9 = vmax.f32 %v10517_v31, %v10455_v8  ;;  %v5529_v33 = vld [vmem:[#allocation3 + $0x8c] sm:$0x3] }
 0x436   : > { %v4919_v51 = vmax.f32 %v4799_v16, %v4863_v11  ;;  %v4040_v63 = vmax.f32 %v3860_v38, %v4004_v21  ;;  %v4219_v35 = vmax.f32 %v4038_v25, %v4183_v19  ;;  %v4220_v53 = vmax.f32 %v4039_v32, %v4184_v4  ;;  %v5408_v11 = vld [vmem:[#allocation3 + $0x80] sm:$0x3]  ;;  %v5650_v25 = vld [vmem:[#allocation3 + $0x98] sm:$0x3] }
 0x437   : > { %v10539_v13 = vpack.c.bf16 %v5026_v37, %v5026_v37  ;;  %v10541_v5 = vunpack.c.h.bf16 %v7433_v17  ;;  %v4366_v27 = vunpack.c.l.bf16 %v4294_v43  ;;  %v5743_v62 = vpack.c.bf16 %v5719_v2, %v5719_v2 }
 0x438   : > { %v5027_v30 = vmax.f32 %v4919_v51, %v4967_v60  ;;  %v4221_v20 = vmax.f32 %v4040_v63, %v4185_v41  ;;  %v4400_v10 = vmax.f32 %v4219_v35, %v10535_v48  ;;  %v5312_v36 = vunpack.c.l.bf16 %v5264_v15 }
 0x439   : > { %5074 = vst.msk [vmem:[#allocation3 + $0x84] sm:$0xf] %vm1586_vm7, %v10539_v13  ;;  %v4401_v40 = vmax.f32 %v4220_v53, %v10541_v5  ;;  %v5334_v12 = vunpack.c.l.bf16 %v5286_v18  ;;  %v5336_v61 = vunpack.c.l.bf16 %v5288_v49  ;;  %v5335_v57 = vunpack.c.h.bf16 %v5286_v18  ;;  %v11647_v49 = vld [vmem:[#allocation25_spill] sm:$0xff] }
 0x43a   : > { %v5051_v45 = vpack.c.bf16 %v5027_v30, %v5027_v30  ;;  %v4402_v47 = vmax.f32 %v4221_v20, %v4366_v27  ;;  %v4436_v14 = vpack.c.bf16 %v4400_v10, %v4400_v10  ;;  %v5456_v54 = vunpack.c.l.bf16 %v5408_v11  ;;  %v11646_v10 = vld [vmem:[#allocation22_spill] sm:$0xff] }
 0x43b   : > { %v4437_v7 = vpack.c.bf16 %v4401_v40, %v4401_v40  ;;  %v10548_v60 = vmax.f32 %v10397_v24, %v5334_v12  ;;  %v5360_v0 = vmax.f32 %v5312_v36, %v5336_v61  ;;  %v5597_v39 = vmax.f32 %v10527_v46, %v10457_v55 }
 0x43c   : > { %5075 = vst.msk [vmem:[#allocation3 + $0x88] sm:$0xf] %vm1586_vm7, %v5051_v45  ;;  %v4438_v26 = vpack.c.bf16 %v4402_v47, %v4402_v47  ;;  %v4472_v34 = vunpack.c.l.bf16 %v4436_v14  ;;  %v10556_v44 = vmax.f32 %v10399_v58, %v5335_v57  ;;  %v10558_v56 = vunpack.c.l.bf16 %v5743_v62 }
 0x43d   : > { %v10560_v28 = vunpack.c.l.bf16 %v4437_v7  ;;  %v5480_v24 = vmax.f32 %v5360_v0, %v5456_v54  ;;  %v5577_v3 = vunpack.c.l.bf16 %v5529_v33  ;;  %v3791_v32 = vunpack.c.l.bf16 %v10550_v1 }
 0x43e   : > { %v4474_v17 = vunpack.c.l.bf16 %v4438_v26  ;;  %v4500_v59 = vrot.slane %v4472_v34, 4  ;;  %v4864_v21 = vrot.slane %v4472_v34, 2  ;;  %v4968_v2 = vrot.slane %v4472_v34, 1 }
 0x43f   : > { %v4516_v46 = vrot.slane %v10560_v28, 4  ;;  %v4865_v16 = vrot.slane %v10560_v28, 2  ;;  %v5478_v58 = vmax.f32 %v10548_v60, %v10455_v8  ;;  %v4969_v19 = vrot.slane %v10560_v28, 1 }
 0x440   : > { %v4501_v38 = vsel %vm2720_vm15, %v4500_v59, %v4474_v17  ;;  %v5479_v43 = vmax.f32 %v10556_v44, %v10457_v55  ;;  %v5601_v37 = vmax.f32 %v5480_v24, %v5577_v3  ;;  %v5698_v63 = vunpack.c.l.bf16 %v5650_v25 }
 0x441   : > { %v4528_v4 = vrot.slane %v4501_v38, 4  ;;  %v4540_v41 = vsel %vm2720_vm15, %v4516_v46, %v4500_v59  ;;  %v4632_v51 = vrot.slane %v4501_v38, 3  ;;  %v4740_v18 = vrot.slane %v4501_v38, 2 }
 0x442   : > { %v4633_v35 = vrot.slane %v4540_v41, 3  ;;  %v4741_v53 = vrot.slane %v4540_v41, 2  ;;  %v4866_v27 = vsel %vm3010_vm1, %v4864_v21, %v4865_v16  ;;  %v5128_v62 = vunpack.c.l.b16 %v10539_v13 }
 0x443   : > { %v5645_v30 = vld [vmem:[#allocation3 + $0x84] sm:$0xff]   ;;  %v5129_v20 = vunpack.c.l.b16 %v5051_v45  ;;  %v3570_v15 = vunpack.c.l.b16 %v11646_v10  ;;  %v3571_v40 = vunpack.c.l.b16 %v11647_v49  ;;  %v4552_v61 = vsel %vm2720_vm15, %v4528_v4, %v4516_v46  ;;  %v10599_v49 = vld [vmem:[#allocation3 + $0x9c] sm:$0xff]  }
 0x444   : > { %v5693_v36 = vunpack.c.l.bf16 %v5645_v30  ;;  %v5694_v12 = vunpack.c.h.bf16 %v5645_v30  ;;  %v4634_v47 = vsel %vm2865_vm0, %v4632_v51, %v4633_v35  ;;  %v4635_v11 = vrot.slane %v4552_v61, 3  ;;  %v5527_v54 = vld [vmem:[#allocation3 + $0x84] sm:$0xff]  }
 0x445   : > { %v5139_v14 = vpack.c.b16 %v5129_v20, %v5128_v62  ;;  %v3580_v57 = vpack.c.b16 %v3571_v40, %v3570_v15  ;;  %v4692_v7 = vmax.f32 %v4472_v34, %v4634_v47  ;;  %v4742_v45 = vsel %vm3010_vm1, %v4740_v18, %v4741_v53 }
 0x446   : > { %v5717_v60 = vmax.f32 %v5596_v9, %v5693_v36  ;;  %v5718_v13 = vmax.f32 %v5597_v39, %v5694_v12  ;;  %v4743_v0 = vrot.slane %v4552_v61, 2  ;;  %v4636_v26 = vsel %vm2865_vm0, %v4633_v35, %v4635_v11  ;;  %v3755_v39 = vld [vmem:[#allocation3 + $0x98] sm:$0x3] }
 0x447   : > { %6960 = vmatmul.msk.bf16.gmra.mxu3 %vm1471_vm10, %v5139_v14  ;;  %6952 = vmatmul.msk.bf16.gmra.mxu2 %vm1471_vm10, %v3580_v57  ;;  %v4800_v33 = vmax.f32 %v4692_v7, %v4742_v45  ;;  %v4970_v24 = vsel %vm3315_vm3, %v4968_v2, %v4969_v19  ;;  %v4971_v3 = vrot.slane %v4501_v38, 1  ;;  %v4693_v31 = vmax.f32 %v10560_v28, %v4636_v26 }
 0x448   : > { %v5741_v34 = vpack.c.bf16 %v5717_v60, %v5717_v60  ;;  %v5742_v17 = vpack.c.bf16 %v5718_v13, %v5718_v13  ;;  %v4744_v9 = vsel %vm3010_vm1, %v4741_v53, %v4743_v0  ;;  %v4867_v59 = vsel %vm3010_vm1, %v4865_v16, %v4740_v18 }
 0x449   : > { %v4920_v21 = vmax.f32 %v4800_v33, %v4866_v27  ;;  %v5575_v25 = vunpack.c.l.bf16 %v5527_v54  ;;  %v5576_v46 = vunpack.c.h.bf16 %v5527_v54  ;;  %v4801_v51 = vmax.f32 %v4693_v31, %v4744_v9  ;;  %v3933_v54 = vld [vmem:[#allocation3 + $0x9c] sm:$0xff]   ;;  %v4295_v31 = vld [vmem:[#allocation3 + $0xb4] sm:$0xff]  }
 0x44a   : > { %v5765_v4 = vunpack.c.l.bf16 %v5741_v34  ;;  %v10589_v41 = vunpack.c.l.bf16 %v5742_v17  ;;  %v5722_v35 = vmax.f32 %v5601_v37, %v5698_v63  ;;  %v4972_v2 = vsel %vm3315_vm3, %v4969_v19, %v4971_v3  ;;  %v3935_v34 = vld [vmem:[#allocation3 + $0xa4] sm:$0x3]  ;;  %v4116_v17 = vld [vmem:[#allocation3 + $0xb0] sm:$0x3] }
 0x44b   : > { %v5028_v38 = vmax.f32 %v4920_v21, %v4970_v24  ;;  %v10592_v30 = vmax.f32 %v5478_v58, %v5575_v25  ;;  %v3827_v62 = vunpack.c.l.bf16 %v3755_v39  ;;  %v4921_v10 = vmax.f32 %v4801_v51, %v4867_v59 }
 0x44c   : > { %v5786_v28 = vrot.slane %v5765_v4, 4  ;;  %v5799_v53 = vrot.slane %v10589_v41, 4  ;;  %v6024_v20 = vrot.slane %v5765_v4, 2  ;;  %v6025_v16 = vrot.slane %v10589_v41, 2 }
 0x44d   : > { %v6091_v18 = vrot.slane %v5765_v4, 1  ;;  %v6092_v27 = vrot.slane %v10589_v41, 1  ;;  %v10597_v15 = vpack.c.bf16 %v5028_v38, %v5028_v38  ;;  %v10607_v37 = vmax.f32 %v5479_v43, %v5576_v46  ;;  %v4297_v38 = vld [vmem:[#allocation3 + $0xbc] sm:$0x3] }
 0x44e   : > { %v5787_v19 = vsel %vm2720_vm15, %v5786_v28, %v10558_v56  ;;  %v5815_v58 = vsel %vm2720_vm15, %v5799_v53, %v5786_v28  ;;  %v5746_v63 = vpack.c.bf16 %v5722_v35, %v5722_v35  ;;  %v6026_v14 = vsel %vm3010_vm1, %v6024_v20, %v6025_v16 }
 0x44f   : > { %v5807_v40 = vrot.slane %v5787_v19, 4  ;;  %v5867_v36 = vrot.slane %v5787_v19, 3  ;;  %v5868_v12 = vrot.slane %v5815_v58, 3  ;;  %v5939_v61 = vrot.slane %v5787_v19, 2  ;;  %5076 = vst.msk [vmem:[#allocation3 + $0x90] sm:$0xf] %vm1586_vm7, %v10597_v15 }
 0x450   : > { %v5940_v47 = vrot.slane %v5815_v58, 2  ;;  %v5029_v57 = vmax.f32 %v4921_v10, %v4972_v2  ;;  %v3828_v56 = vunpack.c.l.bf16 %v10599_v49  ;;  %v6093_v43 = vsel %vm3315_vm3, %v6091_v18, %v6092_v27 }
 0x451   : > { %v5823_v11 = vsel %vm2720_vm15, %v5807_v40, %v5799_v53  ;;  %v5869_v44 = vsel %vm2865_vm0, %v5867_v36, %v5868_v12  ;;  %v6094_v7 = vrot.slane %v5787_v19, 1  ;;  %v6027_v26 = vsel %vm3010_vm1, %v6025_v16, %v5939_v61 }
 0x452   : > { %v5870_v60 = vrot.slane %v5823_v11, 3  ;;  %v5914_v13 = vmax.f32 %v5765_v4, %v5869_v44  ;;  %v5941_v45 = vsel %vm3010_vm1, %v5939_v61, %v5940_v47  ;;  %v5942_v0 = vrot.slane %v5823_v11, 2 }
 0x453   : > { %v5053_v33 = vpack.c.bf16 %v5029_v57, %v5029_v57  ;;  %v10618_v24 = vunpack.c.l.bf16 %v5746_v63  ;;  %v3861_v3 = vmax.f32 %v3789_v6, %v10497_v42  ;;  %v3862_v21 = vmax.f32 %v3790_v50, %v10499_v29  ;;  %v10634_v50 = vld [vmem:[#allocation3 + $0xa4] sm:$0x3] }
 0x454   : > { %v5871_v9 = vsel %vm2865_vm0, %v5868_v12, %v5870_v60  ;;  %v5943_v39 = vsel %vm3010_vm1, %v5940_v47, %v5942_v0  ;;  %v5986_v59 = vmax.f32 %v5914_v13, %v5941_v45  ;;  %v3863_v46 = vmax.f32 %v3791_v32, %v3827_v62  ;;  %v10640_v12 = vld [vmem:[#allocation3 + $0x6c] sm:$0xff]  }
 0x455   : > { %v5915_v25 = vmax.f32 %v10589_v41, %v5871_v9  ;;  %5077 = vst.msk [vmem:[#allocation3 + $0x94] sm:$0xf] %vm1586_vm7, %v5053_v33  ;;  %v4005_v6 = vunpack.c.l.bf16 %v3933_v54  ;;  %v4006_v4 = vunpack.c.h.bf16 %v3933_v54  ;;  %v4007_v35 = vunpack.c.l.bf16 %v3935_v34  ;;  %v10652_v9 = vld [vmem:[#allocation3 + $0x74] sm:$0x3] }
 0x456   : > { %v6066_v51 = vmax.f32 %v5986_v59, %v6026_v14  ;;  %v4188_v2 = vunpack.c.l.bf16 %v4116_v17  ;;  %v4367_v28 = vunpack.c.l.bf16 %v4295_v31  ;;  %v4368_v18 = vunpack.c.h.bf16 %v4295_v31 }
 0x457   : > { %v5987_v53 = vmax.f32 %v5915_v25, %v5943_v39  ;;  %v4041_v20 = vmax.f32 %v3861_v3, %v4005_v6  ;;  %v4042_v16 = vmax.f32 %v3862_v21, %v4006_v4  ;;  %v6095_v41 = vsel %vm3315_vm3, %v6092_v27, %v6094_v7 }
 0x458   : > { %v6138_v10 = vmax.f32 %v6066_v51, %v6093_v43  ;;  %v3829_v1 = vunpack.c.h.bf16 %v10599_v49  ;;  %v4043_v32 = vmax.f32 %v3863_v46, %v4007_v35  ;;  %v4369_v63 = vunpack.c.l.bf16 %v4297_v38  ;;  %v10665_v51 = vld [vmem:[#allocation3 + $0x80] sm:$0x3] }
 0x459   : > { %v6067_v62 = vmax.f32 %v5987_v53, %v6027_v26  ;;  %v4222_v19 = vmax.f32 %v4041_v20, %v10535_v48  ;;  %v4223_v58 = vmax.f32 %v4042_v16, %v10541_v5  ;;  %v3794_v61 = vunpack.c.l.bf16 %v10632_v23 }
 0x45a   : > { %v6154_v40 = vpack.c.bf16 %v6138_v10, %v6138_v10  ;;  %v4224_v36 = vmax.f32 %v4043_v32, %v4188_v2  ;;  %v3830_v47 = vunpack.c.l.bf16 %v10634_v50  ;;  %v5313_v11 = vunpack.c.l.bf16 %v10640_v12 }
 0x45b   : > { %v6139_v14 = vmax.f32 %v6067_v62, %v6095_v41  ;;  %v4403_v27 = vmax.f32 %v4222_v19, %v4367_v28  ;;  %v4404_v57 = vmax.f32 %v4223_v58, %v4368_v18  ;;  %v5130_v7 = vunpack.c.l.b16 %v10597_v15 }
 0x45c   : > { %v6204_v44 = vunpack.c.l.b16 %v6154_v40  ;;  %v7450_v43 = vld [vmem:[#allocation3 + $0x90] sm:$0xff]   ;;  %v5131_v60 = vunpack.c.l.b16 %v5053_v33  ;;  %v3572_v13 = vunpack.c.l.b16 %v10179_v22  ;;  %v3573_v26 = vunpack.c.l.b16 %v10181_v52 }
 0x45d   : > { %v6155_v45 = vpack.c.bf16 %v6139_v14, %v6139_v14  ;;  %v10647_v0 = vunpack.c.l.bf16 %v7450_v43  ;;  %v10649_v54 = vunpack.c.h.bf16 %v7450_v43  ;;  %v4405_v34 = vmax.f32 %v4224_v36, %v4369_v63 }
 0x45e   : > { %v5140_v3 = vpack.c.b16 %v5131_v60, %v5130_v7  ;;  %v4439_v17 = vpack.c.bf16 %v4403_v27, %v4403_v27  ;;  %v4440_v31 = vpack.c.bf16 %v4404_v57, %v4404_v57  ;;  %v3581_v33 = vpack.c.b16 %v3573_v26, %v3572_v13 }
 0x45f   : > { %v6205_v39 = vunpack.c.l.b16 %v6155_v45  ;;  %v5720_v15 = vmax.f32 %v10592_v30, %v10647_v0  ;;  %v5721_v22 = vmax.f32 %v10607_v37, %v10649_v54  ;;  %v4441_v59 = vpack.c.bf16 %v4405_v34, %v4405_v34 }
 0x460   : > { %6961 = vmatmul.msk.bf16.gmra.mxu3 %vm1471_vm10, %v5140_v3  ;;  %v10659_v21 = vunpack.c.l.bf16 %v4439_v17  ;;  %v10661_v52 = vunpack.c.l.bf16 %v4440_v31  ;;  %v5314_v25 = vunpack.c.h.bf16 %v10640_v12  ;;  %6953 = vmatmul.msk.bf16.gmra.mxu2 %vm1471_vm10, %v3581_v33  ;;  %v5315_v30 = vunpack.c.l.bf16 %v10652_v9 }
 0x461   : > { %v6217_v46 = vpack.c.b16 %v6205_v39, %v6204_v44  ;;  %v5744_v6 = vpack.c.bf16 %v5720_v15, %v5720_v15  ;;  %v5745_v4 = vpack.c.bf16 %v5721_v22, %v5721_v22  ;;  %v4477_v37 = vunpack.c.l.bf16 %v4441_v59 }
 0x462   : > { %v4502_v35 = vrot.slane %v10659_v21, 4  ;;  %v4517_v2 = vrot.slane %v10661_v52, 4  ;;  %v4868_v38 = vrot.slane %v10659_v21, 2  ;;  %v4869_v20 = vrot.slane %v10661_v52, 2 }
 0x463   : > { %6967 = vmatmul.msk.bf16.gmra.mxu1 %vm1471_vm10, %v6217_v46  ;;  %v5768_v28 = vunpack.c.l.bf16 %v5744_v6  ;;  %v5769_v53 = vunpack.c.l.bf16 %v5745_v4  ;;  %v4973_v16 = vrot.slane %v10659_v21, 1  ;;  %v4974_v10 = vrot.slane %v10661_v52, 1 }
 0x464   : > { %v10675_v18 = vsel %vm2720_vm15, %v4502_v35, %v4477_v37  ;;  %v4541_v41 = vsel %vm2720_vm15, %v4517_v2, %v4502_v35  ;;  %v5339_v32 = vunpack.c.l.bf16 %v10665_v51  ;;  %v3864_v9 = vmax.f32 %v10497_v42, %v3828_v56 }
 0x465   : > { %v5788_v62 = vrot.slane %v5768_v28, 4  ;;  %v5800_v19 = vrot.slane %v5769_v53, 4  ;;  %v6028_v58 = vrot.slane %v5768_v28, 2  ;;  %v6029_v63 = vrot.slane %v5769_v53, 2 }
 0x466   : > { %v6096_v40 = vrot.slane %v5768_v28, 1  ;;  %v6097_v36 = vrot.slane %v5769_v53, 1  ;;  %v4529_v14 = vrot.slane %v10675_v18, 4  ;;  %v4637_v27 = vrot.slane %v10675_v18, 3 }
 0x467   : > { %v5789_v57 = vsel %vm2720_vm15, %v5788_v62, %v10618_v24  ;;  %v5816_v44 = vsel %vm2720_vm15, %v5800_v19, %v5788_v62  ;;  %v6030_v43 = vsel %vm3010_vm1, %v6028_v58, %v6029_v63  ;;  %v4638_v7 = vrot.slane %v4541_v41, 3 }
 0x468   : > { %v5808_v60 = vrot.slane %v5789_v57, 4  ;;  %v5872_v13 = vrot.slane %v5789_v57, 3  ;;  %v5873_v45 = vrot.slane %v5816_v44, 3  ;;  %v5944_v26 = vrot.slane %v5789_v57, 2 }
 0x469   : > { %v5945_v3 = vrot.slane %v5816_v44, 2  ;;  %v6098_v34 = vsel %vm3315_vm3, %v6096_v40, %v6097_v36  ;;  %v6099_v17 = vrot.slane %v5789_v57, 1  ;;  %v4553_v31 = vsel %vm2720_vm15, %v4529_v14, %v4517_v2 }
 0x46a   : > { %v5824_v39 = vsel %vm2720_vm15, %v5808_v60, %v5800_v19  ;;  %v5874_v15 = vsel %vm2865_vm0, %v5872_v13, %v5873_v45  ;;  %v6031_v24 = vsel %vm3010_vm1, %v6029_v63, %v5944_v26  ;;  %v4639_v22 = vsel %vm2865_vm0, %v4637_v27, %v4638_v7 }
 0x46b   : > { %v5875_v33 = vrot.slane %v5824_v39, 3  ;;  %v5916_v59 = vmax.f32 %v5768_v28, %v5874_v15  ;;  %v5946_v46 = vsel %vm3010_vm1, %v5944_v26, %v5945_v3  ;;  %v5947_v6 = vrot.slane %v5824_v39, 2  ;;  %v5411_v26 = vld [vmem:[#allocation3 + $0x8c] sm:$0x3] }
 0x46c   : > { %v6100_v4 = vsel %vm3315_vm3, %v6097_v36, %v6099_v17  ;;  %v4640_v51 = vrot.slane %v4553_v31, 3  ;;  %v4694_v37 = vmax.f32 %v10659_v21, %v4639_v22  ;;  %v4745_v35 = vrot.slane %v10675_v18, 2 }
 0x46d   : > { %v5876_v2 = vsel %vm2865_vm0, %v5873_v45, %v5875_v33  ;;  %v5948_v62 = vsel %vm3010_vm1, %v5945_v3, %v5947_v6  ;;  %v5988_v19 = vmax.f32 %v5916_v59, %v5946_v46  ;;  %v4746_v58 = vrot.slane %v4541_v41, 2  ;;  %v5409_v41 = vld [vmem:[#allocation3 + $0x84] sm:$0xff]   ;;  %v10719_v59 = vld [vmem:[#allocation3 + $0x9c] sm:$0xff]   ;;  %v4117_v6 = vld [vmem:[#allocation3 + $0xb4] sm:$0xff]  }
 0x46e   : > { %v5917_v63 = vmax.f32 %v5769_v53, %v5876_v2  ;;  %v4641_v40 = vsel %vm2865_vm0, %v4638_v7, %v4640_v51  ;;  %v4748_v28 = vrot.slane %v4553_v31, 2  ;;  %v4870_v14 = vsel %vm3010_vm1, %v4868_v38, %v4869_v20  ;;  %v5653_v33 = vld [vmem:[#allocation3 + $0xa4] sm:$0x3]  ;;  %v4119_v2 = vld [vmem:[#allocation3 + $0xbc] sm:$0x3] }
 0x46f   : > { %v6068_v27 = vmax.f32 %v5988_v19, %v6030_v43  ;;  %v4695_v36 = vmax.f32 %v10661_v52, %v4641_v40  ;;  %v4747_v57 = vsel %vm3010_vm1, %v4745_v35, %v4746_v58  ;;  %v4871_v21 = vsel %vm3010_vm1, %v4869_v20, %v4745_v35 }
 0x470   : > { %v5989_v44 = vmax.f32 %v5917_v63, %v5948_v62  ;;  %v4749_v60 = vsel %vm3010_vm1, %v4746_v58, %v4748_v28  ;;  %v4802_v13 = vmax.f32 %v4694_v37, %v4747_v57  ;;  %v4975_v53 = vsel %vm3315_vm3, %v4973_v16, %v4974_v10  ;;  %v5532_v16 = vld [vmem:[#allocation3 + $0x98] sm:$0x3]  ;;  %v4300_v63 = vld [vmem:[#allocation3 + $0xc8] sm:$0x3] }
 0x471   : > { %v6140_v7 = vmax.f32 %v6068_v27, %v6098_v34  ;;  %v4803_v45 = vmax.f32 %v4695_v36, %v4749_v60  ;;  %v4976_v38 = vrot.slane %v10675_v18, 1  ;;  %v5361_v43 = vmax.f32 %v5313_v11, %v10455_v8  ;;  %v10740_v60 = vld [vmem:[#allocation3 + $0x78] sm:$0xff]  }
 0x472   : > { %v6069_v3 = vmax.f32 %v5989_v44, %v6031_v24  ;;  %v4922_v20 = vmax.f32 %v4802_v13, %v4870_v14  ;;  %v5362_v17 = vmax.f32 %v5314_v25, %v10457_v55  ;;  %v5363_v31 = vmax.f32 %v5315_v30, %v5339_v32  ;;  %v3938_v25 = vld [vmem:[#allocation3 + $0xb0] sm:$0x3]  ;;  %v10742_v13 = vld [vmem:[#allocation3 + $0x84] sm:$0xff]  }
 0x473   : > { %v6156_v39 = vpack.c.bf16 %v6140_v7, %v6140_v7  ;;  %v4923_v34 = vmax.f32 %v4803_v45, %v4871_v21  ;;  %v4977_v18 = vsel %vm3315_vm3, %v4974_v10, %v4976_v38  ;;  %v5457_v15 = vunpack.c.l.bf16 %v5409_v41 }
 0x474   : > { %v6141_v22 = vmax.f32 %v6069_v3, %v6100_v4  ;;  %v5030_v8 = vmax.f32 %v4922_v20, %v4975_v53  ;;  %v5458_v11 = vunpack.c.h.bf16 %v5409_v41  ;;  %v5459_v24 = vunpack.c.l.bf16 %v5411_v26  ;;  %v10751_v26 = vld [vmem:[#allocation3 + $0x80] sm:$0x3] }
 0x475   : > { %v5031_v12 = vmax.f32 %v4923_v34, %v4977_v18  ;;  %v5580_v55 = vunpack.c.l.bf16 %v5532_v16  ;;  %v3865_v52 = vmax.f32 %v10499_v29, %v3829_v1  ;;  %v6206_v10 = vunpack.c.l.b16 %v6156_v39  ;;  %v10732_v1 = vld [vmem:[#allocation3 + $0xc0] sm:$0xff]   ;;  %v10754_v16 = vld [vmem:[#allocation3 + $0x8c] sm:$0x3] }
 0x476   : > { %v6157_v30 = vpack.c.bf16 %v6141_v22, %v6141_v22  ;;  %v5054_v32 = vpack.c.bf16 %v5030_v8, %v5030_v8  ;;  %v5483_v46 = vmax.f32 %v5363_v31, %v5459_v24  ;;  %v5481_v51 = vmax.f32 %v5361_v43, %v5457_v15 }
 0x477   : > { %v5055_v4 = vpack.c.bf16 %v5031_v12, %v5031_v12  ;;  %v5701_v37 = vunpack.c.l.bf16 %v5653_v33  ;;  %v3866_v35 = vmax.f32 %v3794_v61, %v3830_v47  ;;  %v5482_v49 = vmax.f32 %v5362_v17, %v5458_v11 }
 0x478   : > { %v6207_v42 = vunpack.c.l.b16 %v6157_v30  ;;  %5078 = vst.msk [vmem:[#allocation3 + $0x9c] sm:$0xf] %vm1586_vm7, %v5054_v32  ;;  %v5604_v29 = vmax.f32 %v5483_v46, %v5580_v55  ;;  %v4010_v56 = vunpack.c.l.bf16 %v3938_v25  ;;  %v4044_v62 = vmax.f32 %v3864_v9, %v10535_v48 }
 0x479   : > { %5079 = vst.msk [vmem:[#allocation3 + $0xa0] sm:$0xf] %vm1586_vm7, %v5055_v4  ;;  %v4045_v19 = vmax.f32 %v3865_v52, %v10541_v5  ;;  %v4189_v58 = vunpack.c.l.bf16 %v4117_v6  ;;  %v4190_v50 = vunpack.c.h.bf16 %v4117_v6  ;;  %v4191_v40 = vunpack.c.l.bf16 %v4119_v2 }
 0x47a   : > { %v6218_v23 = vpack.c.b16 %v6207_v42, %v6206_v10  ;;  %v5725_v61 = vmax.f32 %v5604_v29, %v5701_v37  ;;  %v4046_v47 = vmax.f32 %v3866_v35, %v4010_v56  ;;  %v7289_v27 = vunpack.c.l.bf16 %v10732_v1 }
 0x47b   : > { %v4225_v28 = vmax.f32 %v4044_v62, %v4189_v58  ;;  %v4226_v14 = vmax.f32 %v4045_v19, %v4190_v50  ;;  %v7290_v36 = vunpack.c.h.bf16 %v10732_v1  ;;  %v4372_v44 = vunpack.c.l.bf16 %v4300_v63 }
 0x47c   : > { %6968 = vmatmul.msk.bf16.gmra.mxu1 %vm1471_vm10, %v6218_v23  ;;  %v5749_v57 = vpack.c.bf16 %v5725_v61, %v5725_v61  ;;  %v4227_v21 = vmax.f32 %v4046_v47, %v4191_v40  ;;  %v5602_v53 = vmax.f32 %v5481_v51, %v10647_v0  ;;  %v5603_v45 = vmax.f32 %v5482_v49, %v10649_v54 }
 0x47d   : > { %v4406_v41 = vmax.f32 %v4225_v28, %v7289_v27  ;;  %v4407_v7 = vmax.f32 %v4226_v14, %v7290_v36  ;;  %v7305_v43 = vunpack.c.l.bf16 %v10740_v60  ;;  %v3795_v3 = vunpack.c.l.bf16 %v10719_v59 }
 0x47e   : > { %v4408_v38 = vmax.f32 %v4227_v21, %v4372_v44  ;;  %v5773_v20 = vunpack.c.l.bf16 %v5749_v57  ;;  %v5340_v39 = vunpack.c.l.bf16 %v10742_v13  ;;  %v5132_v18 = vunpack.c.l.b16 %v5054_v32 }
 0x47f   : > { %v4442_v17 = vpack.c.bf16 %v4406_v41, %v4406_v41  ;;  %v4443_v31 = vpack.c.bf16 %v4407_v7, %v4407_v7  ;;  %v5133_v15 = vunpack.c.l.b16 %v5055_v4  ;;  %v5318_v8 = vunpack.c.l.bf16 %v10751_v26 }
 0x480   : > { %v5651_v34 = vld [vmem:[#allocation3 + $0x9c] sm:$0xff]   ;;  %v4444_v22 = vpack.c.bf16 %v4408_v38, %v4408_v38  ;;  %v7306_v52 = vunpack.c.h.bf16 %v10740_v60  ;;  %v5342_v25 = vunpack.c.l.bf16 %v10754_v16  ;;  %v5656_v16 = vld [vmem:[#allocation3 + $0xb0] sm:$0x3] }
 0x481   : > { %v5699_v11 = vunpack.c.l.bf16 %v5651_v34  ;;  %v5700_v24 = vunpack.c.h.bf16 %v5651_v34  ;;  %v4478_v33 = vunpack.c.l.bf16 %v4442_v17  ;;  %v10758_v12 = vunpack.c.l.bf16 %v4443_v31 }
 0x482   : > { %v5141_v55 = vpack.c.b16 %v5133_v15, %v5132_v18  ;;  %v4480_v9 = vunpack.c.l.bf16 %v4444_v22  ;;  %v5341_v34 = vunpack.c.h.bf16 %v10742_v13 }
 0x483   : > { %v5723_v30 = vmax.f32 %v5602_v53, %v5699_v11  ;;  %v5724_v10 = vmax.f32 %v5603_v45, %v5700_v24  ;;  %v4504_v46 = vrot.slane %v4478_v33, 4  ;;  %v4518_v32 = vrot.slane %v10758_v12, 4 }
 0x484   : > { %6962 = vmatmul.msk.bf16.gmra.mxu3 %vm1471_vm10, %v5141_v55  ;;  %v4872_v6 = vrot.slane %v4478_v33, 2  ;;  %v4873_v4 = vrot.slane %v10758_v12, 2  ;;  %v4978_v51 = vrot.slane %v4478_v33, 1  ;;  %v4979_v37 = vrot.slane %v10758_v12, 1 }
 0x485   : > { %v5747_v35 = vpack.c.bf16 %v5723_v30, %v5723_v30  ;;  %v5748_v2 = vpack.c.bf16 %v5724_v10, %v5724_v10  ;;  %v4505_v42 = vsel %vm2720_vm15, %v4504_v46, %v4480_v9  ;;  %v4542_v49 = vsel %vm2720_vm15, %v4518_v32, %v4504_v46 }
 0x486   : > { %v4530_v29 = vrot.slane %v4505_v42, 4  ;;  %v4642_v56 = vrot.slane %v4505_v42, 3  ;;  %v4643_v62 = vrot.slane %v4542_v49, 3  ;;  %v4750_v19 = vrot.slane %v4505_v42, 2 }
 0x487   : > { %v5771_v58 = vunpack.c.l.bf16 %v5747_v35  ;;  %v5772_v50 = vunpack.c.l.bf16 %v5748_v2  ;;  %v4751_v63 = vrot.slane %v4542_v49, 2  ;;  %v4874_v23 = vsel %vm3010_vm1, %v4872_v6, %v4873_v4 }
 0x488   : > { %v4554_v61 = vsel %vm2720_vm15, %v4530_v29, %v4518_v32  ;;  %v4644_v47 = vsel %vm2865_vm0, %v4642_v56, %v4643_v62  ;;  %v10772_v40 = vsel %vm3010_vm1, %v4873_v4, %v4750_v19  ;;  %v4980_v28 = vsel %vm3315_vm3, %v4978_v51, %v4979_v37  ;;  %v5414_v29 = vld [vmem:[#allocation3 + $0x98] sm:$0x3] }
 0x489   : > { %v5790_v14 = vrot.slane %v5771_v58, 4  ;;  %v5801_v57 = vrot.slane %v5772_v50, 4  ;;  %v6032_v21 = vrot.slane %v5771_v58, 2  ;;  %v6033_v44 = vrot.slane %v5772_v50, 2 }
 0x48a   : > { %v6101_v53 = vrot.slane %v5771_v58, 1  ;;  %v6102_v41 = vrot.slane %v5772_v50, 1  ;;  %v4645_v7 = vrot.slane %v4554_v61, 3  ;;  %v4696_v45 = vmax.f32 %v4478_v33, %v4644_v47 }
 0x48b   : > { %v5791_v38 = vsel %vm2720_vm15, %v5790_v14, %v5773_v20  ;;  %v5817_v17 = vsel %vm2720_vm15, %v5801_v57, %v5790_v14  ;;  %v4752_v31 = vsel %vm3010_vm1, %v4750_v19, %v4751_v63  ;;  %v6034_v55 = vsel %vm3010_vm1, %v6032_v21, %v6033_v44  ;;  %v5535_v21 = vld [vmem:[#allocation3 + $0xa4] sm:$0x3] }
 0x48c   : > { %v5809_v18 = vrot.slane %v5791_v38, 4  ;;  %v5877_v15 = vrot.slane %v5791_v38, 3  ;;  %v5878_v22 = vrot.slane %v5817_v17, 3  ;;  %v5949_v11 = vrot.slane %v5791_v38, 2 }
 0x48d   : > { %v5950_v24 = vrot.slane %v5817_v17, 2  ;;  %v4646_v9 = vsel %vm2865_vm0, %v4643_v62, %v4645_v7  ;;  %v10783_v33 = vmax.f32 %v7305_v43, %v5340_v39  ;;  %v6103_v10 = vsel %vm3315_vm3, %v6101_v53, %v6102_v41  ;;  %v3725_v53 = vld [vmem:[#allocation3 + $0xa4] sm:$0x3]  ;;  %v3761_v17 = vld [vmem:[#allocation3 + $0xb0] sm:$0x3] }
 0x48e   : > { %v5825_v20 = vsel %vm2720_vm15, %v5809_v18, %v5801_v57  ;;  %v5879_v30 = vsel %vm2865_vm0, %v5877_v15, %v5878_v22  ;;  %v4697_v13 = vmax.f32 %v10758_v12, %v4646_v9  ;;  %v6104_v51 = vrot.slane %v5791_v38, 1 }
 0x48f   : > { %v5880_v46 = vrot.slane %v5825_v20, 3  ;;  %v5918_v32 = vmax.f32 %v5771_v58, %v5879_v30  ;;  %v5951_v6 = vsel %vm3010_vm1, %v5949_v11, %v5950_v24  ;;  %v5952_v4 = vrot.slane %v5825_v20, 2 }
 0x490   : > { %v4753_v35 = vrot.slane %v4554_v61, 2  ;;  %v4804_v2 = vmax.f32 %v4696_v45, %v4752_v31  ;;  %v4981_v49 = vrot.slane %v4505_v42, 1  ;;  %v6035_v62 = vsel %vm3010_vm1, %v6033_v44, %v5949_v11 }
 0x491   : > { %v5881_v43 = vsel %vm2865_vm0, %v5878_v22, %v5880_v46  ;;  %v5953_v39 = vsel %vm3010_vm1, %v5950_v24, %v5952_v4  ;;  %v5990_v56 = vmax.f32 %v5918_v32, %v5951_v6  ;;  %v5366_v42 = vmax.f32 %v5318_v8, %v5342_v25  ;;  %v4122_v24 = vld [vmem:[#allocation3 + $0xc8] sm:$0x3]  ;;  %v4303_v6 = vld [vmem:[#allocation3 + $0xd4] sm:$0x3] }
 0x492   : > { %v5919_v19 = vmax.f32 %v5772_v50, %v5881_v43  ;;  %v4754_v12 = vsel %vm3010_vm1, %v4751_v63, %v4753_v35  ;;  %v4924_v47 = vmax.f32 %v4804_v2, %v4874_v23  ;;  %v4982_v58 = vsel %vm3315_vm3, %v4979_v37, %v4981_v49 }
 0x493   : > { %v6070_v14 = vmax.f32 %v5990_v56, %v6034_v55  ;;  %v4805_v57 = vmax.f32 %v4697_v13, %v4754_v12  ;;  %v5462_v61 = vunpack.c.l.bf16 %v5414_v29  ;;  %v5365_v50 = vmax.f32 %v7306_v52, %v5341_v34  ;;  %v3939_v52 = vld [vmem:[#allocation3 + $0xb4] sm:$0xff]  }
 0x494   : > { %v5991_v7 = vmax.f32 %v5919_v19, %v5953_v39  ;;  %v5032_v45 = vmax.f32 %v4924_v47, %v4980_v28  ;;  %v3796_v63 = vunpack.c.h.bf16 %v10719_v59  ;;  %v6105_v23 = vsel %vm3315_vm3, %v6102_v41, %v6104_v51  ;;  %v3941_v28 = vld [vmem:[#allocation3 + $0xbc] sm:$0x3] }
 0x495   : > { %v6142_v37 = vmax.f32 %v6070_v14, %v6103_v10  ;;  %v4925_v44 = vmax.f32 %v4805_v57, %v10772_v40  ;;  %v5486_v38 = vmax.f32 %v5366_v42, %v5462_v61  ;;  %v5583_v25 = vunpack.c.l.bf16 %v5535_v21  ;;  %v5533_v40 = vld [vmem:[#allocation3 + $0x9c] sm:$0xff]  }
 0x496   : > { %v6071_v26 = vmax.f32 %v5991_v7, %v6035_v62  ;;  %v5056_v8 = vpack.c.bf16 %v5032_v45, %v5032_v45  ;;  %v3797_v31 = vunpack.c.l.bf16 %v3725_v53  ;;  %v5484_v60 = vmax.f32 %v10783_v33, %v10647_v0  ;;  %v4301_v33 = vld [vmem:[#allocation3 + $0xcc] sm:$0xff]   ;;  %v3524_v7 = vld [vmem:[%s7839_s10] sm:$0xff]  ;;  %v3618_v45 = vpop.f32.mrf.mxu2 }
 0x497   : > { %v6158_v18 = vpack.c.bf16 %v6142_v37, %v6142_v37  ;;  %v5033_v15 = vmax.f32 %v4925_v44, %v4982_v58  ;;  %v5485_v41 = vmax.f32 %v5365_v50, %v10649_v54  ;;  %v5704_v22 = vunpack.c.l.bf16 %v5656_v16  ;;  %v10825_v44 = vld [vmem:[#allocation3 + $0x8c] sm:$0x3] }
 0x498   : > { %v6143_v34 = vmax.f32 %v6071_v26, %v6105_v23  ;;  %5080 = vst.msk [vmem:[#allocation3 + $0xa8] sm:$0xf] %vm1586_vm7, %v5056_v8  ;;  %v3833_v11 = vunpack.c.l.bf16 %v3761_v17  ;;  %v5607_v9 = vmax.f32 %v5486_v38, %v5583_v25  ;;  %v3867_v20 = vmax.f32 %v3795_v3, %v10535_v48  ;;  %v10835_v26 = vld [vmem:[#allocation3 + $0x98] sm:$0x3] }
 0x499   : > { %v5057_v55 = vpack.c.bf16 %v5033_v15, %v5033_v15  ;;  %v3868_v30 = vmax.f32 %v3796_v63, %v10541_v5  ;;  %v6208_v13 = vunpack.c.l.b16 %v6158_v18  ;;  %v4011_v32 = vunpack.c.l.bf16 %v3939_v52 }
 0x49a   : > { %v6159_v10 = vpack.c.bf16 %v6143_v34, %v6143_v34  ;;  %v3869_v46 = vmax.f32 %v3797_v31, %v3833_v11  ;;  %v5581_v4 = vunpack.c.l.bf16 %v5533_v40  ;;  %v4012_v51 = vunpack.c.h.bf16 %v3939_v52 }
 0x49b   : > { %5081 = vst.msk [vmem:[#allocation3 + $0xac] sm:$0xf] %vm1586_vm7, %v5057_v55  ;;  %v4013_v35 = vunpack.c.l.bf16 %v3941_v28  ;;  %v4194_v2 = vunpack.c.l.bf16 %v4122_v24  ;;  %v5582_v29 = vunpack.c.h.bf16 %v5533_v40  ;;  %v4047_v43 = vmax.f32 %v3867_v20, %v4011_v32  ;;  %v3525_v24 = vld [vmem:[%s7839_s10 + $0x8] sm:$0xff] }
 0x49c   : > { %v6209_v49 = vunpack.c.l.b16 %v6159_v10  ;;  %v4373_v39 = vunpack.c.l.bf16 %v4301_v33  ;;  %v4048_v59 = vmax.f32 %v3868_v30, %v4012_v51  ;;  %v4374_v5 = vunpack.c.h.bf16 %v4301_v33 }
 0x49d   : > { %v4049_v48 = vmax.f32 %v3869_v46, %v4013_v35  ;;  %v4375_v3 = vunpack.c.l.bf16 %v4303_v6  ;;  %v5728_v62 = vmax.f32 %v5607_v9, %v5704_v22  ;;  %v4228_v19 = vmax.f32 %v4047_v43, %v7289_v27 }
 0x49e   : > { %v6219_v56 = vpack.c.b16 %v6209_v49, %v6208_v13  ;;  %v4229_v12 = vmax.f32 %v4048_v59, %v7290_v36  ;;  %v5605_v14 = vmax.f32 %v5484_v60, %v5581_v4  ;;  %v5606_v57 = vmax.f32 %v5485_v41, %v5582_v29  ;;  %v3620_v20 = vpop.f32.mrf.mxu2  ;;  %v5178_v29 = vpop.f32.mrf.mxu3 }
 0x49f   : > { %v4230_v47 = vmax.f32 %v4049_v48, %v4194_v2  ;;  %v4409_v58 = vmax.f32 %v4228_v19, %v4373_v39  ;;  %v5752_v53 = vpack.c.bf16 %v5728_v62, %v5728_v62  ;;  %v3658_v36 = vadd.f32 %v3618_v45, %v3524_v7 }
 0x4a0   : > { %6969 = vmatmul.msk.bf16.gmra.mxu1 %vm1471_vm10, %v6219_v56  ;;  %v4410_v42 = vmax.f32 %v4229_v12, %v4374_v5  ;;  %v5321_v52 = vunpack.c.l.bf16 %v10825_v44  ;;  %v5345_v40 = vunpack.c.l.bf16 %v10835_v26  ;;  %v3659_v2 = vadd.f32 %v3620_v20, %v3525_v24 }
 0x4a1   : > { %v4411_v61 = vmax.f32 %v4230_v47, %v4375_v3  ;;  %v4445_v50 = vpack.c.bf16 %v4409_v58, %v4409_v58  ;;  %3674 = vst.msk [vmem:[%s7839_s10] sm:$0xff] %vm416_vm2, %v3658_v36  ;;  %v5776_v8 = vunpack.c.l.bf16 %v5752_v53 }
 0x4a2   : > { %v10818_v21 = vld [vmem:[#allocation3 + $0xa8] sm:$0xff]   ;;  %v4446_v63 = vpack.c.bf16 %v4410_v42, %v4410_v42  ;;  %3675 = vst.msk [vmem:[%s7839_s10 + $0x8] sm:$0xff] %vm416_vm2, %v3659_v2 }
 0x4a3   : > { %v7369_v27 = vunpack.c.l.bf16 %v10818_v21  ;;  %v7370_v1 = vunpack.c.h.bf16 %v10818_v21  ;;  %v4447_v23 = vpack.c.bf16 %v4411_v61, %v4411_v61  ;;  %v10823_v37 = vunpack.c.l.bf16 %v4445_v50 }
 0x4a4   : > { %v10833_v17 = vunpack.c.l.bf16 %v4446_v63 }
 0x4a5   : > { %v5726_v38 = vmax.f32 %v5605_v14, %v7369_v27  ;;  %v5727_v16 = vmax.f32 %v5606_v57, %v7370_v1  ;;  %v4483_v25 = vunpack.c.l.bf16 %v4447_v23  ;;  %v4506_v31 = vrot.slane %v10823_v37, 4 }
 0x4a6   : > { %v4519_v60 = vrot.slane %v10833_v17, 4  ;;  %v4876_v34 = vrot.slane %v10823_v37, 2  ;;  %v4983_v41 = vrot.slane %v10823_v37, 1  ;;  %v4877_v13 = vrot.slane %v10833_v17, 2 }
 0x4a7   : > { %v5750_v18 = vpack.c.bf16 %v5726_v38, %v5726_v38  ;;  %v5751_v15 = vpack.c.bf16 %v5727_v16, %v5727_v16  ;;  %v10841_v28 = vsel %vm2720_vm15, %v4506_v31, %v4483_v25  ;;  %v4984_v14 = vrot.slane %v10833_v17, 1 }
 0x4a8   : > { %v4531_v55 = vrot.slane %v10841_v28, 4  ;;  %v4543_v9 = vsel %vm2720_vm15, %v4519_v60, %v4506_v31  ;;  %v4647_v30 = vrot.slane %v10841_v28, 3  ;;  %v4755_v10 = vrot.slane %v10841_v28, 2  ;;  %v5084_v49 = vld [vmem:[%s7839_s10] sm:$0xff] }
 0x4a9   : > { %v5774_v22 = vunpack.c.l.bf16 %v5750_v18  ;;  %v10846_v11 = vunpack.c.l.bf16 %v5751_v15  ;;  %v4648_v33 = vrot.slane %v4543_v9, 3  ;;  %v4756_v43 = vrot.slane %v4543_v9, 2 }
 0x4aa   : > { %v5218_v48 = vadd.f32 %v5178_v29, %v5084_v49  ;;  %v4555_v5 = vsel %vm2720_vm15, %v4531_v55, %v4519_v60  ;;  %v4878_v24 = vsel %vm3010_vm1, %v4876_v34, %v4877_v13  ;;  %v5271_v55 = vld [vmem:[#allocation3 + $0x84] sm:$0xff]  }
 0x4ab   : > { %v5792_v46 = vrot.slane %v5774_v22, 4  ;;  %v5802_v32 = vrot.slane %v10846_v11, 4  ;;  %v6036_v6 = vrot.slane %v5774_v22, 2  ;;  %v6037_v4 = vrot.slane %v10846_v11, 2 }
 0x4ac   : > { %v6106_v51 = vrot.slane %v5774_v22, 1  ;;  %v6107_v35 = vrot.slane %v10846_v11, 1  ;;  %5234 = vst.msk [vmem:[%s7839_s10] sm:$0xff] %vm416_vm2, %v5218_v48  ;;  %v4649_v58 = vsel %vm2865_vm0, %v4647_v30, %v4648_v33  ;;  %v4650_v53 = vrot.slane %v4555_v5, 3 }
 0x4ad   : > { %v5793_v39 = vsel %vm2720_vm15, %v5792_v46, %v5776_v8  ;;  %v5818_v59 = vsel %vm2720_vm15, %v5802_v32, %v5792_v46  ;;  %v6038_v47 = vsel %vm3010_vm1, %v6036_v6, %v6037_v4  ;;  %v4698_v38 = vmax.f32 %v10823_v37, %v4649_v58  ;;  %v5417_v6 = vld [vmem:[#allocation3 + $0xa4] sm:$0x3]  ;;  %v5659_v58 = vld [vmem:[#allocation3 + $0xbc] sm:$0x3] }
 0x4ae   : > { %v5810_v3 = vrot.slane %v5793_v39, 4  ;;  %v5882_v56 = vrot.slane %v5793_v39, 3  ;;  %v5883_v62 = vrot.slane %v5818_v59, 3  ;;  %v5954_v19 = vrot.slane %v5793_v39, 2 }
 0x4af   : > { %v5955_v12 = vrot.slane %v5818_v59, 2  ;;  %v6108_v61 = vsel %vm3315_vm3, %v6106_v51, %v6107_v35  ;;  %v6109_v63 = vrot.slane %v5793_v39, 1  ;;  %v4651_v23 = vsel %vm2865_vm0, %v4648_v33, %v4650_v53 }
 0x4b0   : > { %v5826_v57 = vsel %vm2720_vm15, %v5810_v3, %v5802_v32  ;;  %v5884_v42 = vsel %vm2865_vm0, %v5882_v56, %v5883_v62  ;;  %v4757_v16 = vsel %vm3010_vm1, %v4755_v10, %v4756_v43  ;;  %v4699_v18 = vmax.f32 %v10833_v17, %v4651_v23  ;;  %v5180_v23 = vpop.f32.mrf.mxu3 }
 0x4b1   : > { %v5885_v7 = vrot.slane %v5826_v57, 3  ;;  %v5920_v45 = vmax.f32 %v5774_v22, %v5884_v42  ;;  %v5956_v50 = vsel %vm3010_vm1, %v5954_v19, %v5955_v12  ;;  %v5957_v36 = vrot.slane %v5826_v57, 2 }
 0x4b2   : > { %v4758_v60 = vrot.slane %v4555_v5, 2  ;;  %v4806_v22 = vmax.f32 %v4698_v38, %v4757_v16  ;;  %v6039_v9 = vsel %vm3010_vm1, %v6037_v4, %v5954_v19  ;;  %v4985_v37 = vsel %vm3315_vm3, %v4983_v41, %v4984_v14 }
 0x4b3   : > { %v5886_v8 = vsel %vm2865_vm0, %v5883_v62, %v5885_v7  ;;  %v5958_v25 = vsel %vm3010_vm1, %v5955_v12, %v5957_v36  ;;  %v5992_v31 = vmax.f32 %v5920_v45, %v5956_v50  ;;  %v4986_v30 = vrot.slane %v10841_v28, 1  ;;  %v3526_v50 = vld [vmem:[%s7839_s10 + $0x10] sm:$0xff]  ;;  %v3623_v36 = vpop.f32.mrf.mxu2 }
 0x4b4   : > { %v5921_v15 = vmax.f32 %v10846_v11, %v5886_v8  ;;  %v4759_v46 = vsel %vm3010_vm1, %v4756_v43, %v4758_v60  ;;  %v4879_v32 = vsel %vm3010_vm1, %v4877_v13, %v4755_v10  ;;  %v4926_v17 = vmax.f32 %v4806_v22, %v4878_v24  ;;  %v5415_v10 = vld [vmem:[#allocation3 + $0x9c] sm:$0xff]  }
 0x4b5   : > { %v6072_v20 = vmax.f32 %v5992_v31, %v6038_v47  ;;  %v6110_v11 = vsel %vm3315_vm3, %v6107_v35, %v6109_v63  ;;  %v4807_v2 = vmax.f32 %v4699_v18, %v4759_v46  ;;  %v5319_v34 = vunpack.c.l.bf16 %v5271_v55  ;;  %v5538_v35 = vld [vmem:[#allocation3 + $0xb0] sm:$0x3]  ;;  %v5085_v63 = vld [vmem:[%s7839_s10 + $0x8] sm:$0xff]  ;;  %v6164_v31 = vld [vmem:[%s7839_s10] sm:$0xff]  ;;  %v6258_v18 = vpop.f32.mrf.mxu1 }
 0x4b6   : > { %v5993_v33 = vmax.f32 %v5921_v15, %v5958_v25  ;;  %v4987_v4 = vsel %vm3315_vm3, %v4984_v14, %v4986_v30  ;;  %v5034_v29 = vmax.f32 %v4926_v17, %v4985_v37  ;;  %v5320_v39 = vunpack.c.h.bf16 %v5271_v55 }
 0x4b7   : > { %v6144_v51 = vmax.f32 %v6072_v20, %v6108_v61  ;;  %v4927_v59 = vmax.f32 %v4807_v2, %v4879_v32  ;;  %v5369_v28 = vmax.f32 %v5321_v52, %v5345_v40  ;;  %v5465_v13 = vunpack.c.l.bf16 %v5417_v6  ;;  %v3527_v20 = vld [vmem:[%s7839_s10 + $0x18] sm:$0xff]  ;;  %v10913_v32 = vld [vmem:[%s11241_s4] ss:$0 sm:$0xff] }
 0x4b8   : > { %v6073_v49 = vmax.f32 %v5993_v33, %v6039_v9  ;;  %v5058_v48 = vpack.c.bf16 %v5034_v29, %v5034_v29  ;;  %v5367_v3 = vmax.f32 %v5319_v34, %v10647_v0  ;;  %v5368_v19 = vmax.f32 %v5320_v39, %v10649_v54  ;;  %v5183_v30 = vpop.f32.mrf.mxu3 }
 0x4b9   : > { %v6160_v41 = vpack.c.bf16 %v6144_v51, %v6144_v51  ;;  %v5035_v5 = vmax.f32 %v4927_v59, %v4987_v4  ;;  %v5463_v12 = vunpack.c.l.bf16 %v5415_v10  ;;  %v5464_v26 = vunpack.c.h.bf16 %v5415_v10 }
 0x4ba   : > { %v6145_v43 = vmax.f32 %v6073_v49, %v6110_v11  ;;  %5082 = vst.msk [vmem:[#allocation3 + $0xb4] sm:$0xf] %vm1586_vm7, %v5058_v48  ;;  %v5489_v44 = vmax.f32 %v5369_v28, %v5465_v13  ;;  %v5586_v52 = vunpack.c.l.bf16 %v5538_v35  ;;  %v5707_v61 = vunpack.c.l.bf16 %v5659_v58 }
 0x4bb   : > { %v6210_v62 = vunpack.c.l.b16 %v6160_v41  ;;  %v5059_v47 = vpack.c.bf16 %v5035_v5, %v5035_v5  ;;  %v5487_v57 = vmax.f32 %v5367_v3, %v5463_v12  ;;  %v5488_v0 = vmax.f32 %v5368_v19, %v5464_v26  ;;  %v3625_v37 = vpop.f32.mrf.mxu2  ;;  %v3528_v5 = vld [vmem:[%s7839_s10 + $0x20] sm:$0xff] }
 0x4bc   : > { %v6161_v56 = vpack.c.bf16 %v6145_v43, %v6145_v43  ;;  %v5610_v42 = vmax.f32 %v5489_v44, %v5586_v52  ;;  %v3660_v8 = vadd.f32 %v3623_v36, %v3526_v50  ;;  %v5219_v25 = vadd.f32 %v5180_v23, %v5085_v63 }
 0x4bd   : > { %5083 = vst.msk [vmem:[#allocation3 + $0xb8] sm:$0xf] %vm1586_vm7, %v5059_v47  ;;  %v5608_v54 = vmax.f32 %v5487_v57, %v7369_v27  ;;  %v5609_v53 = vmax.f32 %v5488_v0, %v7370_v1  ;;  %v6298_v27 = vadd.f32 %v6258_v18, %v6164_v31  ;;  %v3661_v6 = vadd.f32 %v3625_v37, %v3527_v20  ;;  %v6260_v3 = vpop.f32.mrf.mxu1 }
 0x4be   : > { %v6211_v40 = vunpack.c.l.b16 %v6161_v56  ;;  %v5731_v7 = vmax.f32 %v5610_v42, %v5707_v61  ;;  %3676 = vst.msk [vmem:[%s7839_s10 + $0x10] sm:$0xff] %vm416_vm2, %v3660_v8 }
 0x4bf   : > { %5235 = vst.msk [vmem:[%s7839_s10 + $0x8] sm:$0xff] %vm416_vm2, %v5219_v25 }
 0x4c0   : > { %v6220_v14 = vpack.c.b16 %v6211_v40, %v6210_v62  ;;  %v5755_v1 = vpack.c.bf16 %v5731_v7, %v5731_v7  ;;  %6314 = vst.msk [vmem:[%s7839_s10] sm:$0xff] %vm416_vm2, %v6298_v27  ;;  %v5185_v58 = vpop.f32.mrf.mxu3 }
 0x4c1   : > { %3677 = vst.msk [vmem:[%s7839_s10 + $0x18] sm:$0xff] %vm416_vm2, %v3661_v6 }
 0x4c2   : > { %6970 = vmatmul.msk.bf16.gmra.mxu1 %vm1471_vm10, %v6220_v14  ;;  %v5779_v9 = vunpack.c.l.bf16 %v5755_v1 }
 0x4c3   : > { %v3628_v40 = vpop.f32.mrf.mxu2 }
 0x4c4   : > { %v5657_v45 = vld [vmem:[#allocation3 + $0xb4] sm:$0xff]   ;;  %v3662_v61 = vadd.f32 %v3628_v40, %v3528_v5 }
 0x4c5   : > { %v5705_v38 = vunpack.c.l.bf16 %v5657_v45  ;;  %v5706_v16 = vunpack.c.h.bf16 %v5657_v45  ;;  %v5086_v11 = vld [vmem:[%s7839_s10 + $0x10] sm:$0xff]  ;;  %v6263_v37 = vpop.f32.mrf.mxu1 }
 0x4c6   : > { %v5220_v49 = vadd.f32 %v5183_v30, %v5086_v11  ;;  %v6165_v47 = vld [vmem:[%s7839_s10 + $0x8] sm:$0xff]  ;;  %3678 = vst.msk [vmem:[%s7839_s10 + $0x20] sm:$0xff] %vm416_vm2, %v3662_v61 }
 0x4c7   : > { %v5729_v15 = vmax.f32 %v5608_v54, %v5705_v38  ;;  %v5730_v21 = vmax.f32 %v5609_v53, %v5706_v16  ;;  %v6330_v59 = vld [vmem:[%s7839_s10] sm:$0xff]  ;;  %v6299_v14 = vadd.f32 %v6260_v3, %v6165_v47  ;;  %v3531_v47 = vld [vmem:[%s7839_s10 + $0x38] sm:$0xff] }
 0x4c8   : > { %5236 = vst.msk [vmem:[%s7839_s10 + $0x10] sm:$0xff] %vm416_vm2, %v5220_v49  ;;  %v10924_v10 = vadd.f32 %v10913_v32, %v6330_v59  ;;  %v5087_v50 = vld [vmem:[%s7839_s10 + $0x18] sm:$0xff] }
 0x4c9   : > { %v5753_v60 = vpack.c.bf16 %v5729_v15, %v5729_v15  ;;  %v5754_v22 = vpack.c.bf16 %v5730_v21, %v5730_v21  ;;  %6315 = vst.msk [vmem:[%s7839_s10 + $0x8] sm:$0xff] %vm416_vm2, %v6299_v14  ;;  %v5221_v63 = vadd.f32 %v5185_v58, %v5087_v50  ;;  %v3529_v15 = vld [vmem:[%s7839_s10 + $0x28] sm:$0xff] }
 0x4ca   : > { %v6972_v52 = vmul.f32 -1.442695, %v10924_v10 }
 0x4cb   : > { %v5777_v24 = vunpack.c.l.bf16 %v5753_v60  ;;  %v5778_v55 = vunpack.c.l.bf16 %v5754_v22  ;;  %5237 = vst.msk [vmem:[%s7839_s10 + $0x18] sm:$0xff] %vm416_vm2, %v5221_v63  ;;  %v3630_v21 = vpop.f32.mrf.mxu2 }
 0x4cc   : > { %7661 = vpow2.f32 %v6972_v52 }
 0x4cd   : > { %v5794_v33 = vrot.slane %v5777_v24, 4  ;;  %v5803_v46 = vrot.slane %v5778_v55, 4  ;;  %v6040_v17 = vrot.slane %v5777_v24, 2  ;;  %v6041_v34 = vrot.slane %v5778_v55, 2 }
 0x4ce   : > { %v6111_v48 = vrot.slane %v5777_v24, 1  ;;  %v6112_v35 = vrot.slane %v5778_v55, 1 }
 0x4cf   : > { %v5795_v51 = vsel %vm2720_vm15, %v5794_v33, %v5779_v9  ;;  %v5819_v2 = vsel %vm2720_vm15, %v5803_v46, %v5794_v33  ;;  %v6042_v26 = vsel %vm3010_vm1, %v6040_v17, %v6041_v34  ;;  %v5188_v9 = vpop.f32.mrf.mxu3  ;;  %v6166_v20 = vld [vmem:[%s7839_s10 + $0x10] sm:$0xff] }
 0x4d0   : > { %v5811_v4 = vrot.slane %v5795_v51, 4  ;;  %v5887_v29 = vrot.slane %v5795_v51, 3  ;;  %v5888_v39 = vrot.slane %v5819_v2, 3  ;;  %v5959_v41 = vrot.slane %v5795_v51, 2  ;;  %v6331_v27 = vld [vmem:[%s7839_s10 + $0x8] sm:$0xff] }
 0x4d1   : > { %v5960_v28 = vrot.slane %v5819_v2, 2  ;;  %v6114_v44 = vrot.slane %v5795_v51, 1  ;;  %v6113_v53 = vsel %vm3315_vm3, %v6111_v48, %v6112_v35  ;;  %v10948_v22 = vadd.f32 %v10913_v32, %v6331_v27 }
 0x4d2   : > { %v5827_v13 = vsel %vm2720_vm15, %v5811_v4, %v5803_v46  ;;  %v5889_v43 = vsel %vm2865_vm0, %v5887_v29, %v5888_v39  ;;  %v6043_v7 = vsel %vm3010_vm1, %v6041_v34, %v5959_v41  ;;  %v7662_v25 = vpop.eup %7661  ;;  %v6300_v17 = vadd.f32 %v6263_v37, %v6166_v20 }
 0x4d3   : > { %v5890_v56 = vrot.slane %v5827_v13, 3  ;;  %v5922_v62 = vmax.f32 %v5777_v24, %v5889_v43  ;;  %v5961_v19 = vsel %vm3010_vm1, %v5959_v41, %v5960_v28  ;;  %v5962_v12 = vrot.slane %v5827_v13, 2  ;;  %v3633_v51 = vpop.f32.mrf.mxu2  ;;  %v6265_v13 = vpop.f32.mrf.mxu1 }
 0x4d4   : > { %v6115_v23 = vsel %vm3315_vm3, %v6112_v35, %v6114_v44  ;;  %v6414_v18 = vadd.f32 1.0, %v7662_v25  ;;  %v3663_v24 = vadd.f32 %v3630_v21, %v3529_v15  ;;  %v6973_v33 = vmul.f32 -1.442695, %v10948_v22  ;;  %6316 = vst.msk [vmem:[%s7839_s10 + $0x10] sm:$0xff] %vm416_vm2, %v6300_v17 }
 0x4d5   : > { %v5891_v57 = vsel %vm2865_vm0, %v5888_v39, %v5890_v56  ;;  %v5963_v0 = vsel %vm3010_vm1, %v5960_v28, %v5962_v12  ;;  %v5994_v42 = vmax.f32 %v5922_v62, %v5961_v19  ;;  %v6167_v28 = vld [vmem:[%s7839_s10 + $0x18] sm:$0xff]  ;;  %v3530_v62 = vld [vmem:[%s7839_s10 + $0x30] sm:$0xff] }
 0x4d6   : > { %v5923_v54 = vmax.f32 %v5778_v55, %v5891_v57  ;;  %v5088_v55 = vld [vmem:[%s7839_s10 + $0x20] sm:$0xff]  ;;  %7663 = vrcp.f32 %v6414_v18  ;;  %3679 = vst.msk [vmem:[%s7839_s10 + $0x28] sm:$0xff] %vm416_vm2, %v3663_v24  ;;  %v6441_v41 = vand.u32 2147483648, %v6414_v18  ;;  %v6439_v48 = vand.u32 2147483647, %v6414_v18 }
 0x4d7   : > { %v6074_v45 = vmax.f32 %v5994_v42, %v6042_v26  ;;  %v5222_v46 = vadd.f32 %v5188_v9, %v5088_v55  ;;  %7665 = vpow2.f32 %v6973_v33  ;;  %v5190_v49 = vpop.f32.mrf.mxu3  ;;  %v6301_v5 = vadd.f32 %v6265_v13, %v6167_v28 }
 0x4d8   : > { %v5995_v36 = vmax.f32 %v5923_v54, %v5963_v0  ;;  %vm6435_vm4 = vweird.f32 %v6414_v18  ;;  %v6442_v19 = vor.u32 1.1754944e-38, %v6441_v41  ;;  %v3664_v12 = vadd.f32 %v3633_v51, %v3530_v62 }
 0x4d9   : > { %v6146_v38 = vmax.f32 %v6074_v45, %v6113_v53  ;;  %5238 = vst.msk [vmem:[%s7839_s10 + $0x20] sm:$0xff] %vm416_vm2, %v5222_v46  ;;  %vm6440_vm5 = vcmp.eq.f32.partialorder %v6439_v48, 8.507059e+37  ;;  %v3532_v46 = vld [vmem:[%s7839_s10 + $0x40] sm:$0xff] }
 0x4da   : > { %v6075_v16 = vmax.f32 %v5995_v36, %v6043_v7  ;;  %6317 = vst.msk [vmem:[%s7839_s10 + $0x18] sm:$0xff] %vm416_vm2, %v6301_v5 }
 0x4db   : > { %v6162_v8 = vpack.c.bf16 %v6146_v38, %v6146_v38  ;;  %v6332_v35 = vld [vmem:[%s7839_s10 + $0x10] sm:$0xff]  ;;  %v3635_v26 = vpop.f32.mrf.mxu2  ;;  %3680 = vst.msk [vmem:[%s7839_s10 + $0x30] sm:$0xff] %vm416_vm2, %v3664_v12  ;;  %v6268_v61 = vpop.f32.mrf.mxu1 }
 0x4dc   : > { %v6147_v31 = vmax.f32 %v6075_v16, %v6115_v23  ;;  %v7664_v11 = vpop.eup %7663  ;;  %v10969_v56 = vadd.f32 %v10913_v32, %v6332_v35  ;;  %v3665_v40 = vadd.f32 %v3635_v26, %v3531_v47 }
 0x4dd   : > { %v6212_v60 = vunpack.c.l.b16 %v6162_v8  ;;  %v6431_v2 = vmul.f32 %v7664_v11, %v6414_v18  ;;  %v5089_v34 = vld [vmem:[%s7839_s10 + $0x28] sm:$0xff]  ;;  %v7666_v4 = vpop.eup %7665  ;;  %vm6436_vm7 = vweird.f32 %v7664_v11 }
 0x4de   : > { %v6163_v1 = vpack.c.bf16 %v6147_v31, %v6147_v31  ;;  %v5223_v39 = vadd.f32 %v5190_v49, %v5089_v34  ;;  %v10961_v59 = vadd.f32 1.0, %v7666_v4  ;;  %v6974_v52 = vmul.f32 -1.442695, %v10969_v56  ;;  %3681 = vst.msk [vmem:[%s7839_s10 + $0x38] sm:$0xff] %vm416_vm2, %v3665_v40 }
 0x4df   : > { %v6432_v29 = vsub.f32 1.0, %v6431_v2  ;;  %v5193_v14 = vpop.f32.mrf.mxu3 }
 0x4e0   : > { %v6213_v30 = vunpack.c.l.b16 %v6163_v1  ;;  %5239 = vst.msk [vmem:[%s7839_s10 + $0x28] sm:$0xff] %vm416_vm2, %v5223_v39  ;;  %7667 = vrcp.f32 %v10961_v59  ;;  %v6168_v42 = vld [vmem:[%s7839_s10 + $0x20] sm:$0xff]  ;;  %v6454_v38 = vand.u32 2147483647, %v10961_v59  ;;  %vm6450_vm8 = vweird.f32 %v10961_v59 }
 0x4e1   : > { %v6433_v43 = vmul.f32 %v7664_v11, %v6432_v29  ;;  %7669 = vpow2.f32 %v6974_v52  ;;  %v6302_v53 = vadd.f32 %v6268_v61, %v6168_v42  ;;  %v6333_v7 = vld [vmem:[%s7839_s10 + $0x18] sm:$0xff] }
 0x4e2   : > { %v6221_v6 = vpack.c.b16 %v6213_v30, %v6212_v60  ;;  %v10987_v50 = vadd.f32 %v10913_v32, %v6333_v7  ;;  %v5090_v8 = vld [vmem:[%s7839_s10 + $0x30] sm:$0xff]  ;;  %vm6455_vm11 = vcmp.eq.f32.partialorder %v6454_v38, 8.507059e+37 }
 0x4e3   : > { %v6434_v3 = vadd.f32 %v7664_v11, %v6433_v43  ;;  %6318 = vst.msk [vmem:[%s7839_s10 + $0x20] sm:$0xff] %vm416_vm2, %v6302_v53  ;;  %v3638_v36 = vpop.f32.mrf.mxu2  ;;  %v5224_v31 = vadd.f32 %v5193_v14, %v5090_v8  ;;  %v6270_v24 = vpop.f32.mrf.mxu1  ;;  %v3534_v8 = vld [vmem:[%s7839_s10 + $0x50] sm:$0xff] }
 0x4e4   : > { %6971 = vmatmul.msk.bf16.gmra.mxu1 %vm1471_vm10, %v6221_v6  ;;  %vm6437_vm10 = vmor %vm6435_vm4, %vm6436_vm7  ;;  %v6975_v16 = vmul.f32 -1.442695, %v10987_v50  ;;  %v3666_v17 = vadd.f32 %v3638_v36, %v3532_v46  ;;  %v3533_v6 = vld [vmem:[%s7839_s10 + $0x48] sm:$0xff] }
 0x4e5   : > { %v6438_v44 = vsel %vm6437_vm10, %v7664_v11, %v6434_v3  ;;  %v5091_v18 = vld [vmem:[%s7839_s10 + $0x38] sm:$0xff]  ;;  %5240 = vst.msk [vmem:[%s7839_s10 + $0x30] sm:$0xff] %vm416_vm2, %v5224_v31 }
 0x4e6   : > { %v6443_v58 = vsel %vm6440_vm5, %v6442_v19, %v6438_v44  ;;  %v7668_v0 = vpop.eup %7667  ;;  %7671 = vpow2.f32 %v6975_v16  ;;  %3682 = vst.msk [vmem:[%s7839_s10 + $0x40] sm:$0xff] %vm416_vm2, %v3666_v17 }
 0x4e7   : > { %v6670_v57 = vmul.f32 %v6443_v58, %v10924_v10  ;;  %v6446_v54 = vmul.f32 %v7668_v0, %v10961_v59  ;;  %v6456_v10 = vand.u32 2147483648, %v10961_v59  ;;  %v7670_v63 = vpop.eup %7669  ;;  %vm6451_vm6 = vweird.f32 %v7668_v0  ;;  %v5195_v27 = vpop.f32.mrf.mxu3  ;;  %v6169_v60 = vld [vmem:[%s7839_s10 + $0x28] sm:$0xff] }
 0x4e8   : > { %v10995_v25 = vadd.f32 1.0, %v7670_v63  ;;  %v5225_v21 = vadd.f32 %v5195_v27, %v5091_v18  ;;  %vm6452_vm9 = vmor %vm6450_vm8, %vm6451_vm6  ;;  %v6303_v9 = vadd.f32 %v6270_v24, %v6169_v60 }
 0x4e9   : > { %6686 = vst.msk [vmem:[%s7839_s10] sm:$0xff] %vm416_vm2, %v6670_v57  ;;  %v6447_v45 = vsub.f32 1.0, %v6446_v54  ;;  %v6457_v1 = vor.u32 1.1754944e-38, %v6456_v10 }
 0x4ea   : > { %7673 = vrcp.f32 %v10995_v25  ;;  %5241 = vst.msk [vmem:[%s7839_s10 + $0x38] sm:$0xff] %vm416_vm2, %v5225_v21  ;;  %v6334_v37 = vld [vmem:[%s7839_s10 + $0x20] sm:$0xff]  ;;  %v6471_v13 = vand.u32 2147483648, %v10995_v25  ;;  %v6469_v35 = vand.u32 2147483647, %v10995_v25  ;;  %vm6465_vm13 = vweird.f32 %v10995_v25 }
 0x4eb   : > { %v6448_v23 = vmul.f32 %v7668_v0, %v6447_v45  ;;  %v11008_v33 = vadd.f32 %v10913_v32, %v6334_v37  ;;  %6319 = vst.msk [vmem:[%s7839_s10 + $0x28] sm:$0xff] %vm416_vm2, %v6303_v9  ;;  %v3640_v11 = vpop.f32.mrf.mxu2  ;;  %v6273_v41 = vpop.f32.mrf.mxu1 }
 0x4ec   : > { %v7672_v51 = vpop.eup %7671  ;;  %v3667_v34 = vadd.f32 %v3640_v11, %v3533_v6  ;;  %v6170_v39 = vld [vmem:[%s7839_s10 + $0x30] sm:$0xff]  ;;  %v6472_v44 = vor.u32 1.1754944e-38, %v6471_v13  ;;  %vm6470_vm15 = vcmp.eq.f32.partialorder %v6469_v35, 8.507059e+37 }
 0x4ed   : > { %v6449_v15 = vadd.f32 %v7668_v0, %v6448_v23  ;;  %v6976_v2 = vmul.f32 -1.442695, %v11008_v33  ;;  %v6304_v28 = vadd.f32 %v6273_v41, %v6170_v39  ;;  %v5092_v47 = vld [vmem:[%s7839_s10 + $0x40] sm:$0xff] }
 0x4ee   : > { %3683 = vst.msk [vmem:[%s7839_s10 + $0x48] sm:$0xff] %vm416_vm2, %v3667_v34 }
 0x4ef   : > { %v6453_v55 = vsel %vm6452_vm9, %v7668_v0, %v6449_v15  ;;  %v5198_v4 = vpop.f32.mrf.mxu3  ;;  %7675 = vpow2.f32 %v6976_v2  ;;  %6320 = vst.msk [vmem:[%s7839_s10 + $0x30] sm:$0xff] %vm416_vm2, %v6304_v28 }
 0x4f0   : > { %v6458_v20 = vsel %vm6455_vm11, %v6457_v1, %v6453_v55  ;;  %v7674_v49 = vpop.eup %7673  ;;  %v5226_v40 = vadd.f32 %v5198_v4, %v5092_v47 }
 0x4f1   : > { %v6671_v30 = vmul.f32 %v6458_v20, %v10948_v22  ;;  %v11017_v22 = vadd.f32 1.0, %v7672_v51  ;;  %v6461_v29 = vmul.f32 %v7674_v49, %v10995_v25  ;;  %vm6466_vm12 = vweird.f32 %v7674_v49  ;;  %v6171_v45 = vld [vmem:[%s7839_s10 + $0x38] sm:$0xff] }
 0x4f2   : > { %v6335_v43 = vld [vmem:[%s7839_s10 + $0x28] sm:$0xff]  ;;  %vm6467_vm14 = vmor %vm6465_vm13, %vm6466_vm12  ;;  %5242 = vst.msk [vmem:[%s7839_s10 + $0x40] sm:$0xff] %vm416_vm2, %v5226_v40  ;;  %v3535_v25 = vld [vmem:[%s7839_s10 + $0x58] sm:$0xff] }
 0x4f3   : > { %6687 = vst.msk [vmem:[%s7839_s10 + $0x8] sm:$0xff] %vm416_vm2, %v6671_v30  ;;  %7677 = vrcp.f32 %v11017_v22  ;;  %v6462_v59 = vsub.f32 1.0, %v6461_v29  ;;  %v11030_v5 = vadd.f32 %v10913_v32, %v6335_v43  ;;  %v3643_v3 = vpop.f32.mrf.mxu2  ;;  %v6275_v61 = vpop.f32.mrf.mxu1  ;;  %v6486_v10 = vand.u32 2147483648, %v11017_v22 }
 0x4f4   : > { %v6305_v63 = vadd.f32 %v6275_v61, %v6171_v45  ;;  %v6484_v38 = vand.u32 2147483647, %v11017_v22  ;;  %vm6480_vm1 = vweird.f32 %v11017_v22  ;;  %v3536_v61 = vld [vmem:[%s7839_s10 + $0x60] sm:$0xff] }
 0x4f5   : > { %v6463_v48 = vmul.f32 %v7674_v49, %v6462_v59  ;;  %v7676_v62 = vpop.eup %7675  ;;  %v6977_v12 = vmul.f32 -1.442695, %v11030_v5  ;;  %v5093_v58 = vld [vmem:[%s7839_s10 + $0x48] sm:$0xff]  ;;  %v6487_v60 = vor.u32 1.1754944e-38, %v6486_v10 }
 0x4f6   : > { %v11037_v52 = vadd.f32 1.0, %v7676_v62  ;;  %v6336_v36 = vld [vmem:[%s7839_s10 + $0x30] sm:$0xff]  ;;  %6321 = vst.msk [vmem:[%s7839_s10 + $0x38] sm:$0xff] %vm416_vm2, %v6305_v63  ;;  %vm6485_vm7 = vcmp.eq.f32.partialorder %v6484_v38, 8.507059e+37 }
 0x4f7   : > { %v6464_v19 = vadd.f32 %v7674_v49, %v6463_v48  ;;  %v5200_v14 = vpop.f32.mrf.mxu3  ;;  %7679 = vpow2.f32 %v6977_v12  ;;  %v11052_v16 = vadd.f32 %v10913_v32, %v6336_v36 }
 0x4f8   : > { %7681 = vrcp.f32 %v11037_v52  ;;  %v5227_v7 = vadd.f32 %v5200_v14, %v5093_v58  ;;  %v6501_v51 = vand.u32 2147483648, %v11037_v52  ;;  %v6499_v34 = vand.u32 2147483647, %v11037_v52 }
 0x4f9   : > { %v7678_v26 = vpop.eup %7677  ;;  %v6468_v57 = vsel %vm6467_vm14, %v7674_v49, %v6464_v19  ;;  %v6978_v15 = vmul.f32 -1.442695, %v11052_v16  ;;  %v6172_v30 = vld [vmem:[%s7839_s10 + $0x40] sm:$0xff]  ;;  %vm6495_vm10 = vweird.f32 %v11037_v52 }
 0x4fa   : > { %v6476_v0 = vmul.f32 %v7678_v26, %v11017_v22  ;;  %v6473_v42 = vsel %vm6470_vm15, %v6472_v44, %v6468_v57  ;;  %vm6481_vm0 = vweird.f32 %v7678_v26  ;;  %5243 = vst.msk [vmem:[%s7839_s10 + $0x48] sm:$0xff] %vm416_vm2, %v5227_v7  ;;  %v6502_v59 = vor.u32 1.1754944e-38, %v6501_v51 }
 0x4fb   : > { %v6672_v54 = vmul.f32 %v6473_v42, %v10969_v56  ;;  %v3668_v56 = vadd.f32 %v3643_v3, %v3534_v8  ;;  %v3645_v31 = vpop.f32.mrf.mxu2  ;;  %vm6482_vm3 = vmor %vm6480_vm1, %vm6481_vm0  ;;  %7683 = vpow2.f32 %v6978_v15  ;;  %v6278_v46 = vpop.f32.mrf.mxu1  ;;  %vm6500_vm6 = vcmp.eq.f32.partialorder %v6499_v34, 8.507059e+37 }
 0x4fc   : > { %v6477_v53 = vsub.f32 1.0, %v6476_v0  ;;  %v3669_v21 = vadd.f32 %v3645_v31, %v3535_v25  ;;  %v6306_v11 = vadd.f32 %v6278_v46, %v6172_v30 }
 0x4fd   : > { %6688 = vst.msk [vmem:[%s7839_s10 + $0x10] sm:$0xff] %vm416_vm2, %v6672_v54  ;;  %v7680_v18 = vpop.eup %7679  ;;  %v6337_v49 = vld [vmem:[%s7839_s10 + $0x38] sm:$0xff] }
 0x4fe   : > { %v6478_v23 = vmul.f32 %v7678_v26, %v6477_v53  ;;  %v7682_v1 = vpop.eup %7681  ;;  %v11063_v24 = vadd.f32 1.0, %v7680_v18  ;;  %3684 = vst.msk [vmem:[%s7839_s10 + $0x50] sm:$0xff] %vm416_vm2, %v3668_v56 }
 0x4ff   : > { %v5203_v55 = vpop.f32.mrf.mxu3  ;;  %v6491_v20 = vmul.f32 %v7682_v1, %v11037_v52  ;;  %3685 = vst.msk [vmem:[%s7839_s10 + $0x58] sm:$0xff] %vm416_vm2, %v3669_v21  ;;  %vm6496_vm4 = vweird.f32 %v7682_v1 }
 0x500   : > { %v6479_v27 = vadd.f32 %v7678_v26, %v6478_v23  ;;  %7685 = vrcp.f32 %v11063_v24  ;;  %6322 = vst.msk [vmem:[%s7839_s10 + $0x40] sm:$0xff] %vm416_vm2, %v6306_v11  ;;  %vm6497_vm5 = vmor %vm6495_vm10, %vm6496_vm4  ;;  %v6516_v52 = vand.u32 2147483648, %v11063_v24  ;;  %v6514_v57 = vand.u32 2147483647, %v11063_v24 }
 0x501   : > { %v6492_v6 = vsub.f32 1.0, %v6491_v20  ;;  %v7684_v4 = vpop.eup %7683  ;;  %v6173_v44 = vld [vmem:[%s7839_s10 + $0x48] sm:$0xff]  ;;  %vm6510_vm9 = vweird.f32 %v11063_v24 }
 0x502   : > { %v6483_v9 = vsel %vm6482_vm3, %v7678_v26, %v6479_v27  ;;  %v11085_v28 = vadd.f32 1.0, %v7684_v4  ;;  %v6517_v36 = vor.u32 1.1754944e-38, %v6516_v52  ;;  %vm6515_vm12 = vcmp.eq.f32.partialorder %v6514_v57, 8.507059e+37 }
 0x503   : > { %v6488_v37 = vsel %vm6485_vm7, %v6487_v60, %v6483_v9  ;;  %v6493_v2 = vmul.f32 %v7682_v1, %v6492_v6  ;;  %v3648_v22 = vpop.f32.mrf.mxu2  ;;  %v6280_v12 = vpop.f32.mrf.mxu1 }
 0x504   : > { %v6673_v17 = vmul.f32 %v6488_v37, %v10987_v50  ;;  %v11082_v50 = vadd.f32 %v10913_v32, %v6337_v49  ;;  %7687 = vrcp.f32 %v11085_v28  ;;  %v6307_v58 = vadd.f32 %v6280_v12, %v6173_v44 }
 0x505   : > { %v6494_v29 = vadd.f32 %v7682_v1, %v6493_v2  ;;  %v5094_v39 = vld [vmem:[%s7839_s10 + $0x50] sm:$0xff]  ;;  %v3670_v7 = vadd.f32 %v3648_v22, %v3536_v61  ;;  %v6529_v60 = vand.u32 2147483647, %v11085_v28  ;;  %vm6525_vm14 = vweird.f32 %v11085_v28 }
 0x506   : > { %6689 = vst.msk [vmem:[%s7839_s10 + $0x18] sm:$0xff] %vm416_vm2, %v6673_v17  ;;  %v7686_v41 = vpop.eup %7685  ;;  %v5228_v13 = vadd.f32 %v5203_v55, %v5094_v39  ;;  %v6979_v3 = vmul.f32 -1.442695, %v11082_v50  ;;  %v5095_v62 = vld [vmem:[%s7839_s10 + $0x58] sm:$0xff] }
 0x507   : > { %v5205_v43 = vpop.f32.mrf.mxu3  ;;  %v6498_v48 = vsel %vm6497_vm5, %v7682_v1, %v6494_v29  ;;  %v6506_v35 = vmul.f32 %v7686_v41, %v11063_v24  ;;  %vm6511_vm8 = vweird.f32 %v7686_v41  ;;  %v6338_v0 = vld [vmem:[%s7839_s10 + $0x40] sm:$0xff]  ;;  %6323 = vst.msk [vmem:[%s7839_s10 + $0x48] sm:$0xff] %vm416_vm2, %v6307_v58  ;;  %v6531_v24 = vand.u32 2147483648, %v11085_v28 }
 0x508   : > { %v6503_v19 = vsel %vm6500_vm6, %v6502_v59, %v6498_v48  ;;  %5244 = vst.msk [vmem:[%s7839_s10 + $0x50] sm:$0xff] %vm416_vm2, %v5228_v13  ;;  %7689 = vpow2.f32 %v6979_v3  ;;  %v5229_v40 = vadd.f32 %v5205_v43, %v5095_v62  ;;  %v11101_v42 = vadd.f32 %v10913_v32, %v6338_v0  ;;  %vm6512_vm11 = vmor %vm6510_vm9, %vm6511_vm8  ;;  %v3538_v62 = vld [vmem:[%s7839_s10 + $0x70] sm:$0xff] }
 0x509   : > { %v6674_v47 = vmul.f32 %v6503_v19, %v11008_v33  ;;  %v6507_v26 = vsub.f32 1.0, %v6506_v35  ;;  %v3537_v33 = vld [vmem:[%s7839_s10 + $0x68] sm:$0xff]  ;;  %3686 = vst.msk [vmem:[%s7839_s10 + $0x60] sm:$0xff] %vm416_vm2, %v3670_v7  ;;  %vm6530_vm0 = vcmp.eq.f32.partialorder %v6529_v60, 8.507059e+37  ;;  %v6532_v46 = vor.u32 1.1754944e-38, %v6531_v24  ;;  %v3539_v19 = vld [vmem:[%s7839_s10 + $0x78] sm:$0xff] }
 0x50a   : > { %5245 = vst.msk [vmem:[%s7839_s10 + $0x58] sm:$0xff] %vm416_vm2, %v5229_v40  ;;  %v7688_v10 = vpop.eup %7687  ;;  %v6980_v63 = vmul.f32 -1.442695, %v11101_v42 }
 0x50b   : > { %6690 = vst.msk [vmem:[%s7839_s10 + $0x20] sm:$0xff] %vm416_vm2, %v6674_v47  ;;  %v6508_v14 = vmul.f32 %v7686_v41, %v6507_v26  ;;  %v3650_v54 = vpop.f32.mrf.mxu2  ;;  %v6521_v56 = vmul.f32 %v7688_v10, %v11085_v28  ;;  %vm6526_vm13 = vweird.f32 %v7688_v10 }
 0x50c   : > { %v3671_v45 = vadd.f32 %v3650_v54, %v3537_v33  ;;  %7691 = vpow2.f32 %v6980_v63  ;;  %vm6527_vm15 = vmor %vm6525_vm14, %vm6526_vm13 }
 0x50d   : > { %v6509_v53 = vadd.f32 %v7686_v41, %v6508_v14  ;;  %v6522_v21 = vsub.f32 1.0, %v6521_v56 }
 0x50e   : > { %v7690_v38 = vpop.eup %7689  ;;  %3687 = vst.msk [vmem:[%s7839_s10 + $0x68] sm:$0xff] %vm416_vm2, %v3671_v45  ;;  %v6339_v9 = vld [vmem:[%s7839_s10 + $0x48] sm:$0xff] }
 0x50f   : > { %v5208_v23 = vpop.f32.mrf.mxu3  ;;  %v6513_v8 = vsel %vm6512_vm11, %v7686_v41, %v6509_v53  ;;  %v11114_v31 = vadd.f32 1.0, %v7690_v38  ;;  %v6174_v18 = vld [vmem:[%s7839_s10 + $0x50] sm:$0xff]  ;;  %v6523_v55 = vmul.f32 %v7688_v10, %v6522_v21 }
 0x510   : > { %v6518_v25 = vsel %vm6515_vm12, %v6517_v36, %v6513_v8  ;;  %v5096_v17 = vld [vmem:[%s7839_s10 + $0x60] sm:$0xff] }
 0x511   : > { %v6675_v15 = vmul.f32 %v6518_v25, %v11030_v5  ;;  %7693 = vrcp.f32 %v11114_v31  ;;  %v6524_v37 = vadd.f32 %v7688_v10, %v6523_v55  ;;  %v11130_v5 = vadd.f32 %v10913_v32, %v6339_v9  ;;  %v6175_v28 = vld [vmem:[%s7839_s10 + $0x58] sm:$0xff] }
 0x512   : > { %v7692_v30 = vpop.eup %7691  ;;  %v5230_v34 = vadd.f32 %v5208_v23, %v5096_v17  ;;  %v6544_v35 = vand.u32 2147483647, %v11114_v31  ;;  %vm6540_vm3 = vweird.f32 %v11114_v31 }
 0x513   : > { %6691 = vst.msk [vmem:[%s7839_s10 + $0x28] sm:$0xff] %vm416_vm2, %v6675_v15  ;;  %v3653_v20 = vpop.f32.mrf.mxu2  ;;  %v6528_v11 = vsel %vm6527_vm15, %v7688_v10, %v6524_v37  ;;  %v11133_v51 = vadd.f32 1.0, %v7692_v30  ;;  %v6981_v2 = vmul.f32 -1.442695, %v11130_v5 }
 0x514   : > { %v6533_v4 = vsel %vm6530_vm0, %v6532_v46, %v6528_v11  ;;  %5246 = vst.msk [vmem:[%s7839_s10 + $0x60] sm:$0xff] %vm416_vm2, %v5230_v34  ;;  %v3672_v26 = vadd.f32 %v3653_v20, %v3538_v62  ;;  %vm6545_vm4 = vcmp.eq.f32.partialorder %v6544_v35, 8.507059e+37 }
 0x515   : > { %v5097_v49 = vld [vmem:[%s7839_s10 + $0x68] sm:$0xff]  ;;  %v6676_v41 = vmul.f32 %v6533_v4, %v11052_v16  ;;  %7695 = vrcp.f32 %v11133_v51  ;;  %v6546_v16 = vand.u32 2147483648, %v11114_v31  ;;  %v6561_v10 = vand.u32 2147483648, %v11133_v51 }
 0x516   : > { %7697 = vpow2.f32 %v6981_v2  ;;  %3688 = vst.msk [vmem:[%s7839_s10 + $0x70] sm:$0xff] %vm416_vm2, %v3672_v26  ;;  %v6559_v63 = vand.u32 2147483647, %v11133_v51  ;;  %vm6555_vm5 = vweird.f32 %v11133_v51 }
 0x517   : > { %v5210_v6 = vpop.f32.mrf.mxu3  ;;  %v7694_v22 = vpop.eup %7693  ;;  %6692 = vst.msk [vmem:[%s7839_s10 + $0x30] sm:$0xff] %vm416_vm2, %v6676_v41  ;;  %v6547_v0 = vor.u32 1.1754944e-38, %v6546_v16 }
 0x518   : > { %v5231_v29 = vadd.f32 %v5210_v6, %v5097_v49  ;;  %v6536_v59 = vmul.f32 %v7694_v22, %v11114_v31  ;;  %vm6541_vm1 = vweird.f32 %v7694_v22  ;;  %v6562_v31 = vor.u32 1.1754944e-38, %v6561_v10 }
 0x519   : > { %vm6542_vm7 = vmor %vm6540_vm3, %vm6541_vm1  ;;  %vm6560_vm8 = vcmp.eq.f32.partialorder %v6559_v63, 8.507059e+37 }
 0x51a   : > { %5247 = vst.msk [vmem:[%s7839_s10 + $0x68] sm:$0xff] %vm416_vm2, %v5231_v29  ;;  %v6537_v13 = vsub.f32 1.0, %v6536_v59 }
 0x51b   : > { %v3655_v12 = vpop.f32.mrf.mxu2  ;;  %v7696_v58 = vpop.eup %7695  ;;  %v6176_v37 = vld [vmem:[%s7839_s10 + $0x60] sm:$0xff] }
 0x51c   : > { %v6538_v47 = vmul.f32 %v7694_v22, %v6537_v13  ;;  %v3673_v44 = vadd.f32 %v3655_v12, %v3539_v19  ;;  %v7698_v57 = vpop.eup %7697  ;;  %v6551_v61 = vmul.f32 %v7696_v58, %v11133_v51  ;;  %vm6556_vm10 = vweird.f32 %v7696_v58 }
 0x51d   : > { %v6283_v27 = vpop.f32.mrf.mxu1  ;;  %v6423_v54 = vadd.f32 1.0, %v7698_v57  ;;  %vm6557_vm6 = vmor %vm6555_vm5, %vm6556_vm10 }
 0x51e   : > { %v6308_v1 = vadd.f32 %v6283_v27, %v6174_v18  ;;  %v6539_v14 = vadd.f32 %v7694_v22, %v6538_v47  ;;  %3689 = vst.msk [vmem:[%s7839_s10 + $0x78] sm:$0xff] %vm416_vm2, %v3673_v44  ;;  %v6552_v7 = vsub.f32 1.0, %v6551_v61 }
 0x51f   : > { %v5213_v40 = vpop.f32.mrf.mxu3  ;;  %v6576_v17 = vand.u32 2147483648, %v6423_v54  ;;  %v6574_v51 = vand.u32 2147483647, %v6423_v54  ;;  %vm6570_vm11 = vweird.f32 %v6423_v54 }
 0x520   : > { %6324 = vst.msk [vmem:[%s7839_s10 + $0x50] sm:$0xff] %vm416_vm2, %v6308_v1  ;;  %v6543_v33 = vsel %vm6542_vm7, %v7694_v22, %v6539_v14  ;;  %v6553_v36 = vmul.f32 %v7696_v58, %v6552_v7 }
 0x521   : > { %v6548_v53 = vsel %vm6545_vm4, %v6547_v0, %v6543_v33  ;;  %v6577_v22 = vor.u32 1.1754944e-38, %v6576_v17  ;;  %vm6575_vm13 = vcmp.eq.f32.partialorder %v6574_v51, 8.507059e+37 }
 0x522   : > { %v6677_v45 = vmul.f32 %v6548_v53, %v11082_v50  ;;  %v6554_v56 = vadd.f32 %v7696_v58, %v6553_v36  ;;  %v5098_v50 = vld [vmem:[%s7839_s10 + $0x70] sm:$0xff] }
 0x523   : > { %v5232_v15 = vadd.f32 %v5213_v40, %v5098_v50 }
 0x524   : > { %6693 = vst.msk [vmem:[%s7839_s10 + $0x38] sm:$0xff] %vm416_vm2, %v6677_v45  ;;  %v6558_v1 = vsel %vm6557_vm6, %v7696_v58, %v6554_v56 }
 0x525   : > { %v6285_v39 = vpop.f32.mrf.mxu1  ;;  %v5099_v21 = vld [vmem:[%s7839_s10 + $0x78] sm:$0xff]  ;;  %v6563_v55 = vsel %vm6560_vm8, %v6562_v31, %v6558_v1  ;;  %5248 = vst.msk [vmem:[%s7839_s10 + $0x70] sm:$0xff] %vm416_vm2, %v5232_v15 }
 0x526   : > { %v6309_v48 = vadd.f32 %v6285_v39, %v6175_v28  ;;  %v6678_v9 = vmul.f32 %v6563_v55, %v11101_v42 }
 0x527   : > { %v6340_v43 = vld [vmem:[%s7839_s10 + $0x50] sm:$0xff]  ;;  %v5215_v25 = vpop.f32.mrf.mxu3 }
 0x528   : > { %v11151_v3 = vadd.f32 %v10913_v32, %v6340_v43  ;;  %6325 = vst.msk [vmem:[%s7839_s10 + $0x58] sm:$0xff] %vm416_vm2, %v6309_v48  ;;  %v5233_v60 = vadd.f32 %v5215_v25, %v5099_v21  ;;  %v6177_v48 = vld [vmem:[%s7839_s10 + $0x68] sm:$0xff] }
 0x529   : > { %6694 = vst.msk [vmem:[%s7839_s10 + $0x40] sm:$0xff] %vm416_vm2, %v6678_v9 }
 0x52a   : > { %v6982_v52 = vmul.f32 -1.442695, %v11151_v3  ;;  %5249 = vst.msk [vmem:[%s7839_s10 + $0x78] sm:$0xff] %vm416_vm2, %v5233_v60 }
 0x52c   : > { %7699 = vpow2.f32 %v6982_v52 }
 0x52d   : > { %7701 = vrcp.f32 %v6423_v54 }
 0x52f   : > { %v6341_v23 = vld [vmem:[%s7839_s10 + $0x58] sm:$0xff] }
 0x530   : > { %v11171_v38 = vadd.f32 %v10913_v32, %v6341_v23 }
 0x532   : > { %v7700_v8 = vpop.eup %7699  ;;  %v6983_v27 = vmul.f32 -1.442695, %v11171_v38 }
 0x533   : > { %v6424_v18 = vadd.f32 1.0, %v7700_v8  ;;  %v7702_v24 = vpop.eup %7701 }
 0x534   : > { %v6566_v20 = vmul.f32 %v7702_v24, %v6423_v54  ;;  %vm6571_vm9 = vweird.f32 %v7702_v24 }
 0x535   : > { %7703 = vrcp.f32 %v6424_v18  ;;  %vm6572_vm12 = vmor %vm6570_vm11, %vm6571_vm9  ;;  %v6589_v59 = vand.u32 2147483647, %v6424_v18  ;;  %v6591_v28 = vand.u32 2147483648, %v6424_v18  ;;  %vm6585_vm15 = vweird.f32 %v6424_v18 }
 0x536   : > { %7705 = vpow2.f32 %v6983_v27  ;;  %v6567_v30 = vsub.f32 1.0, %v6566_v20 }
 0x537   : > { %v6592_v12 = vor.u32 1.1754944e-38, %v6591_v28  ;;  %vm6590_vm1 = vcmp.eq.f32.partialorder %v6589_v59, 8.507059e+37 }
 0x538   : > { %v6568_v11 = vmul.f32 %v7702_v24, %v6567_v30 }
 0x53a   : > { %v6569_v34 = vadd.f32 %v7702_v24, %v6568_v11  ;;  %v6179_v11 = vld [vmem:[%s7839_s10 + $0x78] sm:$0xff] }
 0x53b   : > { %v7704_v2 = vpop.eup %7703 }
 0x53c   : > { %v6581_v42 = vmul.f32 %v7704_v2, %v6424_v18  ;;  %v7706_v49 = vpop.eup %7705  ;;  %v6573_v4 = vsel %vm6572_vm12, %v7702_v24, %v6569_v34  ;;  %vm6586_vm14 = vweird.f32 %v7704_v2  ;;  %v6178_v18 = vld [vmem:[%s7839_s10 + $0x70] sm:$0xff] }
 0x53d   : > { %v6425_v39 = vadd.f32 1.0, %v7706_v49  ;;  %v6578_v41 = vsel %vm6575_vm13, %v6577_v22, %v6573_v4  ;;  %vm6587_vm0 = vmor %vm6585_vm15, %vm6586_vm14  ;;  %v7726_v4 = vld [vmem:[%s11241_s4] ss:$0 sm:$0xff] }
 0x53e   : > { %v6582_v29 = vsub.f32 1.0, %v6581_v42  ;;  %v6679_v13 = vmul.f32 %v6578_v41, %v11130_v5 }
 0x53f   : > { %v6288_v46 = vpop.f32.mrf.mxu1  ;;  %7707 = vrcp.f32 %v6425_v39  ;;  %v6606_v57 = vand.u32 2147483648, %v6425_v39  ;;  %v6604_v33 = vand.u32 2147483647, %v6425_v39  ;;  %vm6600_vm7 = vweird.f32 %v6425_v39 }
 0x540   : > { %v6310_v6 = vadd.f32 %v6288_v46, %v6176_v37  ;;  %v6583_v43 = vmul.f32 %v7704_v2, %v6582_v29  ;;  %6695 = vst.msk [vmem:[%s7839_s10 + $0x48] sm:$0xff] %vm416_vm2, %v6679_v13 }
 0x541   : > { %v6607_v10 = vor.u32 1.1754944e-38, %v6606_v57  ;;  %vm6605_vm10 = vcmp.eq.f32.partialorder %v6604_v33, 8.507059e+37 }
 0x542   : > { %6326 = vst.msk [vmem:[%s7839_s10 + $0x60] sm:$0xff] %vm416_vm2, %v6310_v6  ;;  %v6584_v62 = vadd.f32 %v7704_v2, %v6583_v43 }
 0x544   : > { %v6588_v5 = vsel %vm6587_vm0, %v7704_v2, %v6584_v62 }
 0x545   : > { %v6593_v26 = vsel %vm6590_vm1, %v6592_v12, %v6588_v5  ;;  %v7708_v52 = vpop.eup %7707 }
 0x546   : > { %v6680_v40 = vmul.f32 %v6593_v26, %v11151_v3  ;;  %v6596_v58 = vmul.f32 %v7708_v52, %v6425_v39  ;;  %vm6601_vm3 = vweird.f32 %v7708_v52 }
 0x547   : > { %v6290_v35 = vpop.f32.mrf.mxu1  ;;  %vm6602_vm4 = vmor %vm6600_vm7, %vm6601_vm3 }
 0x548   : > { %v6311_v16 = vadd.f32 %v6290_v35, %v6177_v48  ;;  %6696 = vst.msk [vmem:[%s7839_s10 + $0x50] sm:$0xff] %vm416_vm2, %v6680_v40  ;;  %v6597_v14 = vsub.f32 1.0, %v6596_v58 }
 0x549   : > { %v6342_v19 = vld [vmem:[%s7839_s10 + $0x60] sm:$0xff] }
 0x54a   : > { %v6362_v47 = vadd.f32 %v10913_v32, %v6342_v19  ;;  %6327 = vst.msk [vmem:[%s7839_s10 + $0x68] sm:$0xff] %vm416_vm2, %v6311_v16  ;;  %v6598_v61 = vmul.f32 %v7708_v52, %v6597_v14 }
 0x54c   : > { %v6984_v44 = vmul.f32 -1.442695, %v6362_v47  ;;  %v6599_v7 = vadd.f32 %v7708_v52, %v6598_v61 }
 0x54e   : > { %7709 = vpow2.f32 %v6984_v44  ;;  %v6603_v36 = vsel %vm6602_vm4, %v7708_v52, %v6599_v7 }
 0x54f   : > { %v6608_v63 = vsel %vm6605_vm10, %v6607_v10, %v6603_v36 }
 0x550   : > { %v6681_v23 = vmul.f32 %v6608_v63, %v11171_v38 }
 0x551   : > { %v6343_v0 = vld [vmem:[%s7839_s10 + $0x68] sm:$0xff] }
 0x552   : > { %v6363_v54 = vadd.f32 %v10913_v32, %v6343_v0  ;;  %6697 = vst.msk [vmem:[%s7839_s10 + $0x58] sm:$0xff] %vm416_vm2, %v6681_v23 }
 0x554   : > { %v7710_v53 = vpop.eup %7709  ;;  %v6985_v45 = vmul.f32 -1.442695, %v6363_v54 }
 0x555   : > { %v6426_v3 = vadd.f32 1.0, %v7710_v53 }
 0x556   : > { %7711 = vpow2.f32 %v6985_v45 }
 0x557   : > { %7713 = vrcp.f32 %v6426_v3  ;;  %v6621_v31 = vand.u32 2147483648, %v6426_v3  ;;  %v6619_v15 = vand.u32 2147483647, %v6426_v3  ;;  %vm6615_vm6 = vweird.f32 %v6426_v3 }
 0x559   : > { %v6622_v24 = vor.u32 1.1754944e-38, %v6621_v31  ;;  %vm6620_vm9 = vcmp.eq.f32.partialorder %v6619_v15, 8.507059e+37 }
 0x55c   : > { %v7712_v8 = vpop.eup %7711 }
 0x55d   : > { %v7714_v56 = vpop.eup %7713  ;;  %v6427_v32 = vadd.f32 1.0, %v7712_v8 }
 0x55e   : > { %v6611_v50 = vmul.f32 %v7714_v56, %v6426_v3  ;;  %vm6616_vm5 = vweird.f32 %v7714_v56 }
 0x55f   : > { %7715 = vrcp.f32 %v6427_v32  ;;  %vm6617_vm8 = vmor %vm6615_vm6, %vm6616_vm5  ;;  %v6636_v46 = vand.u32 2147483648, %v6427_v32  ;;  %v6634_v6 = vand.u32 2147483647, %v6427_v32  ;;  %vm6630_vm12 = vweird.f32 %v6427_v32 }
 0x560   : > { %v6612_v25 = vsub.f32 1.0, %v6611_v50 }
 0x561   : > { %v6293_v21 = vpop.f32.mrf.mxu1  ;;  %v6637_v42 = vor.u32 1.1754944e-38, %v6636_v46  ;;  %vm6635_vm14 = vcmp.eq.f32.partialorder %v6634_v6, 8.507059e+37 }
 0x562   : > { %v6613_v27 = vmul.f32 %v7714_v56, %v6612_v25  ;;  %v6312_v60 = vadd.f32 %v6293_v21, %v6178_v18 }
 0x564   : > { %v6614_v1 = vadd.f32 %v7714_v56, %v6613_v27  ;;  %6328 = vst.msk [vmem:[%s7839_s10 + $0x70] sm:$0xff] %vm416_vm2, %v6312_v60 }
 0x565   : > { %v7716_v38 = vpop.eup %7715 }
 0x566   : > { %v6618_v55 = vsel %vm6617_vm8, %v7714_v56, %v6614_v1  ;;  %v6626_v9 = vmul.f32 %v7716_v38, %v6427_v32  ;;  %vm6631_vm11 = vweird.f32 %v7716_v38 }
 0x567   : > { %v6623_v20 = vsel %vm6620_vm9, %v6622_v24, %v6618_v55  ;;  %vm6632_vm13 = vmor %vm6630_vm12, %vm6631_vm11 }
 0x568   : > { %v6682_v37 = vmul.f32 %v6623_v20, %v6362_v47  ;;  %v6627_v30 = vsub.f32 1.0, %v6626_v9 }
 0x569   : > { %v6295_v51 = vpop.f32.mrf.mxu1 }
 0x56a   : > { %6698 = vst.msk [vmem:[%s7839_s10 + $0x60] sm:$0xff] %vm416_vm2, %v6682_v37  ;;  %v6628_v17 = vmul.f32 %v7716_v38, %v6627_v30  ;;  %v6313_v34 = vadd.f32 %v6295_v51, %v6179_v11 }
 0x56b   : > { %v6344_v49 = vld [vmem:[%s7839_s10 + $0x70] sm:$0xff] }
 0x56c   : > { %v6629_v2 = vadd.f32 %v7716_v38, %v6628_v17  ;;  %v6364_v29 = vadd.f32 %v7726_v4, %v6344_v49  ;;  %6329 = vst.msk [vmem:[%s7839_s10 + $0x78] sm:$0xff] %vm416_vm2, %v6313_v34 }
 0x56e   : > { %v6633_v22 = vsel %vm6632_vm13, %v7716_v38, %v6629_v2  ;;  %v6986_v59 = vmul.f32 -1.442695, %v6364_v29 }
 0x56f   : > { %v6638_v39 = vsel %vm6635_vm14, %v6637_v42, %v6633_v22 }
 0x570   : > { %v6683_v41 = vmul.f32 %v6638_v39, %v6363_v54  ;;  %7717 = vpow2.f32 %v6986_v59 }
 0x572   : > { %6699 = vst.msk [vmem:[%s7839_s10 + $0x68] sm:$0xff] %vm416_vm2, %v6683_v41 }
 0x573   : > { %v6345_v28 = vld [vmem:[%s7839_s10 + $0x78] sm:$0xff] }
 0x574   : > { %v6365_v13 = vadd.f32 %v7726_v4, %v6345_v28 }
 0x576   : > { %v7718_v43 = vpop.eup %7717  ;;  %v6987_v48 = vmul.f32 -1.442695, %v6365_v13 }
 0x577   : > { %v6428_v35 = vadd.f32 1.0, %v7718_v43 }
 0x578   : > { %7719 = vpow2.f32 %v6987_v48 }
 0x579   : > { %7721 = vrcp.f32 %v6428_v35  ;;  %v6651_v5 = vand.u32 2147483648, %v6428_v35  ;;  %v6649_v44 = vand.u32 2147483647, %v6428_v35  ;;  %vm6645_vm0 = vweird.f32 %v6428_v35 }
 0x57b   : > { %v6652_v58 = vor.u32 1.1754944e-38, %v6651_v5  ;;  %vm6650_vm3 = vcmp.eq.f32.partialorder %v6649_v44, 8.507059e+37 }
 0x57e   : > { %v7720_v16 = vpop.eup %7719 }
 0x57f   : > { %v7722_v62 = vpop.eup %7721  ;;  %v6429_v19 = vadd.f32 1.0, %v7720_v16 }
 0x580   : > { %v6641_v12 = vmul.f32 %v7722_v62, %v6428_v35  ;;  %vm6646_vm15 = vweird.f32 %v7722_v62 }
 0x581   : > { %7723 = vrcp.f32 %v6429_v19  ;;  %vm6647_vm1 = vmor %vm6645_vm0, %vm6646_vm15  ;;  %v6666_v54 = vand.u32 2147483648, %v6429_v19  ;;  %v6664_v7 = vand.u32 2147483647, %v6429_v19  ;;  %vm6660_vm4 = vweird.f32 %v6429_v19 }
 0x582   : > { %v6642_v47 = vsub.f32 1.0, %v6641_v12 }
 0x583   : > { %v6667_v10 = vor.u32 1.1754944e-38, %v6666_v54  ;;  %vm6665_vm5 = vcmp.eq.f32.partialorder %v6664_v7, 8.507059e+37 }
 0x584   : > { %v6643_v26 = vmul.f32 %v7722_v62, %v6642_v47 }
 0x586   : > { %v6644_v52 = vadd.f32 %v7722_v62, %v6643_v26 }
 0x587   : > { %v7724_v40 = vpop.eup %7723 }
 0x588   : > { %v6648_v14 = vsel %vm6647_vm1, %v7722_v62, %v6644_v52  ;;  %v6656_v57 = vmul.f32 %v7724_v40, %v6429_v19  ;;  %vm6661_vm7 = vweird.f32 %v7724_v40 }
 0x589   : > { %v6653_v0 = vsel %vm6650_vm3, %v6652_v58, %v6648_v14  ;;  %vm6662_vm10 = vmor %vm6660_vm4, %vm6661_vm7 }
 0x58a   : > { %v6684_v61 = vmul.f32 %v6653_v0, %v6364_v29  ;;  %v6657_v33 = vsub.f32 1.0, %v6656_v57 }
 0x58c   : > { %6700 = vst.msk [vmem:[%s7839_s10 + $0x70] sm:$0xff] %vm416_vm2, %v6684_v61  ;;  %v6658_v53 = vmul.f32 %v7724_v40, %v6657_v33 }
 0x58e   : > { %v6659_v45 = vadd.f32 %v7724_v40, %v6658_v53 }
 0x590   : > { %v6663_v3 = vsel %vm6662_vm10, %v7724_v40, %v6659_v45 }
 0x591   : > { %v6668_v36 = vsel %vm6665_vm5, %v6667_v10, %v6663_v3 }
 0x592   : > { %v6685_v63 = vmul.f32 %v6668_v36, %v6365_v13 }
 0x594   : > { %6701 = vst.msk [vmem:[%s7839_s10 + $0x78] sm:$0xff] %vm416_vm2, %v6685_v63 }
 0x595 PF: > { %s15_s22 = sadd.s32 1, %s7767_s22   ;;  %s11648_s18 = smov %s7759_s20 }
 0x596   : > { %p12_p9 = scmp.ge.s32.totalorder %s15_s22, 6   ;;  %s11649_s19 = smov %s7763_s21 }
 0x597   : > { %s11650_s20 = smov %s11653_s23  ;;  %s11651_s21 = smov %s11657_s24 }
 0x598   :  { %14 = sbr.rel (!%p12_p9) target bundleno = 3 (0x3), region = 107 }
 0x59d   :  { %6732 = vsyncmov [#allocation4] }
 0x5a0   :  { %s6733_s10 = vpop.sfrf %6732 }
 0x5a1   :  { %p6990_p10 = scmp.ne.s32.totalorder %s6733_s10, 0 }
 0x5a3   :  { %6737 = shalt.err (%p6990_p10)  }

</bundles_post_ra>
